<compile_context>
chip_gen: v7x
topology: tpu7x:2x2x1
jax: 0.10.0
libtpu: 0.0.40
codegen_flags: <defaults>
</compile_context>

<pallas_src>
import functools

import jax
import jax.numpy as jnp
from jax.experimental import pallas as pl
from jax.experimental.pallas import tpu as pltpu

EPS = 1e-6  # LayerNorm epsilon from the module


def _round_up(x, m):
    return ((x + m - 1) // m) * m


# ---------------- fused Pallas kernel: in-VMEM im2col + matmul + bias + LN + ELU ----


def _conv3x3_ln_elu_kernel(a_ref, h_ref, w_ref, p_ref, o_ref, *, wp):
    """One (TH*WP)-pixel row block of: 3x3 conv -> channel LN -> ELU."""
    rows = a_ref.shape[1]                                     # TH * WP (static)
    # Body rows + 4-row halo below -> slab of (rows + 4*wp, C) bf16.
    slab = jnp.concatenate([a_ref[0], h_ref[0]], axis=0)
    # In-VMEM im2col: 9 shifted views of the row-major flattened slab.
    # Output pixel p (flat) with tap (dy, dx) reads slab row p + dy*wp + dx.
    taps = [slab[dy * wp + dx: dy * wp + dx + rows, :]
            for dy in range(3) for dx in range(3)]
    a = jnp.concatenate(taps, axis=1)                         # (rows, 9*C) bf16
    # bf16 x bf16 -> f32 accumulation on the MXU.
    t = jnp.dot(a, w_ref[...], preferred_element_type=jnp.float32)
    p = p_ref[...]                                            # (3, Co): bias/gamma/beta
    t = t + p[0:1, :]                                         # conv bias
    co = t.shape[-1]
    mean = jnp.mean(t, axis=-1, keepdims=True)                # per-pixel channel stats
    cen = t - mean
    # unbiased std (divide by C-1) to match torch.std() used by the module
    var = jnp.sum(cen * cen, axis=-1, keepdims=True) * (1.0 / (co - 1))
    inv = pl.reciprocal(jnp.sqrt(var) + EPS, approx=True)     # EUP, off the VALU path
    y = p[1:2, :] * (cen * inv) + p[2:3, :]
    # ELU(alpha=1). exp(min(y,0)) keeps the discarded branch overflow-free.
    o_ref[0] = jnp.where(y > 0, y, jnp.exp(jnp.minimum(y, 0.0)) - 1.0).astype(o_ref.dtype)


def conv3x3_ln_elu(x_nhwc, w, p, *, out_dtype=jnp.float32, target_rows=2048):
    """Fused 3x3 'same' conv + per-pixel channel LayerNorm + ELU.

    x_nhwc: (N, H, W, C);  w: (9*C, Co) tap-major (ky,kx,ci);  p: (3, Co) =
    [bias; gamma; beta].  Returns (N, H, W, Co) in out_dtype.
    """
    N, H, W, C = x_nhwc.shape
    K, Co = w.shape
    assert K == 9 * C, (K, C)

    WP = _round_up(W + 2, 8)                 # padded width: conv halo + 8-divisible
    th = max(8, ((target_rows // WP) // 8) * 8)
    th = min(th, _round_up(H, 8))            # image rows per grid step (mult of 8)
    hp = _round_up(H, th)
    nb = hp // th
    rows = th * WP                           # output pixels per step (incl. junk cols)
    halo = 4 * WP                            # 4 extra image rows below the body block

    # Zero-pad once (1 row top, hp-H+3 rows bottom, 1 col left, WP-W-1 cols right)
    # and flatten (H, W) -> rows.  bf16 before padding (review item 2).
    xp = jnp.pad(x_nhwc.astype(jnp.bfloat16),
                 ((0, 0), (1, hp - H + 3), (1, WP - W - 1), (0, 0)))
    xp = xp.reshape(N, (hp + 4) * WP, C)

    kernel = functools.partial(_conv3x3_ln_elu_kernel, wp=WP)
    out = pl.pallas_call(
        kernel,
        out_shape=jax.ShapeDtypeStruct((N, hp * WP, Co), out_dtype),
        grid_spec=pltpu.PrefetchScalarGridSpec(
            num_scalar_prefetch=0,
            grid=(N, nb),
            in_specs=[
                # body rows of this tile
                pl.BlockSpec((1, rows, C), lambda n, j: (n, j, 0)),
                # 4-row halo just below the body (same array, second window)
                pl.BlockSpec((1, halo, C), lambda n, j: (n, (j + 1) * (th // 4), 0)),
                # weights + merged (bias, gamma, beta): VMEM-resident
                pl.BlockSpec((K, Co), lambda n, j: (0, 0)),
                pl.BlockSpec((3, Co), lambda n, j: (0, 0)),
            ],
            out_specs=pl.BlockSpec((1, rows, Co), lambda n, j: (n, j, 0)),
        ),
        compiler_params=pltpu.CompilerParams(
            dimension_semantics=("parallel", "parallel")),
    )(xp, xp, w.astype(jnp.bfloat16), p.astype(jnp.float32))

    # Undo the width/height padding (free reshape + slice of junk columns/rows).
    return out.reshape(N, hp, WP, Co)[:, :H, :W, :]


# ------------- plain-JAX mirror of the fused kernel (verification) -------------


def ref_conv3x3_ln_elu(x_nhwc, w, p, *, out_dtype=jnp.float32):
    N, H, W, C = x_nhwc.shape
    Co = w.shape[1]
    xb = jnp.pad(x_nhwc.astype(jnp.bfloat16), ((0, 0), (1, 1), (1, 1), (0, 0)))
    taps = [xb[:, ky:ky + H, kx:kx + W, :] for ky in range(3) for kx in range(3)]
    a = jnp.concatenate(taps, axis=-1).reshape(N * H * W, 9 * C)
    t = jnp.dot(a, w.astype(jnp.bfloat16), preferred_element_type=jnp.float32)
    t = t + p[0:1].astype(jnp.float32)
    mean = jnp.mean(t, axis=-1, keepdims=True)
    cen = t - mean
    std = jnp.sqrt(jnp.sum(cen * cen, axis=-1, keepdims=True) / (Co - 1))
    y = p[1:2] * cen / (std + EPS) + p[2:3]
    y = jnp.where(y > 0, y, jnp.exp(jnp.minimum(y, 0.0)) - 1.0)
    return y.reshape(N, H, W, Co).astype(out_dtype)


# ---------------- module forward (glue in plain JAX) ----------------


def expansive_path_forward(x_nchw, params, stage_fn):
    """conv3x3 -> LN(channel) -> ELU -> conv3x3 -> LN(channel) -> ELU."""
    x = jnp.transpose(x_nchw, (0, 2, 3, 1)).astype(jnp.bfloat16)   # NCHW -> NHWC, bf16
    h1 = stage_fn(x, params["w1"], params["p1"], out_dtype=jnp.bfloat16)
    h2 = stage_fn(h1, params["w2"], params["p2"], out_dtype=jnp.float32)
    return jnp.transpose(h2, (0, 3, 1, 2))                          # back to NCHW


# ---------------- deterministic parameter init (PyTorch-like) ----------------


def _conv_params(key, c_in, c_out):
    kw, kb = jax.random.split(key)
    bound = float(9 * c_in) ** -0.5                # kaiming_uniform(a=sqrt(5)) bound
    w_oihw = jax.random.uniform(kw, (c_out, c_in, 3, 3), jnp.float32, -bound, bound)
    b = jax.random.uniform(kb, (c_out,), jnp.float32, -bound, bound)
    # OIHW -> (ky, kx, ci, co) -> rows (ky*3+kx)*c_in + ci : matches the tap order.
    w_k = jnp.transpose(w_oihw, (2, 3, 1, 0)).reshape(9 * c_in, c_out)
    return w_k.astype(jnp.bfloat16), b


def init_params(key):
    k1, k2 = jax.random.split(key)
    w1, b1 = _conv_params(k1, 64, 32)
    w2, b2 = _conv_params(k2, 32, 16)
    p1 = jnp.stack([b1, jnp.ones((32,), jnp.float32), jnp.zeros((32,), jnp.float32)])
    p2 = jnp.stack([b2, jnp.ones((16,), jnp.float32), jnp.zeros((16,), jnp.float32)])
    return {"w1": w1, "p1": p1, "w2": w2, "p2": p2}


if __name__ == "__main__":
    # Module has fixed channels 64 -> 32 -> 16; small batch/spatial for the demo.
    N, H, W = 2, 16, 16
    C_IN, C_OUT = 64, 16

    key = jax.random.PRNGKey(0)
    kx, kp = jax.random.split(key)
    x = jax.random.normal(kx, (N, C_IN, H, W), jnp.float32)   # NCHW like PyTorch
    params = init_params(kp)

    fwd = jax.jit(functools.partial(expansive_path_forward, stage_fn=conv3x3_ln_elu))
    out = jax.block_until_ready(fwd(x, params))

    ref = expansive_path_forward(x, params, stage_fn=ref_conv3x3_ln_elu)
    assert out.shape == (N, C_OUT, H, W), out.shape
    assert bool(jnp.all(jnp.isfinite(out))), "non-finite output"
    max_err = float(jnp.max(jnp.abs(out - ref)))
    assert bool(jnp.allclose(out, ref, rtol=2e-2, atol=2e-2)), max_err

    print("KERNEL_OK")
</pallas_src>

<mosaic_0001>
module attributes {stable_mosaic.version = 11 : i64} {
  func.func @_conv3x3_ln_elu_kernel(%arg0: i32, %arg1: i32, %arg2: memref<1x384x32xbf16, #tpu.memory_space<vmem>>, %arg3: memref<1x96x32xbf16, #tpu.memory_space<vmem>>, %arg4: memref<288x16xbf16, #tpu.memory_space<vmem>>, %arg5: memref<3x16xf32, #tpu.memory_space<vmem>>, %arg6: memref<1x384x16xf32, #tpu.memory_space<vmem>>) attributes {dimension_semantics = [#tpu.dimension_semantics<parallel>, #tpu.dimension_semantics<parallel>], iteration_bounds = array<i64: 2, 1>, scalar_prefetch = 0 : i64, scratch_operands = 0 : i64, tpu.core_type = #tpu.core_type<tc>, window_params = [{transform_indices = @transform_0, window_bounds = array<i64: 1, 384, 32>}, {transform_indices = @transform_1, window_bounds = array<i64: 1, 96, 32>}, {pipeline_mode = #tpu.pipeline_mode<synchronous>, transform_indices = @transform_2, window_bounds = array<i64: 288, 16>}, {pipeline_mode = #tpu.pipeline_mode<synchronous>, transform_indices = @transform_3, window_bounds = array<i64: 3, 16>}, {transform_indices = @transform_4, window_bounds = array<i64: 1, 384, 16>}]} {
    %c0 = arith.constant 0 : index
    %c0_0 = arith.constant 0 : index
    %c0_1 = arith.constant 0 : index
    %0 = vector.load %arg2[%c0, %c0_0, %c0_1] : memref<1x384x32xbf16, #tpu.memory_space<vmem>>, vector<1x384x32xbf16>
    %1 = vector.shape_cast %0 : vector<1x384x32xbf16> to vector<384x32xbf16>
    %c0_2 = arith.constant 0 : index
    %c0_3 = arith.constant 0 : index
    %c0_4 = arith.constant 0 : index
    %2 = vector.load %arg3[%c0_2, %c0_3, %c0_4] : memref<1x96x32xbf16, #tpu.memory_space<vmem>>, vector<1x96x32xbf16>
    %3 = vector.shape_cast %2 : vector<1x96x32xbf16> to vector<96x32xbf16>
    %4 = tpu.concatenate %1, %3 in 0 : vector<384x32xbf16>, vector<96x32xbf16> -> vector<480x32xbf16>
    %5 = vector.extract_strided_slice %4 {offsets = [0, 0], sizes = [384, 32], strides = [1, 1]} : vector<480x32xbf16> to vector<384x32xbf16>
    %6 = vector.extract_strided_slice %4 {offsets = [1, 0], sizes = [384, 32], strides = [1, 1]} : vector<480x32xbf16> to vector<384x32xbf16>
    %7 = vector.extract_strided_slice %4 {offsets = [2, 0], sizes = [384, 32], strides = [1, 1]} : vector<480x32xbf16> to vector<384x32xbf16>
    %8 = vector.extract_strided_slice %4 {offsets = [24, 0], sizes = [384, 32], strides = [1, 1]} : vector<480x32xbf16> to vector<384x32xbf16>
    %9 = vector.extract_strided_slice %4 {offsets = [25, 0], sizes = [384, 32], strides = [1, 1]} : vector<480x32xbf16> to vector<384x32xbf16>
    %10 = vector.extract_strided_slice %4 {offsets = [26, 0], sizes = [384, 32], strides = [1, 1]} : vector<480x32xbf16> to vector<384x32xbf16>
    %11 = vector.extract_strided_slice %4 {offsets = [48, 0], sizes = [384, 32], strides = [1, 1]} : vector<480x32xbf16> to vector<384x32xbf16>
    %12 = vector.extract_strided_slice %4 {offsets = [49, 0], sizes = [384, 32], strides = [1, 1]} : vector<480x32xbf16> to vector<384x32xbf16>
    %13 = vector.extract_strided_slice %4 {offsets = [50, 0], sizes = [384, 32], strides = [1, 1]} : vector<480x32xbf16> to vector<384x32xbf16>
    %14 = tpu.concatenate %5, %6, %7, %8, %9, %10, %11, %12, %13 in 1 : vector<384x32xbf16>, vector<384x32xbf16>, vector<384x32xbf16>, vector<384x32xbf16>, vector<384x32xbf16>, vector<384x32xbf16>, vector<384x32xbf16>, vector<384x32xbf16>, vector<384x32xbf16> -> vector<384x288xbf16>
    %c0_5 = arith.constant 0 : index
    %c0_6 = arith.constant 0 : index
    %15 = vector.load %arg4[%c0_5, %c0_6] : memref<288x16xbf16, #tpu.memory_space<vmem>>, vector<288x16xbf16>
    %cst = arith.constant dense<0.000000e+00> : vector<384x16xf32>
    %16 = tpu.matmul %14, %15, %cst {dimension_numbers = #tpu.dot_dimension_numbers<[1], [0], [0], [1], [0, 0, 1, 1], [], []>} : vector<384x288xbf16>, vector<288x16xbf16>, vector<384x16xf32> -> vector<384x16xf32>
    %c0_7 = arith.constant 0 : index
    %c0_8 = arith.constant 0 : index
    %17 = vector.load %arg5[%c0_7, %c0_8] : memref<3x16xf32, #tpu.memory_space<vmem>>, vector<3x16xf32>
    %18 = vector.extract_strided_slice %17 {offsets = [0, 0], sizes = [1, 16], strides = [1, 1]} : vector<3x16xf32> to vector<1x16xf32>
    %19 = vector.broadcast %18 : vector<1x16xf32> to vector<384x16xf32>
    %20 = arith.addf %16, %19 : vector<384x16xf32>
    %cst_9 = arith.constant dense<0.000000e+00> : vector<384xf32>
    %21 = vector.multi_reduction <add>, %20, %cst_9 [1] : vector<384x16xf32> to vector<384xf32>
    %22 = vector.shape_cast %21 : vector<384xf32> to vector<384x1xf32>
    %cst_10 = arith.constant 1.600000e+01 : f32
    %23 = vector.broadcast %cst_10 : f32 to vector<384x1xf32>
    %24 = arith.divf %22, %23 : vector<384x1xf32>
    %25 = vector.broadcast %24 : vector<384x1xf32> to vector<384x16xf32>
    %26 = arith.subf %20, %25 : vector<384x16xf32>
    %27 = arith.mulf %26, %26 : vector<384x16xf32>
    %cst_11 = arith.constant dense<0.000000e+00> : vector<384xf32>
    %28 = vector.multi_reduction <add>, %27, %cst_11 [1] : vector<384x16xf32> to vector<384xf32>
    %29 = vector.shape_cast %28 : vector<384xf32> to vector<384x1xf32>
    %cst_12 = arith.constant 0.0666666701 : f32
    %30 = vector.broadcast %cst_12 : f32 to vector<384x1xf32>
    %31 = arith.mulf %29, %30 : vector<384x1xf32>
    %32 = math.sqrt %31 : vector<384x1xf32>
    %cst_13 = arith.constant 9.99999997E-7 : f32
    %33 = vector.broadcast %cst_13 : f32 to vector<384x1xf32>
    %34 = arith.addf %32, %33 : vector<384x1xf32>
    %35 = tpu.reciprocal %34 {approx = true} : vector<384x1xf32> -> vector<384x1xf32>
    %36 = vector.extract_strided_slice %17 {offsets = [1, 0], sizes = [1, 16], strides = [1, 1]} : vector<3x16xf32> to vector<1x16xf32>
    %37 = vector.broadcast %35 : vector<384x1xf32> to vector<384x16xf32>
    %38 = arith.mulf %26, %37 : vector<384x16xf32>
    %39 = vector.broadcast %36 : vector<1x16xf32> to vector<384x16xf32>
    %40 = arith.mulf %39, %38 : vector<384x16xf32>
    %41 = vector.extract_strided_slice %17 {offsets = [2, 0], sizes = [1, 16], strides = [1, 1]} : vector<3x16xf32> to vector<1x16xf32>
    %42 = vector.broadcast %41 : vector<1x16xf32> to vector<384x16xf32>
    %43 = arith.addf %40, %42 : vector<384x16xf32>
    %cst_14 = arith.constant 0.000000e+00 : f32
    %44 = vector.broadcast %cst_14 : f32 to vector<384x16xf32>
    %45 = arith.cmpf ogt, %43, %44 : vector<384x16xf32>
    %cst_15 = arith.constant 0.000000e+00 : f32
    %46 = vector.broadcast %cst_15 : f32 to vector<384x16xf32>
    %47 = arith.minimumf %43, %46 : vector<384x16xf32>
    %48 = math.exp %47 : vector<384x16xf32>
    %cst_16 = arith.constant 1.000000e+00 : f32
    %49 = vector.broadcast %cst_16 : f32 to vector<384x16xf32>
    %50 = arith.subf %48, %49 : vector<384x16xf32>
    %51 = arith.select %45, %43, %50 : vector<384x16xi1>, vector<384x16xf32>
    %c0_17 = arith.constant 0 : index
    %c0_18 = arith.constant 0 : index
    %c0_19 = arith.constant 0 : index
    %52 = vector.load %arg6[%c0_17, %c0_18, %c0_19] : memref<1x384x16xf32, #tpu.memory_space<vmem>>, vector<1x384x16xf32>
    %53 = vector.shape_cast %52 : vector<1x384x16xf32> to vector<384x16xf32>
    %54 = vector.shape_cast %51 : vector<384x16xf32> to vector<1x384x16xf32>
    tpu.vector_store %arg6[%c0_17, %c0_18, %c0_19], %54 {strides = array<i32>} : memref<1x384x16xf32, #tpu.memory_space<vmem>>, vector<1x384x16xf32>,
    return
  }
  func.func @transform_0(%arg0: i32, %arg1: i32) -> (i32, i32, i32) {
    %c0_i32 = arith.constant 0 : i32
    %c0_i32_0 = arith.constant 0 : i32
    return %arg0, %arg1, %c0_i32 : i32, i32, i32
  }
  func.func @transform_1(%arg0: i32, %arg1: i32) -> (i32, i32, i32) {
    %c1_i32 = arith.constant 1 : i32
    %0 = arith.addi %arg1, %c1_i32 : i32
    %c4_i32 = arith.constant 4 : i32
    %1 = arith.muli %0, %c4_i32 : i32
    %c0_i32 = arith.constant 0 : i32
    %c0_i32_0 = arith.constant 0 : i32
    return %arg0, %1, %c0_i32 : i32, i32, i32
  }
  func.func @transform_2(%arg0: i32, %arg1: i32) -> (i32, i32) {
    %c0_i32 = arith.constant 0 : i32
    %c0_i32_0 = arith.constant 0 : i32
    %c0_i32_1 = arith.constant 0 : i32
    return %c0_i32, %c0_i32_0 : i32, i32
  }
  func.func @transform_3(%arg0: i32, %arg1: i32) -> (i32, i32) {
    %c0_i32 = arith.constant 0 : i32
    %c0_i32_0 = arith.constant 0 : i32
    %c0_i32_1 = arith.constant 0 : i32
    return %c0_i32, %c0_i32_0 : i32, i32
  }
  func.func @transform_4(%arg0: i32, %arg1: i32) -> (i32, i32, i32) {
    %c0_i32 = arith.constant 0 : i32
    %c0_i32_0 = arith.constant 0 : i32
    return %arg0, %arg1, %c0_i32 : i32, i32, i32
  }
}

module attributes {stable_mosaic.version = 11 : i64} {
  func.func @_conv3x3_ln_elu_kernel(%arg0: i32, %arg1: i32, %arg2: memref<1x384x64xbf16, #tpu.memory_space<vmem>>, %arg3: memref<1x96x64xbf16, #tpu.memory_space<vmem>>, %arg4: memref<576x32xbf16, #tpu.memory_space<vmem>>, %arg5: memref<3x32xf32, #tpu.memory_space<vmem>>, %arg6: memref<1x384x32xbf16, #tpu.memory_space<vmem>>) attributes {dimension_semantics = [#tpu.dimension_semantics<parallel>, #tpu.dimension_semantics<parallel>], iteration_bounds = array<i64: 2, 1>, scalar_prefetch = 0 : i64, scratch_operands = 0 : i64, tpu.core_type = #tpu.core_type<tc>, window_params = [{transform_indices = @transform_0, window_bounds = array<i64: 1, 384, 64>}, {transform_indices = @transform_1, window_bounds = array<i64: 1, 96, 64>}, {pipeline_mode = #tpu.pipeline_mode<synchronous>, transform_indices = @transform_2, window_bounds = array<i64: 576, 32>}, {pipeline_mode = #tpu.pipeline_mode<synchronous>, transform_indices = @transform_3, window_bounds = array<i64: 3, 32>}, {transform_indices = @transform_4, window_bounds = array<i64: 1, 384, 32>}]} {
    %c0 = arith.constant 0 : index
    %c0_0 = arith.constant 0 : index
    %c0_1 = arith.constant 0 : index
    %0 = vector.load %arg2[%c0, %c0_0, %c0_1] : memref<1x384x64xbf16, #tpu.memory_space<vmem>>, vector<1x384x64xbf16>
    %1 = vector.shape_cast %0 : vector<1x384x64xbf16> to vector<384x64xbf16>
    %c0_2 = arith.constant 0 : index
    %c0_3 = arith.constant 0 : index
    %c0_4 = arith.constant 0 : index
    %2 = vector.load %arg3[%c0_2, %c0_3, %c0_4] : memref<1x96x64xbf16, #tpu.memory_space<vmem>>, vector<1x96x64xbf16>
    %3 = vector.shape_cast %2 : vector<1x96x64xbf16> to vector<96x64xbf16>
    %4 = tpu.concatenate %1, %3 in 0 : vector<384x64xbf16>, vector<96x64xbf16> -> vector<480x64xbf16>
    %5 = vector.extract_strided_slice %4 {offsets = [0, 0], sizes = [384, 64], strides = [1, 1]} : vector<480x64xbf16> to vector<384x64xbf16>
    %6 = vector.extract_strided_slice %4 {offsets = [1, 0], sizes = [384, 64], strides = [1, 1]} : vector<480x64xbf16> to vector<384x64xbf16>
    %7 = vector.extract_strided_slice %4 {offsets = [2, 0], sizes = [384, 64], strides = [1, 1]} : vector<480x64xbf16> to vector<384x64xbf16>
    %8 = vector.extract_strided_slice %4 {offsets = [24, 0], sizes = [384, 64], strides = [1, 1]} : vector<480x64xbf16> to vector<384x64xbf16>
    %9 = vector.extract_strided_slice %4 {offsets = [25, 0], sizes = [384, 64], strides = [1, 1]} : vector<480x64xbf16> to vector<384x64xbf16>
    %10 = vector.extract_strided_slice %4 {offsets = [26, 0], sizes = [384, 64], strides = [1, 1]} : vector<480x64xbf16> to vector<384x64xbf16>
    %11 = vector.extract_strided_slice %4 {offsets = [48, 0], sizes = [384, 64], strides = [1, 1]} : vector<480x64xbf16> to vector<384x64xbf16>
    %12 = vector.extract_strided_slice %4 {offsets = [49, 0], sizes = [384, 64], strides = [1, 1]} : vector<480x64xbf16> to vector<384x64xbf16>
    %13 = vector.extract_strided_slice %4 {offsets = [50, 0], sizes = [384, 64], strides = [1, 1]} : vector<480x64xbf16> to vector<384x64xbf16>
    %14 = tpu.concatenate %5, %6, %7, %8, %9, %10, %11, %12, %13 in 1 : vector<384x64xbf16>, vector<384x64xbf16>, vector<384x64xbf16>, vector<384x64xbf16>, vector<384x64xbf16>, vector<384x64xbf16>, vector<384x64xbf16>, vector<384x64xbf16>, vector<384x64xbf16> -> vector<384x576xbf16>
    %c0_5 = arith.constant 0 : index
    %c0_6 = arith.constant 0 : index
    %15 = vector.load %arg4[%c0_5, %c0_6] : memref<576x32xbf16, #tpu.memory_space<vmem>>, vector<576x32xbf16>
    %cst = arith.constant dense<0.000000e+00> : vector<384x32xf32>
    %16 = tpu.matmul %14, %15, %cst {dimension_numbers = #tpu.dot_dimension_numbers<[1], [0], [0], [1], [0, 0, 1, 1], [], []>} : vector<384x576xbf16>, vector<576x32xbf16>, vector<384x32xf32> -> vector<384x32xf32>
    %c0_7 = arith.constant 0 : index
    %c0_8 = arith.constant 0 : index
    %17 = vector.load %arg5[%c0_7, %c0_8] : memref<3x32xf32, #tpu.memory_space<vmem>>, vector<3x32xf32>
    %18 = vector.extract_strided_slice %17 {offsets = [0, 0], sizes = [1, 32], strides = [1, 1]} : vector<3x32xf32> to vector<1x32xf32>
    %19 = vector.broadcast %18 : vector<1x32xf32> to vector<384x32xf32>
    %20 = arith.addf %16, %19 : vector<384x32xf32>
    %cst_9 = arith.constant dense<0.000000e+00> : vector<384xf32>
    %21 = vector.multi_reduction <add>, %20, %cst_9 [1] : vector<384x32xf32> to vector<384xf32>
    %22 = vector.shape_cast %21 : vector<384xf32> to vector<384x1xf32>
    %cst_10 = arith.constant 3.200000e+01 : f32
    %23 = vector.broadcast %cst_10 : f32 to vector<384x1xf32>
    %24 = arith.divf %22, %23 : vector<384x1xf32>
    %25 = vector.broadcast %24 : vector<384x1xf32> to vector<384x32xf32>
    %26 = arith.subf %20, %25 : vector<384x32xf32>
    %27 = arith.mulf %26, %26 : vector<384x32xf32>
    %cst_11 = arith.constant dense<0.000000e+00> : vector<384xf32>
    %28 = vector.multi_reduction <add>, %27, %cst_11 [1] : vector<384x32xf32> to vector<384xf32>
    %29 = vector.shape_cast %28 : vector<384xf32> to vector<384x1xf32>
    %cst_12 = arith.constant 0.0322580636 : f32
    %30 = vector.broadcast %cst_12 : f32 to vector<384x1xf32>
    %31 = arith.mulf %29, %30 : vector<384x1xf32>
    %32 = math.sqrt %31 : vector<384x1xf32>
    %cst_13 = arith.constant 9.99999997E-7 : f32
    %33 = vector.broadcast %cst_13 : f32 to vector<384x1xf32>
    %34 = arith.addf %32, %33 : vector<384x1xf32>
    %35 = tpu.reciprocal %34 {approx = true} : vector<384x1xf32> -> vector<384x1xf32>
    %36 = vector.extract_strided_slice %17 {offsets = [1, 0], sizes = [1, 32], strides = [1, 1]} : vector<3x32xf32> to vector<1x32xf32>
    %37 = vector.broadcast %35 : vector<384x1xf32> to vector<384x32xf32>
    %38 = arith.mulf %26, %37 : vector<384x32xf32>
    %39 = vector.broadcast %36 : vector<1x32xf32> to vector<384x32xf32>
    %40 = arith.mulf %39, %38 : vector<384x32xf32>
    %41 = vector.extract_strided_slice %17 {offsets = [2, 0], sizes = [1, 32], strides = [1, 1]} : vector<3x32xf32> to vector<1x32xf32>
    %42 = vector.broadcast %41 : vector<1x32xf32> to vector<384x32xf32>
    %43 = arith.addf %40, %42 : vector<384x32xf32>
    %cst_14 = arith.constant 0.000000e+00 : f32
    %44 = vector.broadcast %cst_14 : f32 to vector<384x32xf32>
    %45 = arith.cmpf ogt, %43, %44 : vector<384x32xf32>
    %cst_15 = arith.constant 0.000000e+00 : f32
    %46 = vector.broadcast %cst_15 : f32 to vector<384x32xf32>
    %47 = arith.minimumf %43, %46 : vector<384x32xf32>
    %48 = math.exp %47 : vector<384x32xf32>
    %cst_16 = arith.constant 1.000000e+00 : f32
    %49 = vector.broadcast %cst_16 : f32 to vector<384x32xf32>
    %50 = arith.subf %48, %49 : vector<384x32xf32>
    %51 = arith.select %45, %43, %50 : vector<384x32xi1>, vector<384x32xf32>
    %52 = arith.truncf %51 : vector<384x32xf32> to vector<384x32xbf16>
    %c0_17 = arith.constant 0 : index
    %c0_18 = arith.constant 0 : index
    %c0_19 = arith.constant 0 : index
    %53 = vector.load %arg6[%c0_17, %c0_18, %c0_19] : memref<1x384x32xbf16, #tpu.memory_space<vmem>>, vector<1x384x32xbf16>
    %54 = vector.shape_cast %53 : vector<1x384x32xbf16> to vector<384x32xbf16>
    %55 = vector.shape_cast %52 : vector<384x32xbf16> to vector<1x384x32xbf16>
    tpu.vector_store %arg6[%c0_17, %c0_18, %c0_19], %55 {strides = array<i32>} : memref<1x384x32xbf16, #tpu.memory_space<vmem>>, vector<1x384x32xbf16>,
    return
  }
  func.func @transform_0(%arg0: i32, %arg1: i32) -> (i32, i32, i32) {
    %c0_i32 = arith.constant 0 : i32
    %c0_i32_0 = arith.constant 0 : i32
    return %arg0, %arg1, %c0_i32 : i32, i32, i32
  }
  func.func @transform_1(%arg0: i32, %arg1: i32) -> (i32, i32, i32) {
    %c1_i32 = arith.constant 1 : i32
    %0 = arith.addi %arg1, %c1_i32 : i32
    %c4_i32 = arith.constant 4 : i32
    %1 = arith.muli %0, %c4_i32 : i32
    %c0_i32 = arith.constant 0 : i32
    %c0_i32_0 = arith.constant 0 : i32
    return %arg0, %1, %c0_i32 : i32, i32, i32
  }
  func.func @transform_2(%arg0: i32, %arg1: i32) -> (i32, i32) {
    %c0_i32 = arith.constant 0 : i32
    %c0_i32_0 = arith.constant 0 : i32
    %c0_i32_1 = arith.constant 0 : i32
    return %c0_i32, %c0_i32_0 : i32, i32
  }
  func.func @transform_3(%arg0: i32, %arg1: i32) -> (i32, i32) {
    %c0_i32 = arith.constant 0 : i32
    %c0_i32_0 = arith.constant 0 : i32
    %c0_i32_1 = arith.constant 0 : i32
    return %c0_i32, %c0_i32_0 : i32, i32
  }
  func.func @transform_4(%arg0: i32, %arg1: i32) -> (i32, i32, i32) {
    %c0_i32 = arith.constant 0 : i32
    %c0_i32_0 = arith.constant 0 : i32
    return %arg0, %arg1, %c0_i32 : i32, i32, i32
  }
}

</mosaic_0001>

<bundles_post_ra>
// kernel: expansive_path_forward.3
= control target key start
LH: loop header
LB: loop body
LE: loop exit
PB: predicated region body
PF: predicated region fallthrough
CT: control target
= control target key end

     0   :  { %s4487_s15 = smov 0   ;;  %s4489_s16 = smov 0   ;;  %s7488_s0 = inlined_call_operand.vmem [shape: bf16[2,480,32], index: 0, kind: input, shape index: {}, may-alias: {0,1}]   ;;  %s7489_s1 = inlined_call_operand.vmem [shape: bf16[2,480,32], index: 1, kind: input, shape index: {}, may-alias: {0,1}]   ;;  %s7490_s2 = inlined_call_operand.vmem [shape: bf16[288,16], index: 2, kind: input, shape index: {}]   ;;  %s7491_s3 = inlined_call_operand.vmem [shape: f32[3,16], index: 3, kind: input, shape index: {}]   ;;  %s7492_s4 = inlined_call_operand.vmem [shape: f32[2,384,16], index: 4, kind: output, shape index: {}]  }
   0x1   :  { %s4491_s17 = smov 0  }
   0x2 LB: > { %s26_s18 = sadd.s32 1, %s4452_s16  ;;  %p3814_p0 = scmp.ge.s32.totalorder %s4456_s17, 1  ;;  %s4456_s17 = sphi %s4491_s17, %s14_s17   ;;  %s4452_s16 = sphi %s4489_s16, %s7575_s16   ;;  %s4448_s15 = sphi %s4487_s15, %s7574_s15  }
   0x3   : > { %p28_p1 = scmp.ge.s32.totalorder %s26_s18, 2  ;;  %p216_p2 = scmp.lt.s32.totalorder %s4456_s17, 3 }
   0x5   : > { %s7577_s18 = smov (%p28_p1, %s26_s18), 0  ;;  %p217_p3 = pnand %p3814_p0, %p216_p2 }
   0x7   : > { %220 = sbr.rel (%p217_p3) target bundleno = 1052 (0x41c), region = 36 }
   0xe   : > { %p270_p4 = scmp.lt.s32.totalorder %s4448_s15, 1  ;;  %v4458_v0 = vmov 0   ;;  %v4096_v1 = vld [vmem:[%s7490_s2] sm:$0xff]   ;;  %v4097_v2 = vld [vmem:[%s7490_s2 + $0x8] sm:$0xff]   ;;  %v4098_v3 = vld [vmem:[%s7490_s2 + $0x10] sm:$0xff]   ;;  %vm1052_vm0 = vcmask 1042432  }
   0xf   : > { %1853 = vmatprep.subr.bf16.mxu0 %v4458_v0  ;;  %4018 = vmatprep.subr.bf16.mxu1 %v4458_v0  ;;  %vm749_vm1 = vcmask 1046528   ;;  %s4459_s29 = smov 64   ;;  %vm847_vm2 = vcmask 1043456   ;;  %v4099_v9 = vld [vmem:[%s7490_s2 + $0x18] sm:$0xff]   ;;  %v4101_v19 = vld [vmem:[%s7490_s2 + $0x20] sm:$0xff]   ;;  %s4460_s8 = smov 32  }
  0x10   : > { %s7579_s15 = smov (!%p270_p4, %s4448_s15), 1  ;;  %1854 = vmatpush1.bf16.msra.mxu0 %v4096_v1  ;;  %4034 = vmatpush1.bf16.msra.mxu1 %v4096_v1  ;;  %vm504_vm3 = vsmask.f32 7424  ;;  %s4461_s13 = smov 96   ;;  %v4102_v61 = vld [vmem:[%s7490_s2 + $0x28] sm:$0xff]   ;;  %v4104_v63 = vld [vmem:[%s7490_s2 + $0x30] sm:$0xff]  }
  0x11   : > { %s4050_s21 = smul.u32 240, %s7579_s15  ;;  %1855 = vmatprep.subr.bf16.mxu0 %v4458_v0  ;;  %4019 = vmatprep.subr.bf16.mxu1 %v4458_v0  ;;  %vm945_vm4 = vsmask.f32 3328  ;;  %vm1269_vm5 = vcmask 261120   ;;  %vm1318_vm6 = vcmask 523264   ;;  %vm1367_vm7 = vcmask 785408  }
  0x12   : > { %vm2303_vm8 = vcmask 130048  }
  0x13   : > { %s4523_s26 = scalar_lea.vmem %s7488_s0, %s4050_s21  ;;  %s3939_s9 = sadd.s32 192, %s4050_s21 }
  0x14   : > { %v4529_v4 = vld [vmem:[%s4523_s26 + $0xa8] sm:$0xff]   ;;  %v4532_v5 = vld [vmem:[%s4523_s26 + $0x18] sm:$0xff]   ;;  %1856 = vmatpush1.bf16.msra.mxu0 %v4097_v2  ;;  %4035 = vmatpush1.bf16.msra.mxu1 %v4097_v2  ;;  %v4543_v7 = vld [vmem:[%s4523_s26 + $0xa0] sm:$0xff]   ;;  %s4644_s12 = scalar_lea.vmem %s7489_s1, %s3939_s9 }
  0x15   : > { %1186 = vrot.lane.b32.xlu0 %v4529_v4, %s4459_s29  ;;  %1857 = vmatprep.subr.bf16.mxu0 %v4458_v0  ;;  %v4540_v6 = vld [vmem:[%s4523_s26 + $0x98] sm:$0xff]   ;;  %v529_v8 = vshll.u32 %v4532_v5, 16  ;;  %v1090_v11 = vrot.slane %v4543_v7, 5  ;;  %v4553_v12 = vld [vmem:[%s4523_s26 + $0x8] sm:$0xff]   ;;  %v4556_v13 = vld [vmem:[%s4523_s26 + $0x10] sm:$0xff]   ;;  %v533_v25 = vshrl.u32 %v4532_v5, 16 }
  0x16   : > { %1150 = vrot.lane.b32.xlu1 %v4532_v5, %s4459_s29  ;;  %4020 = vmatprep.subr.bf16.mxu1 %v4458_v0  ;;  %v7497_v10 = vrot.slane %v4540_v6, 5  ;;  %v4559_v14 = vld [vmem:[%s4523_s26 + $0x90] sm:$0xff]   ;;  %v787_v15 = vrot.slane %v4540_v6, 1  ;;  %v1053_v17 = vrot.slane %v4553_v12, 5  ;;  %v1054_v18 = vrot.slane %v4556_v13, 5  ;;  %v4577_v21 = vld [vmem:[%s4523_s26] sm:$0xff]  }
  0x17   : > { %v7496_v20 = vrot.slane %v4559_v14, 1  ;;  %v751_v22 = vrot.slane %v4553_v12, 1  ;;  %v848_v23 = vrot.slane %v4553_v12, 4  ;;  %v4582_v24 = vld [vmem:[%s4523_s26 + $0x20] sm:$0xff]   ;;  %v849_v27 = vrot.slane %v4556_v13, 4  ;;  %v4620_v41 = vld [vmem:[%s4523_s26 + $0xb0] sm:$0xff]  }
  0x18   : > { %1858 = vmatpush1.bf16.msra.mxu0 %v4098_v3  ;;  %4036 = vmatpush1.bf16.msra.mxu1 %v4098_v3  ;;  %v1091_v16 = vsel %vm1052_vm0, %v7497_v10, %v1090_v11  ;;  %v1055_v26 = vsel %vm1052_vm0, %v1053_v17, %v1054_v18  ;;  %v513_v28 = vshll.u32 %v4553_v12, 16  ;;  %v750_v29 = vrot.slane %v4577_v21, 1  ;;  %v4105_v17 = vld [vmem:[%s7490_s2 + $0x38] sm:$0xff]  }
  0x19   : > { %1859 = vmatprep.subr.bf16.mxu0 %v4458_v0  ;;  %4021 = vmatprep.subr.bf16.mxu1 %v4458_v0  ;;  %v4594_v30 = vrot.slane %v529_v8, 1  ;;  %v4602_v31 = vsel %vm749_vm1, %v7496_v20, %v787_v15  ;;  %v506_v32 = vshrl.u32 %v4577_v21, 16  ;;  %v508_v33 = vshll.u32 %v4577_v21, 16 }
  0x1a   : > { %1138 = vrot.lane.b32.xlu1 %v1091_v16, %s4460_s8  ;;  %1102 = vrot.lane.b32.xlu0 %v1055_v26, %s4460_s8  ;;  %v752_v34 = vsel %vm749_vm1, %v750_v29, %v751_v22  ;;  %v515_v35 = vrot.slane %v513_v28, 1  ;;  %v537_v36 = vshll.u32 %v4582_v24, 16  ;;  %v7493_v37 = vshll.u32 %v4559_v14, 16  ;;  %v4716_v26 = vld [vmem:[%s4523_s26 + $0x28] sm:$0xff]  }
  0x1b   : > { %v510_v38 = vrot.slane %v508_v33, 1  ;;  %v7494_v39 = vshrl.u32 %v4559_v14, 16  ;;  %v657_v40 = vshll.u32 %v4540_v6, 16  ;;  %v850_v42 = vsel %vm847_vm2, %v848_v23, %v849_v27 }
  0x1c   : > { %1860 = vmatpush1.bf16.msra.mxu0 %v4099_v9  ;;  %4037 = vmatpush1.bf16.msra.mxu1 %v4099_v9  ;;  %v535_v43 = vor.u32 %v533_v25, %v4594_v30  ;;  %v4632_v44 = vrot.slane %v537_v36, 1  ;;  %v4636_v45 = vrot.slane %v7493_v37, 1  ;;  %v7495_v49 = vrot.slane %v4540_v6, 4 }
  0x1d   : > { %1861 = vmatprep.subr.bf16.mxu0 %v4458_v0  ;;  %4022 = vmatprep.subr.bf16.mxu1 %v4458_v0  ;;  %v511_v46 = vor.u32 %v510_v38, %v506_v32  ;;  %v659_v47 = vrot.slane %v657_v40, 1  ;;  %v673_v50 = vshll.u32 %v4529_v4, 16  ;;  %v885_v52 = vrot.slane %v4543_v7, 4 }
  0x1e   : > { %799 = vrot.lane.b32.xlu1 %v752_v34, %s4459_s29  ;;  %835 = vrot.lane.b32.xlu0 %v4602_v31, %s4459_s29  ;;  %v655_v48 = vor.u32 %v7494_v39, %v4636_v45  ;;  %v677_v53 = vshrl.u32 %v4529_v4, 16  ;;  %v681_v54 = vshll.u32 %v4620_v41, 16  ;;  %v4660_v55 = vsel %vm504_vm3, %v535_v43, %v4632_v44  ;;  %v4106_v34 = vld [vmem:[%s7490_s2 + $0x40] sm:$0xff]  }
  0x1f   : > { %v516_v51 = vsel %vm504_vm3, %v511_v46, %v515_v35  ;;  %v4664_v56 = vrot.slane %v673_v50, 1  ;;  %v517_v57 = vshrl.u32 %v4553_v12, 16  ;;  %v521_v58 = vshll.u32 %v4556_v13, 16 }
  0x20   : > { %1862 = vmatpush1.bf16.msra.mxu0 %v4101_v19  ;;  %4038 = vmatpush1.bf16.msra.mxu1 %v4101_v19  ;;  %v4669_v59 = vsel %vm504_vm3, %v655_v48, %v659_v47  ;;  %v4673_v60 = vrot.slane %v681_v54, 1  ;;  %v886_v1 = vsel %vm847_vm2, %v7495_v49, %v885_v52  ;;  %v1056_v16 = vrot.slane %v4532_v5, 5  ;;  %v4107_v48 = vld [vmem:[%s7490_s2 + $0x48] sm:$0xff]  }
  0x21   : > { %1863 = vmatprep.subr.bf16.mxu0 %v4458_v0  ;;  %4023 = vmatprep.subr.bf16.mxu1 %v4458_v0  ;;  %v679_v62 = vor.u32 %v677_v53, %v4664_v56  ;;  %v519_v2 = vor.u32 %v517_v57, %v515_v35  ;;  %v4697_v3 = vrot.slane %v521_v58, 1  ;;  %v1092_v23 = vrot.slane %v4529_v4, 5 }
  0x22   : > { %897 = vrot.lane.b32.xlu1 %v850_v42, %s4461_s13  ;;  %701 = vrot.lane.b32.xlu0 %v516_v51, %s4460_s8  ;;  %v1057_v29 = vsel %vm1052_vm0, %v1054_v18, %v1056_v16  ;;  %v661_v32 = vshrl.u32 %v4540_v6, 16  ;;  %v665_v33 = vshll.u32 %v4543_v7, 16  ;;  %v753_v35 = vrot.slane %v4556_v13, 1 }
  0x23   : > { %v4702_v9 = vsel %vm504_vm3, %v679_v62, %v4673_v60  ;;  %v524_v19 = vsel %vm504_vm3, %v519_v2, %v4697_v3  ;;  %v541_v18 = vshrl.u32 %v4582_v24, 16  ;;  %v545_v38 = vshll.u32 %v4716_v26, 16  ;;  %v4768_v62 = vld [vmem:[%s4523_s26 + $0xb8] sm:$0xff]  }
  0x24   : > { %1864 = vmatpush1.bf16.msra.mxu0 %v4102_v61  ;;  %4039 = vmatpush1.bf16.msra.mxu1 %v4102_v61  ;;  %v1093_v42 = vsel %vm1052_vm0, %v1090_v11, %v1092_v23  ;;  %v663_v43 = vor.u32 %v661_v32, %v659_v47  ;;  %v4741_v46 = vrot.slane %v665_v33, 1  ;;  %v754_v11 = vsel %vm749_vm1, %v751_v22, %v753_v35  ;;  %v4109_v22 = vld [vmem:[%s7490_s2 + $0x50] sm:$0xff]  }
  0x25   : > { %1865 = vmatprep.subr.bf16.mxu0 %v4458_v0  ;;  %4024 = vmatprep.subr.bf16.mxu1 %v4458_v0  ;;  %v543_v47 = vor.u32 %v541_v18, %v4632_v44  ;;  %v4760_v51 = vrot.slane %v545_v38, 1  ;;  %v685_v2 = vshrl.u32 %v4620_v41, 16  ;;  %v946_v37 = vrot.slane %v517_v57, 4 }
  0x26   : > { %1215 = vrot.lane.b32.xlu1 %v4660_v55, %s4461_s13  ;;  %737 = vrot.lane.b32.xlu0 %v4669_v59, %s4460_s8  ;;  %v4765_v61 = vsel %vm504_vm3, %v663_v43, %v4741_v46  ;;  %v1022_v39 = vrot.slane %v665_v33, 5 }
  0x27   : > { %v4779_v44 = vsel %vm504_vm3, %v543_v47, %v4760_v51  ;;  %v1018_v47 = vrot.slane %v657_v40, 5 }
  0x28   : > { %1866 = vmatpush1.bf16.msra.mxu0 %v4104_v63  ;;  %4040 = vmatpush1.bf16.msra.mxu1 %v4104_v63  ;;  %v851_v63 = vrot.slane %v4532_v5, 4 }
  0x29   : > { %1867 = vmatprep.subr.bf16.mxu0 %v4458_v0  ;;  %4025 = vmatprep.subr.bf16.mxu1 %v4458_v0 }
  0x2a   : > { %933 = vrot.lane.b32.xlu1 %v886_v1, %s4461_s13  ;;  %1251 = vrot.lane.b32.xlu0 %v4702_v9, %s4461_s13  ;;  %v789_v1 = vrot.slane %v4543_v7, 1 }
  0x2c   : > { %1868 = vmatpush1.bf16.msra.mxu0 %v4105_v17  ;;  %4041 = vmatpush1.bf16.msra.mxu1 %v4105_v17  ;;  %v689_v17 = vshll.u32 %v4768_v62, 16  ;;  %v4807_v43 = vsel %vm749_vm1, %v787_v15, %v789_v1  ;;  %v950_v15 = vrot.slane %v521_v58, 5 }
  0x2d   : > { %1869 = vmatprep.subr.bf16.mxu0 %v4458_v0  ;;  %4026 = vmatprep.subr.bf16.mxu1 %v4458_v0 }
  0x2e   : > { %703 = vrot.lane.b32.xlu1 %v524_v19, %s4460_s8  ;;  %1104 = vrot.lane.b32.xlu0 %v1057_v29, %s4460_s8  ;;  %v4110_v19 = vld [vmem:[%s7490_s2 + $0x58] sm:$0xff]   ;;  %v852_v29 = vsel %vm847_vm2, %v849_v27, %v851_v63  ;;  %v4814_v27 = vrot.slane %v689_v17, 1 }
  0x30   : > { %1870 = vmatpush1.bf16.msra.mxu0 %v4106_v34  ;;  %4042 = vmatpush1.bf16.msra.mxu1 %v4106_v34  ;;  %v887_v34 = vrot.slane %v4529_v4, 4 }
  0x31   : > { %1871 = vmatprep.subr.bf16.mxu0 %v4458_v0  ;;  %4027 = vmatprep.subr.bf16.mxu1 %v4458_v0 }
  0x32   : > { %1152 = vrot.lane.b32.xlu1 %v4582_v24, %s4459_s29  ;;  %1140 = vrot.lane.b32.xlu0 %v1093_v42, %s4460_s8  ;;  %v525_v42 = vshrl.u32 %v4556_v13, 16  ;;  %v888_v12 = vsel %vm847_vm2, %v885_v52, %v887_v34  ;;  %v4113_v52 = vld [vmem:[%s7490_s2 + $0x68] sm:$0xff]  }
  0x34   : > { %1872 = vmatpush1.bf16.msra.mxu0 %v4107_v48  ;;  %4043 = vmatpush1.bf16.msra.mxu1 %v4107_v48  ;;  %v687_v48 = vor.u32 %v685_v2, %v4673_v60  ;;  %v669_v60 = vshrl.u32 %v4543_v7, 16  ;;  %v527_v40 = vor.u32 %v525_v42, %v4697_v3  ;;  %v949_v58 = vrot.slane %v525_v42, 4  ;;  %v4855_v42 = vld [vmem:[%s4523_s26 + $0x30] sm:$0xff]  }
  0x35   : > { %1873 = vmatprep.subr.bf16.mxu0 %v4458_v0  ;;  %4028 = vmatprep.subr.bf16.mxu1 %v4458_v0 }
  0x36   : > { %801 = vrot.lane.b32.xlu1 %v754_v11, %s4459_s29  ;;  %739 = vrot.lane.b32.xlu0 %v4765_v61, %s4460_s8  ;;  %v947_v11 = vrot.slane %v513_v28, 5  ;;  %v4112_v28 = vld [vmem:[%s7490_s2 + $0x60] sm:$0xff]   ;;  %v4841_v57 = vsel %vm504_vm3, %v687_v48, %v4814_v27  ;;  %v1021_v33 = vrot.slane %v669_v60, 4  ;;  %v532_v3 = vsel %vm504_vm3, %v527_v40, %v4594_v30 }
  0x37   : > { %v951_v49 = vor.u32 %v950_v15, %v949_v58  ;;  %v953_v30 = vrot.slane %v533_v25, 4  ;;  %v553_v25 = vshll.u32 %v4855_v42, 16  ;;  %v954_v15 = vrot.slane %v529_v8, 5 }
  0x38   : > { %1874 = vmatpush1.bf16.msra.mxu0 %v4109_v22  ;;  %4044 = vmatpush1.bf16.msra.mxu1 %v4109_v22  ;;  %v1017_v22 = vrot.slane %v661_v32, 4  ;;  %v1058_v32 = vrot.slane %v4582_v24, 5  ;;  %v948_v20 = vor.u32 %v947_v11, %v946_v37  ;;  %v549_v37 = vshrl.u32 %v4716_v26, 16 }
  0x39   : > { %1875 = vmatprep.subr.bf16.mxu0 %v4458_v0  ;;  %4029 = vmatprep.subr.bf16.mxu1 %v4458_v0  ;;  %v671_v11 = vor.u32 %v669_v60, %v4741_v46  ;;  %v4909_v60 = vrot.slane %v553_v25, 1  ;;  %v957_v40 = vrot.slane %v541_v18, 4  ;;  %v693_v18 = vshrl.u32 %v4768_v62, 16 }
  0x3a   : > { %1217 = vrot.lane.b32.xlu1 %v4779_v44, %s4461_s13  ;;  %1188 = vrot.lane.b32.xlu0 %v4620_v41, %s4459_s29  ;;  %v1059_v48 = vsel %vm1052_vm0, %v1056_v16, %v1058_v32  ;;  %v1025_v16 = vrot.slane %v677_v53, 4  ;;  %v4115_v53 = vld [vmem:[%s7490_s2 + $0x78] sm:$0xff]   ;;  %v551_v8 = vor.u32 %v549_v37, %v4760_v51 }
  0x3b   : > { %v4918_v13 = vsel %vm504_vm3, %v671_v11, %v4664_v56 }
  0x3c   : > { %1876 = vmatpush1.bf16.msra.mxu0 %v4110_v19  ;;  %4045 = vmatpush1.bf16.msra.mxu1 %v4110_v19  ;;  %v4857_v19 = vor.u32 %v1018_v47, %v1017_v22  ;;  %v755_v47 = vrot.slane %v4532_v5, 1  ;;  %v4873_v22 = vsel %vm945_vm4, %v948_v20, %v951_v49 }
  0x3d   : > { %1877 = vmatprep.subr.bf16.mxu0 %v4458_v0  ;;  %4030 = vmatprep.subr.bf16.mxu1 %v4458_v0 }
  0x3e   : > { %899 = vrot.lane.b32.xlu1 %v852_v29, %s4461_s13  ;;  %837 = vrot.lane.b32.xlu0 %v4807_v43, %s4459_s29  ;;  %v1094_v29 = vrot.slane %v4620_v41, 5  ;;  %7526 = vst [vmem:[#allocation2_spill] sm:$0xff] %v4857_v19  ;;  %v756_v46 = vsel %vm749_vm1, %v753_v35, %v755_v47  ;;  %v4921_v35 = vld [vmem:[%s4644_s12] sm:$0xff]  }
  0x3f   : > { %7527 = vst [vmem:[#allocation3_spill] sm:$0xff] %v4921_v35 }
  0x40   : > { %1878 = vmatpush1.bf16.msra.mxu0 %v4112_v28  ;;  %4046 = vmatpush1.bf16.msra.mxu1 %v4112_v28  ;;  %v1095_v20 = vsel %vm1052_vm0, %v1092_v23, %v1094_v29  ;;  %v1026_v23 = vrot.slane %v673_v50, 5  ;;  %v955_v28 = vor.u32 %v954_v15, %v953_v30  ;;  %v958_v50 = vrot.slane %v537_v36, 5 }
  0x41   : > { %1879 = vmatprep.subr.bf16.mxu0 %v4458_v0  ;;  %4031 = vmatprep.subr.bf16.mxu1 %v4458_v0  ;;  %v1029_v36 = vrot.slane %v685_v2, 4  ;;  %v697_v2 = vshll.u32 %v4921_v35, 16  ;;  %v962_v30 = vrot.slane %v545_v38, 5  ;;  %v695_v38 = vor.u32 %v693_v18, %v4814_v27 }
  0x42   : > { %935 = vrot.lane.b32.xlu1 %v888_v12, %s4461_s13  ;;  %1253 = vrot.lane.b32.xlu0 %v4841_v57, %s4461_s13  ;;  %v4865_v12 = vor.u32 %v1022_v39, %v1021_v33  ;;  %v4114_v39 = vld [vmem:[%s7490_s2 + $0x70] sm:$0xff]   ;;  %v1027_v51 = vor.u32 %v1026_v23, %v1025_v16  ;;  %v4925_v58 = vsel %vm945_vm4, %v951_v49, %v955_v28  ;;  %v1030_v33 = vrot.slane %v681_v54, 5 }
  0x43   : > { %v853_v49 = vrot.slane %v4582_v24, 4  ;;  %v791_v54 = vrot.slane %v4529_v4, 1  ;;  %v1060_v27 = vrot.slane %v4716_v26, 5  ;;  %v5058_v4 = vld [vmem:[%s4523_s26 + $0x40] sm:$0xff]  }
  0x44   : > { %1880 = vmatpush1.bf16.msra.mxu0 %v4113_v52  ;;  %4047 = vmatpush1.bf16.msra.mxu1 %v4113_v52  ;;  %v4934_v56 = vsel %vm945_vm4, %v4865_v12, %v1027_v51  ;;  %v959_v52 = vor.u32 %v958_v50, %v957_v40  ;;  %v757_v40 = vrot.slane %v4582_v24, 1 }
  0x45   : > { %1881 = vmatprep.subr.bf16.mxu0 %v4458_v0  ;;  %4032 = vmatprep.subr.bf16.mxu1 %v4458_v0  ;;  %v854_v16 = vsel %vm847_vm2, %v851_v63, %v853_v49  ;;  %v4964_v11 = vsel %vm749_vm1, %v789_v1, %v791_v54  ;;  %v1033_v63 = vrot.slane %v693_v18, 4 }
  0x46   : > { %705 = vrot.lane.b32.xlu1 %v532_v3, %s4460_s8  ;;  %1106 = vrot.lane.b32.xlu0 %v1059_v48, %s4460_s8  ;;  %v4949_v3 = vsel %vm945_vm4, %v955_v28, %v959_v52  ;;  %v1031_v48 = vor.u32 %v1030_v33, %v1029_v36  ;;  %v1096_v28 = vrot.slane %v4768_v62, 5  ;;  %v966_v36 = vrot.slane %v553_v25, 5 }
  0x47   : > { %v5015_v24 = vsel %vm749_vm1, %v755_v47, %v757_v40  ;;  %v855_v47 = vrot.slane %v4716_v26, 4 }
  0x48   : > { %1882 = vmatpush1.bf16.msra.mxu0 %v4114_v39  ;;  %4048 = vmatpush1.bf16.msra.mxu1 %v4114_v39  ;;  %v961_v39 = vrot.slane %v549_v37, 4  ;;  %v699_v37 = vrot.slane %v697_v2, 1  ;;  %v4968_v15 = vsel %vm945_vm4, %v1027_v51, %v1031_v48  ;;  %v557_v51 = vshrl.u32 %v4855_v42, 16 }
  0x49   : > { %1883 = vmatprep.subr.bf16.mxu0 %v4458_v0  ;;  %4033 = vmatprep.subr.bf16.mxu1 %v4458_v0  ;;  %v4940_v0 = vsel %vm504_vm3, %v551_v8, %v4909_v60  ;;  %v4989_v8 = vld [vmem:[%s4523_s26 + $0x38] sm:$0xff]  }
  0x4a   : > { %1154 = vrot.lane.b32.xlu1 %v4716_v26, %s4459_s29  ;;  %1142 = vrot.lane.b32.xlu0 %v1095_v20, %s4460_s8  ;;  %v889_v20 = vrot.slane %v4620_v41, 4  ;;  %v4979_v1 = vsel %vm504_vm3, %v695_v38, %v699_v37  ;;  %v963_v23 = vor.u32 %v962_v30, %v961_v39  ;;  %v561_v33 = vshll.u32 %v4989_v8, 16 }
  0x4b   : > { %v1040_v30 = vrot.slane %v697_v2, 5  ;;  %v793_v39 = vrot.slane %v4620_v41, 1  ;;  %v891_v2 = vrot.slane %v4768_v62, 4 }
  0x4c   : > { %1884 = vmatpush1.bf16.msra.mxu0 %v4115_v53  ;;  %4049 = vmatpush1.bf16.msra.mxu1 %v4115_v53  ;;  %v1034_v53 = vrot.slane %v689_v17, 5  ;;  %v890_v7 = vsel %vm847_vm2, %v887_v34, %v889_v20  ;;  %v4984_v17 = vsel %vm945_vm4, %v959_v52, %v963_v23  ;;  %v1061_v34 = vsel %vm1052_vm0, %v1058_v32, %v1060_v27 }
  0x4d   : > { %v1097_v32 = vsel %vm1052_vm0, %v1094_v29, %v1096_v28  ;;  %v563_v18 = vrot.slane %v561_v33, 1  ;;  %v965_v52 = vrot.slane %v557_v51, 4  ;;  %v1037_v29 = vshrl.u32 %v4921_v35, 16 }
  0x4e   : > { %803 = vrot.lane.b32.xlu1 %v756_v46, %s4459_s29  ;;  %741 = vrot.lane.b32.xlu0 %v4918_v13, %s4460_s8  ;;  %v1035_v46 = vor.u32 %v1034_v53, %v1033_v63  ;;  %v5044_v41 = vsel %vm749_vm1, %v791_v54, %v793_v39 }
  0x4f   : > { %v1039_v25 = vrot.slane %v1037_v29, 4  ;;  %v1198_v63 = vor.u32 %v1037_v29, %v699_v37  ;;  %v1098_v37 = vrot.slane %v4921_v35, 5 }
  0x50   : > { %v4996_v50 = vsel %vm945_vm4, %v1031_v48, %v1035_v46  ;;  %v5019_v48 = vld [vmem:[%s4644_s12 + $0x8] sm:$0xff]  }
  0x51   : > { %v1041_v53 = vor.u32 %v1040_v30, %v1039_v25  ;;  %v5076_v30 = vld [vmem:[%s4644_s12 + $0x10] sm:$0xff]  }
  0x52   : > { %1219 = vrot.lane.b32.xlu1 %v4940_v0, %s4461_s13  ;;  %1190 = vrot.lane.b32.xlu0 %v4768_v62, %s4459_s29 }
  0x56   : > { %901 = vrot.lane.b32.xlu1 %v854_v16, %s4461_s13  ;;  %839 = vrot.lane.b32.xlu0 %v4964_v11, %s4459_s29  ;;  %v1047_v16 = vshll.u32 %v5019_v48, 16 }
  0x58   : > { %v1049_v25 = vrot.slane %v1047_v16, 5 }
  0x5a   : > { %937 = vrot.lane.b32.xlu1 %v890_v7, %s4461_s13  ;;  %1255 = vrot.lane.b32.xlu0 %v4979_v1, %s4461_s13  ;;  %v1199_v7 = vrot.slane %v1047_v16, 1 }
  0x5e   : > { %707 = vrot.lane.b32.xlu1 %v4660_v55, %s4460_s8  ;;  %1108 = vrot.lane.b32.xlu0 %v1061_v34, %s4460_s8  ;;  %v559_v55 = vor.u32 %v557_v51, %v4909_v60  ;;  %v967_v60 = vor.u32 %v966_v36, %v965_v52  ;;  %v1200_v34 = vsel %vm504_vm3, %v1198_v63, %v1199_v7  ;;  %v1062_v51 = vrot.slane %v4855_v42, 5 }
  0x5f   : > { %v1099_v36 = vsel %vm1052_vm0, %v1096_v28, %v1098_v37  ;;  %v1203_v63 = vshll.u32 %v5076_v30, 16 }
  0x60   : > { %v5027_v5 = vsel %vm504_vm3, %v559_v55, %v563_v18  ;;  %v5033_v38 = vsel %vm945_vm4, %v963_v23, %v967_v60  ;;  %v5047_v23 = vsel %vm945_vm4, %v1035_v46, %v1041_v53  ;;  %v1063_v54 = vsel %vm1052_vm0, %v1060_v27, %v1062_v51 }
  0x61   : > { %v565_v46 = vshrl.u32 %v4989_v8, 16  ;;  %v970_v55 = vrot.slane %v561_v33, 5 }
  0x62   : > { %1156 = vrot.lane.b32.xlu1 %v4855_v42, %s4459_s29  ;;  %1144 = vrot.lane.b32.xlu0 %v1097_v32, %s4460_s8  ;;  %v569_v32 = vshll.u32 %v5058_v4, 16 }
  0x63   : > { %v969_v29 = vrot.slane %v565_v46, 4 }
  0x64   : > { %v571_v52 = vrot.slane %v569_v32, 1 }
  0x66   : > { %805 = vrot.lane.b32.xlu1 %v5015_v24, %s4459_s29  ;;  %743 = vrot.lane.b32.xlu0 %v4702_v9, %s4460_s8  ;;  %v856_v9 = vsel %vm847_vm2, %v853_v49, %v855_v47  ;;  %v892_v49 = vsel %vm847_vm2, %v889_v20, %v891_v2  ;;  %v759_v20 = vrot.slane %v4716_v26, 1  ;;  %v1044_v26 = vshrl.u32 %v5019_v48, 16 }
  0x68   : > { %v5073_v27 = vsel %vm749_vm1, %v757_v40, %v759_v20  ;;  %v7502_v40 = vrot.slane %v4855_v42, 4  ;;  %v1046_v33 = vrot.slane %v1044_v26, 4 }
  0x6a   : > { %1221 = vrot.lane.b32.xlu1 %v5027_v5, %s4461_s13  ;;  %1192 = vrot.lane.b32.xlu0 %v4921_v35, %s4459_s29 }
  0x6e   : > { %903 = vrot.lane.b32.xlu1 %v856_v9, %s4461_s13  ;;  %841 = vrot.lane.b32.xlu0 %v5044_v41, %s4459_s29  ;;  %v7500_v9 = vrot.slane %v4768_v62, 1 }
  0x72   : > { %939 = vrot.lane.b32.xlu1 %v892_v49, %s4461_s13  ;;  %1257 = vrot.lane.b32.xlu0 %v1200_v34, %s4461_s13  ;;  %v7499_v49 = vrot.slane %v4921_v35, 4  ;;  %v1050_v34 = vor.u32 %v1049_v25, %v1046_v33  ;;  %v1100_v25 = vrot.slane %v5019_v48, 5 }
  0x76   : > { %709 = vrot.lane.b32.xlu1 %v4779_v44, %s4460_s8  ;;  %1110 = vrot.lane.b32.xlu0 %v1063_v54, %s4460_s8  ;;  %v567_v44 = vor.u32 %v565_v46, %v563_v18  ;;  %v5087_v18 = vor.u32 %v970_v55, %v969_v29  ;;  %v5106_v54 = vsel %vm749_vm1, %v793_v39, %v7500_v9  ;;  %v5108_v46 = vrot.slane %v1203_v63, 1  ;;  %v5127_v29 = vld [vmem:[%s4523_s26 + $0x48] sm:$0xff]  }
  0x77   : > { %7528 = vst [vmem:[#allocation4_spill] sm:$0xff] %v5106_v54  ;;  %v573_v63 = vshrl.u32 %v5058_v4, 16 }
  0x78   : > { %v5084_v28 = vsel %vm504_vm3, %v567_v44, %v571_v52  ;;  %v5093_v16 = vsel %vm945_vm4, %v967_v60, %v5087_v18  ;;  %v1201_v60 = vor.u32 %v1199_v7, %v1044_v26  ;;  %v894_v44 = vsel %vm847_vm2, %v891_v2, %v7499_v49 }
  0x79   : > { %v7498_v7 = vrot.slane %v4989_v8, 5  ;;  %v7501_v2 = vrot.slane %v4855_v42, 1 }
  0x7a   : > { %1158 = vrot.lane.b32.xlu1 %v4989_v8, %s4459_s29  ;;  %1146 = vrot.lane.b32.xlu0 %v1099_v36, %s4460_s8  ;;  %v5111_v36 = vsel %vm945_vm4, %v1041_v53, %v1050_v34  ;;  %v1206_v39 = vsel %vm504_vm3, %v1201_v60, %v5108_v46  ;;  %v5142_v34 = vld [vmem:[%s7490_s2 + $0x80] sm:$0xff]   ;;  %v1101_v60 = vsel %vm1052_vm0, %v1098_v37, %v1100_v25  ;;  %v4117_v25 = vld [vmem:[%s4644_s12 + $0x18] sm:$0xff]  }
  0x7b   : > { %v1065_v26 = vsel %vm1052_vm0, %v1062_v51, %v7498_v7  ;;  %3966 = vmatprep.subr.bf16.mxu1 %v5142_v34  ;;  %v973_v7 = vrot.slane %v573_v63, 4 }
  0x7e   : > { %807 = vrot.lane.b32.xlu1 %v5073_v27, %s4459_s29  ;;  %745 = vrot.lane.b32.xlu0 %v4841_v57, %s4460_s8  ;;  %v858_v57 = vsel %vm847_vm2, %v855_v47, %v7502_v40 }
  0x82   : > { %1223 = vrot.lane.b32.xlu1 %v5084_v28, %s4461_s13  ;;  %1194 = vrot.lane.b32.xlu0 %v5019_v48, %s4459_s29 }
  0x86   : > { %905 = vrot.lane.b32.xlu1 %v858_v57, %s4461_s13  ;;  %843 = vrot.lane.b32.xlu0 %v5106_v54, %s4459_s29  ;;  %v577_v57 = vshll.u32 %v5127_v29, 16 }
  0x87   : > { %v5116_v47 = vpop.permute.xlu0 %1186 }
  0x88   : > { %v1151_v55 = vpop.permute.xlu1 %1150  ;;  %v5154_v10 = vrot.slane %v577_v57, 1 }
  0x8a   : > { %941 = vrot.lane.b32.xlu1 %v894_v44, %s4461_s13  ;;  %1259 = vrot.lane.b32.xlu0 %v1206_v39, %s4461_s13  ;;  %v5152_v39 = vsel %vm749_vm1, %v759_v20, %v7501_v2  ;;  %v1211_v2 = vshll.u32 %v4117_v25, 16 }
  0x8c   : > { %v1139_v53 = vpop.permute.xlu1 %1138  ;;  %v1103_v33 = vpop.permute.xlu0 %1102 }
  0x8e   : > { %711 = vrot.lane.b32.xlu1 %v4940_v0, %s4460_s8  ;;  %1112 = vrot.lane.b32.xlu0 %v1065_v26, %s4460_s8  ;;  %v974_v0 = vrot.slane %v569_v32, 5  ;;  %v575_v26 = vor.u32 %v573_v63, %v571_v52  ;;  %v1442_v32 = vsel %vm1269_vm5, %v4873_v22, %v1103_v33  ;;  %v859_v52 = vrot.slane %v4989_v8, 4 }
  0x8f   : > { %v1513_v63 = vsel %vm1318_vm6, %v1442_v32, %v1151_v55  ;;  %v1213_v32 = vrot.slane %v1211_v2, 1 }
  0x90   : > { %v800_v51 = vpop.permute.xlu1 %799  ;;  %v836_v44 = vpop.permute.xlu0 %835  ;;  %v5170_v20 = vsel %vm504_vm3, %v575_v26, %v5154_v10  ;;  %v975_v33 = vor.u32 %v974_v0, %v973_v7 }
  0x92   : > { %1160 = vrot.lane.b32.xlu1 %v5058_v4, %s4459_s29  ;;  %1148 = vrot.lane.b32.xlu0 %v1101_v60, %s4460_s8  ;;  %v1024_v60 = vsel %vm945_vm4, %v4857_v19, %v4865_v12  ;;  %v5180_v26 = vsel %vm945_vm4, %v5087_v18, %v975_v33  ;;  %v7529_v18 = vrot.slane %v4855_v42, 4 }
  0x94   : > { %v898_v37 = vpop.permute.xlu1 %897  ;;  %v702_v49 = vpop.permute.xlu0 %701 }
  0x95   : > { %v1271_v9 = vsel %vm1269_vm5, %v4577_v21, %v702_v49  ;;  %v7503_v21 = vrot.slane %v4921_v35, 1  ;;  %v1207_v49 = vshrl.u32 %v5076_v30, 16 }
  0x96   : > { %809 = vrot.lane.b32.xlu1 %v5152_v39, %s4459_s29  ;;  %747 = vrot.lane.b32.xlu0 %v4979_v1, %s4460_s8  ;;  %v1320_v22 = vsel %vm1318_vm6, %v1271_v9, %v800_v51  ;;  %v1496_v9 = vsel %vm1269_vm5, %v1024_v60, %v1139_v53  ;;  %v860_v51 = vsel %vm847_vm2, %v7529_v18, %v859_v52  ;;  %v895_v53 = vrot.slane %v5019_v48, 4 }
  0x97   : > { %v1369_v55 = vsel %vm1367_vm7, %v1320_v22, %v898_v37  ;;  %v1549_v22 = vsel %vm1318_vm6, %v1496_v9, %v5116_v47  ;;  %v1066_v9 = vrot.slane %v5058_v4, 5 }
  0x98   : > { %v1216_v12 = vpop.permute.xlu1 %1215  ;;  %v738_v40 = vpop.permute.xlu0 %737 }
  0x99   : > { %v1561_v1 = vsel %vm1367_vm7, %v1513_v63, %v1216_v12  ;;  %v1307_v7 = vsel %vm1269_vm5, %v4559_v14, %v738_v40  ;;  %v7530_v40 = vrot.slane %v4768_v62, 1  ;;  %v581_v12 = vshrl.u32 %v5127_v29, 16 }
  0x9a   : > { %1225 = vrot.lane.b32.xlu1 %v5170_v20, %s4461_s13  ;;  %1885 = vmatprep.mubr.bf16.mxu0 %v1561_v1  ;;  %v1356_v37 = vsel %vm1318_vm6, %v1307_v7, %v836_v44  ;;  %v4127_v44 = vld [vmem:[%s7490_s2 + $0x88] sm:$0xff]   ;;  %v978_v63 = vrot.slane %v577_v57, 5  ;;  %v5222_v7 = vld [vmem:[%s4523_s26 + $0x50] sm:$0xff]   ;;  %v763_v57 = vrot.slane %v4989_v8, 1 }
  0x9b   : > { %1196 = vrot.lane.b32.xlu0 %v5076_v30, %s4459_s29  ;;  %1886 = vmatmul.mubr.bf16.vlgmr.msra.gmra.mrb[0].mxu0 %v1369_v55  ;;  %v5201_v25 = vsel %vm749_vm1, %v7530_v40, %v7503_v21  ;;  %v1209_v30 = vor.u32 %v1207_v49, %v5108_v46  ;;  %v7532_v46 = vrot.slane %v4921_v35, 4  ;;  %v977_v2 = vrot.slane %v581_v12, 4 }
  0x9c   : > { %v934_v0 = vpop.permute.xlu1 %933  ;;  %7531 = vst [vmem:[#allocation5_spill] sm:$0xff] %v5201_v25  ;;  %v1252_v60 = vpop.permute.xlu0 %1251  ;;  %v585_v40 = vshll.u32 %v5222_v7, 16 }
  0x9d   : > { %v1423_v48 = vsel %vm1367_vm7, %v1356_v37, %v934_v0  ;;  %v1615_v62 = vsel %vm1367_vm7, %v1549_v22, %v1252_v60  ;;  %v896_v47 = vsel %vm847_vm2, %v7532_v46, %v895_v53  ;;  %v1214_v1 = vsel %vm504_vm3, %v1209_v30, %v1213_v32 }
  0x9e   : > { %907 = vrot.lane.b32.xlu1 %v860_v51, %s4461_s13  ;;  %2029 = vmatprep.mubr.bf16.mxu1 %v1615_v62  ;;  %v979_v18 = vor.u32 %v978_v63, %v977_v2  ;;  %v7533_v53 = vrot.slane %v4989_v8, 5  ;;  %v861_v60 = vrot.slane %v5058_v4, 4  ;;  %v587_v62 = vrot.slane %v585_v40, 1  ;;  %v4416_v8 = vld [vmem:[%s4523_s26 + $0x8] sm:$0xff]  }
  0x9f   : > { %845 = vrot.lane.b32.xlu0 %v5201_v25, %s4459_s29  ;;  %2030 = vmatmul.mubr.bf16.vlgmr.msra.gmra.mrb[0].mxu1 %v1423_v48  ;;  %v583_v48 = vor.u32 %v581_v12, %v5154_v10  ;;  %v982_v63 = vrot.slane %v585_v40, 5  ;;  %v1068_v2 = vrot.slane %v5127_v29, 5 }
  0xa0   : > { %v704_v49 = vpop.permute.xlu1 %703  ;;  %v1105_v55 = vpop.permute.xlu0 %1104  ;;  %3967 = vmatpush3.bf16.msra.mxu1 %v5142_v34  ;;  %v1067_v0 = vsel %vm1052_vm0, %v7533_v53, %v1066_v9  ;;  %v5233_v30 = vsel %vm945_vm4, %v975_v33, %v979_v18  ;;  %v7534_v34 = vrot.slane %v4855_v42, 1  ;;  %v589_v33 = vshrl.u32 %v5222_v7, 16 }
  0xa1   : > { %3968 = vmatprep.subr.bf16.mxu1 %v4127_v44  ;;  %v1445_v42 = vsel %vm1269_vm5, %v4925_v58, %v1105_v55 }
  0xa2   : > { %943 = vrot.lane.b32.xlu1 %v896_v47, %s4461_s13  ;;  %v5241_v32 = vsel %vm749_vm1, %v7534_v34, %v763_v57  ;;  %v981_v10 = vrot.slane %v589_v33, 4  ;;  %v5257_v47 = vsel %vm504_vm3, %v583_v48, %v587_v62  ;;  %v1069_v34 = vsel %vm1052_vm0, %v1066_v9, %v1068_v2 }
  0xa3   : > { %1261 = vrot.lane.b32.xlu0 %v1214_v1, %s4461_s13  ;;  %v5261_v1 = vld [vmem:[%s4523_s26 + $0x58] sm:$0xff]  }
  0xa4   : > { %v1153_v51 = vpop.permute.xlu1 %1152  ;;  %v1141_v37 = vpop.permute.xlu0 %1140  ;;  %3969 = vmatpush3.bf16.msra.mxu1 %v4127_v44  ;;  %v983_v53 = vor.u32 %v982_v63, %v981_v10  ;;  %v593_v48 = vshll.u32 %v5261_v1, 16 }
  0xa5   : > { %v1515_v12 = vsel %vm1318_vm6, %v1445_v42, %v1153_v51  ;;  %v765_v51 = vrot.slane %v5058_v4, 1 }
  0xa6   : > { %713 = vrot.lane.b32.xlu1 %v5027_v5, %s4460_s8  ;;  %v862_v5 = vsel %vm847_vm2, %v859_v52, %v861_v60  ;;  %v1273_v52 = vsel %vm1269_vm5, %v4416_v8, %v704_v49  ;;  %v5280_v49 = vld [vmem:[%s4523_s26 + $0x98] sm:$0xff]  }
  0xa7   : > { %1114 = vrot.lane.b32.xlu0 %v1067_v0, %s4460_s8  ;;  %v5286_v9 = vsel %vm749_vm1, %v763_v57, %v765_v51 }
  0xa8   : > { %v802_v22 = vpop.permute.xlu1 %801  ;;  %v740_v44 = vpop.permute.xlu0 %739 }
  0xa9   : > { %v1322_v0 = vsel %vm1318_vm6, %v1273_v52, %v802_v22  ;;  %v1309_v4 = vsel %vm1269_vm5, %v5280_v49, %v740_v44  ;;  %v863_v22 = vrot.slane %v5127_v29, 4  ;;  %v597_v52 = vshrl.u32 %v5261_v1, 16 }
  0xaa   : > { %811 = vrot.lane.b32.xlu1 %v5241_v32, %s4459_s29 }
  0xab   : > { %1162 = vrot.lane.b32.xlu0 %v5127_v29, %s4459_s29 }
  0xac   : > { %v1218_v46 = vpop.permute.xlu1 %1217  ;;  %v1189_v58 = vpop.permute.xlu0 %1188 }
  0xad   : > { %v1564_v55 = vsel %vm1367_vm7, %v1515_v12, %v1218_v46  ;;  %v5275_v12 = vsel %vm945_vm4, %v979_v18, %v983_v53  ;;  %v1499_v18 = vsel %vm1269_vm5, %v4934_v56, %v1141_v37  ;;  %v595_v46 = vrot.slane %v593_v48, 1 }
  0xae   : > { %909 = vrot.lane.b32.xlu1 %v862_v5, %s4461_s13  ;;  %1893 = vmatprep.mubr.bf16.mxu0 %v1564_v55  ;;  %v1551_v55 = vsel %vm1318_vm6, %v1499_v18, %v1189_v58  ;;  %v864_v56 = vsel %vm847_vm2, %v861_v60, %v863_v22  ;;  %v986_v37 = vrot.slane %v593_v48, 5 }
  0xaf   : > { %1227 = vrot.lane.b32.xlu0 %v5257_v47, %s4461_s13 }
  0xb0   : > { %v900_v40 = vpop.permute.xlu1 %899  ;;  %v838_v42 = vpop.permute.xlu0 %837 }
  0xb1   : > { %v1372_v5 = vsel %vm1367_vm7, %v1322_v0, %v900_v40  ;;  %v1358_v63 = vsel %vm1318_vm6, %v1309_v4, %v838_v42  ;;  %v1070_v0 = vrot.slane %v5222_v7, 5  ;;  %v5306_v40 = vld [vmem:[%s4523_s26 + $0x60] sm:$0xff]   ;;  %v767_v42 = vrot.slane %v5127_v29, 1 }
  0xb2   : > { %715 = vrot.lane.b32.xlu1 %v5084_v28, %s4460_s8  ;;  %1894 = vmatmul.mubr.bf16.gmra.mrb[4].mxu0 %v1372_v5  ;;  %v591_v28 = vor.u32 %v589_v33, %v587_v62  ;;  %v985_v62 = vrot.slane %v597_v52, 4  ;;  %v601_v4 = vshll.u32 %v5306_v40, 16 }
  0xb3   : > { %1116 = vrot.lane.b32.xlu0 %v1069_v34, %s4460_s8  ;;  %v1071_v5 = vsel %vm1052_vm0, %v1068_v2, %v1070_v0 }
  0xb4   : > { %v936_v10 = vpop.permute.xlu1 %935  ;;  %v1254_v8 = vpop.permute.xlu0 %1253  ;;  %v5302_v58 = vsel %vm504_vm3, %v591_v28, %v595_v46  ;;  %v987_v60 = vor.u32 %v986_v37, %v985_v62  ;;  %v865_v28 = vrot.slane %v5222_v7, 4  ;;  %v603_v2 = vrot.slane %v601_v4, 1 }
  0xb5   : > { %v1426_v44 = vsel %vm1367_vm7, %v1358_v63, %v936_v10  ;;  %v1618_v57 = vsel %vm1367_vm7, %v1551_v55, %v1254_v8  ;;  %v5321_v10 = vsel %vm749_vm1, %v765_v51, %v767_v42  ;;  %v599_v8 = vor.u32 %v597_v52, %v595_v46 }
  0xb6   : > { %813 = vrot.lane.b32.xlu1 %v5286_v9, %s4459_s29  ;;  %2037 = vmatprep.mubr.bf16.mxu1 %v1618_v57  ;;  %v5315_v63 = vsel %vm945_vm4, %v983_v53, %v987_v60  ;;  %v605_v57 = vshrl.u32 %v5306_v40, 16  ;;  %v866_v51 = vsel %vm847_vm2, %v863_v22, %v865_v28  ;;  %v990_v53 = vrot.slane %v601_v4, 5  ;;  %v4418_v22 = vld [vmem:[%s4523_s26 + $0x10] sm:$0xff]  }
  0xb7   : > { %1164 = vrot.lane.b32.xlu0 %v5222_v7, %s4459_s29  ;;  %2038 = vmatmul.mubr.bf16.gmra.mrb[4].mxu1 %v1426_v44  ;;  %v5334_v37 = vsel %vm504_vm3, %v599_v8, %v603_v2  ;;  %v1072_v62 = vrot.slane %v5261_v1, 5 }
  0xb8   : > { %v706_v33 = vpop.permute.xlu1 %705  ;;  %v1107_v34 = vpop.permute.xlu0 %1106 }
  0xb9   : > { %v1073_v19 = vsel %vm1052_vm0, %v1070_v0, %v1072_v62 }
  0xba   : > { %911 = vrot.lane.b32.xlu1 %v864_v56, %s4461_s13  ;;  %v989_v56 = vrot.slane %v605_v57, 4 }
  0xbb   : > { %1229 = vrot.lane.b32.xlu0 %v5302_v58, %s4461_s13 }
  0xbc   : > { %v1155_v48 = vpop.permute.xlu1 %1154  ;;  %v1143_v18 = vpop.permute.xlu0 %1142  ;;  %v991_v4 = vor.u32 %v990_v53, %v989_v56  ;;  %v867_v53 = vrot.slane %v5261_v1, 4 }
  0xbe   : > { %717 = vrot.lane.b32.xlu1 %v5170_v20, %s4460_s8  ;;  %v1448_v20 = vsel %vm1269_vm5, %v4949_v3, %v1107_v34  ;;  %v1275_v34 = vsel %vm1269_vm5, %v4418_v22, %v706_v33  ;;  %v5357_v33 = vld [vmem:[%s4523_s26 + $0xa0] sm:$0xff]  }
  0xbf   : > { %1118 = vrot.lane.b32.xlu0 %v1071_v5, %s4460_s8  ;;  %v1517_v46 = vsel %vm1318_vm6, %v1448_v20, %v1155_v48  ;;  %v5338_v5 = vld [vmem:[%s4523_s26 + $0x68] sm:$0xff]   ;;  %v769_v48 = vrot.slane %v5222_v7, 1 }
  0xc0   : > { %v804_v55 = vpop.permute.xlu1 %803  ;;  %v742_v44 = vpop.permute.xlu0 %741  ;;  %7535 = vst [vmem:[#allocation6_spill] sm:$0xff] %v5338_v5 }
  0xc1   : > { %v1324_v8 = vsel %vm1318_vm6, %v1275_v34, %v804_v55  ;;  %v1311_v55 = vsel %vm1269_vm5, %v5357_v33, %v742_v44  ;;  %v5363_v0 = vsel %vm749_vm1, %v767_v42, %v769_v48 }
  0xc2   : > { %815 = vrot.lane.b32.xlu1 %v5321_v10, %s4459_s29 }
  0xc3   : > { %1166 = vrot.lane.b32.xlu0 %v5261_v1, %s4459_s29 }
  0xc4   : > { %v1220_v52 = vpop.permute.xlu1 %1219  ;;  %v1191_v21 = vpop.permute.xlu0 %1190 }
  0xc5   : > { %v1567_v3 = vsel %vm1367_vm7, %v1517_v46, %v1220_v52  ;;  %v609_v46 = vshll.u32 %v5338_v5, 16 }
  0xc6   : > { %913 = vrot.lane.b32.xlu1 %v866_v51, %s4461_s13  ;;  %1901 = vmatprep.mubr.bf16.mxu0 %v1567_v3  ;;  %v5352_v3 = vsel %vm945_vm4, %v987_v60, %v991_v4  ;;  %v1502_v60 = vsel %vm1269_vm5, %v4968_v15, %v1143_v18  ;;  %v868_v15 = vsel %vm847_vm2, %v865_v28, %v867_v53  ;;  %v613_v18 = vshrl.u32 %v5338_v5, 16 }
  0xc7   : > { %1231 = vrot.lane.b32.xlu0 %v5334_v37, %s4461_s13  ;;  %v611_v34 = vrot.slane %v609_v46, 1  ;;  %v994_v42 = vrot.slane %v609_v46, 5  ;;  %v771_v28 = vrot.slane %v5261_v1, 1 }
  0xc8   : > { %v902_v20 = vpop.permute.xlu1 %901  ;;  %v840_v52 = vpop.permute.xlu0 %839 }
  0xc9   : > { %v1375_v51 = vsel %vm1367_vm7, %v1324_v8, %v902_v20  ;;  %v1360_v56 = vsel %vm1318_vm6, %v1311_v55, %v840_v52  ;;  %v1553_v8 = vsel %vm1318_vm6, %v1502_v60, %v1191_v21  ;;  %v5383_v52 = vld [vmem:[%s4523_s26 + $0x70] sm:$0xff]   ;;  %v993_v55 = vrot.slane %v613_v18, 4 }
  0xca   : > { %719 = vrot.lane.b32.xlu1 %v5257_v47, %s4460_s8  ;;  %1902 = vmatmul.mubr.bf16.gmra.mrb[8].mxu0 %v1375_v51  ;;  %v607_v47 = vor.u32 %v605_v57, %v603_v2  ;;  %v1074_v57 = vrot.slane %v5306_v40, 5  ;;  %v7511_v25 = vshrl.u32 %v5383_v52, 16 }
  0xcb   : > { %1120 = vrot.lane.b32.xlu0 %v1073_v19, %s4460_s8  ;;  %v5389_v46 = vor.u32 %v994_v42, %v993_v55 }
  0xcc   : > { %v938_v22 = vpop.permute.xlu1 %937  ;;  %v1256_v20 = vpop.permute.xlu0 %1255  ;;  %v5379_v21 = vsel %vm504_vm3, %v607_v47, %v611_v34 }
  0xcd   : > { %v1429_v44 = vsel %vm1367_vm7, %v1360_v56, %v938_v22  ;;  %v1621_v19 = vsel %vm1367_vm7, %v1553_v8, %v1256_v20  ;;  %v1075_v56 = vsel %vm1052_vm0, %v1072_v62, %v1074_v57  ;;  %v7505_v22 = vshll.u32 %v5383_v52, 16 }
  0xce   : > { %817 = vrot.lane.b32.xlu1 %v5363_v0, %s4459_s29  ;;  %2045 = vmatprep.mubr.bf16.mxu1 %v1621_v19  ;;  %v5395_v8 = vsel %vm945_vm4, %v991_v4, %v5389_v46  ;;  %v5401_v20 = vsel %vm749_vm1, %v769_v48, %v771_v28  ;;  %v615_v62 = vor.u32 %v613_v18, %v611_v34  ;;  %v1076_v18 = vrot.slane %v5338_v5, 5 }
  0xcf   : > { %1168 = vrot.lane.b32.xlu0 %v5306_v40, %s4459_s29  ;;  %2046 = vmatmul.mubr.bf16.gmra.mrb[8].mxu1 %v1429_v44  ;;  %v869_v44 = vrot.slane %v5306_v40, 4 }
  0xd0   : > { %v708_v2 = vpop.permute.xlu1 %707  ;;  %v1109_v51 = vpop.permute.xlu0 %1108 }
  0xd1   : > { %v870_v48 = vsel %vm847_vm2, %v867_v53, %v869_v44 }
  0xd2   : > { %915 = vrot.lane.b32.xlu1 %v868_v15, %s4461_s13  ;;  %v619_v15 = vrot.slane %v7505_v22, 1 }
  0xd3   : > { %1233 = vrot.lane.b32.xlu0 %v5379_v21, %s4461_s13 }
  0xd4   : > { %v1157_v60 = vpop.permute.xlu1 %1156  ;;  %v1145_v47 = vpop.permute.xlu0 %1144  ;;  %v5415_v34 = vsel %vm504_vm3, %v615_v62, %v619_v15 }
  0xd6   : > { %721 = vrot.lane.b32.xlu1 %v5302_v58, %s4460_s8  ;;  %v1451_v58 = vsel %vm1269_vm5, %v4984_v17, %v1109_v51  ;;  %v4420_v17 = vld [vmem:[%s4523_s26 + $0x18] sm:$0xff]   ;;  %v773_v51 = vrot.slane %v5306_v40, 1 }
  0xd7   : > { %1122 = vrot.lane.b32.xlu0 %v1075_v56, %s4460_s8  ;;  %v1519_v4 = vsel %vm1318_vm6, %v1451_v58, %v1157_v60  ;;  %v5419_v56 = vld [vmem:[%s4523_s26 + $0x78] sm:$0xff]   ;;  %v1277_v53 = vsel %vm1269_vm5, %v4420_v17, %v708_v2  ;;  %v1077_v58 = vsel %vm1052_vm0, %v1074_v57, %v1076_v18  ;;  %v4421_v2 = vld [vmem:[%s4523_s26 + $0xa8] sm:$0xff]   ;;  %v871_v57 = vrot.slane %v5338_v5, 4 }
  0xd8   : > { %v806_v19 = vpop.permute.xlu1 %805  ;;  %v744_v42 = vpop.permute.xlu0 %743  ;;  %v1505_v17 = vsel %vm1269_vm5, %v4996_v50, %v1145_v47 }
  0xd9   : > { %v1326_v60 = vsel %vm1318_vm6, %v1277_v53, %v806_v19  ;;  %v5439_v19 = vsel %vm749_vm1, %v771_v28, %v773_v51  ;;  %v872_v47 = vsel %vm847_vm2, %v869_v44, %v871_v57 }
  0xda   : > { %819 = vrot.lane.b32.xlu1 %v5401_v20, %s4459_s29 }
  0xdb   : > { %1170 = vrot.lane.b32.xlu0 %v5338_v5, %s4459_s29 }
  0xdc   : > { %v1222_v55 = vpop.permute.xlu1 %1221  ;;  %v1193_v22 = vpop.permute.xlu0 %1192 }
  0xdd   : > { %v1570_v35 = vsel %vm1367_vm7, %v1519_v4, %v1222_v55  ;;  %v7508_v4 = vshll.u32 %v5419_v56, 16 }
  0xde   : > { %917 = vrot.lane.b32.xlu1 %v870_v48, %s4461_s13  ;;  %1909 = vmatprep.mubr.bf16.mxu0 %v1570_v35  ;;  %v1313_v48 = vsel %vm1269_vm5, %v4421_v2, %v744_v42 }
  0xdf   : > { %1235 = vrot.lane.b32.xlu0 %v5415_v34, %s4461_s13  ;;  %v627_v42 = vrot.slane %v7508_v4, 1 }
  0xe0   : > { %v904_v62 = vpop.permute.xlu1 %903  ;;  %v842_v55 = vpop.permute.xlu0 %841 }
  0xe1   : > { %v1378_v35 = vsel %vm1367_vm7, %v1326_v60, %v904_v62  ;;  %v1362_v53 = vsel %vm1318_vm6, %v1313_v48, %v842_v55  ;;  %v1555_v62 = vsel %vm1318_vm6, %v1505_v17, %v1193_v22  ;;  %v1078_v22 = vrot.slane %v5383_v52, 5 }
  0xe2   : > { %723 = vrot.lane.b32.xlu1 %v5334_v37, %s4460_s8  ;;  %1910 = vmatmul.mubr.bf16.gmra.mrb[12].mxu0 %v1378_v35  ;;  %v623_v37 = vor.u32 %v7511_v25, %v619_v15  ;;  %v5462_v35 = vld [vmem:[%s4523_s26 + $0x80] sm:$0xff]   ;;  %v775_v48 = vrot.slane %v5338_v5, 1 }
  0xe3   : > { %1124 = vrot.lane.b32.xlu0 %v1077_v58, %s4460_s8  ;;  %v1079_v44 = vsel %vm1052_vm0, %v1076_v18, %v1078_v22  ;;  %v637_v54 = vshrl.u32 %v5462_v35, 16 }
  0xe4   : > { %v940_v60 = vpop.permute.xlu1 %939  ;;  %v1258_v58 = vpop.permute.xlu0 %1257  ;;  %v5458_v55 = vsel %vm504_vm3, %v623_v37, %v627_v42 }
  0xe5   : > { %v1432_v28 = vsel %vm1367_vm7, %v1362_v53, %v940_v60  ;;  %v1624_v50 = vsel %vm1367_vm7, %v1555_v62, %v1258_v58  ;;  %v7510_v53 = vshrl.u32 %v5419_v56, 16  ;;  %v7509_v60 = vshll.u32 %v5462_v35, 16 }
  0xe6   : > { %821 = vrot.lane.b32.xlu1 %v5439_v19, %s4459_s29  ;;  %2053 = vmatprep.mubr.bf16.mxu1 %v1624_v50  ;;  %v5475_v62 = vsel %vm749_vm1, %v773_v51, %v775_v48  ;;  %v873_v58 = vrot.slane %v5383_v52, 4 }
  0xe7   : > { %1172 = vrot.lane.b32.xlu0 %v5383_v52, %s4459_s29  ;;  %2054 = vmatmul.mubr.bf16.gmra.mrb[12].mxu1 %v1432_v28  ;;  %v631_v18 = vor.u32 %v7510_v53, %v627_v42  ;;  %v635_v50 = vrot.slane %v7509_v60, 1  ;;  %v1080_v60 = vrot.slane %v5419_v56, 5  ;;  %v5495_v53 = vld [vmem:[%s4523_s26 + $0x88] sm:$0xff]  }
  0xe8   : > { %v710_v15 = vpop.permute.xlu1 %709  ;;  %v1111_v2 = vpop.permute.xlu0 %1110  ;;  %v874_v51 = vsel %vm847_vm2, %v871_v57, %v873_v58 }
  0xe9   : > { %v5491_v42 = vsel %vm504_vm3, %v631_v18, %v635_v50 }
  0xea   : > { %919 = vrot.lane.b32.xlu1 %v872_v47, %s4461_s13 }
  0xeb   : > { %1237 = vrot.lane.b32.xlu0 %v5458_v55, %s4461_s13 }
  0xec   : > { %v1159_v17 = vpop.permute.xlu1 %1158  ;;  %v1147_v37 = vpop.permute.xlu0 %1146 }
  0xee   : > { %725 = vrot.lane.b32.xlu1 %v5379_v21, %s4460_s8  ;;  %v1454_v21 = vsel %vm1269_vm5, %v5033_v38, %v1111_v2  ;;  %v4422_v38 = vld [vmem:[%s4523_s26 + $0x20] sm:$0xff]   ;;  %v777_v2 = vrot.slane %v5383_v52, 1 }
  0xef   : > { %1126 = vrot.lane.b32.xlu0 %v1079_v44, %s4460_s8  ;;  %v1521_v44 = vsel %vm1318_vm6, %v1454_v21, %v1159_v17  ;;  %v1279_v57 = vsel %vm1269_vm5, %v4422_v38, %v710_v15  ;;  %v1081_v21 = vsel %vm1052_vm0, %v1078_v22, %v1080_v60  ;;  %v4423_v15 = vld [vmem:[%s4523_s26 + $0xb0] sm:$0xff]   ;;  %v875_v22 = vrot.slane %v5419_v56, 4 }
  0xf0   : > { %v808_v28 = vpop.permute.xlu1 %807  ;;  %v746_v47 = vpop.permute.xlu0 %745  ;;  %v1508_v38 = vsel %vm1269_vm5, %v5047_v23, %v1147_v37 }
  0xf1   : > { %v1328_v17 = vsel %vm1318_vm6, %v1279_v57, %v808_v28  ;;  %v5515_v28 = vsel %vm749_vm1, %v775_v48, %v777_v2  ;;  %v876_v23 = vsel %vm847_vm2, %v873_v58, %v875_v22  ;;  %v7515_v58 = vshrl.u32 %v5495_v53, 16 }
  0xf2   : > { %823 = vrot.lane.b32.xlu1 %v5475_v62, %s4459_s29 }
  0xf3   : > { %1174 = vrot.lane.b32.xlu0 %v5419_v56, %s4459_s29 }
  0xf4   : > { %v1224_v4 = vpop.permute.xlu1 %1223  ;;  %v1195_v25 = vpop.permute.xlu0 %1194 }
  0xf5   : > { %v1573_v5 = vsel %vm1367_vm7, %v1521_v44, %v1224_v4  ;;  %v7514_v4 = vshll.u32 %v5495_v53, 16 }
  0xf6   : > { %921 = vrot.lane.b32.xlu1 %v874_v51, %s4461_s13  ;;  %1917 = vmatprep.mubr.bf16.mxu0 %v1573_v5  ;;  %v1315_v51 = vsel %vm1269_vm5, %v4423_v15, %v746_v47  ;;  %v1557_v47 = vsel %vm1318_vm6, %v1508_v38, %v1195_v25  ;;  %v1082_v25 = vrot.slane %v5462_v35, 5  ;;  %v779_v15 = vrot.slane %v5419_v56, 1 }
  0xf7   : > { %1239 = vrot.lane.b32.xlu0 %v5491_v42, %s4461_s13 }
  0xf8   : > { %v906_v18 = vpop.permute.xlu1 %905  ;;  %v844_v44 = vpop.permute.xlu0 %843  ;;  %v1083_v38 = vsel %vm1052_vm0, %v1080_v60, %v1082_v25 }
  0xf9   : > { %v1381_v5 = vsel %vm1367_vm7, %v1328_v17, %v906_v18  ;;  %v1364_v57 = vsel %vm1318_vm6, %v1315_v51, %v844_v44  ;;  %v643_v18 = vrot.slane %v7514_v4, 1 }
  0xfa   : > { %727 = vrot.lane.b32.xlu1 %v5415_v34, %s4460_s8  ;;  %1918 = vmatmul.mubr.bf16.gmra.mrb[16].mxu0 %v1381_v5  ;;  %v639_v34 = vor.u32 %v637_v54, %v635_v50 }
  0xfb   : > { %1128 = vrot.lane.b32.xlu0 %v1081_v21, %s4460_s8 }
  0xfc   : > { %v942_v17 = vpop.permute.xlu1 %941  ;;  %v1260_v21 = vpop.permute.xlu0 %1259  ;;  %v5534_v50 = vsel %vm504_vm3, %v639_v34, %v643_v18  ;;  %v877_v34 = vrot.slane %v5462_v35, 4 }
  0xfd   : > { %v1435_v48 = vsel %vm1367_vm7, %v1364_v57, %v942_v17  ;;  %v1627_v5 = vsel %vm1367_vm7, %v1557_v47, %v1260_v21  ;;  %v5547_v17 = vsel %vm749_vm1, %v777_v2, %v779_v15  ;;  %v647_v21 = vor.u32 %v7515_v58, %v643_v18 }
  0xfe   : > { %825 = vrot.lane.b32.xlu1 %v5515_v28, %s4459_s29  ;;  %2061 = vmatprep.mubr.bf16.mxu1 %v1627_v5  ;;  %v1084_v18 = vrot.slane %v5495_v53, 5 }
  0xff   : > { %1176 = vrot.lane.b32.xlu0 %v5462_v35, %s4459_s29  ;;  %2062 = vmatmul.mubr.bf16.gmra.mrb[16].mxu1 %v1435_v48 }
 0x100   : > { %v712_v37 = vpop.permute.xlu1 %711  ;;  %v1113_v44 = vpop.permute.xlu0 %1112 }
 0x101   : > { %v1457_v60 = vsel %vm1269_vm5, %v5093_v16, %v1113_v44  ;;  %v4424_v16 = vld [vmem:[%s4523_s26 + $0x28] sm:$0xff]  }
 0x102   : > { %923 = vrot.lane.b32.xlu1 %v876_v23, %s4461_s13  ;;  %v5562_v23 = vsel %vm504_vm3, %v647_v21, %v4636_v45  ;;  %v1281_v44 = vsel %vm1269_vm5, %v4424_v16, %v712_v37  ;;  %v1085_v21 = vsel %vm1052_vm0, %v1082_v25, %v1084_v18 }
 0x103   : > { %1241 = vrot.lane.b32.xlu0 %v5534_v50, %s4461_s13 }
 0x104   : > { %v1161_v51 = vpop.permute.xlu1 %1160  ;;  %v1149_v57 = vpop.permute.xlu0 %1148 }
 0x105   : > { %v1523_v2 = vsel %vm1318_vm6, %v1457_v60, %v1161_v51  ;;  %v1511_v25 = vsel %vm1269_vm5, %v5111_v36, %v1149_v57 }
 0x106   : > { %729 = vrot.lane.b32.xlu1 %v5458_v55, %s4460_s8  ;;  %v878_v55 = vsel %vm847_vm2, %v875_v22, %v877_v34  ;;  %v781_v22 = vrot.slane %v5462_v35, 1 }
 0x107   : > { %1130 = vrot.lane.b32.xlu0 %v1083_v38, %s4460_s8 }
 0x108   : > { %v810_v47 = vpop.permute.xlu1 %809  ;;  %v748_v48 = vpop.permute.xlu0 %747 }
 0x109   : > { %v1330_v45 = vsel %vm1318_vm6, %v1281_v44, %v810_v47  ;;  %v879_v47 = vrot.slane %v5495_v53, 4 }
 0x10a   : > { %827 = vrot.lane.b32.xlu1 %v5547_v17, %s4459_s29 }
 0x10b   : > { %1178 = vrot.lane.b32.xlu0 %v5495_v53, %s4459_s29  ;;  %v880_v36 = vsel %vm847_vm2, %v877_v34, %v879_v47  ;;  %v4427_v34 = vld [vmem:[%s4523_s26 + $0x30] sm:$0xff]  }
 0x10c   : > { %v1226_v5 = vpop.permute.xlu1 %1225 }
 0x10d   : > { %v1197_v38 = vpop.permute.xlu0 %1196  ;;  %v1576_v4 = vsel %vm1367_vm7, %v1523_v2, %v1226_v5 }
 0x10e   : > { %925 = vrot.lane.b32.xlu1 %v878_v55, %s4461_s13  ;;  %1925 = vmatprep.mubr.bf16.mxu0 %v1576_v4  ;;  %v4425_v4 = vld [vmem:[%s4523_s26 + $0xb8] sm:$0xff]   ;;  %v5581_v55 = vsel %vm749_vm1, %v779_v15, %v781_v22  ;;  %v1559_v16 = vsel %vm1318_vm6, %v1511_v25, %v1197_v38  ;;  %v4426_v15 = vld [vmem:[%s4523_s26 + $0x90] sm:$0xff]   ;;  %v783_v38 = vrot.slane %v5495_v53, 1 }
 0x10f   : > { %1243 = vrot.lane.b32.xlu0 %v5562_v23, %s4461_s13  ;;  %v1317_v37 = vsel %vm1269_vm5, %v4425_v4, %v748_v48  ;;  %v1086_v44 = vrot.slane %v4426_v15, 5 }
 0x110   : > { %v908_v51 = vpop.permute.xlu1 %907 }
 0x111   : > { %v846_v60 = vpop.permute.xlu0 %845  ;;  %v1384_v58 = vsel %vm1367_vm7, %v1330_v45, %v908_v51 }
 0x112   : > { %731 = vrot.lane.b32.xlu1 %v5491_v42, %s4460_s8  ;;  %1926 = vmatmul.mubr.bf16.gmra.mrb[20].mxu0 %v1384_v58  ;;  %v1366_v2 = vsel %vm1318_vm6, %v1317_v37, %v846_v60  ;;  %v881_v37 = vrot.slane %v4426_v15, 4 }
 0x113   : > { %1132 = vrot.lane.b32.xlu0 %v1085_v21, %s4460_s8  ;;  %v1087_v21 = vsel %vm1052_vm0, %v1084_v18, %v1086_v44 }
 0x114   : > { %v944_v5 = vpop.permute.xlu1 %943 }
 0x115   : > { %v1262_v42 = vpop.permute.xlu0 %1261  ;;  %v1438_v58 = vsel %vm1367_vm7, %v1366_v2, %v944_v5 }
 0x116   : > { %829 = vrot.lane.b32.xlu1 %v5581_v55, %s4459_s29  ;;  %v1630_v48 = vsel %vm1367_vm7, %v1559_v16, %v1262_v42  ;;  %v7536_v42 = vrot.slane %v4540_v6, 5 }
 0x117   : > { %1180 = vrot.lane.b32.xlu0 %v4426_v15, %s4459_s29  ;;  %2069 = vmatprep.mubr.bf16.mxu1 %v1630_v48 }
 0x118   : > { %2070 = vmatmul.mubr.bf16.gmra.mrb[20].mxu1 %v1438_v58  ;;  %v714_v57 = vpop.permute.xlu1 %713  ;;  %v1089_v58 = vsel %vm1052_vm0, %v1086_v44, %v7536_v42 }
 0x119   : > { %v1115_v45 = vpop.permute.xlu0 %1114  ;;  %3970 = vmatprep.mubr.msk.bf16.mxu1 %vm1269_vm5, %v5015_v24  ;;  %v1283_v4 = vsel %vm1269_vm5, %v4427_v34, %v714_v57  ;;  %v5608_v24 = vsel %vm749_vm1, %v781_v22, %v783_v38  ;;  %v4429_v34 = vld [vmem:[%s4523_s26 + $0x40] sm:$0xff]  }
 0x11a   : > { %927 = vrot.lane.b32.xlu1 %v880_v36, %s4461_s13 }
 0x11b   : > { %1245 = vrot.lane.b32.xlu0 %v4669_v59, %s4461_s13  ;;  %v1460_v59 = vsel %vm1269_vm5, %v5180_v26, %v1115_v45 }
 0x11c   : > { %v812_v51 = vpop.permute.xlu1 %811 }
 0x11d   : > { %v1163_v60 = vpop.permute.xlu0 %1162  ;;  %v1332_v25 = vsel %vm1318_vm6, %v1283_v4, %v812_v51 }
 0x11e   : > { %733 = vrot.lane.b32.xlu1 %v5534_v50, %s4460_s8  ;;  %v1525_v50 = vsel %vm1318_vm6, %v1460_v59, %v1163_v60 }
 0x11f   : > { %1134 = vrot.lane.b32.xlu0 %v1087_v21, %s4460_s8 }
 0x120   : > { %3971 = vmatmul.mubr.msk.bf16.vlgmr.msra.gmra.mrb[24].mxu1 %vm1269_vm5, %v5073_v27  ;;  %v910_v18 = vpop.permute.xlu1 %909  ;;  %v882_v27 = vsel %vm847_vm2, %v879_v47, %v881_v37  ;;  %v4428_v47 = vld [vmem:[%s4523_s26 + $0x38] sm:$0xff]  }
 0x121   : > { %v1228_v2 = vpop.permute.xlu0 %1227  ;;  %v1387_v5 = vsel %vm1367_vm7, %v1332_v25, %v910_v18  ;;  %3974 = vmatprep.mubr.msk.bf16.mxu1 %vm1269_vm5, %v5152_v39 }
 0x122   : > { %831 = vrot.lane.b32.xlu1 %v5608_v24, %s4459_s29  ;;  %v1579_v26 = vsel %vm1367_vm7, %v1525_v50, %v1228_v2 }
 0x123   : > { %1182 = vrot.lane.b32.xlu0 %v5280_v49, %s4459_s29  ;;  %1933 = vmatprep.mubr.bf16.mxu0 %v1579_v26 }
 0x124   : > { %1934 = vmatmul.mubr.bf16.gmra.mrb[24].mxu0 %v1387_v5  ;;  %v716_v22 = vpop.permute.xlu1 %715 }
 0x125   : > { %v1117_v16 = vpop.permute.xlu0 %1116  ;;  %v1285_v48 = vsel %vm1269_vm5, %v4428_v47, %v716_v22 }
 0x126   : > { %929 = vrot.lane.b32.xlu1 %v882_v27, %s4461_s13  ;;  %v1463_v15 = vsel %vm1269_vm5, %v5233_v30, %v1117_v16  ;;  %v7538_v30 = vrot.slane %v4540_v6, 4 }
 0x127   : > { %1247 = vrot.lane.b32.xlu0 %v4765_v61, %s4461_s13  ;;  %v7537_v61 = vrot.slane %v4559_v14, 1 }
 0x128   : > { %3975 = vmatmul.mubr.msk.bf16.gmra.mrb[28].mxu1 %vm1269_vm5, %v5241_v32  ;;  %v814_v39 = vpop.permute.xlu1 %813 }
 0x129   : > { %v1165_v49 = vpop.permute.xlu0 %1164  ;;  %3978 = vmatprep.mubr.msk.bf16.mxu1 %vm1269_vm5, %v5286_v9  ;;  %v5643_v32 = vsel %vm749_vm1, %v783_v38, %v7537_v61  ;;  %v1334_v36 = vsel %vm1318_vm6, %v1285_v48, %v814_v39  ;;  %v884_v38 = vsel %vm847_vm2, %v881_v37, %v7538_v30 }
 0x12a   : > { %735 = vrot.lane.b32.xlu1 %v5562_v23, %s4460_s8  ;;  %v1527_v9 = vsel %vm1318_vm6, %v1463_v15, %v1165_v49 }
 0x12b   : > { %1136 = vrot.lane.b32.xlu0 %v1089_v58, %s4460_s8 }
 0x12c   : > { %v912_v57 = vpop.permute.xlu1 %911 }
 0x12d   : > { %v1230_v44 = vpop.permute.xlu0 %1229  ;;  %v1390_v23 = vsel %vm1367_vm7, %v1334_v36, %v912_v57 }
 0x12e   : > { %833 = vrot.lane.b32.xlu1 %v5643_v32, %s4459_s29  ;;  %v1582_v45 = vsel %vm1367_vm7, %v1527_v9, %v1230_v44 }
 0x12f   : > { %1184 = vrot.lane.b32.xlu0 %v5357_v33, %s4459_s29  ;;  %1941 = vmatprep.mubr.bf16.mxu0 %v1582_v45 }
 0x130   : > { %1942 = vmatmul.mubr.bf16.gmra.mrb[28].mxu0 %v1390_v23  ;;  %3979 = vmatmul.mubr.msk.bf16.gmra.mrb[32].mxu1 %vm1269_vm5, %v5321_v10  ;;  %v718_v51 = vpop.permute.xlu1 %717 }
 0x131   : > { %v1119_v21 = vpop.permute.xlu0 %1118  ;;  %3982 = vmatprep.mubr.msk.bf16.mxu1 %vm1269_vm5, %v5363_v0  ;;  %v1287_v6 = vsel %vm1269_vm5, %v4429_v34, %v718_v51 }
 0x132   : > { %931 = vrot.lane.b32.xlu1 %v884_v38, %s4461_s13  ;;  %v1466_v4 = vsel %vm1269_vm5, %v5275_v12, %v1119_v21  ;;  %v7540_v38 = vshll.u32 %v5383_v52, 16 }
 0x133   : > { %1249 = vrot.lane.b32.xlu0 %v4918_v13, %s4461_s13  ;;  %s4052_s13 = smul.u32 384, %s7579_s15 }
 0x134   : > { %v816_v33 = vpop.permute.xlu1 %815 }
 0x135   : > { %v1167_v60 = vpop.permute.xlu0 %1166  ;;  %v1336_v10 = vsel %vm1318_vm6, %v1287_v6, %v816_v33  ;;  %s6609_s30 = scalar_lea.vmem %s7492_s4, %s4052_s13 }
 0x136   : > { %v1529_v0 = vsel %vm1318_vm6, %v1466_v4, %v1167_v60 }
 0x138   : > { %3983 = vmatmul.mubr.msk.bf16.gmra.mrb[36].mxu1 %vm1269_vm5, %v5401_v20  ;;  %v914_v37 = vpop.permute.xlu1 %913 }
 0x139   : > { %v1232_v59 = vpop.permute.xlu0 %1231  ;;  %v1393_v25 = vsel %vm1367_vm7, %v1336_v10, %v914_v37  ;;  %3986 = vmatprep.mubr.msk.bf16.mxu1 %vm1269_vm5, %v5439_v19  ;;  %v7541_v10 = vld [vmem:[#allocation4_spill] sm:$0xff] }
 0x13a   : > { %v1585_v13 = vsel %vm1367_vm7, %v1529_v0, %v1232_v59  ;;  %v7542_v0 = vshrl.u32 %v5419_v56, 16 }
 0x13b   : > { %1949 = vmatprep.mubr.bf16.mxu0 %v1585_v13  ;;  %v7543_v13 = vshll.u32 %v5419_v56, 16 }
 0x13c   : > { %1950 = vmatmul.mubr.bf16.gmra.mrb[32].mxu0 %v1393_v25  ;;  %v720_v18 = vpop.permute.xlu1 %719 }
 0x13d   : > { %v1121_v12 = vpop.permute.xlu0 %1120  ;;  %v1289_v2 = vsel %vm1269_vm5, %v5127_v29, %v720_v18  ;;  %v1002_v18 = vrot.slane %v7543_v13, 5 }
 0x13e   : > { %v1469_v19 = vsel %vm1269_vm5, %v5315_v63, %v1121_v12  ;;  %v4430_v12 = vld [vmem:[%s4644_s12 + $0x8] sm:$0xff]  }
 0x140   : > { %3987 = vmatmul.mubr.msk.bf16.gmra.mrb[40].mxu1 %vm1269_vm5, %v5475_v62  ;;  %v818_v50 = vpop.permute.xlu1 %817 }
 0x141   : > { %v1169_v20 = vpop.permute.xlu0 %1168  ;;  %3990 = vmatprep.mubr.msk.bf16.mxu1 %vm1269_vm5, %v5515_v28  ;;  %v1338_v5 = vsel %vm1318_vm6, %v1289_v2, %v818_v50  ;;  %v1263_v50 = vrot.slane %v4430_v12, 1  ;;  %v4431_v2 = vld [vmem:[%s4644_s12 + $0x10] sm:$0xff]  }
 0x142   : > { %v1531_v27 = vsel %vm1318_vm6, %v1469_v19, %v1169_v20  ;;  %v1265_v19 = vrot.slane %v4431_v2, 1 }
 0x144   : > { %v916_v26 = vpop.permute.xlu1 %915 }
 0x145   : > { %v1234_v22 = vpop.permute.xlu0 %1233  ;;  %v1396_v16 = vsel %vm1367_vm7, %v1338_v5, %v916_v26 }
 0x146   : > { %v1588_v62 = vsel %vm1367_vm7, %v1531_v27, %v1234_v22  ;;  %v7545_v22 = vld [vmem:[#allocation3_spill] sm:$0xff] }
 0x147   : > { %1957 = vmatprep.mubr.bf16.mxu0 %v1588_v62 }
 0x148   : > { %1958 = vmatmul.mubr.bf16.gmra.mrb[36].mxu0 %v1396_v16  ;;  %3991 = vmatmul.mubr.msk.bf16.gmra.mrb[44].mxu1 %vm1269_vm5, %v5547_v17  ;;  %v722_v28 = vpop.permute.xlu1 %721  ;;  %v7546_v16 = vrot.slane %v7545_v22, 1 }
 0x149   : > { %v1123_v29 = vpop.permute.xlu0 %1122  ;;  %3994 = vmatprep.mubr.msk.bf16.mxu1 %vm1269_vm5, %v5581_v55  ;;  %v1291_v42 = vsel %vm1269_vm5, %v5222_v7, %v722_v28 }
 0x14a   : > { %v1472_v58 = vsel %vm1269_vm5, %v5352_v3, %v1123_v29  ;;  %v1264_v62 = vsel %vm749_vm1, %v7546_v16, %v1263_v50  ;;  %v1266_v29 = vsel %vm749_vm1, %v1263_v50, %v1265_v19 }
 0x14c   : > { %v820_v63 = vpop.permute.xlu1 %819 }
 0x14d   : > { %v1171_v39 = vpop.permute.xlu0 %1170  ;;  %v1340_v49 = vsel %vm1318_vm6, %v1291_v42, %v820_v63 }
 0x14e   : > { %v1533_v17 = vsel %vm1318_vm6, %v1472_v58, %v1171_v39 }
 0x150   : > { %3995 = vmatmul.mubr.msk.bf16.gmra.mrb[48].mxu1 %vm1269_vm5, %v5608_v24  ;;  %v918_v47 = vpop.permute.xlu1 %917 }
 0x151   : > { %v1236_v48 = vpop.permute.xlu0 %1235  ;;  %v1399_v61 = vsel %vm1367_vm7, %v1340_v49, %v918_v47  ;;  %3998 = vmatprep.mubr.msk.bf16.mxu1 %vm1269_vm5, %v5643_v32 }
 0x152   : > { %v1591_v55 = vsel %vm1367_vm7, %v1533_v17, %v1236_v48  ;;  %v4432_v17 = vld [vmem:[%s4644_s12 + $0x18] sm:$0xff]  }
 0x153   : > { %1965 = vmatprep.mubr.bf16.mxu0 %v1591_v55  ;;  %v1267_v48 = vrot.slane %v4432_v17, 1 }
 0x154   : > { %1966 = vmatmul.mubr.bf16.gmra.mrb[40].mxu0 %v1399_v61  ;;  %v724_v7 = vpop.permute.xlu1 %723  ;;  %v7547_v61 = vld [vmem:[#allocation6_spill] sm:$0xff] }
 0x155   : > { %v1125_v3 = vpop.permute.xlu0 %1124  ;;  %v1293_v36 = vsel %vm1269_vm5, %v5261_v1, %v724_v7 }
 0x156   : > { %v1475_v32 = vsel %vm1269_vm5, %v5395_v8, %v1125_v3 }
 0x158   : > { %3999 = vmatmul.mubr.msk.bf16.gmra.mrb[52].mxu1 %vm1269_vm5, %v4602_v31  ;;  %v822_v15 = vpop.permute.xlu1 %821  ;;  %v7539_v31 = vshrl.u32 %v5383_v52, 16 }
 0x159   : > { %v1173_v24 = vpop.permute.xlu0 %1172  ;;  %4002 = vmatprep.mubr.msk.bf16.mxu1 %vm1269_vm5, %v4807_v43  ;;  %v1342_v57 = vsel %vm1318_vm6, %v1293_v36, %v822_v15  ;;  %v998_v43 = vrot.slane %v7540_v38, 5 }
 0x15a   : > { %v1535_v44 = vsel %vm1318_vm6, %v1475_v32, %v1173_v24  ;;  %v997_v30 = vrot.slane %v7539_v31, 4  ;;  %v1005_v32 = vrot.slane %v637_v54, 4  ;;  %v7548_v31 = vshll.u32 %v5462_v35, 16 }
 0x15c   : > { %v920_v9 = vpop.permute.xlu1 %919  ;;  %v999_v8 = vor.u32 %v998_v43, %v997_v30  ;;  %v1006_v30 = vrot.slane %v7548_v31, 5 }
 0x15d   : > { %v1238_v23 = vpop.permute.xlu0 %1237  ;;  %v1402_v45 = vsel %vm1367_vm7, %v1342_v57, %v920_v9 }
 0x15e   : > { %v1594_v51 = vsel %vm1367_vm7, %v1535_v44, %v1238_v23  ;;  %v1000_v60 = vsel %vm945_vm4, %v5389_v46, %v999_v8 }
 0x15f   : > { %1973 = vmatprep.mubr.bf16.mxu0 %v1594_v51  ;;  %v1007_v51 = vor.u32 %v1006_v30, %v1005_v32 }
 0x160   : > { %1974 = vmatmul.mubr.bf16.gmra.mrb[44].mxu0 %v1402_v45  ;;  %4003 = vmatmul.mubr.msk.bf16.gmra.mrb[56].mxu1 %vm1269_vm5, %v4964_v11  ;;  %v726_v1 = vpop.permute.xlu1 %725  ;;  %v1268_v45 = vsel %vm749_vm1, %v1265_v19, %v1267_v48 }
 0x161   : > { %v1127_v21 = vpop.permute.xlu0 %1126  ;;  %4006 = vmatprep.mubr.msk.bf16.mxu1 %vm1269_vm5, %v5044_v41  ;;  %v1295_v6 = vsel %vm1269_vm5, %v5306_v40, %v726_v1  ;;  %v1001_v41 = vrot.slane %v7542_v0, 4  ;;  %v7544_v40 = vld [vmem:[#allocation5_spill] sm:$0xff]  ;;  %v7549_v0 = vshrl.u32 %v5495_v53, 16 }
 0x162   : > { %v1478_v4 = vsel %vm1269_vm5, %v1000_v60, %v1127_v21 }
 0x163   : > { %v1003_v26 = vor.u32 %v1002_v18, %v1001_v41  ;;  %v1009_v41 = vrot.slane %v7549_v0, 4 }
 0x164   : > { %v824_v33 = vpop.permute.xlu1 %823 }
 0x165   : > { %v1175_v34 = vpop.permute.xlu0 %1174  ;;  %v1344_v11 = vsel %vm1318_vm6, %v1295_v6, %v824_v33  ;;  %v1004_v58 = vsel %vm945_vm4, %v999_v8, %v1003_v26  ;;  %v1008_v21 = vsel %vm945_vm4, %v1003_v26, %v1007_v51 }
 0x166   : > { %v1537_v59 = vsel %vm1318_vm6, %v1478_v4, %v1175_v34 }
 0x168   : > { %4007 = vmatmul.mubr.msk.bf16.gmra.mrb[60].mxu1 %vm1269_vm5, %v7541_v10  ;;  %v922_v37 = vpop.permute.xlu1 %921 }
 0x169   : > { %v1240_v25 = vpop.permute.xlu0 %1239  ;;  %v1405_v46 = vsel %vm1367_vm7, %v1344_v11, %v922_v37  ;;  %4010 = vmatprep.mubr.msk.bf16.mxu1 %vm1269_vm5, %v7544_v40 }
 0x16a   : > { %v1597_v20 = vsel %vm1367_vm7, %v1537_v59, %v1240_v25  ;;  %v7550_v59 = vshll.u32 %v5495_v53, 16 }
 0x16b   : > { %1981 = vmatprep.mubr.bf16.mxu0 %v1597_v20 }
 0x16c   : > { %1982 = vmatmul.mubr.bf16.gmra.mrb[48].mxu0 %v1405_v46  ;;  %v728_v5 = vpop.permute.xlu1 %727  ;;  %v1010_v25 = vrot.slane %v7550_v59, 5 }
 0x16d   : > { %v1129_v27 = vpop.permute.xlu0 %1128  ;;  %v1297_v55 = vsel %vm1269_vm5, %v7547_v61, %v728_v5 }
 0x16e   : > { %v5747_v28 = vpop.f32.mrb[0].mxu0  ;;  %v1481_v3 = vsel %vm1269_vm5, %v1004_v58, %v1129_v27  ;;  %v1011_v13 = vor.u32 %v1010_v25, %v1009_v41 }
 0x16f   : > { %v1889_v63 = vpop.f32.mrb[1].mxu0 }
 0x170   : > { %4011 = vmatmul.mubr.msk.bf16.gmra.mrb[64].mxu1 %vm1269_vm5, %v1264_v62  ;;  %v826_v39 = vpop.permute.xlu1 %825  ;;  %v5751_v42 = vpop.f32.mrb[2].mxu0  ;;  %v1012_v19 = vsel %vm945_vm4, %v1007_v51, %v1011_v13  ;;  %v7551_v63 = vshrl.u32 %v4559_v14, 16 }
 0x171   : > { %v1177_v49 = vpop.permute.xlu0 %1176  ;;  %v1892_v47 = vpop.f32.mrb[3].mxu0  ;;  %4014 = vmatprep.mubr.msk.bf16.mxu1 %vm1269_vm5, %v1266_v29  ;;  %v1346_v15 = vsel %vm1318_vm6, %v1297_v55, %v826_v39 }
 0x172   : > { %v5758_v7 = vpop.f32.mrb[0].mxu1  ;;  %v1539_v57 = vsel %vm1318_vm6, %v1481_v3, %v1177_v49  ;;  %v1013_v39 = vrot.slane %v7551_v63, 4 }
 0x173   : > { %v2033_v24 = vpop.f32.mrb[1].mxu1 }
 0x174   : > { %v924_v36 = vpop.permute.xlu1 %923  ;;  %v5765_v9 = vpop.f32.mrb[2].mxu1 }
 0x175   : > { %v1242_v44 = vpop.permute.xlu0 %1241  ;;  %v1408_v23 = vsel %vm1367_vm7, %v1346_v15, %v924_v36  ;;  %v2036_v38 = vpop.f32.mrb[3].mxu1 }
 0x176   : > { %v1600_v43 = vsel %vm1367_vm7, %v1539_v57, %v1242_v44 }
 0x177   : > { %1989 = vmatprep.mubr.bf16.mxu0 %v1600_v43 }
 0x178   : > { %1990 = vmatmul.mubr.bf16.gmra.mrb[52].mxu0 %v1408_v23  ;;  %4015 = vmatmul.mubr.msk.bf16.gmra.mrb[68].mxu1 %vm1269_vm5, %v1268_v45  ;;  %v730_v54 = vpop.permute.xlu1 %729 }
 0x179   : > { %v1131_v1 = vpop.permute.xlu0 %1130  ;;  %v1299_v60 = vsel %vm1269_vm5, %v5383_v52, %v730_v54 }
 0x17a   : > { %v1484_v34 = vsel %vm1269_vm5, %v1008_v21, %v1131_v1 }
 0x17c   : > { %v828_v8 = vpop.permute.xlu1 %827 }
 0x17d   : > { %v1179_v33 = vpop.permute.xlu0 %1178  ;;  %v1348_v6 = vsel %vm1318_vm6, %v1299_v60, %v828_v8  ;;  %v7553_v60 = vld [vmem:[#allocation2_spill] sm:$0xff] }
 0x17e   : > { %v1541_v11 = vsel %vm1318_vm6, %v1484_v34, %v1179_v33 }
 0x180   : > { %v926_v4 = vpop.permute.xlu1 %925 }
 0x181   : > { %v1244_v10 = vpop.permute.xlu0 %1243  ;;  %v1411_v37 = vsel %vm1367_vm7, %v1348_v6, %v926_v4 }
 0x182   : > { %v1603_v46 = vsel %vm1367_vm7, %v1541_v11, %v1244_v10 }
 0x183   : > { %1997 = vmatprep.mubr.bf16.mxu0 %v1603_v46 }
 0x184   : > { %1998 = vmatmul.mubr.bf16.gmra.mrb[56].mxu0 %v1411_v37  ;;  %v732_v52 = vpop.permute.xlu1 %731 }
 0x185   : > { %v1133_v18 = vpop.permute.xlu0 %1132  ;;  %v5785_v40 = vpop.f32.mrb[4].mxu0  ;;  %v1301_v26 = vsel %vm1269_vm5, %v5419_v56, %v732_v52  ;;  %v7552_v56 = vshll.u32 %v4559_v14, 16 }
 0x186   : > { %v1897_v12 = vpop.f32.mrb[5].mxu0  ;;  %v1487_v22 = vsel %vm1269_vm5, %v1012_v19, %v1133_v18 }
 0x187   : > { %v5787_v50 = vpop.f32.mrb[6].mxu0  ;;  %v1014_v48 = vrot.slane %v7552_v56, 5  ;;  %v1669_v56 = vlaneseq }
 0x188   : > { %v830_v20 = vpop.permute.xlu1 %829  ;;  %v1900_v2 = vpop.f32.mrb[7].mxu0 }
 0x189   : > { %v1181_v5 = vpop.permute.xlu0 %1180  ;;  %v1350_v16 = vsel %vm1318_vm6, %v1301_v26, %v830_v20  ;;  %v1015_v15 = vor.u32 %v1014_v48, %v1013_v39 }
 0x18a   : > { %v5792_v27 = vpop.f32.mrb[4].mxu1  ;;  %v1543_v58 = vsel %vm1318_vm6, %v1487_v22, %v1181_v5 }
 0x18b   : > { %v2041_v62 = vpop.f32.mrb[5].mxu1  ;;  %v1016_v32 = vsel %vm945_vm4, %v1011_v13, %v1015_v15  ;;  %v1020_v34 = vsel %vm945_vm4, %v1015_v15, %v7553_v60 }
 0x18c   : > { %v928_v29 = vpop.permute.xlu1 %927  ;;  %v5799_v49 = vpop.f32.mrb[6].mxu1 }
 0x18d   : > { %v1246_v47 = vpop.permute.xlu0 %1245  ;;  %v1414_v17 = vsel %vm1367_vm7, %v1350_v16, %v928_v29  ;;  %v2044_v61 = vpop.f32.mrb[7].mxu1 }
 0x18e   : > { %v1606_v55 = vsel %vm1367_vm7, %v1543_v58, %v1246_v47 }
 0x18f   : > { %2005 = vmatprep.mubr.bf16.mxu0 %v1606_v55  ;;  %v5842_v55 = vshrl.u32 %v1669_v56, 7 }
 0x190   : > { %2006 = vmatmul.mubr.bf16.gmra.mrb[60].mxu0 %v1414_v17  ;;  %v734_v3 = vpop.permute.xlu1 %733 }
 0x191   : > { %v1135_v24 = vpop.permute.xlu0 %1134  ;;  %v1303_v44 = vsel %vm1269_vm5, %v5462_v35, %v734_v3 }
 0x192   : > { %v1490_v23 = vsel %vm1269_vm5, %v1016_v32, %v1135_v24  ;;  %v1671_v24 = vsub.s32 0, %v5842_v55  ;;  %v1668_v32 = vld [vmem:[%s7491_s3] sm:$0x7] }
 0x194   : > { %v832_v36 = vpop.permute.xlu1 %831 }
 0x195   : > { %v1183_v57 = vpop.permute.xlu0 %1182  ;;  %v1352_v14 = vsel %vm1318_vm6, %v1303_v44, %v832_v36 }
 0x196   : > { %v1545_v31 = vsel %vm1318_vm6, %v1490_v23, %v1183_v57 }
 0x198   : > { %v930_v45 = vpop.permute.xlu1 %929 }
 0x199   : > { %v1248_v30 = vpop.permute.xlu0 %1247  ;;  %v1417_v38 = vsel %vm1367_vm7, %v1352_v14, %v930_v45  ;;  %v5852_v14 = vrot.slane %v1668_v32, %v1671_v24 }
 0x19a   : > { %v1609_v43 = vsel %vm1367_vm7, %v1545_v31, %v1248_v30 }
 0x19b   : > { %2013 = vmatprep.mubr.bf16.mxu0 %v1609_v43  ;;  %v1896_v45 = vadd.f32 %v5785_v40, %v5852_v14  ;;  %v1888_v31 = vadd.f32 %v5747_v28, %v5852_v14 }
 0x19c   : > { %2014 = vmatmul.mubr.bf16.gmra.mrb[64].mxu0 %v1417_v38  ;;  %v736_v54 = vpop.permute.xlu1 %735  ;;  %v1899_v38 = vadd.f32 %v5787_v50, %v5852_v14 }
 0x19d   : > { %v1137_v51 = vpop.permute.xlu0 %1136  ;;  %v5813_v1 = vpop.f32.mrb[8].mxu0  ;;  %v1305_v4 = vsel %vm1269_vm5, %v5495_v53, %v736_v54 }
 0x19e   : > { %v1905_v8 = vpop.f32.mrb[9].mxu0  ;;  %v1493_v10 = vsel %vm1269_vm5, %v1020_v34, %v1137_v51  ;;  %v1891_v51 = vadd.f32 %v5751_v42, %v5852_v14 }
 0x19f   : > { %v5815_v35 = vpop.f32.mrb[10].mxu0 }
 0x1a0   : > { %v834_v21 = vpop.permute.xlu1 %833  ;;  %v1908_v33 = vpop.f32.mrb[11].mxu0 }
 0x1a1   : > { %v1185_v6 = vpop.permute.xlu0 %1184  ;;  %v1354_v37 = vsel %vm1318_vm6, %v1305_v4, %v834_v21 }
 0x1a2   : > { %v5821_v11 = vpop.f32.mrb[8].mxu1  ;;  %v1547_v59 = vsel %vm1318_vm6, %v1493_v10, %v1185_v6 }
 0x1a3   : > { %v2049_v0 = vpop.f32.mrb[9].mxu1 }
 0x1a4   : > { %v932_v41 = vpop.permute.xlu1 %931  ;;  %v5826_v25 = vpop.f32.mrb[10].mxu1  ;;  %v1904_v0 = vadd.f32 %v5813_v1, %v5852_v14 }
 0x1a5   : > { %v1250_v46 = vpop.permute.xlu0 %1249  ;;  %v1420_v52 = vsel %vm1367_vm7, %v1354_v37, %v932_v41  ;;  %v2052_v13 = vpop.f32.mrb[11].mxu1 }
 0x1a6   : > { %v1612_v18 = vsel %vm1367_vm7, %v1547_v59, %v1250_v46  ;;  %v1907_v13 = vadd.f32 %v5815_v35, %v5852_v14 }
 0x1a7   : > { %2021 = vmatprep.mubr.bf16.mxu0 %v1612_v18 }
 0x1a8   : > { %2022 = vmatmul.mubr.bf16.gmra.mrb[68].mxu0 %v1420_v52 }
 0x1b5   : > { %v1911_v53 = vpop.f32.mrb[12].mxu0 }
 0x1b6   : > { %v1913_v12 = vpop.f32.mrb[13].mxu0  ;;  %v1912_v42 = vadd.f32 %v1911_v53, %v5852_v14 }
 0x1b7   : > { %v1914_v20 = vpop.f32.mrb[14].mxu0 }
 0x1b8   : > { %v1916_v2 = vpop.f32.mrb[15].mxu0  ;;  %v1915_v59 = vadd.f32 %v1914_v20, %v5852_v14 }
 0x1ba   : > { %v5830_v19 = vpop.f32.mrb[12].mxu1 }
 0x1bb   : > { %v2057_v5 = vpop.f32.mrb[13].mxu1 }
 0x1bc   : > { %v5832_v26 = vpop.f32.mrb[14].mxu1 }
 0x1bd   : > { %v2060_v22 = vpop.f32.mrb[15].mxu1 }
 0x1cd   : > { %v5834_v16 = vpop.f32.mrb[16].mxu0 }
 0x1ce   : > { %v1921_v62 = vpop.f32.mrb[17].mxu0 }
 0x1cf   : > { %v5836_v29 = vpop.f32.mrb[18].mxu0 }
 0x1d0   : > { %v1924_v63 = vpop.f32.mrb[19].mxu0 }
 0x1d1   : > { %v1920_v63 = vadd.f32 %v5834_v16, %v5852_v14 }
 0x1d2   : > { %v5838_v39 = vpop.f32.mrb[16].mxu1 }
 0x1d3   : > { %v2065_v58 = vpop.f32.mrb[17].mxu1 }
 0x1d4   : > { %v5840_v47 = vpop.f32.mrb[18].mxu1 }
 0x1d5   : > { %v2068_v17 = vpop.f32.mrb[19].mxu1 }
 0x1e5   : > { %v1927_v48 = vpop.f32.mrb[20].mxu0 }
 0x1e6   : > { %v1929_v61 = vpop.f32.mrb[21].mxu0  ;;  %v1928_v20 = vadd.f32 %v1927_v48, %v5852_v14  ;;  %v1923_v48 = vadd.f32 %v5836_v29, %v5852_v14 }
 0x1e7   : > { %v1930_v3 = vpop.f32.mrb[22].mxu0 }
 0x1e8   : > { %v1932_v15 = vpop.f32.mrb[23].mxu0  ;;  %v1931_v56 = vadd.f32 %v1930_v3, %v5852_v14 }
 0x1eb   : > { %v5845_v36 = vpop.f32.mrb[20].mxu1 }
 0x1ec   : > { %v2073_v57 = vpop.f32.mrb[21].mxu1 }
 0x1ed   : > { %v5850_v44 = vpop.f32.mrb[22].mxu1 }
 0x1ee   : > { %v2076_v23 = vpop.f32.mrb[23].mxu1 }
 0x1f3   : > { %v3972_v30 = vpop.f32.mrb[24].mxu1 }
 0x1f4   : > { %v5860_v43 = vadd.f32 %v3972_v30, %v1896_v45  ;;  %v2112_v54 = vpop.f32.mrb[25].mxu1 }
 0x1f5   : > { %v5864_v8 = vadd.f32 %v2112_v54, %v1888_v31  ;;  %v3973_v21 = vpop.f32.mrb[26].mxu1 }
 0x1f6   : > { %v5866_v33 = vadd.f32 %v3973_v21, %v1899_v38  ;;  %v2115_v40 = vpop.f32.mrb[27].mxu1  ;;  %v2310_v28 = vsel %vm2303_vm8, %v5860_v43, 0.0 }
 0x1f7   : > { %v5870_v60 = vadd.f32 %v2115_v40, %v1891_v51  ;;  %2311 = vadd.xlane.f32.xlu0 %v2310_v28  ;;  %v1935_v34 = vpop.f32.mrb[24].mxu0  ;;  %v2304_v37 = vsel %vm2303_vm8, %v5864_v8, 0.0 }
 0x1f8   : > { %v1937_v50 = vpop.f32.mrb[25].mxu0  ;;  %v2313_v1 = vsel %vm2303_vm8, %v5866_v33, 0.0  ;;  %v1936_v21 = vadd.f32 %v1935_v34, %v5852_v14 }
 0x1f9   : > { %v1938_v6 = vpop.f32.mrb[26].mxu0  ;;  %v2307_v4 = vsel %vm2303_vm8, %v5870_v60, 0.0 }
 0x1fa   : > { %2308 = vadd.xlane.f32.xlu1 %v2307_v4  ;;  %v1940_v10 = vpop.f32.mrb[27].mxu0 }
 0x1fb   : > { %v3976_v41 = vpop.f32.mrb[28].mxu1  ;;  %2305 = vadd.xlane.f32.xlu0 %v2304_v37 }
 0x1fc   : > { %v5880_v46 = vadd.f32 %v3976_v41, %v1912_v42  ;;  %v2128_v52 = vpop.f32.mrb[29].mxu1  ;;  %v1939_v42 = vadd.f32 %v1938_v6, %v5852_v14 }
 0x1fd   : > { %v5884_v18 = vadd.f32 %v2128_v52, %v1904_v0  ;;  %v3977_v53 = vpop.f32.mrb[30].mxu1 }
 0x1fe   : > { %v5886_v12 = vadd.f32 %v3977_v53, %v1915_v59  ;;  %v2131_v2 = vpop.f32.mrb[31].mxu1  ;;  %v2322_v5 = vsel %vm2303_vm8, %v5880_v46, 0.0 }
 0x1ff   : > { %v5892_v22 = vadd.f32 %v2131_v2, %v1907_v13  ;;  %2323 = vadd.xlane.f32.xlu1 %v2322_v5  ;;  %2314 = vadd.xlane.f32.xlu0 %v2313_v1  ;;  %v2316_v35 = vsel %vm2303_vm8, %v5884_v18, 0.0 }
 0x200   : > { %v2325_v62 = vsel %vm2303_vm8, %v5886_v12, 0.0 }
 0x201   : > { %v2319_v3 = vsel %vm2303_vm8, %v5892_v22, 0.0 }
 0x203   : > { %v3980_v58 = vpop.f32.mrb[32].mxu1  ;;  %2317 = vadd.xlane.f32.xlu1 %v2316_v35  ;;  %2326 = vadd.xlane.f32.xlu0 %v2325_v62  ;;  %v1943_v17 = vpop.f32.mrb[28].mxu0 }
 0x204   : > { %v5902_v61 = vadd.f32 %v3980_v58, %v1928_v20  ;;  %v1945_v15 = vpop.f32.mrb[29].mxu0  ;;  %v2144_v24 = vpop.f32.mrb[33].mxu1  ;;  %v1944_v29 = vadd.f32 %v1943_v17, %v5852_v14 }
 0x205   : > { %v5906_v32 = vadd.f32 %v2144_v24, %v1920_v63  ;;  %v1946_v57 = vpop.f32.mrb[30].mxu0  ;;  %v3981_v23 = vpop.f32.mrb[34].mxu1 }
 0x206   : > { %v5908_v45 = vadd.f32 %v3981_v23, %v1931_v56  ;;  %v1948_v16 = vpop.f32.mrb[31].mxu0  ;;  %v2147_v31 = vpop.f32.mrb[35].mxu1  ;;  %v2334_v30 = vsel %vm2303_vm8, %v5902_v61, 0.0  ;;  %v1947_v28 = vadd.f32 %v1946_v57, %v5852_v14 }
 0x207   : > { %v5914_v38 = vadd.f32 %v2147_v31, %v1923_v48  ;;  %2335 = vadd.xlane.f32.xlu1 %v2334_v30  ;;  %2320 = vadd.xlane.f32.xlu0 %v2319_v3  ;;  %v2328_v54 = vsel %vm2303_vm8, %v5906_v32, 0.0 }
 0x208   : > { %v2337_v51 = vsel %vm2303_vm8, %v5908_v45, 0.0 }
 0x209   : > { %v2331_v59 = vsel %vm2303_vm8, %v5914_v38, 0.0 }
 0x20b   : > { %v3984_v40 = vpop.f32.mrb[36].mxu1  ;;  %2329 = vadd.xlane.f32.xlu1 %v2328_v54  ;;  %2338 = vadd.xlane.f32.xlu0 %v2337_v51 }
 0x20c   : > { %v5923_v50 = vadd.f32 %v3984_v40, %v1944_v29  ;;  %v2160_v4 = vpop.f32.mrb[37].mxu1 }
 0x20d   : > { %v5926_v10 = vadd.f32 %v2160_v4, %v1936_v21  ;;  %v3985_v37 = vpop.f32.mrb[38].mxu1 }
 0x20e   : > { %v5928_v0 = vadd.f32 %v3985_v37, %v1947_v28  ;;  %v2163_v41 = vpop.f32.mrb[39].mxu1  ;;  %v2346_v34 = vsel %vm2303_vm8, %v5923_v50, 0.0 }
 0x20f   : > { %v5934_v52 = vadd.f32 %v2163_v41, %v1939_v42  ;;  %2332 = vadd.xlane.f32.xlu0 %v2331_v59  ;;  %2347 = vadd.xlane.f32.xlu1 %v2346_v34  ;;  %v1951_v13 = vpop.f32.mrb[32].mxu0  ;;  %v2340_v1 = vsel %vm2303_vm8, %v5926_v10, 0.0 }
 0x210   : > { %v1953_v53 = vpop.f32.mrb[33].mxu0  ;;  %v2349_v5 = vsel %vm2303_vm8, %v5928_v0, 0.0  ;;  %v1952_v20 = vadd.f32 %v1951_v13, %v5852_v14 }
 0x211   : > { %v1954_v2 = vpop.f32.mrb[34].mxu0  ;;  %v2343_v15 = vsel %vm2303_vm8, %v5934_v52, 0.0 }
 0x212   : > { %v1956_v6 = vpop.f32.mrb[35].mxu0  ;;  %v1955_v63 = vadd.f32 %v1954_v2, %v5852_v14 }
 0x213   : > { %v3988_v35 = vpop.f32.mrb[40].mxu1  ;;  %2350 = vadd.xlane.f32.xlu0 %v2349_v5  ;;  %2341 = vadd.xlane.f32.xlu1 %v2340_v1 }
 0x214   : > { %v2176_v62 = vpop.f32.mrb[41].mxu1 }
 0x215   : > { %v5942_v58 = vadd.f32 %v2176_v62, %v1952_v20  ;;  %v3989_v17 = vpop.f32.mrb[42].mxu1 }
 0x216   : > { %v2179_v56 = vpop.f32.mrb[43].mxu1 }
 0x217   : > { %v5946_v24 = vadd.f32 %v2179_v56, %v1955_v63  ;;  %2344 = vadd.xlane.f32.xlu0 %v2343_v15  ;;  %v2352_v37 = vsel %vm2303_vm8, %v5942_v58, 0.0 }
 0x219   : > { %v2355_v34 = vsel %vm2303_vm8, %v5946_v24, 0.0 }
 0x21b   : > { %v1959_v48 = vpop.f32.mrb[36].mxu0  ;;  %v3992_v57 = vpop.f32.mrb[44].mxu1 }
 0x21c   : > { %v1960_v23 = vadd.f32 %v1959_v48, %v5852_v14  ;;  %v1961_v16 = vpop.f32.mrb[37].mxu0  ;;  %v2192_v31 = vpop.f32.mrb[45].mxu1 }
 0x21d   : > { %v1962_v30 = vpop.f32.mrb[38].mxu0  ;;  %v3993_v3 = vpop.f32.mrb[46].mxu1 }
 0x21e   : > { %v5949_v29 = vadd.f32 %v3988_v35, %v1960_v23  ;;  %v1963_v54 = vadd.f32 %v1962_v30, %v5852_v14  ;;  %v1964_v51 = vpop.f32.mrb[39].mxu0  ;;  %v2195_v21 = vpop.f32.mrb[47].mxu1 }
 0x220   : > { %v5952_v40 = vadd.f32 %v3989_v17, %v1963_v54  ;;  %v2358_v28 = vsel %vm2303_vm8, %v5949_v29, 0.0 }
 0x221   : > { %2359 = vadd.xlane.f32.xlu1 %v2358_v28 }
 0x222   : > { %v2361_v4 = vsel %vm2303_vm8, %v5952_v40, 0.0 }
 0x223   : > { %2362 = vadd.xlane.f32.xlu0 %v2361_v4  ;;  %v5958_v42 = vpop.f32.mrb[48].mxu1 }
 0x224   : > { %v2208_v41 = vpop.f32.mrb[49].mxu1 }
 0x225   : > { %2353 = vadd.xlane.f32.xlu1 %v2352_v37  ;;  %v5962_v59 = vpop.f32.mrb[50].mxu1 }
 0x226   : > { %v2211_v13 = vpop.f32.mrb[51].mxu1 }
 0x227   : > { %2356 = vadd.xlane.f32.xlu0 %v2355_v34  ;;  %v1967_v53 = vpop.f32.mrb[40].mxu0 }
 0x228   : > { %v1968_v2 = vadd.f32 %v1967_v53, %v5852_v14  ;;  %v1969_v6 = vpop.f32.mrb[41].mxu0 }
 0x229   : > { %v1970_v5 = vpop.f32.mrb[42].mxu0 }
 0x22a   : > { %v1971_v1 = vadd.f32 %v1970_v5, %v5852_v14  ;;  %v5968_v20 = vadd.f32 %v2192_v31, %v1968_v2  ;;  %v1972_v35 = vpop.f32.mrb[43].mxu0  ;;  %v2040_v5 = vadd.f32 %v5792_v27, %v5852_v14 }
 0x22b   : > { %v5970_v62 = vpop.f32.mrb[52].mxu1 }
 0x22c   : > { %v5972_v63 = vadd.f32 %v2195_v21, %v1971_v1  ;;  %v2364_v17 = vsel %vm2303_vm8, %v5968_v20, 0.0  ;;  %v5976_v56 = vpop.f32.mrb[53].mxu1 }
 0x22d   : > { %2365 = vadd.xlane.f32.xlu1 %v2364_v17  ;;  %v5978_v15 = vpop.f32.mrb[54].mxu1  ;;  %v2043_v17 = vadd.f32 %v5799_v49, %v5852_v14  ;;  %v2056_v49 = vadd.f32 %v5830_v19, %v5852_v14 }
 0x22e   : > { %v2367_v48 = vsel %vm2303_vm8, %v5972_v63, 0.0  ;;  %v5982_v23 = vpop.f32.mrb[55].mxu1 }
 0x22f   : > { %2368 = vadd.xlane.f32.xlu0 %v2367_v48 }
 0x233   : > { %v1975_v16 = vpop.f32.mrb[44].mxu0  ;;  %v5984_v31 = vpop.f32.mrb[56].mxu1 }
 0x234   : > { %v1976_v30 = vadd.f32 %v1975_v16, %v5852_v14  ;;  %v1977_v54 = vpop.f32.mrb[45].mxu0  ;;  %v5987_v51 = vpop.f32.mrb[57].mxu1  ;;  %v2035_v16 = vadd.f32 %v5765_v9, %v5852_v14 }
 0x235   : > { %v1978_v21 = vpop.f32.mrb[46].mxu0  ;;  %v5989_v28 = vpop.f32.mrb[58].mxu1 }
 0x236   : > { %v5991_v4 = vadd.f32 %v3992_v57, %v1976_v30  ;;  %v1979_v37 = vadd.f32 %v1978_v21, %v5852_v14  ;;  %v1980_v34 = vpop.f32.mrb[47].mxu0  ;;  %v5994_v53 = vpop.f32.mrb[59].mxu1  ;;  %v2032_v57 = vadd.f32 %v5758_v7, %v5852_v14 }
 0x238   : > { %v5996_v2 = vadd.f32 %v3993_v3, %v1979_v37  ;;  %v2370_v6 = vsel %vm2303_vm8, %v5991_v4, 0.0 }
 0x239   : > { %2371 = vadd.xlane.f32.xlu1 %v2370_v6 }
 0x23a   : > { %v2373_v1 = vsel %vm2303_vm8, %v5996_v2, 0.0 }
 0x23b   : > { %v4008_v35 = vpop.f32.mrb[60].mxu1  ;;  %2374 = vadd.xlane.f32.xlu0 %v2373_v1 }
 0x23c   : > { %v6008_v3 = vadd.f32 %v4008_v35, %v2040_v5  ;;  %v2256_v48 = vpop.f32.mrb[61].mxu1  ;;  %v2048_v35 = vadd.f32 %v5821_v11, %v5852_v14 }
 0x23d   : > { %v6012_v30 = vadd.f32 %v2256_v48, %v2032_v57  ;;  %v4009_v27 = vpop.f32.mrb[62].mxu1  ;;  %v2059_v48 = vadd.f32 %v5832_v26, %v5852_v14 }
 0x23e   : > { %v6014_v54 = vadd.f32 %v4009_v27, %v2043_v17  ;;  %v2259_v21 = vpop.f32.mrb[63].mxu1 }
 0x23f   : > { %v6016_v37 = vadd.f32 %v2259_v21, %v2035_v16  ;;  %v1983_v7 = vpop.f32.mrb[48].mxu0 }
 0x240   : > { %v1984_v34 = vadd.f32 %v1983_v7, %v5852_v14  ;;  %v1985_v6 = vpop.f32.mrb[49].mxu0 }
 0x241   : > { %v1986_v1 = vpop.f32.mrb[50].mxu0 }
 0x242   : > { %v6021_v5 = vadd.f32 %v2208_v41, %v1984_v34  ;;  %v1987_v9 = vadd.f32 %v1986_v1, %v5852_v14  ;;  %v1988_v57 = vpop.f32.mrb[51].mxu0  ;;  %v2051_v41 = vadd.f32 %v5826_v25, %v5852_v14  ;;  %v2072_v1 = vadd.f32 %v5845_v36, %v5852_v14 }
 0x243   : > { %v4012_v17 = vpop.f32.mrb[64].mxu1  ;;  %v2075_v57 = vadd.f32 %v5850_v44, %v5852_v14 }
 0x244   : > { %v6028_v16 = vadd.f32 %v2211_v13, %v1987_v9  ;;  %v6030_v27 = vadd.f32 %v4012_v17, %v2056_v49  ;;  %v2272_v21 = vpop.f32.mrb[65].mxu1  ;;  %v2376_v19 = vsel %vm2303_vm8, %v6021_v5, 0.0  ;;  %v2064_v49 = vadd.f32 %v5838_v39, %v5852_v14 }
 0x245   : > { %v6036_v7 = vadd.f32 %v2272_v21, %v2048_v35  ;;  %v4013_v34 = vpop.f32.mrb[66].mxu1  ;;  %2377 = vadd.xlane.f32.xlu1 %v2376_v19  ;;  %v2067_v19 = vadd.f32 %v5840_v47, %v5852_v14 }
 0x246   : > { %v6038_v11 = vadd.f32 %v4013_v34, %v2059_v48  ;;  %v2275_v6 = vpop.f32.mrb[67].mxu1  ;;  %v2379_v26 = vsel %vm2303_vm8, %v6028_v16, 0.0 }
 0x247   : > { %v6042_v13 = vadd.f32 %v2275_v6, %v2051_v41  ;;  %2380 = vadd.xlane.f32.xlu0 %v2379_v26 }
 0x24b   : > { %v1991_v25 = vpop.f32.mrb[52].mxu0  ;;  %v4016_v9 = vpop.f32.mrb[68].mxu1 }
 0x24c   : > { %v1992_v35 = vadd.f32 %v1991_v25, %v5852_v14  ;;  %v6051_v17 = vadd.f32 %v4016_v9, %v2072_v1  ;;  %v1993_v48 = vpop.f32.mrb[53].mxu0  ;;  %v2288_v21 = vpop.f32.mrb[69].mxu1 }
 0x24d   : > { %v6055_v41 = vadd.f32 %v2288_v21, %v2064_v49  ;;  %v1994_v36 = vpop.f32.mrb[54].mxu0  ;;  %v4017_v34 = vpop.f32.mrb[70].mxu1 }
 0x24e   : > { %v6058_v39 = vadd.f32 %v5958_v42, %v1992_v35  ;;  %v1995_v6 = vadd.f32 %v1994_v36, %v5852_v14  ;;  %v6061_v26 = vadd.f32 %v4017_v34, %v2075_v57  ;;  %v1996_v44 = vpop.f32.mrb[55].mxu0  ;;  %v2291_v25 = vpop.f32.mrb[71].mxu1 }
 0x24f   : > { %v6063_v1 = vadd.f32 %v2291_v25, %v2067_v19  ;;  %v2418_v44 = vsel %vm2303_vm8, %v6008_v3, 0.0 }
 0x250   : > { %v6066_v9 = vadd.f32 %v5962_v59, %v1995_v6  ;;  %v2382_v47 = vsel %vm2303_vm8, %v6058_v39, 0.0 }
 0x251   : > { %2383 = vadd.xlane.f32.xlu1 %v2382_v47 }
 0x252   : > { %v2385_v49 = vsel %vm2303_vm8, %v6066_v9, 0.0 }
 0x253   : > { %2386 = vadd.xlane.f32.xlu0 %v2385_v49  ;;  %v2412_v49 = vsel %vm2303_vm8, %v6012_v30, 0.0 }
 0x257   : > { %v1999_v42 = vpop.f32.mrb[56].mxu0 }
 0x258   : > { %v2000_v35 = vadd.f32 %v1999_v42, %v5852_v14  ;;  %v2001_v57 = vpop.f32.mrb[57].mxu0 }
 0x259   : > { %v2002_v48 = vpop.f32.mrb[58].mxu0 }
 0x25a   : > { %v6074_v21 = vadd.f32 %v5976_v56, %v2000_v35  ;;  %v2003_v19 = vadd.f32 %v2002_v48, %v5852_v14  ;;  %v2004_v59 = vpop.f32.mrb[59].mxu0  ;;  %v2421_v56 = vsel %vm2303_vm8, %v6014_v54, 0.0 }
 0x25c   : > { %v6078_v36 = vadd.f32 %v5982_v23, %v2003_v19  ;;  %v2388_v34 = vsel %vm2303_vm8, %v6074_v21, 0.0  ;;  %v2415_v19 = vsel %vm2303_vm8, %v6016_v37, 0.0 }
 0x25d   : > { %2389 = vadd.xlane.f32.xlu1 %v2388_v34 }
 0x25e   : > { %v2391_v6 = vsel %vm2303_vm8, %v6078_v36, 0.0 }
 0x25f   : > { %2392 = vadd.xlane.f32.xlu0 %v2391_v6 }
 0x261   : > { %2419 = vadd.xlane.f32.xlu1 %v2418_v44  ;;  %v2433_v44 = vsel %vm2303_vm8, %v6038_v11, 0.0 }
 0x263   : > { %2422 = vadd.xlane.f32.xlu0 %v2421_v56  ;;  %v2007_v25 = vpop.f32.mrb[60].mxu0 }
 0x264   : > { %v2008_v23 = vadd.f32 %v2007_v25, %v5852_v14  ;;  %v2009_v47 = vpop.f32.mrb[61].mxu0 }
 0x265   : > { %2413 = vadd.xlane.f32.xlu1 %v2412_v49  ;;  %v2010_v42 = vpop.f32.mrb[62].mxu0 }
 0x266   : > { %v6092_v35 = vadd.f32 %v5970_v62, %v2008_v23  ;;  %v2011_v57 = vadd.f32 %v2010_v42, %v5852_v14  ;;  %v2012_v48 = vpop.f32.mrb[63].mxu0  ;;  %v2430_v62 = vsel %vm2303_vm8, %v6030_v27, 0.0  ;;  %v2424_v23 = vsel %vm2303_vm8, %v6036_v7, 0.0 }
 0x267   : > { %2416 = vadd.xlane.f32.xlu0 %v2415_v19  ;;  %v2427_v48 = vsel %vm2303_vm8, %v6042_v13, 0.0 }
 0x268   : > { %v6098_v59 = vadd.f32 %v5978_v15, %v2011_v57  ;;  %v2394_v34 = vsel %vm2303_vm8, %v6092_v35, 0.0 }
 0x269   : > { %2395 = vadd.xlane.f32.xlu1 %v2394_v34 }
 0x26a   : > { %v2397_v6 = vsel %vm2303_vm8, %v6098_v59, 0.0 }
 0x26b   : > { %2398 = vadd.xlane.f32.xlu0 %v2397_v6 }
 0x26d   : > { %2431 = vadd.xlane.f32.xlu1 %v2430_v62  ;;  %v2445_v62 = vsel %vm2303_vm8, %v6061_v26, 0.0 }
 0x26f   : > { %2434 = vadd.xlane.f32.xlu0 %v2433_v44  ;;  %v2015_v56 = vpop.f32.mrb[64].mxu0 }
 0x270   : > { %v2016_v15 = vadd.f32 %v2015_v56, %v5852_v14  ;;  %v2017_v25 = vpop.f32.mrb[65].mxu0 }
 0x271   : > { %2425 = vadd.xlane.f32.xlu1 %v2424_v23  ;;  %v2018_v47 = vpop.f32.mrb[66].mxu0 }
 0x272   : > { %v6112_v49 = vadd.f32 %v5987_v51, %v2016_v15  ;;  %v2019_v42 = vadd.f32 %v2018_v47, %v5852_v14  ;;  %v2020_v57 = vpop.f32.mrb[67].mxu0  ;;  %v2442_v51 = vsel %vm2303_vm8, %v6051_v17, 0.0  ;;  %v2436_v15 = vsel %vm2303_vm8, %v6055_v41, 0.0 }
 0x273   : > { %2428 = vadd.xlane.f32.xlu0 %v2427_v48  ;;  %v2439_v57 = vsel %vm2303_vm8, %v6063_v1, 0.0 }
 0x274   : > { %v6118_v19 = vadd.f32 %v5994_v53, %v2019_v42  ;;  %v2400_v34 = vsel %vm2303_vm8, %v6112_v49, 0.0 }
 0x275   : > { %2401 = vadd.xlane.f32.xlu1 %v2400_v34 }
 0x276   : > { %v2403_v6 = vsel %vm2303_vm8, %v6118_v19, 0.0 }
 0x277   : > { %2404 = vadd.xlane.f32.xlu0 %v2403_v6 }
 0x279   : > { %2443 = vadd.xlane.f32.xlu1 %v2442_v51 }
 0x27b   : > { %2446 = vadd.xlane.f32.xlu0 %v2445_v62  ;;  %v2023_v44 = vpop.f32.mrb[68].mxu0 }
 0x27c   : > { %v2024_v53 = vadd.f32 %v2023_v44, %v5852_v14  ;;  %v2025_v56 = vpop.f32.mrb[69].mxu0 }
 0x27d   : > { %2437 = vadd.xlane.f32.xlu1 %v2436_v15  ;;  %v2026_v25 = vpop.f32.mrb[70].mxu0 }
 0x27e   : > { %v6132_v23 = vadd.f32 %v5984_v31, %v2024_v53  ;;  %v2027_v47 = vadd.f32 %v2026_v25, %v5852_v14  ;;  %v2028_v42 = vpop.f32.mrb[71].mxu0 }
 0x27f   : > { %2440 = vadd.xlane.f32.xlu0 %v2439_v57 }
 0x280   : > { %v6138_v48 = vadd.f32 %v5989_v28, %v2027_v47  ;;  %v2406_v34 = vsel %vm2303_vm8, %v6132_v23, 0.0 }
 0x281   : > { %2407 = vadd.xlane.f32.xlu1 %v2406_v34 }
 0x282   : > { %v2409_v6 = vsel %vm2303_vm8, %v6138_v48, 0.0 }
 0x283   : > { %2410 = vadd.xlane.f32.xlu0 %v2409_v6 }
 0x284   : > { %v2312_v31 = vpop.xlane.xlu0 %2311 }
 0x285   : > { %v2451_v51 = vmul.f32 0.0625, %v2312_v31 }
 0x287   : > { %v6145_v14 = vsub.f32 %v5860_v43, %v2451_v51  ;;  %v2309_v62 = vpop.xlane.xlu1 %2308 }
 0x288   : > { %v2306_v44 = vpop.xlane.xlu0 %2305  ;;  %v2450_v56 = vmul.f32 0.0625, %v2309_v62 }
 0x289   : > { %v2449_v53 = vmul.f32 0.0625, %v2306_v44  ;;  %v2547_v28 = vmul.f32 %v6145_v14, %v6145_v14 }
 0x28a   : > { %v6156_v6 = vsub.f32 %v5870_v60, %v2450_v56 }
 0x28b   : > { %v6150_v15 = vsub.f32 %v5864_v8, %v2449_v53  ;;  %v2599_v25 = vsel %vm2303_vm8, %v2547_v28, 0.0 }
 0x28c   : > { %v2324_v47 = vpop.xlane.xlu1 %2323  ;;  %2600 = vadd.xlane.f32.xlu1 %v2599_v25  ;;  %v2315_v42 = vpop.xlane.xlu0 %2314 }
 0x28d   : > { %v2455_v57 = vmul.f32 0.0625, %v2324_v47  ;;  %v2452_v34 = vmul.f32 0.0625, %v2315_v42  ;;  %v2545_v43 = vmul.f32 %v6150_v15, %v6150_v15 }
 0x28f   : > { %v6159_v31 = vsub.f32 %v5880_v46, %v2455_v57  ;;  %v6162_v51 = vsub.f32 %v5866_v33, %v2452_v34  ;;  %v2593_v8 = vsel %vm2303_vm8, %v2545_v43, 0.0  ;;  %v2546_v46 = vmul.f32 %v6156_v6, %v6156_v6 }
 0x290   : > { %v2318_v62 = vpop.xlane.xlu1 %2317  ;;  %2594 = vadd.xlane.f32.xlu1 %v2593_v8  ;;  %v2327_v44 = vpop.xlane.xlu0 %2326 }
 0x291   : > { %v2453_v53 = vmul.f32 0.0625, %v2318_v62  ;;  %v2456_v28 = vmul.f32 0.0625, %v2327_v44  ;;  %v2551_v25 = vmul.f32 %v6159_v31, %v6159_v31  ;;  %v2548_v60 = vmul.f32 %v6162_v51, %v6162_v51 }
 0x293   : > { %v6172_v56 = vsub.f32 %v5884_v18, %v2453_v53  ;;  %v6175_v33 = vsub.f32 %v5886_v12, %v2456_v28  ;;  %v2611_v47 = vsel %vm2303_vm8, %v2551_v25, 0.0  ;;  %v2602_v42 = vsel %vm2303_vm8, %v2548_v60, 0.0 }
 0x294   : > { %v2336_v57 = vpop.xlane.xlu1 %2335  ;;  %2612 = vadd.xlane.f32.xlu1 %v2611_v47  ;;  %2603 = vadd.xlane.f32.xlu0 %v2602_v42  ;;  %v2321_v34 = vpop.xlane.xlu0 %2320  ;;  %v2596_v28 = vsel %vm2303_vm8, %v2546_v46, 0.0 }
 0x295   : > { %v2459_v43 = vmul.f32 0.0625, %v2336_v57  ;;  %v2454_v8 = vmul.f32 0.0625, %v2321_v34  ;;  %v2549_v62 = vmul.f32 %v6172_v56, %v6172_v56  ;;  %v2552_v18 = vmul.f32 %v6175_v33, %v6175_v33 }
 0x297   : > { %v6184_v44 = vsub.f32 %v5902_v61, %v2459_v43  ;;  %v6187_v12 = vsub.f32 %v5892_v22, %v2454_v8  ;;  %v2605_v53 = vsel %vm2303_vm8, %v2549_v62, 0.0  ;;  %v2614_v34 = vsel %vm2303_vm8, %v2552_v18, 0.0 }
 0x298   : > { %v2330_v25 = vpop.xlane.xlu1 %2329  ;;  %2606 = vadd.xlane.f32.xlu1 %v2605_v53  ;;  %2597 = vadd.xlane.f32.xlu0 %v2596_v28  ;;  %v2339_v60 = vpop.xlane.xlu0 %2338 }
 0x299   : > { %v2457_v47 = vmul.f32 0.0625, %v2330_v25  ;;  %v2460_v42 = vmul.f32 0.0625, %v2339_v60  ;;  %v2555_v57 = vmul.f32 %v6184_v44, %v6184_v44  ;;  %v2550_v46 = vmul.f32 %v6187_v12, %v6187_v12 }
 0x29b   : > { %v6195_v61 = vsub.f32 %v5906_v32, %v2457_v47  ;;  %v6198_v22 = vsub.f32 %v5908_v45, %v2460_v42  ;;  %v2623_v43 = vsel %vm2303_vm8, %v2555_v57, 0.0  ;;  %v2608_v47 = vsel %vm2303_vm8, %v2550_v46, 0.0 }
 0x29c   : > { %v2348_v8 = vpop.xlane.xlu1 %2347  ;;  %2624 = vadd.xlane.f32.xlu1 %v2623_v43  ;;  %2615 = vadd.xlane.f32.xlu0 %v2614_v34  ;;  %v2333_v62 = vpop.xlane.xlu0 %2332 }
 0x29d   : > { %v2463_v53 = vmul.f32 0.0625, %v2348_v8  ;;  %v2458_v28 = vmul.f32 0.0625, %v2333_v62  ;;  %v2553_v18 = vmul.f32 %v6195_v61, %v6195_v61  ;;  %v2556_v32 = vmul.f32 %v6198_v22, %v6198_v22 }
 0x29f   : > { %v6208_v45 = vsub.f32 %v5923_v50, %v2463_v53  ;;  %v6211_v25 = vsub.f32 %v5914_v38, %v2458_v28  ;;  %v2617_v60 = vsel %vm2303_vm8, %v2553_v18, 0.0  ;;  %v2626_v62 = vsel %vm2303_vm8, %v2556_v32, 0.0 }
 0x2a0   : > { %v2342_v42 = vpop.xlane.xlu1 %2341  ;;  %2618 = vadd.xlane.f32.xlu1 %v2617_v60  ;;  %2609 = vadd.xlane.f32.xlu0 %v2608_v47  ;;  %v2351_v57 = vpop.xlane.xlu0 %2350 }
 0x2a1   : > { %v2461_v34 = vmul.f32 0.0625, %v2342_v42  ;;  %v2464_v43 = vmul.f32 0.0625, %v2351_v57  ;;  %v2559_v8 = vmul.f32 %v6208_v45, %v6208_v45  ;;  %v2554_v46 = vmul.f32 %v6211_v25, %v6211_v25 }
 0x2a3   : > { %v6219_v50 = vsub.f32 %v5926_v10, %v2461_v34  ;;  %v6222_v38 = vsub.f32 %v5928_v0, %v2464_v43  ;;  %v2635_v53 = vsel %vm2303_vm8, %v2559_v8, 0.0  ;;  %v2620_v0 = vsel %vm2303_vm8, %v2554_v46, 0.0 }
 0x2a4   : > { %2636 = vadd.xlane.f32.xlu1 %v2635_v53  ;;  %2627 = vadd.xlane.f32.xlu0 %v2626_v62  ;;  %v2345_v28 = vpop.xlane.xlu0 %2344 }
 0x2a5   : > { %v2462_v18 = vmul.f32 0.0625, %v2345_v28  ;;  %v2557_v60 = vmul.f32 %v6219_v50, %v6219_v50  ;;  %v2560_v47 = vmul.f32 %v6222_v38, %v6222_v38 }
 0x2a7   : > { %v6230_v32 = vsub.f32 %v5934_v52, %v2462_v18  ;;  %v2629_v10 = vsel %vm2303_vm8, %v2557_v60, 0.0  ;;  %v2638_v42 = vsel %vm2303_vm8, %v2560_v47, 0.0 }
 0x2a8   : > { %2630 = vadd.xlane.f32.xlu1 %v2629_v10  ;;  %2621 = vadd.xlane.f32.xlu0 %v2620_v0 }
 0x2a9   : > { %v2558_v57 = vmul.f32 %v6230_v32, %v6230_v32 }
 0x2ab   : > { %v2632_v52 = vsel %vm2303_vm8, %v2558_v57, 0.0 }
 0x2ac   : > { %2639 = vadd.xlane.f32.xlu0 %v2638_v42 }
 0x2ae   : > { %v2360_v34 = vpop.xlane.xlu1 %2359 }
 0x2af   : > { %v2467_v43 = vmul.f32 0.0625, %v2360_v34 }
 0x2b0   : > { %2633 = vadd.xlane.f32.xlu0 %v2632_v52  ;;  %v2363_v8 = vpop.xlane.xlu0 %2362 }
 0x2b1   : > { %v6241_v62 = vsub.f32 %v5949_v29, %v2467_v43  ;;  %v2468_v53 = vmul.f32 0.0625, %v2363_v8 }
 0x2b2   : > { %v2354_v46 = vpop.xlane.xlu1 %2353 }
 0x2b3   : > { %v6244_v28 = vsub.f32 %v5952_v40, %v2468_v53  ;;  %v2465_v18 = vmul.f32 0.0625, %v2354_v46  ;;  %v2563_v60 = vmul.f32 %v6241_v62, %v6241_v62 }
 0x2b4   : > { %v2357_v10 = vpop.xlane.xlu0 %2356 }
 0x2b5   : > { %v6249_v0 = vsub.f32 %v5942_v58, %v2465_v18  ;;  %v2466_v47 = vmul.f32 0.0625, %v2357_v10  ;;  %v2647_v42 = vsel %vm2303_vm8, %v2563_v60, 0.0  ;;  %v2564_v29 = vmul.f32 %v6244_v28, %v6244_v28 }
 0x2b6   : > { %2648 = vadd.xlane.f32.xlu1 %v2647_v42 }
 0x2b7   : > { %v6255_v57 = vsub.f32 %v5946_v24, %v2466_v47  ;;  %v2650_v40 = vsel %vm2303_vm8, %v2564_v29, 0.0  ;;  %v2561_v34 = vmul.f32 %v6249_v0, %v6249_v0 }
 0x2b8   : > { %2651 = vadd.xlane.f32.xlu0 %v2650_v40 }
 0x2b9   : > { %v2641_v43 = vsel %vm2303_vm8, %v2561_v34, 0.0  ;;  %v2562_v58 = vmul.f32 %v6255_v57, %v6255_v57 }
 0x2ba   : > { %v2366_v52 = vpop.xlane.xlu1 %2365  ;;  %2642 = vadd.xlane.f32.xlu1 %v2641_v43 }
 0x2bb   : > { %v2469_v8 = vmul.f32 0.0625, %v2366_v52  ;;  %v2644_v53 = vsel %vm2303_vm8, %v2562_v58, 0.0 }
 0x2bc   : > { %2645 = vadd.xlane.f32.xlu0 %v2644_v53  ;;  %v2369_v46 = vpop.xlane.xlu0 %2368 }
 0x2bd   : > { %v6265_v24 = vsub.f32 %v5968_v20, %v2469_v8  ;;  %v2470_v18 = vmul.f32 0.0625, %v2369_v46 }
 0x2bf   : > { %v6268_v60 = vsub.f32 %v5972_v63, %v2470_v18  ;;  %v2565_v10 = vmul.f32 %v6265_v24, %v6265_v24 }
 0x2c1   : > { %v2653_v47 = vsel %vm2303_vm8, %v2565_v10, 0.0  ;;  %v2566_v42 = vmul.f32 %v6268_v60, %v6268_v60 }
 0x2c2   : > { %2654 = vadd.xlane.f32.xlu1 %v2653_v47 }
 0x2c3   : > { %v2656_v29 = vsel %vm2303_vm8, %v2566_v42, 0.0 }
 0x2c4   : > { %2657 = vadd.xlane.f32.xlu0 %v2656_v29 }
 0x2c6   : > { %v2372_v40 = vpop.xlane.xlu1 %2371 }
 0x2c7   : > { %v2471_v34 = vmul.f32 0.0625, %v2372_v40 }
 0x2c8   : > { %v2375_v20 = vpop.xlane.xlu0 %2374 }
 0x2c9   : > { %v6277_v43 = vsub.f32 %v5991_v4, %v2471_v34  ;;  %v2472_v63 = vmul.f32 0.0625, %v2375_v20 }
 0x2cb   : > { %v6280_v58 = vsub.f32 %v5996_v2, %v2472_v63  ;;  %v2567_v52 = vmul.f32 %v6277_v43, %v6277_v43 }
 0x2cd   : > { %v2659_v8 = vsel %vm2303_vm8, %v2567_v52, 0.0  ;;  %v2568_v53 = vmul.f32 %v6280_v58, %v6280_v58 }
 0x2ce   : > { %2660 = vadd.xlane.f32.xlu1 %v2659_v8 }
 0x2cf   : > { %v2662_v46 = vsel %vm2303_vm8, %v2568_v53, 0.0 }
 0x2d0   : > { %2663 = vadd.xlane.f32.xlu0 %v2662_v46 }
 0x2d2   : > { %v2378_v18 = vpop.xlane.xlu1 %2377 }
 0x2d3   : > { %v2473_v10 = vmul.f32 0.0625, %v2378_v18 }
 0x2d4   : > { %v2381_v4 = vpop.xlane.xlu0 %2380 }
 0x2d5   : > { %v6289_v47 = vsub.f32 %v6021_v5, %v2473_v10  ;;  %v2474_v2 = vmul.f32 0.0625, %v2381_v4 }
 0x2d7   : > { %v6292_v42 = vsub.f32 %v6028_v16, %v2474_v2  ;;  %v2569_v29 = vmul.f32 %v6289_v47, %v6289_v47 }
 0x2d9   : > { %v2665_v40 = vsel %vm2303_vm8, %v2569_v29, 0.0  ;;  %v2570_v34 = vmul.f32 %v6292_v42, %v6292_v42 }
 0x2da   : > { %2666 = vadd.xlane.f32.xlu1 %v2665_v40 }
 0x2db   : > { %v2668_v20 = vsel %vm2303_vm8, %v2570_v34, 0.0 }
 0x2dc   : > { %2669 = vadd.xlane.f32.xlu0 %v2668_v20 }
 0x2de   : > { %v2384_v63 = vpop.xlane.xlu1 %2383 }
 0x2df   : > { %v2475_v52 = vmul.f32 0.0625, %v2384_v63 }
 0x2e0   : > { %v2387_v5 = vpop.xlane.xlu0 %2386 }
 0x2e1   : > { %v6301_v8 = vsub.f32 %v6058_v39, %v2475_v52  ;;  %v2476_v16 = vmul.f32 0.0625, %v2387_v5 }
 0x2e3   : > { %v6304_v53 = vsub.f32 %v6066_v9, %v2476_v16  ;;  %v2571_v46 = vmul.f32 %v6301_v8, %v6301_v8 }
 0x2e5   : > { %v2671_v18 = vsel %vm2303_vm8, %v2571_v46, 0.0  ;;  %v2572_v10 = vmul.f32 %v6304_v53, %v6304_v53 }
 0x2e6   : > { %2672 = vadd.xlane.f32.xlu1 %v2671_v18 }
 0x2e7   : > { %v2674_v4 = vsel %vm2303_vm8, %v2572_v10, 0.0 }
 0x2e8   : > { %2675 = vadd.xlane.f32.xlu0 %v2674_v4 }
 0x2ea   : > { %v2390_v2 = vpop.xlane.xlu1 %2389 }
 0x2eb   : > { %v2477_v29 = vmul.f32 0.0625, %v2390_v2 }
 0x2ec   : > { %v2393_v39 = vpop.xlane.xlu0 %2392 }
 0x2ed   : > { %v6313_v40 = vsub.f32 %v6074_v21, %v2477_v29  ;;  %v2478_v9 = vmul.f32 0.0625, %v2393_v39 }
 0x2ee   : > { %v2420_v34 = vpop.xlane.xlu1 %2419 }
 0x2ef   : > { %v6316_v20 = vsub.f32 %v6078_v36, %v2478_v9  ;;  %v2487_v63 = vmul.f32 0.0625, %v2420_v34  ;;  %v2573_v52 = vmul.f32 %v6313_v40, %v6313_v40 }
 0x2f0   : > { %v2423_v5 = vpop.xlane.xlu0 %2422 }
 0x2f1   : > { %v6321_v16 = vsub.f32 %v6008_v3, %v2487_v63  ;;  %v2488_v46 = vmul.f32 0.0625, %v2423_v5  ;;  %v2677_v18 = vsel %vm2303_vm8, %v2573_v52, 0.0  ;;  %v2574_v21 = vmul.f32 %v6316_v20, %v6316_v20 }
 0x2f2   : > { %v2414_v10 = vpop.xlane.xlu1 %2413  ;;  %2678 = vadd.xlane.f32.xlu1 %v2677_v18 }
 0x2f3   : > { %v6327_v4 = vsub.f32 %v6014_v54, %v2488_v46  ;;  %v2485_v36 = vmul.f32 0.0625, %v2414_v10  ;;  %v2680_v2 = vsel %vm2303_vm8, %v2574_v21, 0.0  ;;  %v2583_v29 = vmul.f32 %v6321_v16, %v6321_v16 }
 0x2f4   : > { %2681 = vadd.xlane.f32.xlu0 %v2680_v2  ;;  %v2417_v3 = vpop.xlane.xlu0 %2416 }
 0x2f5   : > { %v6333_v39 = vsub.f32 %v6012_v30, %v2485_v36  ;;  %v2486_v9 = vmul.f32 0.0625, %v2417_v3  ;;  %v2707_v34 = vsel %vm2303_vm8, %v2583_v29, 0.0  ;;  %v2584_v63 = vmul.f32 %v6327_v4, %v6327_v4 }
 0x2f6   : > { %v2396_v52 = vpop.xlane.xlu1 %2395  ;;  %2708 = vadd.xlane.f32.xlu1 %v2707_v34 }
 0x2f7   : > { %v6339_v54 = vsub.f32 %v6016_v37, %v2486_v9  ;;  %v2479_v5 = vmul.f32 0.0625, %v2396_v52  ;;  %v2710_v46 = vsel %vm2303_vm8, %v2584_v63, 0.0  ;;  %v2581_v18 = vmul.f32 %v6333_v39, %v6333_v39 }
 0x2f8   : > { %2711 = vadd.xlane.f32.xlu0 %v2710_v46  ;;  %v2399_v30 = vpop.xlane.xlu0 %2398 }
 0x2f9   : > { %v6345_v21 = vsub.f32 %v6092_v35, %v2479_v5  ;;  %v2480_v10 = vmul.f32 0.0625, %v2399_v30  ;;  %v2701_v36 = vsel %vm2303_vm8, %v2581_v18, 0.0  ;;  %v2582_v2 = vmul.f32 %v6339_v54, %v6339_v54 }
 0x2fa   : > { %v2432_v29 = vpop.xlane.xlu1 %2431  ;;  %2702 = vadd.xlane.f32.xlu1 %v2701_v36 }
 0x2fb   : > { %v6351_v37 = vsub.f32 %v6098_v59, %v2480_v10  ;;  %v2491_v3 = vmul.f32 0.0625, %v2432_v29  ;;  %v2704_v9 = vsel %vm2303_vm8, %v2582_v2, 0.0  ;;  %v2575_v34 = vmul.f32 %v6345_v21, %v6345_v21 }
 0x2fc   : > { %2705 = vadd.xlane.f32.xlu0 %v2704_v9  ;;  %v2435_v35 = vpop.xlane.xlu0 %2434 }
 0x2fd   : > { %v6357_v63 = vsub.f32 %v6030_v27, %v2491_v3  ;;  %v2492_v52 = vmul.f32 0.0625, %v2435_v35  ;;  %v2683_v5 = vsel %vm2303_vm8, %v2575_v34, 0.0  ;;  %v2576_v46 = vmul.f32 %v6351_v37, %v6351_v37 }
 0x2fe   : > { %v2426_v18 = vpop.xlane.xlu1 %2425  ;;  %2684 = vadd.xlane.f32.xlu1 %v2683_v5 }
 0x2ff   : > { %v6363_v59 = vsub.f32 %v6038_v11, %v2492_v52  ;;  %v2489_v30 = vmul.f32 0.0625, %v2426_v18  ;;  %v2686_v10 = vsel %vm2303_vm8, %v2576_v46, 0.0  ;;  %v2587_v36 = vmul.f32 %v6357_v63, %v6357_v63 }
 0x300   : > { %2687 = vadd.xlane.f32.xlu0 %v2686_v10  ;;  %v2429_v27 = vpop.xlane.xlu0 %2428 }
 0x301   : > { %v6369_v2 = vsub.f32 %v6036_v7, %v2489_v30  ;;  %v2490_v29 = vmul.f32 0.0625, %v2429_v27  ;;  %v2719_v3 = vsel %vm2303_vm8, %v2587_v36, 0.0  ;;  %v2588_v9 = vmul.f32 %v6363_v59, %v6363_v59 }
 0x302   : > { %v2402_v34 = vpop.xlane.xlu1 %2401  ;;  %2720 = vadd.xlane.f32.xlu1 %v2719_v3 }
 0x303   : > { %7554 = vst [vmem:[#allocation4_spill] sm:$0xff] %v6369_v2  ;;  %v6375_v11 = vsub.f32 %v6042_v13, %v2490_v29  ;;  %v2481_v35 = vmul.f32 0.0625, %v2402_v34  ;;  %v2722_v52 = vsel %vm2303_vm8, %v2588_v9, 0.0  ;;  %v2585_v5 = vmul.f32 %v6369_v2, %v6369_v2 }
 0x304   : > { %2723 = vadd.xlane.f32.xlu0 %v2722_v52  ;;  %v2405_v7 = vpop.xlane.xlu0 %2404 }
 0x305   : > { %7555 = vst [vmem:[#allocation5_spill] sm:$0xff] %v6375_v11  ;;  %v6381_v46 = vsub.f32 %v6112_v49, %v2481_v35  ;;  %v2482_v18 = vmul.f32 0.0625, %v2405_v7  ;;  %v2713_v30 = vsel %vm2303_vm8, %v2585_v5, 0.0  ;;  %v2586_v10 = vmul.f32 %v6375_v11, %v6375_v11 }
 0x306   : > { %v2444_v36 = vpop.xlane.xlu1 %2443  ;;  %2714 = vadd.xlane.f32.xlu1 %v2713_v30 }
 0x307   : > { %7556 = vst [vmem:[#allocation3_spill] sm:$0xff] %v6381_v46  ;;  %v6387_v13 = vsub.f32 %v6118_v19, %v2482_v18  ;;  %v2716_v27 = vsel %vm2303_vm8, %v2586_v10, 0.0  ;;  %v2577_v29 = vmul.f32 %v6381_v46, %v6381_v46  ;;  %v2495_v5 = vmul.f32 0.0625, %v2444_v36 }
 0x308   : > { %2717 = vadd.xlane.f32.xlu0 %v2716_v27  ;;  %v2447_v3 = vpop.xlane.xlu0 %2446 }
 0x309   : > { %7557 = vst [vmem:[#allocation6_spill] sm:$0xff] %v6387_v13  ;;  %v2689_v49 = vsel %vm2303_vm8, %v2577_v29, 0.0  ;;  %v2578_v9 = vmul.f32 %v6387_v13, %v6387_v13  ;;  %v2496_v10 = vmul.f32 0.0625, %v2447_v3 }
 0x30a   : > { %v2438_v34 = vpop.xlane.xlu1 %2437  ;;  %2690 = vadd.xlane.f32.xlu1 %v2689_v49  ;;  %v6405_v49 = vsub.f32 %v6051_v17, %v2495_v5 }
 0x30b   : > { %v2493_v35 = vmul.f32 0.0625, %v2438_v34  ;;  %v2692_v52 = vsel %vm2303_vm8, %v2578_v9, 0.0 }
 0x30c   : > { %2693 = vadd.xlane.f32.xlu0 %v2692_v52  ;;  %v2441_v19 = vpop.xlane.xlu0 %2440  ;;  %7560 = vst [vmem:[#allocation8_spill] sm:$0xff] %v6405_v49  ;;  %v2591_v5 = vmul.f32 %v6405_v49, %v6405_v49 }
 0x30d   : > { %v6397_v7 = vsub.f32 %v6055_v41, %v2493_v35  ;;  %v2494_v18 = vmul.f32 0.0625, %v2441_v19 }
 0x30e   : > { %v2408_v30 = vpop.xlane.xlu1 %2407 }
 0x30f   : > { %7558 = vst [vmem:[#allocation2_spill] sm:$0xff] %v6397_v7  ;;  %v6400_v27 = vsub.f32 %v6063_v1, %v2494_v18  ;;  %v2483_v29 = vmul.f32 0.0625, %v2408_v30  ;;  %v2589_v13 = vmul.f32 %v6397_v7, %v6397_v7  ;;  %v6414_v1 = vsub.f32 %v6061_v26, %v2496_v10 }
 0x310   : > { %v2411_v9 = vpop.xlane.xlu0 %2410  ;;  %v2731_v18 = vsel %vm2303_vm8, %v2591_v5, 0.0 }
 0x311   : > { %7559 = vst [vmem:[#allocation7_spill] sm:$0xff] %v6400_v27  ;;  %v6408_v36 = vsub.f32 %v6132_v23, %v2483_v29  ;;  %v2484_v34 = vmul.f32 0.0625, %v2411_v9  ;;  %v2725_v41 = vsel %vm2303_vm8, %v2589_v13, 0.0  ;;  %v2590_v3 = vmul.f32 %v6400_v27, %v6400_v27  ;;  %7562 = vst [vmem:[#allocation10_spill] sm:$0xff] %v6414_v1 }
 0x312   : > { %2726 = vadd.xlane.f32.xlu1 %v2725_v41 }
 0x313   : > { %7561 = vst [vmem:[#allocation9_spill] sm:$0xff] %v6408_v36  ;;  %v6417_v35 = vsub.f32 %v6138_v48, %v2484_v34  ;;  %v2728_v17 = vsel %vm2303_vm8, %v2590_v3, 0.0  ;;  %v2579_v52 = vmul.f32 %v6408_v36, %v6408_v36  ;;  %v2592_v48 = vmul.f32 %v6414_v1, %v6414_v1 }
 0x314   : > { %2729 = vadd.xlane.f32.xlu0 %v2728_v17 }
 0x315   : > { %7563 = vst [vmem:[#allocation11_spill] sm:$0xff] %v6417_v35  ;;  %v2695_v23 = vsel %vm2303_vm8, %v2579_v52, 0.0  ;;  %v2580_v13 = vmul.f32 %v6417_v35, %v6417_v35  ;;  %v2734_v10 = vsel %vm2303_vm8, %v2592_v48, 0.0  ;;  %v3267_v52 = vsub.s32 1, %v5842_v55 }
 0x316   : > { %2696 = vadd.xlane.f32.xlu1 %v2695_v23  ;;  %v3319_v23 = vsub.s32 2, %v5842_v55 }
 0x317   : > { %v2698_v26 = vsel %vm2303_vm8, %v2580_v13, 0.0 }
 0x318   : > { %2699 = vadd.xlane.f32.xlu0 %v2698_v26 }
 0x319   : > { %v2601_v19 = vpop.xlane.xlu1 %2600 }
 0x31a   : > { %v2739_v30 = vmul.f32 0.06666667, %v2601_v19  ;;  %2732 = vadd.xlane.f32.xlu1 %v2731_v18  ;;  %v4433_v18 = vld [vmem:[%s7491_s3] sm:$0x7] }
 0x31c   : > { %4128 = vrsqrt.f32 %v2739_v30  ;;  %2735 = vadd.xlane.f32.xlu0 %v2734_v10  ;;  %v6447_v10 = vrot.slane %v4433_v18, %v3267_v52  ;;  %vm2801_vm9 = vcmp.eq.f32.partialorder %v2739_v30, inf  ;;  %vm2803_vm10 = vcmp.eq.f32.partialorder %v2739_v30, 0.0 }
 0x31d   : > { %v2595_v29 = vpop.xlane.xlu1 %2594 }
 0x31e   : > { %v2737_v9 = vmul.f32 0.06666667, %v2595_v29  ;;  %v6449_v29 = vrot.slane %v4433_v18, %v3319_v23 }
 0x320   : > { %4130 = vrsqrt.f32 %v2737_v9  ;;  %vm2787_vm11 = vcmp.eq.f32.partialorder %v2737_v9, inf  ;;  %vm2789_vm12 = vcmp.eq.f32.partialorder %v2737_v9, 0.0  ;;  %v2790_v35 = vand.u32 2147483648, %v2737_v9 }
 0x321   : > { %v2613_v34 = vpop.xlane.xlu1 %2612  ;;  %v2604_v41 = vpop.xlane.xlu0 %2603 }
 0x322   : > { %v6432_v3 = vmul.f32 0.06666667, %v2613_v34  ;;  %v6434_v17 = vmul.f32 0.06666667, %v2604_v41  ;;  %v2804_v34 = vand.u32 2147483648, %v2739_v30 }
 0x324   : > { %4132 = vrsqrt.f32 %v6432_v3  ;;  %vm2829_vm13 = vcmp.eq.f32.partialorder %v6432_v3, inf  ;;  %vm2831_vm14 = vcmp.eq.f32.partialorder %v6432_v3, 0.0  ;;  %vm2808_vm15 = vcmp.eq.f32.partialorder %v6434_v17, inf }
 0x325   : > { %4134 = vrsqrt.f32 %v6434_v17  ;;  %v2607_v13 = vpop.xlane.xlu1 %2606  ;;  %v2598_v5 = vpop.xlane.xlu0 %2597  ;;  %vm2810_vm0 = vcmp.eq.f32.partialorder %v6434_v17, 0.0 }
 0x326   : > { %v4129_v26 = vpop.eup %4128  ;;  %v6440_v48 = vmul.f32 0.06666667, %v2607_v13  ;;  %v6442_v19 = vmul.f32 0.06666667, %v2598_v5 }
 0x327   : > { %v2800_v55 = vmul.f32 %v4129_v26, %v2739_v30 }
 0x328   : > { %4136 = vrsqrt.f32 %v6440_v48  ;;  %vm2815_vm1 = vcmp.eq.f32.partialorder %v6440_v48, inf  ;;  %vm2817_vm2 = vcmp.eq.f32.partialorder %v6440_v48, 0.0  ;;  %vm2794_vm3 = vcmp.eq.f32.partialorder %v6442_v19, inf }
 0x329   : > { %v2802_v41 = vsel %vm2801_vm9, %v2739_v30, %v2800_v55  ;;  %4138 = vrsqrt.f32 %v6442_v19  ;;  %v2625_v13 = vpop.xlane.xlu1 %2624  ;;  %v2616_v5 = vpop.xlane.xlu0 %2615  ;;  %v2832_v30 = vand.u32 2147483648, %v6432_v3  ;;  %vm2796_vm4 = vcmp.eq.f32.partialorder %v6442_v19, 0.0 }
 0x32a   : > { %v4131_v1 = vpop.eup %4130  ;;  %v2805_v49 = vsel %vm2803_vm10, %v2804_v34, %v2802_v41  ;;  %v6453_v52 = vmul.f32 0.06666667, %v2625_v13  ;;  %v6455_v23 = vmul.f32 0.06666667, %v2616_v5  ;;  %v2811_v34 = vand.u32 2147483648, %v6434_v17 }
 0x32b   : > { %v3123_v26 = vadd.f32 1e-06, %v2805_v49  ;;  %v2786_v18 = vmul.f32 %v4131_v1, %v2737_v9 }
 0x32c   : > { %4140 = vrsqrt.f32 %v6453_v52  ;;  %vm2857_vm5 = vcmp.eq.f32.partialorder %v6453_v52, inf  ;;  %vm2859_vm6 = vcmp.eq.f32.partialorder %v6453_v52, 0.0  ;;  %v2860_v11 = vand.u32 2147483648, %v6453_v52 }
 0x32d   : > { %4142 = vrcp.f32 %v3123_v26  ;;  %v2788_v55 = vsel %vm2787_vm11, %v2737_v9, %v2786_v18  ;;  %v2619_v49 = vpop.xlane.xlu1 %2618  ;;  %v2610_v1 = vpop.xlane.xlu0 %2609  ;;  %v2818_v18 = vand.u32 2147483648, %v6440_v48  ;;  %v2797_v9 = vand.u32 2147483648, %v6442_v19 }
 0x32e   : > { %v4133_v41 = vpop.eup %4132  ;;  %v2791_v13 = vsel %vm2789_vm12, %v2790_v35, %v2788_v55  ;;  %4144 = vrsqrt.f32 %v6455_v23  ;;  %v6469_v5 = vmul.f32 0.06666667, %v2619_v49  ;;  %v6473_v7 = vmul.f32 0.06666667, %v2610_v1 }
 0x32f   : > { %v4135_v36 = vpop.eup %4134  ;;  %v3121_v27 = vadd.f32 1e-06, %v2791_v13  ;;  %v2828_v26 = vmul.f32 %v4133_v41, %v6432_v3  ;;  %vm2836_vm7 = vcmp.eq.f32.partialorder %v6455_v23, inf  ;;  %vm2838_vm9 = vcmp.eq.f32.partialorder %v6455_v23, 0.0 }
 0x330   : > { %v2807_v46 = vmul.f32 %v4135_v36, %v6434_v17  ;;  %4146 = vrsqrt.f32 %v6469_v5  ;;  %vm2843_vm10 = vcmp.eq.f32.partialorder %v6469_v5, inf  ;;  %vm2845_vm11 = vcmp.eq.f32.partialorder %v6469_v5, 0.0 }
 0x331   : > { %4148 = vrcp.f32 %v3121_v27  ;;  %v2830_v35 = vsel %vm2829_vm13, %v6432_v3, %v2828_v26  ;;  %v2637_v55 = vpop.xlane.xlu1 %2636  ;;  %vm2822_vm12 = vcmp.eq.f32.partialorder %v6473_v7, inf  ;;  %vm2824_vm13 = vcmp.eq.f32.partialorder %v6473_v7, 0.0 }
 0x332   : > { %v4137_v49 = vpop.eup %4136  ;;  %v2833_v36 = vsel %vm2831_vm14, %v2832_v30, %v2830_v35  ;;  %v2809_v1 = vsel %vm2808_vm15, %v6434_v17, %v2807_v46  ;;  %4150 = vrsqrt.f32 %v6473_v7  ;;  %v6497_v30 = vmul.f32 0.06666667, %v2637_v55 }
 0x333   : > { %v4139_v27 = vpop.eup %4138  ;;  %v3127_v41 = vadd.f32 1e-06, %v2833_v36  ;;  %v2812_v13 = vsel %vm2810_vm0, %v2811_v34, %v2809_v1  ;;  %v2814_v26 = vmul.f32 %v4137_v49, %v6440_v48  ;;  %v2839_v17 = vand.u32 2147483648, %v6455_v23  ;;  %v2628_v34 = vpop.xlane.xlu0 %2627 }
 0x334   : > { %v3124_v2 = vadd.f32 1e-06, %v2812_v13  ;;  %v2793_v3 = vmul.f32 %v4139_v27, %v6442_v19  ;;  %vm2885_vm14 = vcmp.eq.f32.partialorder %v6497_v30, inf  ;;  %vm2887_vm15 = vcmp.eq.f32.partialorder %v6497_v30, 0.0 }
 0x335   : > { %4152 = vrcp.f32 %v3127_v41  ;;  %v2816_v46 = vsel %vm2815_vm1, %v6440_v48, %v2814_v26 }
 0x336   : > { %v4141_v35 = vpop.eup %4140  ;;  %4154 = vrcp.f32 %v3124_v2  ;;  %v2819_v49 = vsel %vm2817_vm2, %v2818_v18, %v2816_v46  ;;  %v2795_v55 = vsel %vm2794_vm3, %v6442_v19, %v2793_v3  ;;  %v6516_v18 = vmul.f32 0.06666667, %v2628_v34 }
 0x337   : > { %v4143_v36 = vpop.eup %4142  ;;  %v3125_v1 = vadd.f32 1e-06, %v2819_v49  ;;  %v2798_v27 = vsel %vm2796_vm4, %v2797_v9, %v2795_v55  ;;  %v2856_v41 = vmul.f32 %v4141_v35, %v6453_v52  ;;  %4156 = vrsqrt.f32 %v6497_v30 }
 0x338   : > { %v4145_v13 = vpop.eup %4144  ;;  %v3219_v2 = vmul.f32 %v4143_v36, %v6145_v14  ;;  %v3122_v48 = vadd.f32 1e-06, %v2798_v27  ;;  %v2846_v9 = vand.u32 2147483648, %v6469_v5  ;;  %vm2864_vm0 = vcmp.eq.f32.partialorder %v6516_v18, inf }
 0x339   : > { %4158 = vrcp.f32 %v3125_v1  ;;  %v2858_v26 = vsel %vm2857_vm5, %v6453_v52, %v2856_v41  ;;  %v2835_v19 = vmul.f32 %v4145_v13, %v6455_v23  ;;  %v2631_v52 = vpop.xlane.xlu1 %2630  ;;  %vm2866_vm1 = vcmp.eq.f32.partialorder %v6516_v18, 0.0 }
 0x33a   : > { %v4147_v3 = vpop.eup %4146  ;;  %v3271_v46 = vmul.f32 %v6447_v10, %v3219_v2  ;;  %4160 = vrcp.f32 %v3122_v48  ;;  %v2861_v14 = vsel %vm2859_vm6, %v2860_v11, %v2858_v26 }
 0x33b   : > { %v4149_v34 = vpop.eup %4148  ;;  %v3131_v35 = vadd.f32 1e-06, %v2861_v14  ;;  %v2837_v49 = vsel %vm2836_vm7, %v6455_v23, %v2835_v19  ;;  %v2842_v55 = vmul.f32 %v4147_v3, %v6469_v5  ;;  %4162 = vrsqrt.f32 %v6516_v18 }
 0x33c   : > { %v4151_v36 = vpop.eup %4150  ;;  %v6533_v1 = vadd.f32 %v6449_v29, %v3271_v46  ;;  %v3217_v27 = vmul.f32 %v4149_v34, %v6150_v15  ;;  %v2840_v11 = vsel %vm2838_vm9, %v2839_v17, %v2837_v49  ;;  %v2825_v23 = vand.u32 2147483648, %v6473_v7 }
 0x33d   : > { %4164 = vrcp.f32 %v3131_v35  ;;  %v3128_v41 = vadd.f32 1e-06, %v2840_v11  ;;  %v2844_v13 = vsel %vm2843_vm10, %v6469_v5, %v2842_v55  ;;  %v2821_v2 = vmul.f32 %v4151_v36, %v6473_v7 }
 0x33e   : > { %v3419_v48 = vmin.f32 %v6533_v1, 0.0  ;;  %v3269_v26 = vmul.f32 %v6447_v10, %v3217_v27  ;;  %v2847_v15 = vsel %vm2845_vm11, %v2846_v9, %v2844_v13  ;;  %v6551_v46 = vmul.f32 0.06666667, %v2631_v52 }
 0x33f   : > { %v4153_v17 = vpop.eup %4152  ;;  %4166 = vrcp.f32 %v3128_v41  ;;  %v3129_v19 = vadd.f32 1e-06, %v2847_v15  ;;  %v2823_v3 = vsel %vm2822_vm12, %v6473_v7, %v2821_v2  ;;  %vm3371_vm2 = vcmp.gt.f32.partialorder %v6533_v1, 0.0 }
 0x340   : > { %v4155_v14 = vpop.eup %4154  ;;  %v3469_v34 = vmul.f32 1.442695, %v3419_v48  ;;  %v6554_v35 = vadd.f32 %v6449_v29, %v3269_v26  ;;  %v3223_v49 = vmul.f32 %v4153_v17, %v6159_v31  ;;  %v2826_v5 = vsel %vm2824_vm13, %v2825_v23, %v2823_v3 }
 0x341   : > { %v4157_v9 = vpop.eup %4156  ;;  %v3220_v55 = vmul.f32 %v4155_v14, %v6162_v51  ;;  %4168 = vrcp.f32 %v3129_v19  ;;  %v3126_v36 = vadd.f32 1e-06, %v2826_v5  ;;  %v2888_v23 = vand.u32 2147483648, %v6497_v30 }
 0x342   : > { %4170 = vpow2.f32 %v3469_v34  ;;  %v3417_v27 = vmin.f32 %v6554_v35, 0.0  ;;  %v3275_v11 = vmul.f32 %v6447_v10, %v3223_v49  ;;  %v2884_v31 = vmul.f32 %v4157_v9, %v6497_v30 }
 0x343   : > { %v4159_v52 = vpop.eup %4158  ;;  %v3272_v41 = vmul.f32 %v6447_v10, %v3220_v55  ;;  %4172 = vrcp.f32 %v3126_v36  ;;  %v2867_v49 = vand.u32 2147483648, %v6516_v18  ;;  %vm2871_vm3 = vcmp.eq.f32.partialorder %v6551_v46, inf }
 0x344   : > { %v4161_v7 = vpop.eup %4160  ;;  %v3465_v13 = vmul.f32 1.442695, %v3417_v27  ;;  %v6567_v51 = vadd.f32 %v6449_v29, %v3275_v11  ;;  %v3221_v2 = vmul.f32 %v4159_v52, %v6172_v56  ;;  %4174 = vrsqrt.f32 %v6551_v46 }
 0x345   : > { %v6572_v48 = vadd.f32 %v6449_v29, %v3272_v41  ;;  %v3218_v26 = vmul.f32 %v4161_v7, %v6156_v6  ;;  %v2886_v15 = vsel %vm2885_vm14, %v6497_v30, %v2884_v31  ;;  %v4163_v17 = vpop.eup %4162  ;;  %v2622_v7 = vpop.xlane.xlu0 %2621  ;;  %vm3369_vm4 = vcmp.gt.f32.partialorder %v6554_v35, 0.0 }
 0x346   : > { %4176 = vpow2.f32 %v3465_v13  ;;  %v3423_v19 = vmin.f32 %v6567_v51, 0.0  ;;  %v3273_v3 = vmul.f32 %v6447_v10, %v3221_v2  ;;  %v2889_v6 = vsel %vm2887_vm15, %v2888_v23, %v2886_v15 }
 0x347   : > { %v4165_v56 = vpop.eup %4164  ;;  %v3420_v14 = vmin.f32 %v6572_v48, 0.0  ;;  %v3270_v34 = vmul.f32 %v6447_v10, %v3218_v26  ;;  %v3135_v36 = vadd.f32 1e-06, %v2889_v6  ;;  %v2863_v30 = vmul.f32 %v4163_v17, %v6516_v18 }
 0x348   : > { %v3477_v5 = vmul.f32 1.442695, %v3423_v19  ;;  %v6587_v9 = vadd.f32 %v6449_v29, %v3273_v3  ;;  %v3227_v55 = vmul.f32 %v4165_v56, %v6184_v44  ;;  %vm2873_vm5 = vcmp.eq.f32.partialorder %v6551_v46, 0.0 }
 0x349   : > { %v4167_v27 = vpop.eup %4166  ;;  %v3471_v11 = vmul.f32 1.442695, %v3420_v14  ;;  %v6593_v52 = vadd.f32 %v6449_v29, %v3270_v34  ;;  %vm3375_vm6 = vcmp.gt.f32.partialorder %v6567_v51, 0.0  ;;  %vm3372_vm7 = vcmp.gt.f32.partialorder %v6572_v48, 0.0 }
 0x34a   : > { %4178 = vpow2.f32 %v3477_v5  ;;  %v3421_v41 = vmin.f32 %v6587_v9, 0.0  ;;  %v3279_v31 = vmul.f32 %v6447_v10, %v3227_v55  ;;  %v3224_v2 = vmul.f32 %v4167_v27, %v6175_v33 }
 0x34b   : > { %v4169_v44 = vpop.eup %4168  ;;  %4180 = vpow2.f32 %v3471_v11  ;;  %v3418_v13 = vmin.f32 %v6593_v52, 0.0  ;;  %v2865_v33 = vsel %vm2864_vm0, %v6516_v18, %v2863_v30  ;;  %vm3373_vm9 = vcmp.gt.f32.partialorder %v6587_v9, 0.0 }
 0x34c   : > { %v4171_v26 = vpop.eup %4170  ;;  %v3473_v15 = vmul.f32 1.442695, %v3421_v41  ;;  %v6603_v23 = vadd.f32 %v6449_v29, %v3279_v31  ;;  %v3225_v17 = vmul.f32 %v4169_v44, %v6195_v61  ;;  %4182 = vrcp.f32 %v3135_v36 }
 0x34d   : > { %v4173_v19 = vpop.eup %4172  ;;  %v3890_v3 = vadd.f32 -1.0, %v4171_v26  ;;  %v3467_v56 = vmul.f32 1.442695, %v3418_v13  ;;  %v3276_v14 = vmul.f32 %v6447_v10, %v3224_v2  ;;  %v2868_v41 = vsel %vm2866_vm1, %v2867_v49, %v2865_v33 }
 0x34e   : > { %v4175_v34 = vpop.eup %4174  ;;  %4184 = vpow2.f32 %v3473_v15  ;;  %v3427_v61 = vmin.f32 %v6603_v23, 0.0  ;;  %v3277_v6 = vmul.f32 %v6447_v10, %v3225_v17  ;;  %v3222_v36 = vmul.f32 %v4173_v19, %v6187_v12 }
 0x34f   : > { %v3611_v5 = vsel %vm3371_vm2, %v6533_v1, %v3890_v3  ;;  %4186 = vpow2.f32 %v3467_v56  ;;  %v6622_v55 = vadd.f32 %v6449_v29, %v3276_v14  ;;  %v2870_v31 = vmul.f32 %v4175_v34, %v6551_v46  ;;  %v2640_v1 = vpop.xlane.xlu0 %2639 }
 0x350   : > { %v4177_v27 = vpop.eup %4176  ;;  %3659 = vst.msk [vmem:[%s6609_s30 + $0x10] sm:$0xff] %vm2303_vm8, %v3611_v5  ;;  %v3485_v11 = vmul.f32 1.442695, %v3427_v61  ;;  %v6628_v30 = vadd.f32 %v6449_v29, %v3277_v6  ;;  %v3274_v2 = vmul.f32 %v6447_v10, %v3222_v36  ;;  %v2874_v12 = vand.u32 2147483648, %v6551_v46 }
 0x351   : > { %v3888_v44 = vadd.f32 -1.0, %v4177_v27  ;;  %v3424_v13 = vmin.f32 %v6622_v55, 0.0  ;;  %v3132_v15 = vadd.f32 1e-06, %v2868_v41  ;;  %v6637_v17 = vmul.f32 0.06666667, %v2622_v7  ;;  %v2649_v41 = vpop.xlane.xlu1 %2648 }
 0x352   : > { %4188 = vpow2.f32 %v3485_v11  ;;  %v3425_v26 = vmin.f32 %v6628_v30, 0.0  ;;  %v6643_v19 = vadd.f32 %v6449_v29, %v3274_v2  ;;  %v2872_v3 = vsel %vm2871_vm3, %v6551_v46, %v2870_v31 }
 0x353   : > { %v3609_v18 = vsel %vm3369_vm4, %v6554_v35, %v3888_v44  ;;  %v3479_v49 = vmul.f32 1.442695, %v3424_v13  ;;  %4190 = vrcp.f32 %v3132_v15  ;;  %v2875_v7 = vsel %vm2873_vm5, %v2874_v12, %v2872_v3  ;;  %v2634_v36 = vpop.xlane.xlu0 %2633 }
 0x354   : > { %v4179_v56 = vpop.eup %4178  ;;  %3657 = vst.msk [vmem:[%s6609_s30] sm:$0xff] %vm2303_vm8, %v3609_v18  ;;  %v3481_v14 = vmul.f32 1.442695, %v3425_v26  ;;  %v3422_v34 = vmin.f32 %v6643_v19, 0.0  ;;  %v3133_v5 = vadd.f32 1e-06, %v2875_v7 }
 0x355   : > { %v4181_v33 = vpop.eup %4180  ;;  %v3894_v35 = vadd.f32 -1.0, %v4179_v56  ;;  %4192 = vpow2.f32 %v3479_v49  ;;  %v6661_v13 = vmul.f32 0.06666667, %v2640_v1  ;;  %vm3370_vm10 = vcmp.gt.f32.partialorder %v6593_v52, 0.0 }
 0x356   : > { %v4183_v61 = vpop.eup %4182  ;;  %v3891_v6 = vadd.f32 -1.0, %v4181_v33  ;;  %4194 = vpow2.f32 %v3481_v14  ;;  %v3475_v46 = vmul.f32 1.442695, %v3422_v34  ;;  %vm3379_vm11 = vcmp.gt.f32.partialorder %v6603_v23, 0.0  ;;  %v2643_v14 = vpop.xlane.xlu1 %2642 }
 0x357   : > { %v3615_v27 = vsel %vm3375_vm6, %v6567_v51, %v3894_v35  ;;  %v3231_v11 = vmul.f32 %v4183_v61, %v6208_v45  ;;  %4196 = vrsqrt.f32 %v6637_v17  ;;  %v6666_v45 = vmul.f32 0.06666667, %v2634_v36  ;;  %v2652_v15 = vpop.xlane.xlu0 %2651 }
 0x358   : > { %v4185_v31 = vpop.eup %4184  ;;  %3663 = vst.msk [vmem:[%s6609_s30 + $0x30] sm:$0xff] %vm2303_vm8, %v3615_v27  ;;  %v3612_v44 = vsel %vm3372_vm7, %v6572_v48, %v3891_v6  ;;  %4198 = vrcp.f32 %v3133_v5  ;;  %vm3376_vm12 = vcmp.gt.f32.partialorder %v6622_v55, 0.0  ;;  %vm3377_vm13 = vcmp.gt.f32.partialorder %v6628_v30, 0.0 }
 0x359   : > { %v4187_v2 = vpop.eup %4186  ;;  %3660 = vst.msk [vmem:[%s6609_s30 + $0x18] sm:$0xff] %vm2303_vm8, %v3612_v44  ;;  %v3892_v12 = vadd.f32 -1.0, %v4185_v31  ;;  %4200 = vpow2.f32 %v3475_v46  ;;  %v3283_v51 = vmul.f32 %v6447_v10, %v3231_v11  ;;  %vm2850_vm14 = vcmp.eq.f32.partialorder %v6637_v17, inf }
 0x35a   : > { %v3889_v26 = vadd.f32 -1.0, %v4187_v2  ;;  %4202 = vrsqrt.f32 %v6661_v13  ;;  %v6686_v56 = vmul.f32 0.06666667, %v2649_v41  ;;  %vm3374_vm15 = vcmp.gt.f32.partialorder %v6643_v19, 0.0 }
 0x35b   : > { %v3613_v48 = vsel %vm3373_vm9, %v6587_v9, %v3892_v12  ;;  %v6673_v1 = vadd.f32 %v6449_v29, %v3283_v51  ;;  %4204 = vrsqrt.f32 %v6666_v45  ;;  %vm2852_vm0 = vcmp.eq.f32.partialorder %v6637_v17, 0.0  ;;  %v2646_v2 = vpop.xlane.xlu0 %2645 }
 0x35c   : > { %v4189_v18 = vpop.eup %4188  ;;  %3661 = vst.msk [vmem:[%s6609_s30 + $0x20] sm:$0xff] %vm2303_vm8, %v3613_v48  ;;  %v3610_v49 = vsel %vm3370_vm10, %v6593_v52, %v3889_v26  ;;  %v2853_v52 = vand.u32 2147483648, %v6637_v17  ;;  %v6691_v33 = vmul.f32 0.06666667, %v2652_v15  ;;  %4206 = vrsqrt.f32 %v6686_v56 }
 0x35d   : > { %3658 = vst.msk [vmem:[%s6609_s30 + $0x8] sm:$0xff] %vm2303_vm8, %v3610_v49  ;;  %v3898_v9 = vadd.f32 -1.0, %v4189_v18  ;;  %v3431_v3 = vmin.f32 %v6673_v1, 0.0  ;;  %v4191_v7 = vpop.eup %4190  ;;  %vm2892_vm1 = vcmp.eq.f32.partialorder %v6661_v13, inf  ;;  %vm2894_vm2 = vcmp.eq.f32.partialorder %v6661_v13, 0.0 }
 0x35e   : > { %v3228_v6 = vmul.f32 %v4191_v7, %v6198_v22  ;;  %v6700_v27 = vmul.f32 0.06666667, %v2643_v14  ;;  %v2895_v22 = vand.u32 2147483648, %v6661_v13  ;;  %vm2878_vm3 = vcmp.eq.f32.partialorder %v6666_v45, inf }
 0x35f   : > { %v4193_v35 = vpop.eup %4192  ;;  %v3619_v34 = vsel %vm3379_vm11, %v6603_v23, %v3898_v9  ;;  %v3493_v61 = vmul.f32 1.442695, %v3431_v3  ;;  %vm2880_vm4 = vcmp.eq.f32.partialorder %v6666_v45, 0.0  ;;  %v2881_v49 = vand.u32 2147483648, %v6666_v45 }
 0x360   : > { %v4195_v5 = vpop.eup %4194  ;;  %3667 = vst.msk [vmem:[%s6609_s30 + $0x50] sm:$0xff] %vm2303_vm8, %v3619_v34  ;;  %v3895_v36 = vadd.f32 -1.0, %v4193_v35  ;;  %v3280_v23 = vmul.f32 %v6447_v10, %v3228_v6  ;;  %vm3383_vm5 = vcmp.gt.f32.partialorder %v6673_v1, 0.0  ;;  %v6732_v14 = vmul.f32 0.06666667, %v2646_v2  ;;  %v2658_v2 = vpop.xlane.xlu0 %2657 }
 0x361   : > { %v4197_v46 = vpop.eup %4196  ;;  %v3896_v11 = vadd.f32 -1.0, %v4195_v5  ;;  %4208 = vpow2.f32 %v3493_v61  ;;  %vm2913_vm6 = vcmp.eq.f32.partialorder %v6686_v56, inf  ;;  %vm2915_vm7 = vcmp.eq.f32.partialorder %v6686_v56, 0.0 }
 0x362   : > { %v4199_v41 = vpop.eup %4198  ;;  %v3616_v31 = vsel %vm3376_vm12, %v6622_v55, %v3895_v36  ;;  %v2849_v44 = vmul.f32 %v4197_v46, %v6637_v17  ;;  %4210 = vrsqrt.f32 %v6691_v33  ;;  %v6716_v26 = vadd.f32 %v6449_v29, %v3280_v23  ;;  %v2655_v23 = vpop.xlane.xlu1 %2654 }
 0x363   : > { %v4201_v12 = vpop.eup %4200  ;;  %3664 = vst.msk [vmem:[%s6609_s30 + $0x38] sm:$0xff] %vm2303_vm8, %v3616_v31  ;;  %v3617_v51 = vsel %vm3377_vm13, %v6628_v30, %v3896_v11  ;;  %v3229_v48 = vmul.f32 %v4199_v41, %v6219_v50  ;;  %4212 = vrsqrt.f32 %v6700_v27  ;;  %vm2920_vm9 = vcmp.eq.f32.partialorder %v6691_v33, inf }
 0x364   : > { %v4203_v55 = vpop.eup %4202  ;;  %3665 = vst.msk [vmem:[%s6609_s30 + $0x40] sm:$0xff] %vm2303_vm8, %v3617_v51  ;;  %v3893_v15 = vadd.f32 -1.0, %v4201_v12  ;;  %v2851_v18 = vsel %vm2850_vm14, %v6637_v17, %v2849_v44  ;;  %v3428_v50 = vmin.f32 %v6716_v26, 0.0  ;;  %vm2922_vm10 = vcmp.eq.f32.partialorder %v6691_v33, 0.0 }
 0x365   : > { %v4205_v30 = vpop.eup %4204  ;;  %v3281_v9 = vmul.f32 %v6447_v10, %v3229_v48  ;;  %v2854_v3 = vsel %vm2852_vm0, %v2853_v52, %v2851_v18  ;;  %v2891_v34 = vmul.f32 %v4203_v55, %v6661_v13  ;;  %v2916_v52 = vand.u32 2147483648, %v6686_v56 }
 0x366   : > { %v3614_v7 = vsel %vm3374_vm15, %v6643_v19, %v3893_v15  ;;  %v3130_v35 = vadd.f32 1e-06, %v2854_v3  ;;  %v2877_v61 = vmul.f32 %v4205_v30, %v6666_v45  ;;  %v3487_v6 = vmul.f32 1.442695, %v3428_v50  ;;  %v4207_v36 = vpop.eup %4206  ;;  %v2661_v50 = vpop.xlane.xlu1 %2660 }
 0x367   : > { %3662 = vst.msk [vmem:[%s6609_s30 + $0x28] sm:$0xff] %vm2303_vm8, %v3614_v7  ;;  %v6742_v5 = vadd.f32 %v6449_v29, %v3281_v9  ;;  %v2893_v17 = vsel %vm2892_vm1, %v6661_v13, %v2891_v34  ;;  %v2912_v44 = vmul.f32 %v4207_v36, %v6686_v56  ;;  %v2923_v13 = vand.u32 2147483648, %v6691_v33  ;;  %v2664_v34 = vpop.xlane.xlu0 %2663 }
 0x368   : > { %4214 = vrcp.f32 %v3130_v35  ;;  %v2879_v19 = vsel %vm2878_vm3, %v6666_v45, %v2877_v61  ;;  %v2896_v11 = vsel %vm2894_vm2, %v2895_v22, %v2893_v17  ;;  %v6766_v15 = vmul.f32 0.06666667, %v2655_v23 }
 0x369   : > { %4216 = vpow2.f32 %v3487_v6  ;;  %v3429_v46 = vmin.f32 %v6742_v5, 0.0  ;;  %v3136_v41 = vadd.f32 1e-06, %v2896_v11  ;;  %v2882_v31 = vsel %vm2880_vm4, %v2881_v49, %v2879_v19 }
 0x36a   : > { %4218 = vrsqrt.f32 %v6732_v14  ;;  %v3134_v48 = vadd.f32 1e-06, %v2882_v31  ;;  %v2914_v45 = vsel %vm2913_vm6, %v6686_v56, %v2912_v44  ;;  %v6771_v30 = vmul.f32 0.06666667, %v2658_v2  ;;  %v2667_v19 = vpop.xlane.xlu1 %2666 }
 0x36b   : > { %v4209_v12 = vpop.eup %4208  ;;  %v3489_v51 = vmul.f32 1.442695, %v3429_v46  ;;  %4220 = vrcp.f32 %v3136_v41  ;;  %v2917_v18 = vsel %vm2915_vm7, %v2916_v52, %v2914_v45  ;;  %vm2899_vm11 = vcmp.eq.f32.partialorder %v6700_v27, inf }
 0x36c   : > { %v4211_v22 = vpop.eup %4210  ;;  %v3902_v55 = vadd.f32 -1.0, %v4209_v12  ;;  %v3139_v7 = vadd.f32 1e-06, %v2917_v18  ;;  %vm3380_vm12 = vcmp.gt.f32.partialorder %v6716_v26, 0.0  ;;  %vm2901_vm13 = vcmp.eq.f32.partialorder %v6700_v27, 0.0 }
 0x36d   : > { %4222 = vpow2.f32 %v3489_v51  ;;  %v2919_v49 = vmul.f32 %v4211_v22, %v6691_v33  ;;  %v4213_v9 = vpop.eup %4212  ;;  %v2902_v61 = vand.u32 2147483648, %v6700_v27  ;;  %vm2906_vm14 = vcmp.eq.f32.partialorder %v6732_v14, inf }
 0x36e   : > { %v3623_v3 = vsel %vm3383_vm5, %v6673_v1, %v3902_v55  ;;  %4224 = vrcp.f32 %v3134_v48  ;;  %v2898_v35 = vmul.f32 %v4213_v9, %v6700_v27  ;;  %vm3381_vm15 = vcmp.gt.f32.partialorder %v6742_v5, 0.0 }
 0x36f   : > { %3671 = vst.msk [vmem:[%s6609_s30 + $0x70] sm:$0xff] %vm2303_vm8, %v3623_v3  ;;  %v2921_v56 = vsel %vm2920_vm9, %v6691_v33, %v2919_v49  ;;  %4226 = vrsqrt.f32 %v6766_v15  ;;  %v6793_v46 = vmul.f32 0.06666667, %v2661_v50  ;;  %v6795_v33 = vmul.f32 0.06666667, %v2664_v34 }
 0x370   : > { %4228 = vrcp.f32 %v3139_v7  ;;  %v2924_v1 = vsel %vm2922_vm10, %v2923_v13, %v2921_v56  ;;  %v2900_v17 = vsel %vm2899_vm11, %v6700_v27, %v2898_v35  ;;  %vm2908_vm0 = vcmp.eq.f32.partialorder %v6732_v14, 0.0 }
 0x371   : > { %v3140_v6 = vadd.f32 1e-06, %v2924_v1  ;;  %4230 = vrsqrt.f32 %v6771_v30  ;;  %v2903_v36 = vsel %vm2901_vm13, %v2902_v61, %v2900_v17  ;;  %v2909_v44 = vand.u32 2147483648, %v6732_v14 }
 0x372   : > { %v4215_v52 = vpop.eup %4214  ;;  %v3137_v41 = vadd.f32 1e-06, %v2903_v36  ;;  %v6801_v2 = vmul.f32 0.06666667, %v2667_v19  ;;  %vm2927_vm1 = vcmp.eq.f32.partialorder %v6766_v15, inf  ;;  %vm2929_vm2 = vcmp.eq.f32.partialorder %v6766_v15, 0.0 }
 0x373   : > { %v4217_v11 = vpop.eup %4216  ;;  %v3226_v23 = vmul.f32 %v4215_v52, %v6211_v25  ;;  %4232 = vrcp.f32 %v3140_v6  ;;  %v2930_v13 = vand.u32 2147483648, %v6766_v15  ;;  %vm2934_vm3 = vcmp.eq.f32.partialorder %v6771_v30, inf }
 0x374   : > { %v4219_v27 = vpop.eup %4218  ;;  %v3899_v31 = vadd.f32 -1.0, %v4217_v11  ;;  %4234 = vrsqrt.f32 %v6793_v46  ;;  %vm2936_vm4 = vcmp.eq.f32.partialorder %v6771_v30, 0.0  ;;  %v2937_v56 = vand.u32 2147483648, %v6771_v30 }
 0x375   : > { %v3278_v12 = vmul.f32 %v6447_v10, %v3226_v23  ;;  %4236 = vrcp.f32 %v3137_v41  ;;  %v2905_v51 = vmul.f32 %v4219_v27, %v6732_v14  ;;  %v4221_v25 = vpop.eup %4220  ;;  %vm2941_vm5 = vcmp.eq.f32.partialorder %v6793_v46, inf }
 0x376   : > { %v3620_v48 = vsel %vm3380_vm12, %v6716_v26, %v3899_v31  ;;  %4238 = vrsqrt.f32 %v6795_v33  ;;  %v3232_v45 = vmul.f32 %v4221_v25, %v6222_v38  ;;  %vm2943_vm6 = vcmp.eq.f32.partialorder %v6793_v46, 0.0 }
 0x377   : > { %v4223_v22 = vpop.eup %4222  ;;  %3668 = vst.msk [vmem:[%s6609_s30 + $0x58] sm:$0xff] %vm2303_vm8, %v3620_v48  ;;  %v6815_v55 = vadd.f32 %v6449_v29, %v3278_v12  ;;  %v2907_v18 = vsel %vm2906_vm14, %v6732_v14, %v2905_v51  ;;  %4240 = vrsqrt.f32 %v6801_v2  ;;  %v2944_v36 = vand.u32 2147483648, %v6793_v46 }
 0x378   : > { %v4225_v26 = vpop.eup %4224  ;;  %v3900_v49 = vadd.f32 -1.0, %v4223_v22  ;;  %v2910_v50 = vsel %vm2908_vm0, %v2909_v44, %v2907_v18  ;;  %v3284_v38 = vmul.f32 %v6447_v10, %v3232_v45  ;;  %vm2948_vm7 = vcmp.eq.f32.partialorder %v6795_v33, inf }
 0x379   : > { %v4227_v9 = vpop.eup %4226  ;;  %v3426_v3 = vmin.f32 %v6815_v55, 0.0  ;;  %v3230_v7 = vmul.f32 %v4225_v26, %v6230_v32  ;;  %v3138_v14 = vadd.f32 1e-06, %v2910_v50  ;;  %vm2950_vm9 = vcmp.eq.f32.partialorder %v6795_v33, 0.0 }
 0x37a   : > { %v4229_v35 = vpop.eup %4228  ;;  %v3621_v34 = vsel %vm3381_vm15, %v6742_v5, %v3900_v49  ;;  %v2926_v1 = vmul.f32 %v4227_v9, %v6766_v15  ;;  %v6838_v17 = vadd.f32 %v6449_v29, %v3284_v38  ;;  %v2951_v22 = vand.u32 2147483648, %v6795_v33 }
 0x37b   : > { %v4231_v61 = vpop.eup %4230  ;;  %3669 = vst.msk [vmem:[%s6609_s30 + $0x60] sm:$0xff] %vm2303_vm8, %v3621_v34  ;;  %v3483_v6 = vmul.f32 1.442695, %v3426_v3  ;;  %v3282_v32 = vmul.f32 %v6447_v10, %v3230_v7  ;;  %v3235_v19 = vmul.f32 %v4229_v35, %v6241_v62  ;;  %4242 = vrcp.f32 %v3138_v14 }
 0x37c   : > { %v2928_v5 = vsel %vm2927_vm1, %v6766_v15, %v2926_v1  ;;  %v2933_v52 = vmul.f32 %v4231_v61, %v6771_v30  ;;  %v3432_v23 = vmin.f32 %v6838_v17, 0.0  ;;  %vm2955_vm10 = vcmp.eq.f32.partialorder %v6801_v2, inf }
 0x37d   : > { %v4233_v11 = vpop.eup %4232  ;;  %4244 = vpow2.f32 %v3483_v6  ;;  %v6850_v41 = vadd.f32 %v6449_v29, %v3282_v32  ;;  %v3287_v27 = vmul.f32 %v6447_v10, %v3235_v19  ;;  %v2931_v44 = vsel %vm2929_vm2, %v2930_v13, %v2928_v5 }
 0x37e   : > { %v4235_v62 = vpop.eup %4234  ;;  %v3236_v31 = vmul.f32 %v4233_v11, %v6244_v28  ;;  %v2935_v12 = vsel %vm2934_vm3, %v6771_v30, %v2933_v52  ;;  %v3495_v25 = vmul.f32 1.442695, %v3432_v23  ;;  %vm3378_vm11 = vcmp.gt.f32.partialorder %v6815_v55, 0.0  ;;  %v2670_v23 = vpop.xlane.xlu0 %2669 }
 0x37f   : > { %v4237_v51 = vpop.eup %4236  ;;  %v3430_v48 = vmin.f32 %v6850_v41, 0.0  ;;  %v6865_v28 = vadd.f32 %v6449_v29, %v3287_v27  ;;  %v2938_v18 = vsel %vm2936_vm4, %v2937_v56, %v2935_v12  ;;  %v3141_v49 = vadd.f32 1e-06, %v2931_v44 }
 0x380   : > { %v4239_v45 = vpop.eup %4238  ;;  %v3288_v15 = vmul.f32 %v6447_v10, %v3236_v31  ;;  %v3233_v13 = vmul.f32 %v4237_v51, %v6249_v0  ;;  %4246 = vpow2.f32 %v3495_v25  ;;  %v2940_v50 = vmul.f32 %v4235_v62, %v6793_v46  ;;  %v2673_v31 = vpop.xlane.xlu1 %2672 }
 0x381   : > { %v3491_v26 = vmul.f32 1.442695, %v3430_v48  ;;  %v4241_v9 = vpop.eup %4240  ;;  %v3435_v3 = vmin.f32 %v6865_v28, 0.0  ;;  %v3142_v35 = vadd.f32 1e-06, %v2938_v18  ;;  %v2947_v30 = vmul.f32 %v4239_v45, %v6795_v33 }
 0x382   : > { %v6875_v38 = vadd.f32 %v6449_v29, %v3288_v15  ;;  %v3285_v7 = vmul.f32 %v6447_v10, %v3233_v13  ;;  %v2942_v0 = vsel %vm2941_vm5, %v6793_v46, %v2940_v50  ;;  %v2954_v56 = vmul.f32 %v4241_v9, %v6801_v2  ;;  %v2676_v15 = vpop.xlane.xlu0 %2675 }
 0x383   : > { %4248 = vpow2.f32 %v3491_v26  ;;  %v3501_v34 = vmul.f32 1.442695, %v3435_v3  ;;  %vm2957_vm12 = vcmp.eq.f32.partialorder %v6801_v2, 0.0  ;;  %v2945_v61 = vsel %vm2943_vm6, %v2944_v36, %v2942_v0 }
 0x384   : > { %v3436_v14 = vmin.f32 %v6875_v38, 0.0  ;;  %v6885_v1 = vadd.f32 %v6449_v29, %v3285_v7  ;;  %4250 = vrcp.f32 %v3141_v49  ;;  %v2949_v6 = vsel %vm2948_vm7, %v6795_v33, %v2947_v30  ;;  %v2679_v26 = vpop.xlane.xlu1 %2678 }
 0x385   : > { %v2958_v32 = vand.u32 2147483648, %v6801_v2  ;;  %v4243_v19 = vpop.eup %4242  ;;  %4252 = vpow2.f32 %v3501_v34  ;;  %v2956_v11 = vsel %vm2955_vm10, %v6801_v2, %v2954_v56  ;;  %v3143_v36 = vadd.f32 1e-06, %v2945_v61 }
 0x386   : > { %v3503_v5 = vmul.f32 1.442695, %v3436_v14  ;;  %v3433_v52 = vmin.f32 %v6885_v1, 0.0  ;;  %v3234_v46 = vmul.f32 %v4243_v19, %v6255_v57  ;;  %4254 = vrcp.f32 %v3142_v35  ;;  %v2682_v3 = vpop.xlane.xlu0 %2681 }
 0x387   : > { %v4245_v62 = vpop.eup %4244  ;;  %v2952_v27 = vsel %vm2950_vm9, %v2951_v22, %v2949_v6  ;;  %v2959_v48 = vsel %vm2957_vm12, %v2958_v32, %v2956_v11  ;;  %v6904_v45 = vmul.f32 0.06666667, %v2670_v23  ;;  %v6909_v22 = vmul.f32 0.06666667, %v2673_v31 }
 0x388   : > { %v3897_v44 = vadd.f32 -1.0, %v4245_v62  ;;  %4256 = vpow2.f32 %v3503_v5  ;;  %v3497_v12 = vmul.f32 1.442695, %v3433_v52  ;;  %v3144_v51 = vadd.f32 1e-06, %v2952_v27 }
 0x389   : > { %v3286_v25 = vmul.f32 %v6447_v10, %v3234_v46  ;;  %4258 = vrcp.f32 %v3143_v36  ;;  %v3145_v33 = vadd.f32 1e-06, %v2959_v48  ;;  %vm3384_vm13 = vcmp.gt.f32.partialorder %v6838_v17, 0.0 }
 0x38a   : > { %v3618_v57 = vsel %vm3378_vm11, %v6815_v55, %v3897_v44  ;;  %4260 = vpow2.f32 %v3497_v12  ;;  %v4247_v13 = vpop.eup %4246  ;;  %vm3382_vm14 = vcmp.gt.f32.partialorder %v6850_v41, 0.0  ;;  %v6924_v0 = vmul.f32 0.06666667, %v2676_v15 }
 0x38b   : > { %3666 = vst.msk [vmem:[%s6609_s30 + $0x48] sm:$0xff] %vm2303_vm8, %v3618_v57  ;;  %v6914_v18 = vadd.f32 %v6449_v29, %v3286_v25  ;;  %4262 = vrcp.f32 %v3144_v51  ;;  %v3903_v2 = vadd.f32 -1.0, %v4247_v13  ;;  %v6926_v30 = vmul.f32 0.06666667, %v2679_v26 }
 0x38c   : > { %4264 = vrcp.f32 %v3145_v33  ;;  %vm3387_vm15 = vcmp.gt.f32.partialorder %v6865_v28, 0.0  ;;  %vm3388_vm0 = vcmp.gt.f32.partialorder %v6875_v38, 0.0  ;;  %vm3385_vm1 = vcmp.gt.f32.partialorder %v6885_v1, 0.0 }
 0x38d   : > { %v4249_v49 = vpop.eup %4248  ;;  %v3434_v55 = vmin.f32 %v6914_v18, 0.0  ;;  %4266 = vrsqrt.f32 %v6904_v45  ;;  %v3624_v50 = vsel %vm3384_vm13, %v6838_v17, %v3903_v2  ;;  %v6935_v6 = vmul.f32 0.06666667, %v2682_v3 }
 0x38e   : > { %v3901_v9 = vadd.f32 -1.0, %v4249_v49  ;;  %4268 = vrsqrt.f32 %v6909_v22  ;;  %v4251_v7 = vpop.eup %4250  ;;  %3672 = vst.msk [vmem:[%s6609_s30 + $0x78] sm:$0xff] %vm2303_vm8, %v3624_v50  ;;  %vm2962_vm2 = vcmp.eq.f32.partialorder %v6904_v45, inf  ;;  %vm2964_vm3 = vcmp.eq.f32.partialorder %v6904_v45, 0.0 }
 0x38f   : > { %v3499_v35 = vmul.f32 1.442695, %v3434_v55  ;;  %v4253_v56 = vpop.eup %4252  ;;  %v3237_v17 = vmul.f32 %v4251_v7, %v6265_v24  ;;  %v2965_v11 = vand.u32 2147483648, %v6904_v45  ;;  %vm2969_vm4 = vcmp.eq.f32.partialorder %v6909_v22, inf }
 0x390   : > { %v3622_v34 = vsel %vm3382_vm14, %v6850_v41, %v3901_v9  ;;  %v4255_v14 = vpop.eup %4254  ;;  %v3906_v61 = vadd.f32 -1.0, %v4253_v56  ;;  %vm3386_vm5 = vcmp.gt.f32.partialorder %v6914_v18, 0.0  ;;  %vm2971_vm6 = vcmp.eq.f32.partialorder %v6909_v22, 0.0 }
 0x391   : > { %3670 = vst.msk [vmem:[%s6609_s30 + $0x68] sm:$0xff] %vm2303_vm8, %v3622_v34  ;;  %4270 = vpow2.f32 %v3499_v35  ;;  %v3289_v19 = vmul.f32 %v6447_v10, %v3237_v17  ;;  %v3238_v41 = vmul.f32 %v4255_v14, %v6268_v60  ;;  %vm2976_vm7 = vcmp.eq.f32.partialorder %v6924_v0, inf }
 0x392   : > { %v4257_v32 = vpop.eup %4256  ;;  %4272 = vrsqrt.f32 %v6924_v0  ;;  %v3627_v5 = vsel %vm3387_vm15, %v6865_v28, %v3906_v61  ;;  %v2709_v28 = vpop.xlane.xlu1 %2708  ;;  %v2979_v55 = vand.u32 2147483648, %v6924_v0  ;;  %vm2978_vm9 = vcmp.eq.f32.partialorder %v6924_v0, 0.0 }
 0x393   : > { %v4259_v24 = vpop.eup %4258  ;;  %v3907_v52 = vadd.f32 -1.0, %v4257_v32  ;;  %4274 = vrsqrt.f32 %v6926_v30  ;;  %3675 = vst.msk [vmem:[%s6609_s30 + $0x90] sm:$0xff] %vm2303_vm8, %v3627_v5  ;;  %v6948_v60 = vadd.f32 %v6449_v29, %v3289_v19  ;;  %v3290_v62 = vmul.f32 %v6447_v10, %v3238_v41 }
 0x394   : > { %v4261_v23 = vpop.eup %4260  ;;  %v3239_v46 = vmul.f32 %v4259_v24, %v6277_v43  ;;  %4276 = vrsqrt.f32 %v6935_v6  ;;  %v6972_v15 = vmul.f32 0.06666667, %v2709_v28  ;;  %vm2983_vm10 = vcmp.eq.f32.partialorder %v6926_v30, inf }
 0x395   : > { %v4263_v36 = vpop.eup %4262  ;;  %v3628_v27 = vsel %vm3388_vm0, %v6875_v38, %v3907_v52  ;;  %v3904_v31 = vadd.f32 -1.0, %v4261_v23  ;;  %v3437_v43 = vmin.f32 %v6948_v60, 0.0  ;;  %v6963_v12 = vadd.f32 %v6449_v29, %v3290_v62 }
 0x396   : > { %v4265_v44 = vpop.eup %4264  ;;  %3676 = vst.msk [vmem:[%s6609_s30 + $0x98] sm:$0xff] %vm2303_vm8, %v3628_v27  ;;  %v3291_v51 = vmul.f32 %v6447_v10, %v3239_v46  ;;  %v2972_v38 = vand.u32 2147483648, %v6909_v22  ;;  %v3240_v57 = vmul.f32 %v4263_v36, %v6280_v58  ;;  %vm2985_vm11 = vcmp.eq.f32.partialorder %v6926_v30, 0.0 }
 0x397   : > { %v4267_v25 = vpop.eup %4266  ;;  %v3625_v48 = vsel %vm3385_vm1, %v6885_v1, %v3904_v31  ;;  %v3241_v33 = vmul.f32 %v4265_v44, %v6289_v47  ;;  %v3505_v2 = vmul.f32 1.442695, %v3437_v43  ;;  %v3438_v26 = vmin.f32 %v6963_v12, 0.0 }
 0x398   : > { %v4269_v13 = vpop.eup %4268  ;;  %3673 = vst.msk [vmem:[%s6609_s30 + $0x80] sm:$0xff] %vm2303_vm8, %v3625_v48  ;;  %v6978_v49 = vadd.f32 %v6449_v29, %v3291_v51  ;;  %v3292_v1 = vmul.f32 %v6447_v10, %v3240_v57  ;;  %v2961_v47 = vmul.f32 %v4267_v25, %v6904_v45  ;;  %v2986_v52 = vand.u32 2147483648, %v6926_v30 }
 0x399   : > { %v3293_v58 = vmul.f32 %v6447_v10, %v3241_v33  ;;  %v2968_v50 = vmul.f32 %v4269_v13, %v6909_v22  ;;  %4278 = vpow2.f32 %v3505_v2  ;;  %v3507_v9 = vmul.f32 1.442695, %v3438_v26 }
 0x39a   : > { %v3439_v3 = vmin.f32 %v6978_v49, 0.0  ;;  %v6990_v35 = vadd.f32 %v6449_v29, %v3292_v1  ;;  %v2963_v34 = vsel %vm2962_vm2, %v6904_v45, %v2961_v47  ;;  %v2712_v45 = vpop.xlane.xlu0 %2711  ;;  %vm2990_vm12 = vcmp.eq.f32.partialorder %v6935_v6, inf }
 0x39b   : > { %v4271_v7 = vpop.eup %4270  ;;  %v6993_v56 = vadd.f32 %v6449_v29, %v3293_v58  ;;  %v2970_v17 = vsel %vm2969_vm4, %v6909_v22, %v2968_v50  ;;  %4280 = vpow2.f32 %v3507_v9  ;;  %v2966_v19 = vsel %vm2964_vm3, %v2965_v11, %v2963_v34 }
 0x39c   : > { %v4273_v14 = vpop.eup %4272  ;;  %v3905_v61 = vadd.f32 -1.0, %v4271_v7  ;;  %v3509_v32 = vmul.f32 1.442695, %v3439_v3  ;;  %v3440_v24 = vmin.f32 %v6990_v35, 0.0  ;;  %v3146_v62 = vadd.f32 1e-06, %v2966_v19 }
 0x39d   : > { %v4275_v41 = vpop.eup %4274  ;;  %v3441_v5 = vmin.f32 %v6993_v56, 0.0  ;;  %v2973_v46 = vsel %vm2971_vm6, %v2972_v38, %v2970_v17  ;;  %v2975_v31 = vmul.f32 %v4273_v14, %v6924_v0  ;;  %vm2992_vm13 = vcmp.eq.f32.partialorder %v6935_v6, 0.0 }
 0x39e   : > { %v3626_v23 = vsel %vm3386_vm5, %v6914_v18, %v3905_v61  ;;  %4282 = vpow2.f32 %v3509_v32  ;;  %v4277_v11 = vpop.eup %4276  ;;  %v3511_v28 = vmul.f32 1.442695, %v3440_v24  ;;  %v3147_v27 = vadd.f32 1e-06, %v2973_v46  ;;  %v2703_v18 = vpop.xlane.xlu1 %2702 }
 0x39f   : > { %3674 = vst.msk [vmem:[%s6609_s30 + $0x88] sm:$0xff] %vm2303_vm8, %v3626_v23  ;;  %v3513_v36 = vmul.f32 1.442695, %v3441_v5  ;;  %4284 = vrcp.f32 %v3146_v62  ;;  %v2982_v44 = vmul.f32 %v4275_v41, %v6926_v30  ;;  %v2989_v43 = vmul.f32 %v4277_v11, %v6935_v6 }
 0x3a0   : > { %4286 = vpow2.f32 %v3511_v28  ;;  %v2977_v22 = vsel %vm2976_vm7, %v6924_v0, %v2975_v31  ;;  %v2993_v51 = vand.u32 2147483648, %v6935_v6  ;;  %v2706_v0 = vpop.xlane.xlu0 %2705  ;;  %v7032_v58 = vmul.f32 0.06666667, %v2712_v45 }
 0x3a1   : > { %4288 = vpow2.f32 %v3513_v36  ;;  %v2980_v38 = vsel %vm2978_vm9, %v2979_v55, %v2977_v22  ;;  %v2984_v25 = vsel %vm2983_vm10, %v6926_v30, %v2982_v44  ;;  %v2991_v48 = vsel %vm2990_vm12, %v6935_v6, %v2989_v43 }
 0x3a2   : > { %4290 = vrcp.f32 %v3147_v27  ;;  %v3148_v57 = vadd.f32 1e-06, %v2980_v38  ;;  %v2987_v33 = vsel %vm2985_vm11, %v2986_v52, %v2984_v25  ;;  %v2994_v13 = vsel %vm2992_vm13, %v2993_v51, %v2991_v48  ;;  %v2685_v30 = vpop.xlane.xlu1 %2684 }
 0x3a3   : > { %v4279_v2 = vpop.eup %4278  ;;  %v3149_v26 = vadd.f32 1e-06, %v2987_v33  ;;  %v3150_v1 = vadd.f32 1e-06, %v2994_v13  ;;  %4292 = vrsqrt.f32 %v6972_v15  ;;  %vm3389_vm14 = vcmp.gt.f32.partialorder %v6948_v60, 0.0 }
 0x3a4   : > { %v3908_v55 = vadd.f32 -1.0, %v4279_v2  ;;  %4294 = vrcp.f32 %v3148_v57  ;;  %v7035_v6 = vmul.f32 0.06666667, %v2703_v18  ;;  %vm3390_vm15 = vcmp.gt.f32.partialorder %v6963_v12, 0.0  ;;  %v2688_v61 = vpop.xlane.xlu0 %2687 }
 0x3a5   : > { %v4281_v47 = vpop.eup %4280  ;;  %4296 = vrcp.f32 %v3149_v26  ;;  %v7042_v7 = vmul.f32 0.06666667, %v2706_v0  ;;  %v7046_v14 = vmul.f32 0.06666667, %v2685_v30  ;;  %vm3391_vm0 = vcmp.gt.f32.partialorder %v6978_v49, 0.0 }
 0x3a6   : > { %v3629_v50 = vsel %vm3389_vm14, %v6948_v60, %v3908_v55  ;;  %v3909_v9 = vadd.f32 -1.0, %v4281_v47  ;;  %4298 = vrcp.f32 %v3150_v1  ;;  %vm3392_vm1 = vcmp.gt.f32.partialorder %v6990_v35, 0.0 }
 0x3a7   : > { %3677 = vst.msk [vmem:[%s6609_s30 + $0xa0] sm:$0xff] %vm2303_vm8, %v3629_v50  ;;  %4300 = vrsqrt.f32 %v7032_v58  ;;  %vm3393_vm2 = vcmp.gt.f32.partialorder %v6993_v56, 0.0  ;;  %vm3053_vm3 = vcmp.eq.f32.partialorder %v6972_v15, inf  ;;  %vm3055_vm4 = vcmp.eq.f32.partialorder %v6972_v15, 0.0  ;;  %v2721_v50 = vpop.xlane.xlu1 %2720 }
 0x3a8   : > { %v4283_v3 = vpop.eup %4282  ;;  %v3630_v34 = vsel %vm3390_vm15, %v6963_v12, %v3909_v9  ;;  %4302 = vrsqrt.f32 %v7035_v6  ;;  %v3056_v5 = vand.u32 2147483648, %v6972_v15  ;;  %vm3060_vm5 = vcmp.eq.f32.partialorder %v7032_v58, inf }
 0x3a9   : > { %v3910_v17 = vadd.f32 -1.0, %v4283_v3  ;;  %v4285_v60 = vpop.eup %4284  ;;  %3678 = vst.msk [vmem:[%s6609_s30 + $0xa8] sm:$0xff] %vm2303_vm8, %v3630_v34  ;;  %4304 = vrsqrt.f32 %v7042_v7  ;;  %vm3062_vm6 = vcmp.eq.f32.partialorder %v7032_v58, 0.0  ;;  %v3063_v11 = vand.u32 2147483648, %v7032_v58 }
 0x3aa   : > { %v4287_v32 = vpop.eup %4286  ;;  %v3242_v12 = vmul.f32 %v4285_v60, %v6292_v42  ;;  %4306 = vrsqrt.f32 %v7046_v14  ;;  %vm3039_vm7 = vcmp.eq.f32.partialorder %v7035_v6, inf  ;;  %v3042_v43 = vand.u32 2147483648, %v7035_v6 }
 0x3ab   : > { %v3631_v19 = vsel %vm3391_vm0, %v6978_v49, %v3910_v17  ;;  %v4289_v41 = vpop.eup %4288  ;;  %v3911_v24 = vadd.f32 -1.0, %v4287_v32  ;;  %v7064_v49 = vmul.f32 0.06666667, %v2688_v61  ;;  %vm3041_vm9 = vcmp.eq.f32.partialorder %v7035_v6, 0.0 }
 0x3ac   : > { %3679 = vst.msk [vmem:[%s6609_s30 + $0xb0] sm:$0xff] %vm2303_vm8, %v3631_v19  ;;  %v4291_v52 = vpop.eup %4290  ;;  %v3912_v23 = vadd.f32 -1.0, %v4289_v41  ;;  %v3294_v42 = vmul.f32 %v6447_v10, %v3242_v12  ;;  %v3049_v38 = vand.u32 2147483648, %v7042_v7  ;;  %vm3046_vm10 = vcmp.eq.f32.partialorder %v7042_v7, inf  ;;  %v2724_v12 = vpop.xlane.xlu0 %2723 }
 0x3ad   : > { %v4293_v62 = vpop.eup %4292  ;;  %v3632_v46 = vsel %vm3392_vm1, %v6990_v35, %v3911_v24  ;;  %v3243_v45 = vmul.f32 %v4291_v52, %v6301_v8  ;;  %4308 = vrsqrt.f32 %v7064_v49  ;;  %vm3048_vm11 = vcmp.eq.f32.partialorder %v7042_v7, 0.0 }
 0x3ae   : > { %v4295_v28 = vpop.eup %4294  ;;  %3680 = vst.msk [vmem:[%s6609_s30 + $0xb8] sm:$0xff] %vm2303_vm8, %v3632_v46  ;;  %v3633_v36 = vsel %vm3393_vm2, %v6993_v56, %v3912_v23  ;;  %v7078_v27 = vadd.f32 %v6449_v29, %v3294_v42  ;;  %v3052_v31 = vmul.f32 %v4293_v62, %v6972_v15  ;;  %vm2997_vm12 = vcmp.eq.f32.partialorder %v7046_v14, inf }
 0x3af   : > { %v4297_v35 = vpop.eup %4296  ;;  %3681 = vst.msk [vmem:[%s6609_s30 + $0xc0] sm:$0xff] %vm2303_vm8, %v3633_v36  ;;  %v3295_v8 = vmul.f32 %v6447_v10, %v3243_v45  ;;  %v3244_v44 = vmul.f32 %v4295_v28, %v6304_v53  ;;  %vm2999_vm13 = vcmp.eq.f32.partialorder %v7046_v14, 0.0  ;;  %v3000_v60 = vand.u32 2147483648, %v7046_v14 }
 0x3b0   : > { %v4299_v18 = vpop.eup %4298  ;;  %v3442_v56 = vmin.f32 %v7078_v27, 0.0  ;;  %v3245_v22 = vmul.f32 %v4297_v35, %v6313_v40  ;;  %v3054_v51 = vsel %vm3053_vm3, %v6972_v15, %v3052_v31  ;;  %vm3004_vm14 = vcmp.eq.f32.partialorder %v7064_v49, inf  ;;  %v2715_v31 = vpop.xlane.xlu1 %2714 }
 0x3b1   : > { %v4301_v25 = vpop.eup %4300  ;;  %v7096_v53 = vadd.f32 %v6449_v29, %v3295_v8  ;;  %v3296_v48 = vmul.f32 %v6447_v10, %v3244_v44  ;;  %v3246_v57 = vmul.f32 %v4299_v18, %v6316_v20  ;;  %v3057_v33 = vsel %vm3055_vm4, %v3056_v5, %v3054_v51 }
 0x3b2   : > { %v4303_v40 = vpop.eup %4302  ;;  %v3515_v13 = vmul.f32 1.442695, %v3442_v56  ;;  %v3297_v2 = vmul.f32 %v6447_v10, %v3245_v22  ;;  %v3159_v26 = vadd.f32 1e-06, %v3057_v33  ;;  %v3059_v1 = vmul.f32 %v4301_v25, %v7032_v58  ;;  %v2718_v56 = vpop.xlane.xlu0 %2717 }
 0x3b3   : > { %v3443_v0 = vmin.f32 %v7096_v53, 0.0  ;;  %v7109_v20 = vadd.f32 %v6449_v29, %v3296_v48  ;;  %v3298_v15 = vmul.f32 %v6447_v10, %v3246_v57  ;;  %v3038_v30 = vmul.f32 %v4303_v40, %v7035_v6  ;;  %v4305_v9 = vpop.eup %4304 }
 0x3b4   : > { %4310 = vpow2.f32 %v3515_v13  ;;  %v7114_v55 = vadd.f32 %v6449_v29, %v3297_v2  ;;  %v3061_v47 = vsel %vm3060_vm5, %v7032_v58, %v3059_v1  ;;  %v4307_v61 = vpop.eup %4306  ;;  %vm3006_vm15 = vcmp.eq.f32.partialorder %v7064_v49, 0.0  ;;  %v2691_v33 = vpop.xlane.xlu1 %2690 }
 0x3b5   : > { %v3517_v3 = vmul.f32 1.442695, %v3443_v0  ;;  %v3444_v34 = vmin.f32 %v7109_v20, 0.0  ;;  %v7122_v17 = vadd.f32 %v6449_v29, %v3298_v15  ;;  %4312 = vrcp.f32 %v3159_v26 }
 0x3b6   : > { %v3445_v32 = vmin.f32 %v7114_v55, 0.0  ;;  %v3064_v19 = vsel %vm3062_vm6, %v3063_v11, %v3061_v47  ;;  %v3040_v42 = vsel %vm3039_vm7, %v7035_v6, %v3038_v30  ;;  %v3045_v62 = vmul.f32 %v4305_v9, %v7042_v7  ;;  %v2694_v0 = vpop.xlane.xlu0 %2693 }
 0x3b7   : > { %4314 = vpow2.f32 %v3517_v3  ;;  %v3519_v41 = vmul.f32 1.442695, %v3444_v34  ;;  %v3446_v24 = vmin.f32 %v7122_v17, 0.0  ;;  %v4309_v5 = vpop.eup %4308  ;;  %v3160_v23 = vadd.f32 1e-06, %v3064_v19 }
 0x3b8   : > { %v3521_v52 = vmul.f32 1.442695, %v3445_v32  ;;  %v3043_v46 = vsel %vm3041_vm9, %v3042_v43, %v3040_v42  ;;  %v2996_v45 = vmul.f32 %v4307_v61, %v7046_v14  ;;  %v3047_v28 = vsel %vm3046_vm10, %v7042_v7, %v3045_v62 }
 0x3b9   : > { %4316 = vpow2.f32 %v3519_v41  ;;  %v3523_v58 = vmul.f32 1.442695, %v3446_v24  ;;  %v3157_v11 = vadd.f32 1e-06, %v3043_v46  ;;  %v3003_v36 = vmul.f32 %v4309_v5, %v7064_v49 }
 0x3ba   : > { %4318 = vpow2.f32 %v3521_v52  ;;  %v3050_v35 = vsel %vm3048_vm11, %v3049_v38, %v3047_v28  ;;  %v2998_v6 = vsel %vm2997_vm12, %v7046_v14, %v2996_v45  ;;  %v3007_v8 = vand.u32 2147483648, %v7064_v49 }
 0x3bb   : > { %4320 = vpow2.f32 %v3523_v58  ;;  %v3158_v44 = vadd.f32 1e-06, %v3050_v35  ;;  %v3001_v43 = vsel %vm2999_vm13, %v3000_v60, %v2998_v6  ;;  %v3005_v18 = vsel %vm3004_vm14, %v7064_v49, %v3003_v36 }
 0x3bc   : > { %4322 = vrcp.f32 %v3160_v23  ;;  %v3151_v22 = vadd.f32 1e-06, %v3001_v43  ;;  %v3008_v7 = vsel %vm3006_vm15, %v3007_v8, %v3005_v18  ;;  %v7155_v51 = vmul.f32 0.06666667, %v2721_v50 }
 0x3bd   : > { %4324 = vrcp.f32 %v3157_v11  ;;  %v3152_v25 = vadd.f32 1e-06, %v3008_v7  ;;  %vm3394_vm0 = vcmp.gt.f32.partialorder %v7078_v27, 0.0  ;;  %v7158_v57 = vmul.f32 0.06666667, %v2724_v12 }
 0x3be   : > { %v4311_v38 = vpop.eup %4310  ;;  %4326 = vrcp.f32 %v3158_v44  ;;  %v7163_v2 = vmul.f32 0.06666667, %v2715_v31  ;;  %vm3395_vm1 = vcmp.gt.f32.partialorder %v7096_v53, 0.0  ;;  %v7168_v1 = vmul.f32 0.06666667, %v2718_v56 }
 0x3bf   : > { %v3913_v48 = vadd.f32 -1.0, %v4311_v38  ;;  %4328 = vrcp.f32 %v3151_v22  ;;  %v4313_v14 = vpop.eup %4312  ;;  %vm3396_vm2 = vcmp.gt.f32.partialorder %v7109_v20, 0.0  ;;  %vm3397_vm3 = vcmp.gt.f32.partialorder %v7114_v55, 0.0 }
 0x3c0   : > { %4330 = vrcp.f32 %v3152_v25  ;;  %v3255_v49 = vmul.f32 %v4313_v14, %v6321_v16  ;;  %vm3398_vm4 = vcmp.gt.f32.partialorder %v7122_v17, 0.0  ;;  %v7184_v60 = vmul.f32 0.06666667, %v2694_v0 }
 0x3c1   : > { %v4315_v40 = vpop.eup %4314  ;;  %v3634_v13 = vsel %vm3394_vm0, %v7078_v27, %v3913_v48  ;;  %4332 = vrsqrt.f32 %v7155_v51  ;;  %v7173_v27 = vmul.f32 0.06666667, %v2691_v33  ;;  %vm3081_vm5 = vcmp.eq.f32.partialorder %v7155_v51, inf }
 0x3c2   : > { %3682 = vst.msk [vmem:[%s6609_s30 + $0xc8] sm:$0xff] %vm2303_vm8, %v3634_v13  ;;  %v3914_v26 = vadd.f32 -1.0, %v4315_v40  ;;  %v3307_v16 = vmul.f32 %v6447_v10, %v3255_v49  ;;  %4334 = vrsqrt.f32 %v7158_v57  ;;  %vm3083_vm6 = vcmp.eq.f32.partialorder %v7155_v51, 0.0 }
 0x3c3   : > { %v4317_v15 = vpop.eup %4316  ;;  %4336 = vrsqrt.f32 %v7163_v2  ;;  %v3084_v23 = vand.u32 2147483648, %v7155_v51  ;;  %v3070_v45 = vand.u32 2147483648, %v7163_v2  ;;  %vm3088_vm7 = vcmp.eq.f32.partialorder %v7158_v57, inf }
 0x3c4   : > { %v4319_v47 = vpop.eup %4318  ;;  %v3635_v30 = vsel %vm3395_vm1, %v7096_v53, %v3914_v26  ;;  %v3915_v50 = vadd.f32 -1.0, %v4317_v15  ;;  %v7181_v34 = vadd.f32 %v6449_v29, %v3307_v16  ;;  %4338 = vrsqrt.f32 %v7168_v1 }
 0x3c5   : > { %v4321_v9 = vpop.eup %4320  ;;  %3683 = vst.msk [vmem:[%s6609_s30 + $0xd0] sm:$0xff] %vm2303_vm8, %v3635_v30  ;;  %v3916_v3 = vadd.f32 -1.0, %v4319_v47  ;;  %4340 = vrsqrt.f32 %v7173_v27  ;;  %vm3090_vm9 = vcmp.eq.f32.partialorder %v7158_v57, 0.0  ;;  %vm3067_vm10 = vcmp.eq.f32.partialorder %v7163_v2, inf  ;;  %v2727_v47 = vpop.xlane.xlu1 %2726 }
 0x3c6   : > { %v4323_v61 = vpop.eup %4322  ;;  %v3636_v53 = vsel %vm3396_vm2, %v7109_v20, %v3915_v50  ;;  %v3917_v32 = vadd.f32 -1.0, %v4321_v9  ;;  %v3455_v41 = vmin.f32 %v7181_v34, 0.0  ;;  %4342 = vrsqrt.f32 %v7184_v60 }
 0x3c7   : > { %v4325_v19 = vpop.eup %4324  ;;  %3684 = vst.msk [vmem:[%s6609_s30 + $0xd8] sm:$0xff] %vm2303_vm8, %v3636_v53  ;;  %v3637_v12 = vsel %vm3397_vm3, %v7114_v55, %v3916_v3  ;;  %v3256_v24 = vmul.f32 %v4323_v61, %v6327_v4  ;;  %vm3074_vm11 = vcmp.eq.f32.partialorder %v7168_v1, inf  ;;  %vm3069_vm12 = vcmp.eq.f32.partialorder %v7163_v2, 0.0  ;;  %v2730_v3 = vpop.xlane.xlu0 %2729 }
 0x3c8   : > { %v4327_v20 = vpop.eup %4326  ;;  %3685 = vst.msk [vmem:[%s6609_s30 + $0xe0] sm:$0xff] %vm2303_vm8, %v3637_v12  ;;  %v3638_v5 = vsel %vm3398_vm4, %v7122_v17, %v3917_v32  ;;  %v3253_v52 = vmul.f32 %v4325_v19, %v6333_v39  ;;  %v3541_v42 = vmul.f32 1.442695, %v3455_v41  ;;  %v3091_v39 = vand.u32 2147483648, %v7158_v57 }
 0x3c9   : > { %v4329_v55 = vpop.eup %4328  ;;  %3686 = vst.msk [vmem:[%s6609_s30 + $0xe8] sm:$0xff] %vm2303_vm8, %v3638_v5  ;;  %v3308_v4 = vmul.f32 %v6447_v10, %v3256_v24  ;;  %v3254_v62 = vmul.f32 %v4327_v20, %v6339_v54  ;;  %v3077_v44 = vand.u32 2147483648, %v7168_v1  ;;  %vm3076_vm13 = vcmp.eq.f32.partialorder %v7168_v1, 0.0 }
 0x3ca   : > { %v4331_v58 = vpop.eup %4330  ;;  %v3305_v46 = vmul.f32 %v6447_v10, %v3253_v52  ;;  %v3247_v17 = vmul.f32 %v4329_v55, %v6345_v21  ;;  %4344 = vpow2.f32 %v3541_v42  ;;  %vm3011_vm14 = vcmp.eq.f32.partialorder %v7173_v27, inf }
 0x3cb   : > { %v4333_v11 = vpop.eup %4332  ;;  %v7217_v28 = vadd.f32 %v6449_v29, %v3308_v4  ;;  %v3306_v36 = vmul.f32 %v6447_v10, %v3254_v62  ;;  %v3248_v54 = vmul.f32 %v4331_v58, %v6351_v37  ;;  %v3014_v7 = vand.u32 2147483648, %v7173_v27 }
 0x3cc   : > { %v7223_v31 = vadd.f32 %v6449_v29, %v3305_v46  ;;  %v3299_v21 = vmul.f32 %v6447_v10, %v3247_v17  ;;  %v3080_v35 = vmul.f32 %v4333_v11, %v7155_v51  ;;  %v4335_v43 = vpop.eup %4334  ;;  %vm3407_vm15 = vcmp.gt.f32.partialorder %v7181_v34, 0.0  ;;  %v2697_v46 = vpop.xlane.xlu1 %2696 }
 0x3cd   : > { %v3456_v6 = vmin.f32 %v7217_v28, 0.0  ;;  %v7232_v8 = vadd.f32 %v6449_v29, %v3306_v36  ;;  %v3300_v37 = vmul.f32 %v6447_v10, %v3248_v54  ;;  %v4337_v38 = vpop.eup %4336  ;;  %vm3013_vm0 = vcmp.eq.f32.partialorder %v7173_v27, 0.0 }
 0x3ce   : > { %v3453_v18 = vmin.f32 %v7223_v31, 0.0  ;;  %v7239_v56 = vadd.f32 %v6449_v29, %v3299_v21  ;;  %v3082_v22 = vsel %vm3081_vm5, %v7155_v51, %v3080_v35  ;;  %vm3018_vm1 = vcmp.eq.f32.partialorder %v7184_v60, inf  ;;  %v4339_v33 = vpop.eup %4338 }
 0x3cf   : > { %v3543_v25 = vmul.f32 1.442695, %v3456_v6  ;;  %v3454_v48 = vmin.f32 %v7232_v8, 0.0  ;;  %v7250_v14 = vadd.f32 %v6449_v29, %v3300_v37  ;;  %v3085_v49 = vsel %vm3083_vm6, %v3084_v23, %v3082_v22  ;;  %v4341_v26 = vpop.eup %4340 }
 0x3d0   : > { %v3537_v40 = vmul.f32 1.442695, %v3453_v18  ;;  %v3447_v13 = vmin.f32 %v7239_v56, 0.0  ;;  %vm3020_vm2 = vcmp.eq.f32.partialorder %v7184_v60, 0.0  ;;  %v3021_v16 = vand.u32 2147483648, %v7184_v60  ;;  %v4343_v61 = vpop.eup %4342 }
 0x3d1   : > { %4346 = vpow2.f32 %v3543_v25  ;;  %v3539_v0 = vmul.f32 1.442695, %v3454_v48  ;;  %v3448_v15 = vmin.f32 %v7250_v14, 0.0  ;;  %v3163_v50 = vadd.f32 1e-06, %v3085_v49 }
 0x3d2   : > { %4348 = vpow2.f32 %v3537_v40  ;;  %v3525_v30 = vmul.f32 1.442695, %v3447_v13  ;;  %v3087_v9 = vmul.f32 %v4335_v43, %v7158_v57  ;;  %v3066_v53 = vmul.f32 %v4337_v38, %v7163_v2 }
 0x3d3   : > { %4350 = vpow2.f32 %v3539_v0  ;;  %v3527_v51 = vmul.f32 1.442695, %v3448_v15  ;;  %v3073_v32 = vmul.f32 %v4339_v33, %v7168_v1  ;;  %v3010_v12 = vmul.f32 %v4341_v26, %v7173_v27 }
 0x3d4   : > { %4352 = vpow2.f32 %v3525_v30  ;;  %v3089_v19 = vsel %vm3088_vm7, %v7158_v57, %v3087_v9  ;;  %v3017_v41 = vmul.f32 %v4343_v61, %v7184_v60  ;;  %v4345_v24 = vpop.eup %4344  ;;  %v3068_v5 = vsel %vm3067_vm10, %v7163_v2, %v3066_v53 }
 0x3d5   : > { %4354 = vpow2.f32 %v3527_v51  ;;  %v3092_v20 = vsel %vm3090_vm9, %v3091_v39, %v3089_v19  ;;  %v3075_v52 = vsel %vm3074_vm11, %v7168_v1, %v3073_v32  ;;  %v3926_v23 = vadd.f32 -1.0, %v4345_v24  ;;  %v2700_v1 = vpop.xlane.xlu0 %2699  ;;  %v7565_v51 = vld [vmem:[#allocation5_spill] sm:$0xff]  ;;  %v7566_v19 = vld [vmem:[#allocation3_spill] sm:$0xff] }
 0x3d6   : > { %4356 = vrcp.f32 %v3163_v50  ;;  %v3164_v55 = vadd.f32 1e-06, %v3092_v20  ;;  %v3071_v42 = vsel %vm3069_vm12, %v3070_v45, %v3068_v5  ;;  %v3078_v57 = vsel %vm3076_vm13, %v3077_v44, %v3075_v52 }
 0x3d7   : > { %v3161_v4 = vadd.f32 1e-06, %v3071_v42  ;;  %v3012_v62 = vsel %vm3011_vm14, %v7173_v27, %v3010_v12  ;;  %v3019_v58 = vsel %vm3018_vm1, %v7184_v60, %v3017_v41  ;;  %v3647_v17 = vsel %vm3407_vm15, %v7181_v34, %v3926_v23  ;;  %v2733_v60 = vpop.xlane.xlu1 %2732 }
 0x3d8   : > { %4358 = vrcp.f32 %v3164_v55  ;;  %v3162_v2 = vadd.f32 1e-06, %v3078_v57  ;;  %v3015_v39 = vsel %vm3013_vm0, %v3014_v7, %v3012_v62  ;;  %3695 = vst.msk [vmem:[%s6609_s30 + $0x130] sm:$0xff] %vm2303_vm8, %v3647_v17  ;;  %v3022_v11 = vsel %vm3020_vm2, %v3021_v16, %v3019_v58 }
 0x3d9   : > { %4360 = vrcp.f32 %v3161_v4  ;;  %v3153_v45 = vadd.f32 1e-06, %v3015_v39  ;;  %v7297_v36 = vmul.f32 0.06666667, %v2727_v47  ;;  %v3154_v54 = vadd.f32 1e-06, %v3022_v11  ;;  %v2736_v7 = vpop.xlane.xlu0 %2735 }
 0x3da   : > { %4362 = vrcp.f32 %v3162_v2  ;;  %v7299_v27 = vmul.f32 0.06666667, %v2730_v3  ;;  %vm3408_vm3 = vcmp.gt.f32.partialorder %v7217_v28, 0.0  ;;  %vm3405_vm4 = vcmp.gt.f32.partialorder %v7223_v31, 0.0  ;;  %v7567_v4 = vld [vmem:[#allocation6_spill] sm:$0xff] }
 0x3db   : > { %v4347_v21 = vpop.eup %4346  ;;  %4364 = vrcp.f32 %v3153_v45  ;;  %vm3406_vm5 = vcmp.gt.f32.partialorder %v7232_v8, 0.0  ;;  %v7306_v22 = vmul.f32 0.06666667, %v2697_v46  ;;  %vm3399_vm6 = vcmp.gt.f32.partialorder %v7239_v56, 0.0 }
 0x3dc   : > { %v4349_v34 = vpop.eup %4348  ;;  %v3927_v35 = vadd.f32 -1.0, %v4347_v21  ;;  %4366 = vrcp.f32 %v3154_v54  ;;  %v7312_v33 = vmul.f32 0.06666667, %v2700_v1  ;;  %v7318_v49 = vmul.f32 0.06666667, %v2733_v60 }
 0x3dd   : > { %v4351_v6 = vpop.eup %4350  ;;  %v3924_v37 = vadd.f32 -1.0, %v4349_v34  ;;  %4368 = vrsqrt.f32 %v7297_v36  ;;  %vm3400_vm7 = vcmp.gt.f32.partialorder %v7250_v14, 0.0  ;;  %v7325_v0 = vmul.f32 0.06666667, %v2736_v7 }
 0x3de   : > { %v4353_v44 = vpop.eup %4352  ;;  %v3648_v43 = vsel %vm3408_vm3, %v7217_v28, %v3927_v35  ;;  %v3925_v18 = vadd.f32 -1.0, %v4351_v6  ;;  %4370 = vrsqrt.f32 %v7299_v27  ;;  %vm3095_vm9 = vcmp.eq.f32.partialorder %v7297_v36, inf }
 0x3df   : > { %v4355_v38 = vpop.eup %4354  ;;  %3696 = vst.msk [vmem:[%s6609_s30 + $0x138] sm:$0xff] %vm2303_vm8, %v3648_v43  ;;  %v3645_v25 = vsel %vm3405_vm4, %v7223_v31, %v3924_v37  ;;  %v3918_v48 = vadd.f32 -1.0, %v4353_v44  ;;  %4372 = vrsqrt.f32 %v7306_v22  ;;  %v3098_v9 = vand.u32 2147483648, %v7297_v36 }
 0x3e0   : > { %v4357_v40 = vpop.eup %4356  ;;  %3693 = vst.msk [vmem:[%s6609_s30 + $0x120] sm:$0xff] %vm2303_vm8, %v3645_v25  ;;  %v3646_v28 = vsel %vm3406_vm5, %v7232_v8, %v3925_v18  ;;  %v3919_v13 = vadd.f32 -1.0, %v4355_v38  ;;  %4374 = vrsqrt.f32 %v7312_v33  ;;  %vm3097_vm10 = vcmp.eq.f32.partialorder %v7297_v36, 0.0 }
 0x3e1   : > { %3694 = vst.msk [vmem:[%s6609_s30 + $0x128] sm:$0xff] %vm2303_vm8, %v3646_v28  ;;  %v3639_v31 = vsel %vm3399_vm6, %v7239_v56, %v3918_v48  ;;  %v3259_v26 = vmul.f32 %v4357_v40, %v6357_v63  ;;  %v7564_v63 = vld [vmem:[#allocation4_spill] sm:$0xff]  ;;  %4376 = vrsqrt.f32 %v7318_v49  ;;  %vm3102_vm11 = vcmp.eq.f32.partialorder %v7299_v27, inf }
 0x3e2   : > { %v4359_v15 = vpop.eup %4358  ;;  %3687 = vst.msk [vmem:[%s6609_s30 + $0xf0] sm:$0xff] %vm2303_vm8, %v3639_v31  ;;  %v3640_v8 = vsel %vm3400_vm7, %v7250_v14, %v3919_v13  ;;  %4378 = vrsqrt.f32 %v7325_v0  ;;  %v3105_v41 = vand.u32 2147483648, %v7299_v27  ;;  %vm3104_vm12 = vcmp.eq.f32.partialorder %v7299_v27, 0.0 }
 0x3e3   : > { %v4361_v16 = vpop.eup %4360  ;;  %3688 = vst.msk [vmem:[%s6609_s30 + $0xf8] sm:$0xff] %vm2303_vm8, %v3640_v8  ;;  %v3311_v47 = vmul.f32 %v6447_v10, %v3259_v26  ;;  %v3260_v56 = vmul.f32 %v4359_v15, %v6363_v59  ;;  %v3028_v23 = vand.u32 2147483648, %v7306_v22  ;;  %vm3025_vm13 = vcmp.eq.f32.partialorder %v7306_v22, inf }
 0x3e4   : > { %v4363_v30 = vpop.eup %4362  ;;  %v3257_v50 = vmul.f32 %v4361_v16, %v7564_v63  ;;  %v3035_v62 = vand.u32 2147483648, %v7312_v33  ;;  %vm3027_vm14 = vcmp.eq.f32.partialorder %v7306_v22, 0.0  ;;  %vm3032_vm15 = vcmp.eq.f32.partialorder %v7312_v33, inf }
 0x3e5   : > { %v4365_v14 = vpop.eup %4364  ;;  %v7341_v3 = vadd.f32 %v6449_v29, %v3311_v47  ;;  %v3312_v61 = vmul.f32 %v6447_v10, %v3260_v56  ;;  %v3258_v53 = vmul.f32 %v4363_v30, %v7565_v51  ;;  %vm3109_vm0 = vcmp.eq.f32.partialorder %v7318_v49, inf }
 0x3e6   : > { %v4367_v59 = vpop.eup %4366  ;;  %v3309_v32 = vmul.f32 %v6447_v10, %v3257_v50  ;;  %v3249_v12 = vmul.f32 %v4365_v14, %v7566_v19  ;;  %vm3034_vm1 = vcmp.eq.f32.partialorder %v7312_v33, 0.0  ;;  %vm3111_vm2 = vcmp.eq.f32.partialorder %v7318_v49, 0.0 }
 0x3e7   : > { %v4369_v24 = vpop.eup %4368  ;;  %v3459_v20 = vmin.f32 %v7341_v3, 0.0  ;;  %v7353_v5 = vadd.f32 %v6449_v29, %v3312_v61  ;;  %v3310_v52 = vmul.f32 %v6447_v10, %v3258_v53  ;;  %v3250_v57 = vmul.f32 %v4367_v59, %v7567_v4 }
 0x3e8   : > { %v7359_v55 = vadd.f32 %v6449_v29, %v3309_v32  ;;  %v3301_v42 = vmul.f32 %v6447_v10, %v3249_v12  ;;  %v3094_v2 = vmul.f32 %v4369_v24, %v7297_v36  ;;  %v4371_v39 = vpop.eup %4370  ;;  %v3112_v34 = vand.u32 2147483648, %v7318_v49 }
 0x3e9   : > { %v3549_v58 = vmul.f32 1.442695, %v3459_v20  ;;  %v3460_v46 = vmin.f32 %v7353_v5, 0.0  ;;  %v7367_v17 = vadd.f32 %v6449_v29, %v3310_v52  ;;  %v3302_v11 = vmul.f32 %v6447_v10, %v3250_v57  ;;  %v4373_v35 = vpop.eup %4372 }
 0x3ea   : > { %v3457_v1 = vmin.f32 %v7359_v55, 0.0  ;;  %v7373_v45 = vadd.f32 %v6449_v29, %v3301_v42  ;;  %vm3116_vm3 = vcmp.eq.f32.partialorder %v7325_v0, inf  ;;  %v4375_v44 = vpop.eup %4374  ;;  %v3096_v18 = vsel %vm3095_vm9, %v7297_v36, %v3094_v2 }
 0x3eb   : > { %4380 = vpow2.f32 %v3549_v58  ;;  %v3551_v54 = vmul.f32 1.442695, %v3460_v46  ;;  %v3458_v21 = vmin.f32 %v7367_v17, 0.0  ;;  %v7384_v60 = vadd.f32 %v6449_v29, %v3302_v11  ;;  %v4377_v38 = vpop.eup %4376 }
 0x3ec   : > { %v3545_v6 = vmul.f32 1.442695, %v3457_v1  ;;  %v3449_v37 = vmin.f32 %v7373_v45, 0.0  ;;  %v3101_v7 = vmul.f32 %v4371_v39, %v7299_v27  ;;  %vm3118_vm4 = vcmp.eq.f32.partialorder %v7325_v0, 0.0  ;;  %v4379_v40 = vpop.eup %4378 }
 0x3ed   : > { %4382 = vpow2.f32 %v3551_v54  ;;  %v3547_v43 = vmul.f32 1.442695, %v3458_v21  ;;  %v3450_v48 = vmin.f32 %v7384_v60, 0.0  ;;  %v3099_v28 = vsel %vm3097_vm10, %v3098_v9, %v3096_v18  ;;  %v7569_v21 = vld [vmem:[#allocation7_spill] sm:$0xff] }
 0x3ee   : > { %4384 = vpow2.f32 %v3545_v6  ;;  %v3529_v25 = vmul.f32 1.442695, %v3449_v37  ;;  %v3103_v13 = vsel %vm3102_vm11, %v7299_v27, %v3101_v7  ;;  %v3024_v31 = vmul.f32 %v4373_v35, %v7306_v22  ;;  %v7570_v35 = vld [vmem:[#allocation9_spill] sm:$0xff]  ;;  %v7571_v7 = vld [vmem:[#allocation11_spill] sm:$0xff] }
 0x3ef   : > { %4386 = vpow2.f32 %v3547_v43  ;;  %v3531_v26 = vmul.f32 1.442695, %v3450_v48  ;;  %v3165_v15 = vadd.f32 1e-06, %v3099_v28  ;;  %v3106_v8 = vsel %vm3104_vm12, %v3105_v41, %v3103_v13  ;;  %v7572_v48 = vld [vmem:[#allocation8_spill] sm:$0xff] }
 0x3f0   : > { %4388 = vpow2.f32 %v3529_v25  ;;  %v3166_v16 = vadd.f32 1e-06, %v3106_v8  ;;  %v3026_v47 = vsel %vm3025_vm13, %v7306_v22, %v3024_v31  ;;  %v3031_v36 = vmul.f32 %v4375_v44, %v7312_v33  ;;  %v7573_v8 = vld [vmem:[#allocation10_spill] sm:$0xff] }
 0x3f1   : > { %v3108_v56 = vmul.f32 %v4377_v38, %v7318_v49  ;;  %4390 = vpow2.f32 %v3531_v26  ;;  %v3029_v30 = vsel %vm3027_vm14, %v3028_v23, %v3026_v47  ;;  %v3115_v63 = vmul.f32 %v4379_v40, %v7325_v0 }
 0x3f2   : > { %v3119_v50 = vand.u32 2147483648, %v7325_v0  ;;  %4392 = vrcp.f32 %v3165_v15  ;;  %v3155_v27 = vadd.f32 1e-06, %v3029_v30  ;;  %v3033_v9 = vsel %vm3032_vm15, %v7312_v33, %v3031_v36 }
 0x3f3   : > { %v3110_v14 = vsel %vm3109_vm0, %v7318_v49, %v3108_v56  ;;  %4394 = vrcp.f32 %v3166_v16  ;;  %v3036_v61 = vsel %vm3034_vm1, %v3035_v62, %v3033_v9  ;;  %v3117_v51 = vsel %vm3116_vm3, %v7325_v0, %v3115_v63 }
 0x3f4   : > { %v3113_v22 = vsel %vm3111_vm2, %v3112_v34, %v3110_v14  ;;  %4396 = vrcp.f32 %v3155_v27  ;;  %v3156_v59 = vadd.f32 1e-06, %v3036_v61  ;;  %v3120_v19 = vsel %vm3118_vm4, %v3119_v50, %v3117_v51 }
 0x3f5   : > { %v4381_v53 = vpop.eup %4380  ;;  %v3167_v32 = vadd.f32 1e-06, %v3113_v22  ;;  %v3168_v41 = vadd.f32 1e-06, %v3120_v19  ;;  %vm3411_vm5 = vcmp.gt.f32.partialorder %v7341_v3, 0.0  ;;  %vm3412_vm6 = vcmp.gt.f32.partialorder %v7353_v5, 0.0 }
 0x3f6   : > { %v3930_v12 = vadd.f32 -1.0, %v4381_v53  ;;  %4398 = vrcp.f32 %v3156_v59  ;;  %vm3409_vm7 = vcmp.gt.f32.partialorder %v7359_v55, 0.0  ;;  %vm3410_vm9 = vcmp.gt.f32.partialorder %v7367_v17, 0.0 }
 0x3f7   : > { %v4383_v24 = vpop.eup %4382  ;;  %4400 = vrcp.f32 %v3167_v32  ;;  %vm3401_vm10 = vcmp.gt.f32.partialorder %v7373_v45, 0.0  ;;  %vm3402_vm11 = vcmp.gt.f32.partialorder %v7384_v60, 0.0 }
 0x3f8   : > { %v4385_v33 = vpop.eup %4384  ;;  %v3651_v49 = vsel %vm3411_vm5, %v7341_v3, %v3930_v12  ;;  %v3931_v20 = vadd.f32 -1.0, %v4383_v24  ;;  %4402 = vrcp.f32 %v3168_v41 }
 0x3f9   : > { %v4387_v52 = vpop.eup %4386  ;;  %3699 = vst.msk [vmem:[%s6609_s30 + $0x150] sm:$0xff] %vm2303_vm8, %v3651_v49  ;;  %v3928_v0 = vadd.f32 -1.0, %v4385_v33 }
 0x3fa   : > { %v4389_v23 = vpop.eup %4388  ;;  %v3652_v42 = vsel %vm3412_vm6, %v7353_v5, %v3931_v20  ;;  %v3929_v4 = vadd.f32 -1.0, %v4387_v52 }
 0x3fb   : > { %3700 = vst.msk [vmem:[%s6609_s30 + $0x158] sm:$0xff] %vm2303_vm8, %v3652_v42  ;;  %v3649_v3 = vsel %vm3409_vm7, %v7359_v55, %v3928_v0  ;;  %v3920_v57 = vadd.f32 -1.0, %v4389_v23  ;;  %v4391_v62 = vpop.eup %4390  ;;  %v7568_v55 = vld [vmem:[#allocation2_spill] sm:$0xff] }
 0x3fc   : > { %3697 = vst.msk [vmem:[%s6609_s30 + $0x140] sm:$0xff] %vm2303_vm8, %v3649_v3  ;;  %v3650_v58 = vsel %vm3410_vm9, %v7367_v17, %v3929_v4  ;;  %v4393_v5 = vpop.eup %4392  ;;  %v3921_v2 = vadd.f32 -1.0, %v4391_v62 }
 0x3fd   : > { %3698 = vst.msk [vmem:[%s6609_s30 + $0x148] sm:$0xff] %vm2303_vm8, %v3650_v58  ;;  %v3641_v46 = vsel %vm3401_vm10, %v7373_v45, %v3920_v57  ;;  %v4395_v39 = vpop.eup %4394  ;;  %v3261_v1 = vmul.f32 %v4393_v5, %v7568_v55 }
 0x3fe   : > { %3689 = vst.msk [vmem:[%s6609_s30 + $0x100] sm:$0xff] %vm2303_vm8, %v3641_v46  ;;  %v4397_v11 = vpop.eup %4396  ;;  %v3642_v54 = vsel %vm3402_vm11, %v7384_v60, %v3921_v2  ;;  %v3262_v17 = vmul.f32 %v4395_v39, %v7569_v21 }
 0x3ff   : > { %3690 = vst.msk [vmem:[%s6609_s30 + $0x108] sm:$0xff] %vm2303_vm8, %v3642_v54  ;;  %v3313_v34 = vmul.f32 %v6447_v10, %v3261_v1  ;;  %v3251_v6 = vmul.f32 %v4397_v11, %v7570_v35 }
 0x400   : > { %v4399_v45 = vpop.eup %4398  ;;  %v3314_v37 = vmul.f32 %v6447_v10, %v3262_v17 }
 0x401   : > { %v4401_v44 = vpop.eup %4400  ;;  %v3365_v43 = vadd.f32 %v6449_v29, %v3313_v34  ;;  %v3303_v18 = vmul.f32 %v6447_v10, %v3251_v6  ;;  %v3252_v38 = vmul.f32 %v4399_v45, %v7571_v7 }
 0x402   : > { %v4403_v25 = vpop.eup %4402  ;;  %v3366_v60 = vadd.f32 %v6449_v29, %v3314_v37  ;;  %v3263_v40 = vmul.f32 %v4401_v44, %v7572_v48 }
 0x403   : > { %v3461_v28 = vmin.f32 %v3365_v43, 0.0  ;;  %v3355_v13 = vadd.f32 %v6449_v29, %v3303_v18  ;;  %v3304_v31 = vmul.f32 %v6447_v10, %v3252_v38  ;;  %v3264_v16 = vmul.f32 %v4403_v25, %v7573_v8 }
 0x404   : > { %v3462_v26 = vmin.f32 %v3366_v60, 0.0  ;;  %v3315_v15 = vmul.f32 %v6447_v10, %v3263_v40  ;;  %vm3413_vm12 = vcmp.gt.f32.partialorder %v3365_v43, 0.0  ;;  %vm3414_vm13 = vcmp.gt.f32.partialorder %v3366_v60, 0.0 }
 0x405   : > { %v3553_v47 = vmul.f32 1.442695, %v3461_v28  ;;  %v3451_v36 = vmin.f32 %v3355_v13, 0.0  ;;  %v3356_v56 = vadd.f32 %v6449_v29, %v3304_v31  ;;  %v3316_v50 = vmul.f32 %v6447_v10, %v3264_v16 }
 0x406   : > { %v3555_v30 = vmul.f32 1.442695, %v3462_v26  ;;  %v3367_v63 = vadd.f32 %v6449_v29, %v3315_v15  ;;  %vm3403_vm14 = vcmp.gt.f32.partialorder %v3355_v13, 0.0 }
 0x407   : > { %4404 = vpow2.f32 %v3553_v47  ;;  %v3533_v27 = vmul.f32 1.442695, %v3451_v36  ;;  %v3452_v9 = vmin.f32 %v3356_v56, 0.0  ;;  %v3368_v61 = vadd.f32 %v6449_v29, %v3316_v50 }
 0x408   : > { %4406 = vpow2.f32 %v3555_v30  ;;  %v3463_v14 = vmin.f32 %v3367_v63, 0.0  ;;  %vm3404_vm15 = vcmp.gt.f32.partialorder %v3356_v56, 0.0  ;;  %vm3415_vm0 = vcmp.gt.f32.partialorder %v3367_v63, 0.0 }
 0x409   : > { %4408 = vpow2.f32 %v3533_v27  ;;  %v3535_v22 = vmul.f32 1.442695, %v3452_v9  ;;  %v3464_v53 = vmin.f32 %v3368_v61, 0.0  ;;  %vm3416_vm1 = vcmp.gt.f32.partialorder %v3368_v61, 0.0 }
 0x40a   : > { %v3557_v51 = vmul.f32 1.442695, %v3463_v14 }
 0x40b   : > { %4410 = vpow2.f32 %v3535_v22  ;;  %v3559_v59 = vmul.f32 1.442695, %v3464_v53 }
 0x40c   : > { %4412 = vpow2.f32 %v3557_v51 }
 0x40d   : > { %4414 = vpow2.f32 %v3559_v59 }
 0x411   : > { %v4405_v32 = vpop.eup %4404 }
 0x412   : > { %v4407_v19 = vpop.eup %4406  ;;  %v3932_v10 = vadd.f32 -1.0, %v4405_v32 }
 0x413   : > { %v4409_v12 = vpop.eup %4408  ;;  %v3933_v41 = vadd.f32 -1.0, %v4407_v19 }
 0x414   : > { %v3653_v24 = vsel %vm3413_vm12, %v3365_v43, %v3932_v10  ;;  %v3922_v29 = vadd.f32 -1.0, %v4409_v12 }
 0x415   : > { %v4411_v33 = vpop.eup %4410  ;;  %3701 = vst.msk [vmem:[%s6609_s30 + $0x160] sm:$0xff] %vm2303_vm8, %v3653_v24  ;;  %v3654_v49 = vsel %vm3414_vm13, %v3366_v60, %v3933_v41 }
 0x416   : > { %v4413_v20 = vpop.eup %4412  ;;  %3702 = vst.msk [vmem:[%s6609_s30 + $0x168] sm:$0xff] %vm2303_vm8, %v3654_v49  ;;  %v3643_v52 = vsel %vm3403_vm14, %v3355_v13, %v3922_v29  ;;  %v3923_v0 = vadd.f32 -1.0, %v4411_v33 }
 0x417   : > { %3691 = vst.msk [vmem:[%s6609_s30 + $0x110] sm:$0xff] %vm2303_vm8, %v3643_v52  ;;  %v3934_v23 = vadd.f32 -1.0, %v4413_v20  ;;  %v4415_v42 = vpop.eup %4414 }
 0x418   : > { %v3644_v4 = vsel %vm3404_vm15, %v3356_v56, %v3923_v0  ;;  %v3935_v57 = vadd.f32 -1.0, %v4415_v42 }
 0x419   : > { %3692 = vst.msk [vmem:[%s6609_s30 + $0x118] sm:$0xff] %vm2303_vm8, %v3644_v4  ;;  %v3655_v3 = vsel %vm3415_vm0, %v3367_v63, %v3934_v23 }
 0x41a   : > { %3703 = vst.msk [vmem:[%s6609_s30 + $0x170] sm:$0xff] %vm2303_vm8, %v3655_v3  ;;  %v3656_v62 = vsel %vm3416_vm1, %v3368_v61, %v3935_v57 }
 0x41b   : > { %3704 = vst.msk [vmem:[%s6609_s30 + $0x178] sm:$0xff] %vm2303_vm8, %v3656_v62 }
 0x41c PF: > { %s14_s17 = sadd.s32 1, %s4456_s17   ;;  %s7574_s15 = smov %s4452_s16 }
 0x41d   : > { %p11_p5 = scmp.ge.s32.totalorder %s14_s17, 4   ;;  %s7575_s16 = smov %s7577_s18 }
 0x41f   :  { %13 = sbr.rel (!%p11_p5) target bundleno = 2 (0x2), region = 69 }

// kernel: expansive_path_forward.2
= control target key start
LH: loop header
LB: loop body
LE: loop exit
PB: predicated region body
PF: predicated region fallthrough
CT: control target
= control target key end

     0   :  { %s5055_s15 = smov 0   ;;  %s5057_s16 = smov 0   ;;  %s8057_s0 = inlined_call_operand.vmem [shape: bf16[2,480,64], index: 0, kind: input, shape index: {}, may-alias: {0,1}]   ;;  %s8058_s1 = inlined_call_operand.vmem [shape: bf16[2,480,64], index: 1, kind: input, shape index: {}, may-alias: {0,1}]   ;;  %s8059_s2 = inlined_call_operand.vmem [shape: bf16[576,32], index: 2, kind: input, shape index: {}]   ;;  %s8060_s3 = inlined_call_operand.vmem [shape: f32[3,32], index: 3, kind: input, shape index: {}]   ;;  %s8061_s4 = inlined_call_operand.vmem [shape: bf16[2,384,32], index: 4, kind: output, shape index: {}]  }
   0x1   :  { %s5059_s17 = smov 0  }
   0x2 LB: > { %s26_s18 = sadd.s32 1, %s5022_s16  ;;  %p4128_p0 = scmp.ge.s32.totalorder %s5026_s17, 1  ;;  %s5026_s17 = sphi %s5059_s17, %s14_s17   ;;  %s5022_s16 = sphi %s5057_s16, %s8156_s16   ;;  %s5018_s15 = sphi %s5055_s15, %s8155_s15  }
   0x3   : > { %p28_p1 = scmp.ge.s32.totalorder %s26_s18, 2  ;;  %p216_p2 = scmp.lt.s32.totalorder %s5026_s17, 3 }
   0x5   : > { %s8158_s18 = smov (%p28_p1, %s26_s18), 0  ;;  %p217_p3 = pnand %p4128_p0, %p216_p2 }
   0x7   : > { %220 = sbr.rel (%p217_p3) target bundleno = 1102 (0x44e), region = 36 }
   0xe   : > { %p270_p4 = scmp.lt.s32.totalorder %s5018_s15, 1  ;;  %v4639_v0 = vld [vmem:[%s8059_s2] sm:$0xff]   ;;  %v8075_v1 = vmov 0   ;;  %v4641_v3 = vld [vmem:[%s8059_s2 + $0x8] sm:$0xff]   ;;  %v4644_v5 = vld [vmem:[%s8059_s2 + $0x10] sm:$0xff]   ;;  %vm799_vm0 = vcmask 1043456  }
   0xf   : > { %1749 = vmatprep.subr.bf16.mxu0 %v8075_v1  ;;  %4452 = vmatprep.subr.bf16.mxu1 %v8075_v1  ;;  %v4640_v2 = vld [vmem:[%s8059_s2 + $0x80] sm:$0xff]   ;;  %v4643_v4 = vld [vmem:[%s8059_s2 + $0x88] sm:$0xff]   ;;  %v4645_v6 = vld [vmem:[%s8059_s2 + $0x90] sm:$0xff]   ;;  %s5029_s9 = smov 64   ;;  %vm504_vm1 = vsmask.f32 7424 }
  0x10   : > { %s8160_s15 = smov (!%p270_p4, %s5018_s15), 1  ;;  %1750 = vmatpush1.bf16.msra.mxu0 %v4639_v0  ;;  %4468 = vmatpush1.bf16.msra.mxu1 %v4640_v2  ;;  %vm1004_vm2 = vcmask 1042432   ;;  %v4646_v0 = vld [vmem:[%s8059_s2 + $0x18] sm:$0xff]   ;;  %vm897_vm3 = vsmask.f32 3328  ;;  %vm749_vm4 = vcmask 1046528  }
  0x11   : > { %s4592_s25 = smul.u32 240, %s8160_s15  ;;  %1751 = vmatprep.subr.bf16.mxu0 %v8075_v1  ;;  %4453 = vmatprep.subr.bf16.mxu1 %v8075_v1  ;;  %vm1131_vm5 = vcmask 523264   ;;  %vm2424_vm6 = vcmask 261120  }
  0x12   : > { %s4594_s14 = smul.u32 192, %s8160_s15 }
  0x13   : > { %s5100_s6 = scalar_lea.vmem %s8057_s0, %s4592_s25  ;;  %s4319_s22 = sadd.s32 192, %s4592_s25 }
  0x14   : > { %1752 = vmatpush1.bf16.msra.mxu0 %v4641_v3  ;;  %v5106_v7 = vld [vmem:[%s5100_s6 + $0x8] sm:$0xff]   ;;  %v5109_v8 = vld [vmem:[%s5100_s6 + $0x10] sm:$0xff]   ;;  %4469 = vmatpush1.bf16.msra.mxu1 %v4643_v4  ;;  %v5122_v13 = vld [vmem:[%s5100_s6] sm:$0xff]   ;;  %s5491_s26 = scalar_lea.vmem %s8058_s1, %s4319_s22  ;;  %s7238_s20 = scalar_lea.vmem %s8061_s4, %s4594_s14 }
  0x15   : > { %1753 = vmatprep.subr.bf16.mxu0 %v8075_v1  ;;  %4454 = vmatprep.subr.bf16.mxu1 %v8075_v1  ;;  %v800_v9 = vrot.slane %v5106_v7, 4  ;;  %v801_v10 = vrot.slane %v5109_v8, 4  ;;  %v5116_v11 = vld [vmem:[%s5100_s6 + $0x48] sm:$0xff]   ;;  %v5119_v12 = vld [vmem:[%s5100_s6 + $0x50] sm:$0xff]   ;;  %v8073_v14 = vshll.u32 %v5106_v7, 16  ;;  %v5130_v19 = vld [vmem:[%s5100_s6 + $0x38] sm:$0xff]  }
  0x16   : > { %v577_v16 = vshll.u32 %v5116_v11, 16  ;;  %v581_v17 = vshrl.u32 %v5116_v11, 16  ;;  %v585_v18 = vshll.u32 %v5119_v12, 16  ;;  %v506_v20 = vshrl.u32 %v5122_v13, 16  ;;  %v5146_v26 = vld [vmem:[%s5100_s6 + $0x40] sm:$0xff]   ;;  %v5150_v28 = vld [vmem:[%s5100_s6 + $0x18] sm:$0xff]  }
  0x17   : > { %v802_v15 = vsel %vm799_vm0, %v800_v9, %v801_v10  ;;  %v508_v21 = vshll.u32 %v5122_v13, 16  ;;  %v515_v24 = vrot.slane %v8073_v14, 1  ;;  %v8074_v27 = vrot.slane %v5130_v19, 5  ;;  %v5161_v36 = vld [vmem:[%s5100_s6 + $0x58] sm:$0xff]   ;;  %v5177_v44 = vld [vmem:[%s5100_s6 + $0x20] sm:$0xff]   ;;  %v5204_v59 = vld [vmem:[%s5100_s6 + $0x28] sm:$0xff]  }
  0x18   : > { %1754 = vmatpush1.bf16.msra.mxu0 %v4644_v5  ;;  %4470 = vmatpush1.bf16.msra.mxu1 %v4645_v6  ;;  %v5139_v22 = vrot.slane %v577_v16, 1  ;;  %v587_v23 = vrot.slane %v585_v18, 1  ;;  %v8072_v30 = vshrl.u32 %v5106_v7, 16  ;;  %v8071_v31 = vshll.u32 %v5109_v8, 16  ;;  %v5180_v45 = vld [vmem:[%s5100_s6 + $0x60] sm:$0xff]   ;;  %v5212_v63 = vld [vmem:[%s5100_s6 + $0x68] sm:$0xff]  }
  0x19   : > { %1755 = vmatprep.subr.bf16.mxu0 %v8075_v1  ;;  %849 = vrot.lane.b32.xlu0 %v802_v15, %s5029_s9  ;;  %v510_v25 = vrot.slane %v508_v21, 1  ;;  %v1018_v33 = vrot.slane %v5146_v26, 5  ;;  %v803_v34 = vrot.slane %v5150_v28, 4  ;;  %v589_v41 = vshrl.u32 %v5119_v12, 16  ;;  %v4648_v9 = vld [vmem:[%s8059_s2 + $0x98] sm:$0xff]   ;;  %v4649_v21 = vld [vmem:[%s8059_s2 + $0x20] sm:$0xff]  }
  0x1a   : > { %4455 = vmatprep.subr.bf16.mxu1 %v8075_v1  ;;  %v583_v29 = vor.u32 %v581_v17, %v5139_v22  ;;  %v519_v38 = vor.u32 %v8072_v30, %v515_v24  ;;  %v523_v40 = vrot.slane %v8071_v31, 1  ;;  %v593_v42 = vshll.u32 %v5161_v36, 16 }
  0x1b   : > { %v511_v32 = vor.u32 %v510_v25, %v506_v20  ;;  %v1019_v39 = vsel %vm1004_vm2, %v8074_v27, %v1018_v33  ;;  %v804_v43 = vsel %vm799_vm0, %v801_v10, %v803_v34  ;;  %v591_v46 = vor.u32 %v589_v41, %v587_v23 }
  0x1c   : > { %v588_v35 = vsel %vm504_vm1, %v583_v29, %v587_v23  ;;  %v595_v47 = vrot.slane %v593_v42, 1  ;;  %v1020_v48 = vrot.slane %v5116_v11, 5  ;;  %v524_v49 = vsel %vm504_vm1, %v519_v38, %v523_v40  ;;  %1756 = vmatpush1.bf16.msra.mxu0 %v4646_v0  ;;  %4471 = vmatpush1.bf16.msra.mxu1 %v4648_v9  ;;  %v5243_v29 = vld [vmem:[%s5100_s6 + $0x30] sm:$0xff]   ;;  %v4651_v38 = vld [vmem:[%s8059_s2 + $0x28] sm:$0xff]  }
  0x1d   : > { %719 = vrot.lane.b32.xlu1 %v588_v35, %s5029_s9  ;;  %v516_v37 = vsel %vm504_vm1, %v511_v32, %v515_v24  ;;  %v8070_v50 = vshrl.u32 %v5109_v8, 16  ;;  %v8069_v51 = vshll.u32 %v5150_v28, 16  ;;  %v805_v53 = vrot.slane %v5177_v44, 4  ;;  %1757 = vmatprep.subr.bf16.mxu0 %v8075_v1  ;;  %8097 = vst [vmem:[#allocation2_spill] sm:$0xff] %v5243_v29  ;;  %v4650_v32 = vld [vmem:[%s8059_s2 + $0xa0] sm:$0xff]  }
  0x1e   : > { %701 = vrot.lane.b32.xlu0 %v516_v37, %s5029_s9  ;;  %v596_v52 = vsel %vm504_vm1, %v591_v46, %v595_v47  ;;  %v597_v54 = vshrl.u32 %v5161_v36, 16  ;;  %v601_v55 = vshll.u32 %v5180_v45, 16  ;;  %v1021_v56 = vsel %vm1004_vm2, %v1018_v33, %v1020_v48  ;;  %4456 = vmatprep.subr.bf16.mxu1 %v8075_v1  ;;  %v5254_v37 = vld [vmem:[%s5100_s6 + $0x70] sm:$0xff]  }
  0x1f   : > { %v527_v57 = vor.u32 %v8070_v50, %v523_v40  ;;  %v531_v58 = vrot.slane %v8069_v51, 1  ;;  %v806_v60 = vsel %vm799_vm0, %v803_v34, %v805_v53  ;;  %v1022_v2 = vrot.slane %v5119_v12, 5  ;;  %v5541_v50 = vld [vmem:[%s5100_s6 + $0xa0] sm:$0xff]  }
  0x20   : > { %v599_v61 = vor.u32 %v597_v54, %v595_v47  ;;  %v603_v62 = vrot.slane %v601_v55, 1  ;;  %v807_v4 = vrot.slane %v5204_v59, 4  ;;  %v8068_v5 = vshrl.u32 %v5150_v28, 16  ;;  %1758 = vmatpush1.bf16.msra.mxu0 %v4649_v21  ;;  %4472 = vmatpush1.bf16.msra.mxu1 %v4650_v32  ;;  %v4659_v32 = vld [vmem:[%s8059_s2 + $0x40] sm:$0xff]  }
  0x21   : > { %1066 = vrot.lane.b32.xlu1 %v1019_v39, %s5029_s9  ;;  %v532_v3 = vsel %vm504_vm1, %v527_v57, %v531_v58  ;;  %v8067_v6 = vshll.u32 %v5177_v44, 16  ;;  %v605_v15 = vshrl.u32 %v5180_v45, 16  ;;  %v609_v20 = vshll.u32 %v5212_v63, 16  ;;  %1759 = vmatprep.subr.bf16.mxu0 %v8075_v1  ;;  %v4655_v57 = vld [vmem:[%s8059_s2 + $0xb0] sm:$0xff]  }
  0x22   : > { %851 = vrot.lane.b32.xlu0 %v804_v43, %s5029_s9  ;;  %v604_v10 = vsel %vm504_vm1, %v599_v61, %v603_v62  ;;  %v1023_v23 = vsel %vm1004_vm2, %v1020_v48, %v1022_v2  ;;  %v535_v24 = vor.u32 %v8068_v5, %v531_v58  ;;  %v808_v33 = vsel %vm799_vm0, %v805_v53, %v807_v4  ;;  %v4653_v43 = vld [vmem:[%s8059_s2 + $0xa8] sm:$0xff]   ;;  %v4654_v48 = vld [vmem:[%s8059_s2 + $0x30] sm:$0xff]  }
  0x23   : > { %v539_v25 = vrot.slane %v8067_v6, 1  ;;  %v607_v34 = vor.u32 %v605_v15, %v603_v62  ;;  %v611_v35 = vrot.slane %v609_v20, 1  ;;  %v1024_v39 = vrot.slane %v5161_v36, 5  ;;  %4457 = vmatprep.subr.bf16.mxu1 %v8075_v1  ;;  %v4656_v62 = vld [vmem:[%s8059_s2 + $0x38] sm:$0xff]  }
  0x24   : > { %v8065_v40 = vshrl.u32 %v5177_v44, 16  ;;  %v8064_v47 = vshll.u32 %v5204_v59, 16  ;;  %1760 = vmatpush1.bf16.msra.mxu0 %v4651_v38  ;;  %v613_v53 = vshrl.u32 %v5212_v63, 16  ;;  %4473 = vmatpush1.bf16.msra.mxu1 %v4653_v43  ;;  %v5322_v38 = vld [vmem:[%s8059_s2 + $0xc0] sm:$0xff]   ;;  %v934_v43 = vrot.slane %v585_v18, 5 }
  0x25   : > { %703 = vrot.lane.b32.xlu1 %v524_v49, %s5029_s9  ;;  %v540_v46 = vsel %vm504_vm1, %v535_v24, %v539_v25  ;;  %v612_v49 = vsel %vm504_vm1, %v607_v34, %v611_v35  ;;  %1761 = vmatprep.subr.bf16.mxu0 %v8075_v1  ;;  %v1025_v58 = vsel %vm1004_vm2, %v1022_v2, %v1024_v39  ;;  %v5298_v2 = vld [vmem:[%s5100_s6 + $0x78] sm:$0xff]   ;;  %v8063_v24 = vshrl.u32 %v5204_v59, 16 }
  0x26   : > { %721 = vrot.lane.b32.xlu0 %v596_v52, %s5029_s9  ;;  %v809_v52 = vrot.slane %v5243_v29, 4  ;;  %4458 = vmatprep.subr.bf16.mxu1 %v8075_v1  ;;  %v547_v61 = vrot.slane %v8064_v47, 1  ;;  %v621_v34 = vshrl.u32 %v5254_v37, 16  ;;  %v819_v51 = vrot.slane %v5161_v36, 4 }
  0x28   : > { %1762 = vmatpush1.bf16.msra.mxu0 %v4654_v48  ;;  %v810_v0 = vsel %vm799_vm0, %v807_v4, %v809_v52  ;;  %4474 = vmatpush1.bf16.msra.mxu1 %v4655_v57  ;;  %v4658_v4 = vld [vmem:[%s8059_s2 + $0xb8] sm:$0xff]   ;;  %v938_v48 = vrot.slane %v593_v42, 5  ;;  %v551_v57 = vor.u32 %v8063_v24, %v547_v61 }
  0x29   : > { %1068 = vrot.lane.b32.xlu1 %v1021_v56, %s5029_s9  ;;  %v617_v56 = vshll.u32 %v5254_v37, 16  ;;  %1763 = vmatprep.subr.bf16.mxu0 %v8075_v1 }
  0x2a   : > { %853 = vrot.lane.b32.xlu0 %v806_v60, %s5029_s9  ;;  %v543_v60 = vor.u32 %v8065_v40, %v539_v25  ;;  %4459 = vmatprep.subr.bf16.mxu1 %v8075_v1  ;;  %v8062_v25 = vshll.u32 %v5243_v29, 16  ;;  %v5404_v40 = vld [vmem:[%s5100_s6 + $0x88] sm:$0xff]  }
  0x2b   : > { %v619_v9 = vrot.slane %v617_v56, 1 }
  0x2c   : > { %v548_v21 = vsel %vm504_vm1, %v543_v60, %v547_v61  ;;  %1764 = vmatpush1.bf16.msra.mxu0 %v4656_v62  ;;  %4475 = vmatpush1.bf16.msra.mxu1 %v4658_v4  ;;  %v555_v18 = vrot.slane %v8062_v25, 1  ;;  %v5345_v62 = vld [vmem:[%s5100_s6 + $0x80] sm:$0xff]   ;;  %v5354_v61 = vld [vmem:[%s8059_s2 + $0xc8] sm:$0xff]   ;;  %v1028_v4 = vrot.slane %v5212_v63, 5 }
  0x2d   : > { %705 = vrot.lane.b32.xlu1 %v532_v3, %s5029_s9  ;;  %v615_v3 = vor.u32 %v613_v53, %v611_v35  ;;  %v625_v35 = vshll.u32 %v5298_v2, 16  ;;  %1765 = vmatprep.subr.bf16.mxu0 %v8075_v1  ;;  %v623_v42 = vor.u32 %v621_v34, %v619_v9 }
  0x2e   : > { %723 = vrot.lane.b32.xlu0 %v604_v10, %s5029_s9  ;;  %v1026_v10 = vrot.slane %v5180_v45, 5  ;;  %4460 = vmatprep.subr.bf16.mxu1 %v8075_v1 }
  0x2f   : > { %v627_v60 = vrot.slane %v625_v35, 1 }
  0x30   : > { %1766 = vmatpush1.bf16.msra.mxu0 %v4659_v32  ;;  %4476 = vmatpush1.bf16.msra.mxu1 %v5322_v38  ;;  %v629_v32 = vshrl.u32 %v5298_v2, 16  ;;  %v1029_v25 = vsel %vm1004_vm2, %v1026_v10, %v1028_v4 }
  0x31   : > { %1070 = vrot.lane.b32.xlu1 %v1023_v23, %s5029_s9  ;;  %v811_v23 = vrot.slane %v5130_v19, 4  ;;  %1767 = vmatprep.subr.bf16.mxu0 %v8075_v1 }
  0x32   : > { %855 = vrot.lane.b32.xlu0 %v808_v33, %s5029_s9  ;;  %v620_v33 = vsel %vm504_vm1, %v615_v3, %v619_v9  ;;  %v946_v3 = vrot.slane %v609_v20, 5  ;;  %4461 = vmatprep.subr.bf16.mxu1 %v8075_v1  ;;  %v556_v9 = vsel %vm504_vm1, %v551_v57, %v555_v18  ;;  %v628_v20 = vsel %vm504_vm1, %v623_v42, %v627_v60  ;;  %v5383_v57 = vld [vmem:[%s8059_s2 + $0xd0] sm:$0xff]  }
  0x33   : > { %v631_v24 = vor.u32 %v629_v32, %v627_v60 }
  0x34   : > { %4477 = vmatpush1.bf16.msra.mxu1 %v5354_v61 }
  0x35   : > { %707 = vrot.lane.b32.xlu1 %v540_v46, %s5029_s9  ;;  %v933_v46 = vrot.slane %v589_v41, 4  ;;  %v4661_v41 = vld [vmem:[%s8059_s2 + $0x48] sm:$0xff]   ;;  %4462 = vmatprep.subr.bf16.mxu1 %v8075_v1 }
  0x36   : > { %725 = vrot.lane.b32.xlu0 %v612_v49, %s5029_s9  ;;  %v1027_v49 = vsel %vm1004_vm2, %v1024_v39, %v1026_v10  ;;  %v937_v39 = vrot.slane %v597_v54, 4  ;;  %v8081_v54 = vshll.u32 %v5130_v19, 16  ;;  %1768 = vmatpush1.bf16.msra.mxu0 %v4661_v41  ;;  %v950_v41 = vrot.slane %v617_v56, 5  ;;  %v5411_v10 = vld [vmem:[%s8059_s2 + $0xd8] sm:$0xff]  }
  0x37   : > { %1769 = vmatprep.subr.bf16.mxu0 %v8075_v1 }
  0x38   : > { %v563_v42 = vrot.slane %v8081_v54, 1  ;;  %4478 = vmatpush1.bf16.msra.mxu1 %v5383_v57  ;;  %v5419_v60 = vor.u32 %v938_v48, %v937_v39  ;;  %v815_v48 = vrot.slane %v5116_v11, 4  ;;  %v637_v39 = vshrl.u32 %v5345_v62, 16 }
  0x39   : > { %1072 = vrot.lane.b32.xlu1 %v1025_v58, %s5029_s9  ;;  %v812_v58 = vsel %vm799_vm0, %v809_v52, %v811_v23  ;;  %v941_v52 = vrot.slane %v605_v15, 4  ;;  %v4664_v15 = vld [vmem:[%s8059_s2 + $0x50] sm:$0xff]   ;;  %4463 = vmatprep.subr.bf16.mxu1 %v8075_v1 }
  0x3a   : > { %857 = vrot.lane.b32.xlu0 %v810_v0, %s5029_s9  ;;  %v942_v0 = vrot.slane %v601_v55, 5  ;;  %v813_v55 = vrot.slane %v5146_v26, 4  ;;  %1770 = vmatpush1.bf16.msra.mxu0 %v4664_v15 }
  0x3b   : > { %1771 = vmatprep.subr.bf16.mxu0 %v8075_v1 }
  0x3c   : > { %4479 = vmatpush1.bf16.msra.mxu1 %v5411_v10 }
  0x3d   : > { %709 = vrot.lane.b32.xlu1 %v548_v21, %s5029_s9  ;;  %v8066_v21 = vshrl.u32 %v5243_v29, 16  ;;  %4464 = vmatprep.subr.bf16.mxu1 %v8075_v1 }
  0x3e   : > { %727 = vrot.lane.b32.xlu0 %v620_v33, %s5029_s9  ;;  %v633_v33 = vshll.u32 %v5345_v62, 16 }
  0x3f   : > { %v559_v56 = vor.u32 %v8066_v21, %v555_v18  ;;  %v5413_v18 = vor.u32 %v934_v43, %v933_v46  ;;  %v5427_v43 = vor.u32 %v942_v0, %v941_v52 }
  0x40   : > { %v635_v47 = vrot.slane %v633_v33, 1 }
  0x41   : > { %1074 = vrot.lane.b32.xlu1 %v1027_v49, %s5029_s9  ;;  %v945_v49 = vrot.slane %v613_v53, 4  ;;  %v4666_v53 = vld [vmem:[%s8059_s2 + $0x58] sm:$0xff]   ;;  %v564_v15 = vsel %vm504_vm1, %v559_v56, %v563_v42  ;;  %v641_v56 = vshll.u32 %v5404_v40, 16 }
  0x42   : > { %859 = vrot.lane.b32.xlu0 %v812_v58, %s5029_s9  ;;  %v949_v58 = vrot.slane %v621_v34, 4  ;;  %v954_v34 = vrot.slane %v625_v35, 5  ;;  %v8080_v35 = vshrl.u32 %v5130_v19, 16  ;;  %1772 = vmatpush1.bf16.msra.mxu0 %v4666_v53  ;;  %v636_v21 = vsel %vm504_vm1, %v631_v24, %v635_v47  ;;  %v5439_v53 = vld [vmem:[%s8059_s2 + $0xe0] sm:$0xff]  }
  0x43   : > { %v5429_v46 = vor.u32 %v946_v3, %v945_v49  ;;  %1773 = vmatprep.subr.bf16.mxu0 %v8075_v1  ;;  %v958_v24 = vrot.slane %v633_v33, 5  ;;  %v5448_v3 = vld [vmem:[%s5100_s6 + $0x90] sm:$0xff]   ;;  %v816_v33 = vsel %vm799_vm0, %v813_v55, %v815_v48  ;;  %4480 = vmatpush1.bf16.msra.mxu1 %v5439_v53 }
  0x44   : > { %v5442_v0 = vor.u32 %v950_v41, %v949_v58  ;;  %v4671_v58 = vld [vmem:[%s8059_s2 + $0x68] sm:$0xff]   ;;  %4465 = vmatprep.subr.bf16.mxu1 %v8075_v1 }
  0x45   : > { %711 = vrot.lane.b32.xlu1 %v556_v9, %s5029_s9  ;;  %v814_v9 = vsel %vm799_vm0, %v811_v23, %v813_v55  ;;  %v1030_v23 = vrot.slane %v5254_v37, 5  ;;  %v1032_v55 = vrot.slane %v5298_v2, 5 }
  0x46   : > { %729 = vrot.lane.b32.xlu0 %v628_v20, %s5029_s9  ;;  %v953_v20 = vrot.slane %v629_v32, 4  ;;  %v8078_v32 = vshll.u32 %v5146_v26, 16 }
  0x47   : > { %v1031_v49 = vsel %vm1004_vm2, %v1028_v4, %v1030_v23  ;;  %v643_v4 = vrot.slane %v641_v56, 1 }
  0x48   : > { %v5444_v52 = vor.u32 %v954_v34, %v953_v20  ;;  %v571_v41 = vrot.slane %v8078_v32, 1  ;;  %v639_v34 = vor.u32 %v637_v39, %v635_v47  ;;  %v817_v20 = vrot.slane %v5119_v12, 4 }
  0x49   : > { %1076 = vrot.lane.b32.xlu1 %v1029_v25, %s5029_s9  ;;  %v4669_v25 = vld [vmem:[%s8059_s2 + $0x60] sm:$0xff]  }
  0x4a   : > { %861 = vrot.lane.b32.xlu0 %v814_v9, %s5029_s9  ;;  %v567_v9 = vor.u32 %v8080_v35, %v563_v42  ;;  %1774 = vmatpush1.bf16.msra.mxu0 %v4669_v25  ;;  %v5470_v42 = vld [vmem:[%s8059_s2 + $0xe8] sm:$0xff]   ;;  %v4674_v25 = vld [vmem:[%s8059_s2 + $0x70] sm:$0xff]   ;;  %v818_v6 = vsel %vm799_vm0, %v815_v48, %v817_v20 }
  0x4b   : > { %1775 = vmatprep.subr.bf16.mxu0 %v8075_v1  ;;  %4481 = vmatpush1.bf16.msra.mxu1 %v5470_v42 }
  0x4c   : > { %v572_v47 = vsel %vm504_vm1, %v567_v9, %v571_v41  ;;  %v649_v9 = vshll.u32 %v5448_v3, 16  ;;  %4466 = vmatprep.subr.bf16.mxu1 %v8075_v1 }
  0x4d   : > { %713 = vrot.lane.b32.xlu1 %v564_v15, %s5029_s9  ;;  %v8077_v15 = vshrl.u32 %v5146_v26, 16 }
  0x4e   : > { %731 = vrot.lane.b32.xlu0 %v636_v21, %s5029_s9  ;;  %v957_v21 = vrot.slane %v637_v39, 4  ;;  %1776 = vmatpush1.bf16.msra.mxu0 %v4671_v58  ;;  %v644_v39 = vsel %vm504_vm1, %v639_v34, %v643_v4  ;;  %v5499_v58 = vld [vmem:[%s8059_s2 + $0xf0] sm:$0xff]   ;;  %v1033_v34 = vsel %vm1004_vm2, %v1030_v23, %v1032_v55  ;;  %v1034_v23 = vrot.slane %v5345_v62, 5 }
  0x4f   : > { %1777 = vmatprep.subr.bf16.mxu0 %v8075_v1  ;;  %4482 = vmatpush1.bf16.msra.mxu1 %v5499_v58  ;;  %v966_v14 = vrot.slane %v649_v9, 5 }
  0x50   : > { %v5493_v12 = vor.u32 %v958_v24, %v957_v21  ;;  %v575_v24 = vor.u32 %v8077_v15, %v571_v41  ;;  %v4676_v21 = vld [vmem:[%s8059_s2 + $0x78] sm:$0xff]   ;;  %4467 = vmatprep.subr.bf16.mxu1 %v8075_v1  ;;  %v1035_v11 = vsel %vm1004_vm2, %v1032_v55, %v1034_v23 }
  0x51   : > { %1078 = vrot.lane.b32.xlu1 %v1031_v49, %s5029_s9  ;;  %v645_v49 = vshrl.u32 %v5404_v40, 16  ;;  %v5523_v41 = vld [vmem:[%s8059_s2 + $0xf8] sm:$0xff]  }
  0x52   : > { %863 = vrot.lane.b32.xlu0 %v816_v33, %s5029_s9  ;;  %v5503_v33 = vld [vmem:[%s5100_s6 + $0x98] sm:$0xff]   ;;  %1778 = vmatpush1.bf16.msra.mxu0 %v4674_v25  ;;  %v580_v36 = vsel %vm504_vm1, %v575_v24, %v5139_v22  ;;  %v930_v25 = vrot.slane %v577_v16, 5  ;;  %v820_v16 = vsel %vm799_vm0, %v817_v20, %v819_v51  ;;  %v1036_v24 = vrot.slane %v5404_v40, 5 }
  0x53   : > { %v647_v5 = vor.u32 %v645_v49, %v643_v4  ;;  %1779 = vmatprep.subr.bf16.mxu0 %v8075_v1  ;;  %v657_v48 = vshll.u32 %v5503_v33, 16  ;;  %v653_v4 = vshrl.u32 %v5448_v3, 16  ;;  %4483 = vmatpush1.bf16.msra.mxu1 %v5523_v41  ;;  %v821_v20 = vrot.slane %v5180_v45, 4 }
  0x54   : > { %v5583_v45 = vsel %vm897_vm3, %v5427_v43, %v5429_v46 }
  0x55   : > { %715 = vrot.lane.b32.xlu1 %v572_v47, %s5029_s9  ;;  %v651_v47 = vrot.slane %v649_v9, 1  ;;  %v5600_v9 = vsel %vm897_vm3, %v5442_v0, %v5444_v52 }
  0x56   : > { %733 = vrot.lane.b32.xlu0 %v644_v39, %s5029_s9  ;;  %v929_v39 = vrot.slane %v581_v17, 4  ;;  %v5531_v17 = vld [vmem:[%s8059_s2 + $0x100] sm:$0xff]   ;;  %1780 = vmatpush1.bf16.msra.mxu0 %v4676_v21  ;;  %v661_v21 = vshrl.u32 %v5503_v33, 16 }
  0x57   : > { %1974 = vmatprep.subr.bf16.mxu0 %v8075_v1  ;;  %4396 = vmatprep.subr.bf16.mxu1 %v5531_v17 }
  0x58   : > { %v5547_v22 = vor.u32 %v930_v25, %v929_v39  ;;  %v5563_v39 = vsel %vm897_vm3, %v5413_v18, %v5419_v60  ;;  %v5575_v25 = vsel %vm897_vm3, %v5419_v60, %v5427_v43  ;;  %v1038_v60 = vrot.slane %v5448_v3, 5 }
  0x59   : > { %1080 = vrot.lane.b32.xlu1 %v1033_v34, %s5029_s9  ;;  %v652_v34 = vsel %vm504_vm1, %v647_v5, %v651_v47  ;;  %v655_v5 = vor.u32 %v653_v4, %v651_v47  ;;  %v5570_v47 = vld [vmem:[%s5100_s6 + $0xa8] sm:$0xff]  }
  0x5a   : > { %865 = vrot.lane.b32.xlu0 %v818_v6, %s5029_s9  ;;  %v659_v6 = vrot.slane %v657_v48, 1  ;;  %v5558_v31 = vsel %vm897_vm3, %v5547_v22, %v5413_v18  ;;  %v673_v43 = vshll.u32 %v5570_v47, 16 }
  0x5c   : > { %v660_v55 = vsel %vm504_vm1, %v655_v5, %v659_v6  ;;  %v663_v30 = vor.u32 %v661_v21, %v659_v6  ;;  %v965_v5 = vrot.slane %v653_v4, 4  ;;  %v5591_v6 = vsel %vm897_vm3, %v5429_v46, %v5442_v0  ;;  %v5604_v4 = vld [vmem:[%s5100_s6 + $0xb0] sm:$0xff]  }
  0x5d   : > { %717 = vrot.lane.b32.xlu1 %v580_v36, %s5029_s9  ;;  %v665_v36 = vshll.u32 %v5541_v50, 16  ;;  %v969_v46 = vrot.slane %v661_v21, 4  ;;  %v675_v1 = vrot.slane %v673_v43, 1  ;;  %v677_v21 = vshrl.u32 %v5570_v47, 16 }
  0x5e   : > { %735 = vrot.lane.b32.xlu0 %v652_v34, %s5029_s9  ;;  %v1037_v34 = vsel %vm1004_vm2, %v1034_v23, %v1036_v24  ;;  %v823_v23 = vrot.slane %v5212_v63, 4  ;;  %v967_v15 = vor.u32 %v966_v14, %v965_v5  ;;  %v5630_v5 = vld [vmem:[%s5100_s6 + $0xb8] sm:$0xff]  }
  0x5f   : > { %v667_v18 = vrot.slane %v665_v36, 1 }
  0x60   : > { %v824_v0 = vsel %vm799_vm0, %v821_v20, %v823_v23 }
  0x61   : > { %1082 = vrot.lane.b32.xlu1 %v1035_v11, %s5029_s9  ;;  %v962_v11 = vrot.slane %v641_v56, 5  ;;  %v822_v56 = vsel %vm799_vm0, %v819_v51, %v821_v20  ;;  %v668_v63 = vsel %vm504_vm1, %v663_v30, %v667_v18  ;;  %v1039_v51 = vsel %vm1004_vm2, %v1036_v24, %v1038_v60 }
  0x62   : > { %867 = vrot.lane.b32.xlu0 %v820_v16, %s5029_s9  ;;  %v961_v16 = vrot.slane %v645_v49, 4  ;;  %v669_v49 = vshrl.u32 %v5541_v50, 16  ;;  %v825_v20 = vrot.slane %v5254_v37, 4 }
  0x64   : > { %v963_v27 = vor.u32 %v962_v11, %v961_v16  ;;  %v671_v30 = vor.u32 %v669_v49, %v667_v18  ;;  %v974_v18 = vrot.slane %v665_v36, 5  ;;  %v973_v16 = vrot.slane %v669_v49, 4 }
  0x65   : > { %737 = vrot.lane.b32.xlu1 %v660_v55, %s5029_s9  ;;  %v970_v55 = vrot.slane %v657_v48, 5  ;;  %v1040_v48 = vrot.slane %v5503_v33, 5  ;;  %v826_v37 = vsel %vm799_vm0, %v823_v23, %v825_v20  ;;  %v1042_v36 = vrot.slane %v5541_v50, 5 }
  0x66   : > { %1084 = vrot.lane.b32.xlu0 %v1037_v34, %s5029_s9  ;;  %v5609_v34 = vsel %vm897_vm3, %v5444_v52, %v5493_v12  ;;  %v681_v52 = vshll.u32 %v5604_v4, 16  ;;  %v5623_v24 = vsel %vm897_vm3, %v963_v27, %v967_v15  ;;  %v676_v14 = vsel %vm504_vm1, %v671_v30, %v675_v1 }
  0x67   : > { %8098 = vst [vmem:[#allocation3_spill] sm:$0xff] %v5623_v24  ;;  %v971_v11 = vor.u32 %v970_v55, %v969_v46  ;;  %v685_v46 = vshrl.u32 %v5604_v4, 16  ;;  %v689_v49 = vshll.u32 %v5630_v5, 16  ;;  %v978_v23 = vrot.slane %v673_v43, 5 }
  0x68   : > { %v683_v55 = vrot.slane %v681_v52, 1  ;;  %v977_v30 = vrot.slane %v677_v21, 4 }
  0x69   : > { %869 = vrot.lane.b32.xlu1 %v822_v56, %s5029_s9  ;;  %v5620_v56 = vsel %vm897_vm3, %v5493_v12, %v963_v27  ;;  %v5633_v12 = vsel %vm897_vm3, %v967_v15, %v971_v11  ;;  %v1041_v27 = vsel %vm1004_vm2, %v1038_v60, %v1040_v48  ;;  %v5645_v60 = vld [vmem:[%s5491_s26] sm:$0xff]  }
  0x6a   : > { %739 = vrot.lane.b32.xlu0 %v668_v63, %s5029_s9  ;;  %8099 = vst [vmem:[#allocation4_spill] sm:$0xff] %v5633_v12  ;;  %v679_v63 = vor.u32 %v677_v21, %v675_v1  ;;  %v829_v21 = vrot.slane %v5345_v62, 4  ;;  %v8108_v12 = vshrl.u32 %v5146_v26, 16 }
  0x6c   : > { %v684_v15 = vsel %vm504_vm1, %v679_v63, %v683_v55  ;;  %v693_v63 = vshrl.u32 %v5630_v5, 16  ;;  %v925_v29 = vrot.slane %v8108_v12, 4  ;;  %v835_v12 = vrot.slane %v5503_v33, 4 }
  0x6d   : > { %1086 = vrot.lane.b32.xlu1 %v1039_v51, %s5029_s9  ;;  %v975_v51 = vor.u32 %v974_v18, %v973_v16  ;;  %v691_v18 = vrot.slane %v689_v49, 1 }
  0x6e   : > { %871 = vrot.lane.b32.xlu0 %v824_v0, %s5029_s9  ;;  %v827_v0 = vrot.slane %v5298_v2, 4  ;;  %v1044_v2 = vrot.slane %v5570_v47, 5 }
  0x6f   : > { %v5648_v1 = vsel %vm897_vm3, %v971_v11, %v975_v51  ;;  %v8079_v11 = vshll.u32 %v5645_v60, 16 }
  0x70   : > { %8100 = vst [vmem:[#allocation5_spill] sm:$0xff] %v5648_v1  ;;  %v828_v16 = vsel %vm799_vm0, %v825_v20, %v827_v0  ;;  %v1045_v20 = vsel %vm1004_vm2, %v1042_v36, %v1044_v2  ;;  %v830_v62 = vsel %vm799_vm0, %v827_v0, %v829_v21 }
  0x71   : > { %741 = vrot.lane.b32.xlu1 %v676_v14, %s5029_s9  ;;  %v1043_v14 = vsel %vm1004_vm2, %v1040_v48, %v1042_v36  ;;  %v979_v48 = vor.u32 %v978_v23, %v977_v30  ;;  %v1046_v23 = vrot.slane %v5604_v4, 5  ;;  %v989_v36 = vshrl.u32 %v5645_v60, 16 }
  0x72   : > { %1088 = vrot.lane.b32.xlu0 %v1041_v27, %s5029_s9  ;;  %v687_v27 = vor.u32 %v685_v46, %v683_v55  ;;  %v695_v55 = vor.u32 %v693_v63, %v691_v18 }
  0x73   : > { %v5668_v32 = vsel %vm897_vm3, %v975_v51, %v979_v48  ;;  %v5679_v51 = vld [vmem:[%s5491_s26 + $0x10] sm:$0xff]  }
  0x74   : > { %v692_v43 = vsel %vm504_vm1, %v687_v27, %v691_v18  ;;  %8101 = vst [vmem:[#allocation6_spill] sm:$0xff] %v5668_v32  ;;  %v831_v18 = vrot.slane %v5404_v40, 4  ;;  %v1107_v54 = vshll.u32 %v5679_v51, 16 }
  0x75   : > { %873 = vrot.lane.b32.xlu1 %v826_v37, %s5029_s9  ;;  %v5662_v37 = vld [vmem:[%s5491_s26 + $0x8] sm:$0xff]  }
  0x76   : > { %743 = vrot.lane.b32.xlu0 %v684_v15, %s5029_s9  ;;  %v699_v15 = vrot.slane %v8079_v11, 1  ;;  %v8082_v30 = vshll.u32 %v5662_v37, 16  ;;  %v832_v35 = vsel %vm799_vm0, %v829_v21, %v831_v18 }
  0x78   : > { %v700_v27 = vsel %vm504_vm1, %v695_v55, %v699_v15  ;;  %v1103_v55 = vrot.slane %v8082_v30, 1 }
  0x79   : > { %1090 = vrot.lane.b32.xlu1 %v1043_v14, %s5029_s9  ;;  %v982_v14 = vrot.slane %v681_v52, 5  ;;  %v750_v52 = vrot.slane %v5122_v13, 1  ;;  %v996_v13 = vshrl.u32 %v5662_v37, 16 }
  0x7a   : > { %875 = vrot.lane.b32.xlu0 %v828_v16, %s5029_s9  ;;  %v981_v16 = vrot.slane %v685_v46, 4  ;;  %v5684_v46 = vld [vmem:[%s5100_s6 + $0x8] sm:$0xff]  }
  0x7c   : > { %v983_v11 = vor.u32 %v982_v14, %v981_v16  ;;  %v5703_v14 = vld [vmem:[%s5491_s26 + $0x18] sm:$0xff]   ;;  %v8104_v16 = vrot.slane %v5684_v46, 1 }
  0x7d   : > { %745 = vrot.lane.b32.xlu1 %v692_v43, %s5029_s9  ;;  %v1047_v43 = vsel %vm1004_vm2, %v1044_v2, %v1046_v23  ;;  %v833_v2 = vrot.slane %v5448_v3, 4  ;;  %8103 = vst [vmem:[#allocation8_spill] sm:$0xff] %v5703_v14 }
  0x7e   : > { %1092 = vrot.lane.b32.xlu0 %v1045_v20, %s5029_s9  ;;  %v1102_v20 = vor.u32 %v989_v36, %v699_v15  ;;  %v5696_v0 = vsel %vm897_vm3, %v979_v48, %v983_v11  ;;  %v986_v15 = vrot.slane %v689_v49, 5  ;;  %v752_v30 = vsel %vm749_vm4, %v750_v52, %v8104_v16 }
  0x7f   : > { %8102 = vst [vmem:[#allocation7_spill] sm:$0xff] %v5696_v0  ;;  %v1109_v0 = vrot.slane %v1107_v54, 1  ;;  %v8105_v49 = vshll.u32 %v5130_v19, 16  ;;  %v1050_v54 = vrot.slane %v5645_v60, 5  ;;  %v1115_v16 = vshll.u32 %v5703_v14, 16 }
  0x80   : > { %v1104_v21 = vsel %vm504_vm1, %v1102_v20, %v1103_v55  ;;  %v8107_v20 = vshll.u32 %v5146_v26, 16 }
  0x81   : > { %877 = vrot.lane.b32.xlu1 %v830_v62, %s5029_s9  ;;  %v1048_v62 = vrot.slane %v5630_v5, 5  ;;  %v922_v32 = vrot.slane %v8105_v49, 5 }
  0x82   : > { %747 = vrot.lane.b32.xlu0 %v700_v27, %s5029_s9  ;;  %v985_v27 = vrot.slane %v693_v63, 4  ;;  %v8106_v63 = vshrl.u32 %v5130_v19, 16  ;;  %v926_v1 = vrot.slane %v8107_v20, 5  ;;  %v1117_v20 = vrot.slane %v1115_v16, 1 }
  0x83   : > { %v1049_v48 = vsel %vm1004_vm2, %v1046_v23, %v1048_v62  ;;  %v834_v23 = vsel %vm799_vm0, %v831_v18, %v833_v2  ;;  %v8109_v18 = vshll.u32 %v5645_v60, 16  ;;  %v837_v16 = vrot.slane %v5541_v50, 4 }
  0x84   : > { %v987_v49 = vor.u32 %v986_v15, %v985_v27  ;;  %v991_v27 = vrot.slane %v989_v36, 4  ;;  %v4977_v36 = vld [vmem:[%s5100_s6] sm:$0xff]  }
  0x85   : > { %1094 = vrot.lane.b32.xlu1 %v1047_v43, %s5029_s9  ;;  %v1105_v43 = vor.u32 %v1103_v55, %v996_v13  ;;  %v1111_v55 = vshrl.u32 %v5679_v51, 16 }
  0x86   : > { %879 = vrot.lane.b32.xlu0 %v832_v35, %s5029_s9  ;;  %v921_v35 = vrot.slane %v8106_v63, 4  ;;  %v992_v63 = vrot.slane %v8109_v18, 5  ;;  %v836_v18 = vsel %vm799_vm0, %v833_v2, %v835_v12 }
  0x87   : > { %v1110_v26 = vsel %vm504_vm1, %v1105_v43, %v1109_v0  ;;  %v1051_v43 = vsel %vm1004_vm2, %v1048_v62, %v1050_v54  ;;  %v8110_v62 = vrot.slane %v5684_v46, 1 }
  0x89   : > { %1119 = vrot.lane.b32.xlu1 %v1104_v21, %s5029_s9  ;;  %v5729_v21 = vsel %vm897_vm3, %v983_v11, %v987_v49  ;;  %v1113_v11 = vor.u32 %v1111_v55, %v1109_v0 }
  0x8a   : > { %1096 = vrot.lane.b32.xlu0 %v1049_v48, %s5029_s9  ;;  %v5736_v48 = vld [vmem:[%s5100_s6 + $0x10] sm:$0xff]  }
  0x8b   : > { %v850_v24 = vpop.permute.xlu0 %849  ;;  %v753_v15 = vrot.slane %v5736_v48, 1  ;;  %v1118_v55 = vsel %vm504_vm1, %v1113_v11, %v1117_v20  ;;  %v8112_v11 = vshll.u32 %v5662_v37, 16 }
  0x8c   : > { %v1206_v52 = vsel %vm1131_vm5, %v752_v30, %v850_v24  ;;  %v5733_v24 = vor.u32 %v922_v32, %v921_v35  ;;  %v927_v30 = vor.u32 %v926_v1, %v925_v29  ;;  %v5744_v35 = vld [vmem:[%s5100_s6 + $0x48] sm:$0xff]   ;;  %v1052_v1 = vrot.slane %v5662_v37, 5 }
  0x8d   : > { %1781 = vmatprep.mubr.bf16.mxu0 %v1206_v52  ;;  %881 = vrot.lane.b32.xlu1 %v834_v23, %s5029_s9  ;;  %v754_v2 = vsel %vm749_vm4, %v8110_v62, %v753_v15  ;;  %v1001_v20 = vrot.slane %v8112_v11, 5 }
  0x8e   : > { %1121 = vrot.lane.b32.xlu0 %v1110_v26, %s5029_s9  ;;  %v928_v0 = vsel %vm897_vm3, %v5733_v24, %v927_v30  ;;  %v993_v26 = vor.u32 %v992_v63, %v991_v27  ;;  %v1053_v62 = vsel %vm1004_vm2, %v1050_v54, %v1052_v1  ;;  %v4683_v63 = vld [vmem:[%s8059_s2 + $0x108] sm:$0xff]   ;;  %v998_v54 = vrot.slane %v996_v13, 4  ;;  %v5784_v1 = vld [vmem:[%s5100_s6 + $0x18] sm:$0xff]  }
  0x8f   : > { %v720_v52 = vpop.permute.xlu1 %719 }
  0x90   : > { %v702_v32 = vpop.permute.xlu0 %701  ;;  %v5748_v29 = vsel %vm1131_vm5, %v5744_v35, %v720_v52  ;;  %v5774_v27 = vsel %vm897_vm3, %v987_v49, %v993_v26  ;;  %v755_v49 = vrot.slane %v5784_v1, 1 }
  0x91   : > { %2054 = vmatprep.mubr.bf16.mxu1 %v5748_v29  ;;  %v1133_v23 = vsel %vm1131_vm5, %v4977_v36, %v702_v32  ;;  %1098 = vrot.lane.b32.xlu1 %v1051_v43, %s5029_s9  ;;  %v4978_v32 = vld [vmem:[%s8059_s2 + $0x80] sm:$0xff]  }
  0x92   : > { %1782 = vmatmul.mubr.bf16.vlgmr.msra.gmra.mrb[0].mxu0 %v1133_v23  ;;  %883 = vrot.lane.b32.xlu0 %v836_v18, %s5029_s9  ;;  %v8111_v23 = vmov 0   ;;  %v839_v18 = vrot.slane %v5570_v47, 4 }
  0x93   : > { %v1067_v52 = vpop.permute.xlu1 %1066  ;;  %1975 = vmatpush1.bf16.msra.mxu0 %v4978_v32  ;;  %v841_v32 = vrot.slane %v5604_v4, 4 }
  0x94   : > { %v1326_v43 = vsel %vm1131_vm5, %v928_v0, %v1067_v52  ;;  %v852_v36 = vpop.permute.xlu0 %851  ;;  %1976 = vmatprep.subr.bf16.mxu0 %v8111_v23  ;;  %v838_v52 = vsel %vm799_vm0, %v835_v12, %v837_v16  ;;  %v843_v12 = vrot.slane %v5630_v5, 4 }
  0x95   : > { %2055 = vmatmul.mubr.bf16.vlgmr.msra.gmra.mrb[0].mxu1 %v1326_v43  ;;  %v1210_v0 = vsel %vm1131_vm5, %v754_v2, %v852_v36  ;;  %1123 = vrot.lane.b32.xlu1 %v1118_v55, %s5029_s9  ;;  %v4980_v2 = vld [vmem:[%s8059_s2 + $0x88] sm:$0xff]   ;;  %v840_v55 = vsel %vm799_vm0, %v837_v16, %v839_v18  ;;  %v5799_v36 = vld [vmem:[%s5100_s6 + $0x50] sm:$0xff]   ;;  %v756_v16 = vsel %vm749_vm4, %v753_v15, %v755_v49 }
  0x96   : > { %4397 = vmatpush3.bf16.msra.mxu1 %v5531_v17  ;;  %1789 = vmatprep.mubr.bf16.mxu0 %v1210_v0  ;;  %v842_v0 = vsel %vm799_vm0, %v839_v18, %v841_v32  ;;  %v844_v18 = vsel %vm799_vm0, %v841_v32, %v843_v12 }
  0x97   : > { %v704_v43 = vpop.permute.xlu1 %703  ;;  %1977 = vmatpush1.bf16.msra.mxu0 %v4980_v2  ;;  %1100 = vrot.lane.b32.xlu0 %v1053_v62, %s5029_s9  ;;  %v932_v62 = vsel %vm897_vm3, %v927_v30, %v5547_v22  ;;  %v4684_v2 = vld [vmem:[%s8059_s2 + $0x110] sm:$0xff]  }
  0x98   : > { %v1136_v17 = vsel %vm1131_vm5, %v5684_v46, %v704_v43  ;;  %v722_v13 = vpop.permute.xlu0 %721  ;;  %1978 = vmatprep.subr.bf16.mxu0 %v8111_v23  ;;  %4398 = vmatprep.subr.bf16.mxu1 %v4683_v63  ;;  %v845_v43 = vrot.slane %v5645_v60, 4  ;;  %v4982_v22 = vld [vmem:[%s8059_s2 + $0x90] sm:$0xff]  }
  0x99   : > { %v5803_v11 = vsel %vm1131_vm5, %v5799_v36, %v722_v13  ;;  %885 = vrot.lane.b32.xlu1 %v838_v52, %s5029_s9  ;;  %v1002_v13 = vor.u32 %v1001_v20, %v998_v54  ;;  %v847_v52 = vrot.slane %v5662_v37, 4 }
  0x9a   : > { %1790 = vmatmul.mubr.bf16.gmra.mrb[4].mxu0 %v1136_v17  ;;  %2062 = vmatprep.mubr.bf16.mxu1 %v5803_v11  ;;  %v5834_v17 = vld [vmem:[%s5100_s6 + $0x20] sm:$0xff]   ;;  %v846_v32 = vsel %vm799_vm0, %v843_v12, %v845_v43 }
  0x9b   : > { %v1069_v14 = vpop.permute.xlu1 %1068  ;;  %1979 = vmatpush1.bf16.msra.mxu0 %v4982_v22  ;;  %887 = vrot.lane.b32.xlu0 %v840_v55, %s5029_s9  ;;  %v5826_v20 = vsel %vm897_vm3, %v993_v26, %v1002_v13  ;;  %v1005_v26 = vrot.slane %v5684_v46, 5  ;;  %v1006_v55 = vrot.slane %v5736_v48, 5  ;;  %v848_v12 = vsel %vm799_vm0, %v845_v43, %v847_v52  ;;  %v5850_v22 = vld [vmem:[%s5100_s6 + $0x58] sm:$0xff]  }
  0x9c   : > { %v1330_v30 = vsel %vm1131_vm5, %v932_v62, %v1069_v14  ;;  %v854_v15 = vpop.permute.xlu0 %853  ;;  %1980 = vmatprep.subr.bf16.mxu0 %v8111_v23  ;;  %4399 = vmatpush3.bf16.msra.mxu1 %v4683_v63  ;;  %v4685_v14 = vld [vmem:[%s8059_s2 + $0x118] sm:$0xff]   ;;  %v757_v63 = vrot.slane %v5834_v17, 1  ;;  %v1008_v46 = vrot.slane %v5784_v1, 5 }
  0x9d   : > { %2063 = vmatmul.mubr.bf16.gmra.mrb[4].mxu1 %v1330_v30  ;;  %v1214_v54 = vsel %vm1131_vm5, %v756_v16, %v854_v15  ;;  %889 = vrot.lane.b32.xlu1 %v842_v0, %s5029_s9  ;;  %v4984_v16 = vld [vmem:[%s8059_s2 + $0x98] sm:$0xff]   ;;  %v1007_v43 = vsel %vm1004_vm2, %v1005_v26, %v1006_v55 }
  0x9e   : > { %1797 = vmatprep.mubr.bf16.mxu0 %v1214_v54  ;;  %4400 = vmatprep.subr.bf16.mxu1 %v4684_v2 }
  0x9f   : > { %v706_v62 = vpop.permute.xlu1 %705  ;;  %1981 = vmatpush1.bf16.msra.mxu0 %v4984_v16  ;;  %891 = vrot.lane.b32.xlu0 %v844_v18, %s5029_s9  ;;  %v4986_v18 = vld [vmem:[%s8059_s2 + $0xa0] sm:$0xff]  }
  0xa0   : > { %v1139_v0 = vsel %vm1131_vm5, %v5736_v48, %v706_v62  ;;  %v724_v13 = vpop.permute.xlu0 %723  ;;  %1982 = vmatprep.subr.bf16.mxu0 %v8111_v23  ;;  %4401 = vmatpush3.bf16.msra.mxu1 %v4684_v2  ;;  %v5861_v48 = vsel %vm749_vm4, %v755_v49, %v757_v63  ;;  %v1010_v2 = vrot.slane %v5834_v17, 5  ;;  %v1009_v49 = vsel %vm1004_vm2, %v1006_v55, %v1008_v46 }
  0xa1   : > { %v5854_v30 = vsel %vm1131_vm5, %v5850_v22, %v724_v13  ;;  %893 = vrot.lane.b32.xlu1 %v846_v32, %s5029_s9  ;;  %4402 = vmatprep.subr.bf16.mxu1 %v4685_v14  ;;  %v5874_v32 = vld [vmem:[%s5100_s6 + $0x28] sm:$0xff]  }
  0xa2   : > { %1798 = vmatmul.mubr.bf16.gmra.mrb[8].mxu0 %v1139_v0  ;;  %2070 = vmatprep.mubr.bf16.mxu1 %v5854_v30  ;;  %v1012_v26 = vrot.slane %v5874_v32, 5  ;;  %v1011_v16 = vsel %vm1004_vm2, %v1008_v46, %v1010_v2  ;;  %v5883_v0 = vld [vmem:[%s5100_s6 + $0x30] sm:$0xff]  }
  0xa3   : > { %v1071_v15 = vpop.permute.xlu1 %1070  ;;  %1983 = vmatpush1.bf16.msra.mxu0 %v4986_v18  ;;  %895 = vrot.lane.b32.xlu0 %v848_v12, %s5029_s9  ;;  %v1014_v55 = vrot.slane %v5883_v0, 5 }
  0xa4   : > { %v1334_v52 = vsel %vm1131_vm5, %v5558_v31, %v1071_v15  ;;  %v856_v54 = vpop.permute.xlu0 %855  ;;  %1984 = vmatprep.subr.bf16.mxu0 %v8111_v23  ;;  %4403 = vmatpush3.bf16.msra.mxu1 %v4685_v14  ;;  %v759_v31 = vrot.slane %v5874_v32, 1  ;;  %v4989_v14 = vld [vmem:[%s8059_s2 + $0xa8] sm:$0xff]   ;;  %v1013_v46 = vsel %vm1004_vm2, %v1010_v2, %v1012_v26  ;;  %v5897_v15 = vld [vmem:[%s5100_s6 + $0x60] sm:$0xff]   ;;  %v4991_v2 = vld [vmem:[%s8059_s2 + $0xb0] sm:$0xff]  }
  0xa5   : > { %2071 = vmatmul.mubr.bf16.gmra.mrb[8].mxu1 %v1334_v52  ;;  %v1218_v62 = vsel %vm1131_vm5, %v5861_v48, %v856_v54  ;;  %1054 = vrot.lane.b32.xlu1 %v1007_v43, %s5029_s9  ;;  %v1015_v52 = vsel %vm1004_vm2, %v1012_v26, %v1014_v55 }
  0xa6   : > { %1805 = vmatprep.mubr.bf16.mxu0 %v1218_v62 }
  0xa7   : > { %v708_v13 = vpop.permute.xlu1 %707  ;;  %1985 = vmatpush1.bf16.msra.mxu0 %v4989_v14  ;;  %1056 = vrot.lane.b32.xlu0 %v1009_v49, %s5029_s9 }
  0xa8   : > { %v5892_v12 = vsel %vm1131_vm5, %v5784_v1, %v708_v13  ;;  %v726_v43 = vpop.permute.xlu0 %725  ;;  %1986 = vmatprep.subr.bf16.mxu0 %v8111_v23  ;;  %v5907_v1 = vsel %vm749_vm4, %v757_v63, %v759_v31  ;;  %v8113_v63 = vrot.slane %v5130_v19, 5  ;;  %v761_v13 = vrot.slane %v5883_v0, 1 }
  0xa9   : > { %v5901_v18 = vsel %vm1131_vm5, %v5897_v15, %v726_v43  ;;  %1058 = vrot.lane.b32.xlu1 %v1011_v16, %s5029_s9  ;;  %v5934_v43 = vld [vmem:[%s5100_s6 + $0x68] sm:$0xff]  }
  0xaa   : > { %1806 = vmatmul.mubr.bf16.gmra.mrb[12].mxu0 %v5892_v12  ;;  %2078 = vmatprep.mubr.bf16.mxu1 %v5901_v18  ;;  %v1017_v16 = vsel %vm1004_vm2, %v1014_v55, %v8113_v63 }
  0xab   : > { %v1073_v54 = vpop.permute.xlu1 %1072  ;;  %1987 = vmatpush1.bf16.msra.mxu0 %v4991_v2  ;;  %1060 = vrot.lane.b32.xlu0 %v1013_v46, %s5029_s9 }
  0xac   : > { %v1338_v49 = vsel %vm1131_vm5, %v5563_v39, %v1073_v54  ;;  %v858_v62 = vpop.permute.xlu0 %857  ;;  %1988 = vmatprep.subr.bf16.mxu0 %v8111_v23  ;;  %v4992_v39 = vld [vmem:[%s8059_s2 + $0xb8] sm:$0xff]  }
  0xad   : > { %2079 = vmatmul.mubr.bf16.gmra.mrb[12].mxu1 %v1338_v49  ;;  %v1222_v26 = vsel %vm1131_vm5, %v5907_v1, %v858_v62  ;;  %1062 = vrot.lane.b32.xlu1 %v1015_v52, %s5029_s9  ;;  %v5943_v52 = vsel %vm749_vm4, %v759_v31, %v761_v13  ;;  %v4994_v62 = vld [vmem:[%s5100_s6 + $0x38] sm:$0xff]  }
  0xae   : > { %1813 = vmatprep.mubr.bf16.mxu0 %v1222_v26  ;;  %v763_v63 = vrot.slane %v4994_v62, 1 }
  0xaf   : > { %v710_v14 = vpop.permute.xlu1 %709  ;;  %1989 = vmatpush1.bf16.msra.mxu0 %v4992_v39  ;;  %1064 = vrot.lane.b32.xlu0 %v1017_v16, %s5029_s9 }
  0xb0   : > { %v5930_v19 = vsel %vm1131_vm5, %v5834_v17, %v710_v14  ;;  %v728_v55 = vpop.permute.xlu0 %727  ;;  %1990 = vmatprep.subr.bf16.mxu0 %v8111_v23 }
  0xb1   : > { %v5938_v46 = vsel %vm1131_vm5, %v5934_v43, %v728_v55 }
  0xb2   : > { %1814 = vmatmul.mubr.bf16.gmra.mrb[16].mxu0 %v5930_v19  ;;  %2086 = vmatprep.mubr.bf16.mxu1 %v5938_v46 }
  0xb3   : > { %v1075_v17 = vpop.permute.xlu1 %1074  ;;  %1991 = vmatpush1.bf16.msra.mxu0 %v5322_v38 }
  0xb4   : > { %v1342_v54 = vsel %vm1131_vm5, %v5575_v25, %v1075_v17  ;;  %v860_v2 = vpop.permute.xlu0 %859  ;;  %1992 = vmatprep.subr.bf16.mxu0 %v8111_v23  ;;  %v5959_v25 = vld [vmem:[%s5100_s6 + $0x70] sm:$0xff]   ;;  %v4996_v17 = vld [vmem:[%s5100_s6 + $0x40] sm:$0xff]  }
  0xb5   : > { %2087 = vmatmul.mubr.bf16.gmra.mrb[16].mxu1 %v1342_v54  ;;  %v1226_v49 = vsel %vm1131_vm5, %v5943_v52, %v860_v2  ;;  %v765_v54 = vrot.slane %v4996_v17, 1 }
  0xb6   : > { %1821 = vmatprep.mubr.bf16.mxu0 %v1226_v49 }
  0xb7   : > { %v712_v16 = vpop.permute.xlu1 %711  ;;  %1993 = vmatpush1.bf16.msra.mxu0 %v5354_v61  ;;  %v5968_v61 = vsel %vm749_vm4, %v761_v13, %v763_v63 }
  0xb8   : > { %v5955_v31 = vsel %vm1131_vm5, %v5874_v32, %v712_v16  ;;  %v730_v38 = vpop.permute.xlu0 %729  ;;  %1994 = vmatprep.subr.bf16.mxu0 %v8111_v23  ;;  %v5993_v16 = vsel %vm749_vm4, %v763_v63, %v765_v54  ;;  %v8114_v63 = vshll.u32 %v5106_v7, 16 }
  0xb9   : > { %v5963_v26 = vsel %vm1131_vm5, %v5959_v25, %v730_v38 }
  0xba   : > { %1822 = vmatmul.mubr.bf16.gmra.mrb[20].mxu0 %v5955_v31  ;;  %2094 = vmatprep.mubr.bf16.mxu1 %v5963_v26 }
  0xbb   : > { %v1077_v32 = vpop.permute.xlu1 %1076  ;;  %1995 = vmatpush1.bf16.msra.mxu0 %v5383_v57 }
  0xbc   : > { %v1346_v14 = vsel %vm1131_vm5, %v5583_v45, %v1077_v32  ;;  %v862_v39 = vpop.permute.xlu0 %861  ;;  %1996 = vmatprep.subr.bf16.mxu0 %v8111_v23  ;;  %v5984_v45 = vld [vmem:[%s5100_s6 + $0x78] sm:$0xff]  }
  0xbd   : > { %2095 = vmatmul.mubr.bf16.gmra.mrb[20].mxu1 %v1346_v14  ;;  %v1230_v55 = vsel %vm1131_vm5, %v5968_v61, %v862_v39  ;;  %v767_v14 = vrot.slane %v5744_v35, 1  ;;  %v8117_v35 = vshrl.u32 %v5109_v8, 16 }
  0xbe   : > { %1829 = vmatprep.mubr.bf16.mxu0 %v1230_v55 }
  0xbf   : > { %v714_v2 = vpop.permute.xlu1 %713  ;;  %1997 = vmatpush1.bf16.msra.mxu0 %v5411_v10 }
  0xc0   : > { %v5980_v13 = vsel %vm1131_vm5, %v5883_v0, %v714_v2  ;;  %v732_v57 = vpop.permute.xlu0 %731  ;;  %1998 = vmatprep.subr.bf16.mxu0 %v8111_v23  ;;  %v8115_v2 = vshrl.u32 %v5106_v7, 16 }
  0xc1   : > { %v5988_v49 = vsel %vm1131_vm5, %v5984_v45, %v732_v57 }
  0xc2   : > { %1830 = vmatmul.mubr.bf16.gmra.mrb[24].mxu0 %v5980_v13  ;;  %2102 = vmatprep.mubr.bf16.mxu1 %v5988_v49  ;;  %v898_v57 = vrot.slane %v8115_v2, 4 }
  0xc3   : > { %v1079_v10 = vpop.permute.xlu1 %1078  ;;  %1999 = vmatpush1.bf16.msra.mxu0 %v5439_v53  ;;  %v899_v53 = vrot.slane %v8114_v63, 5 }
  0xc4   : > { %v1350_v0 = vsel %vm1131_vm5, %v5591_v6, %v1079_v10  ;;  %v864_v38 = vpop.permute.xlu0 %863  ;;  %2000 = vmatprep.subr.bf16.mxu0 %v8111_v23  ;;  %v8116_v10 = vshll.u32 %v5109_v8, 16 }
  0xc5   : > { %2103 = vmatmul.mubr.bf16.gmra.mrb[24].mxu1 %v1350_v0  ;;  %v1234_v32 = vsel %vm1131_vm5, %v5993_v16, %v864_v38  ;;  %v901_v38 = vrot.slane %v8117_v35, 4 }
  0xc6   : > { %1837 = vmatprep.mubr.bf16.mxu0 %v1234_v32  ;;  %v902_v0 = vrot.slane %v8116_v10, 5  ;;  %v6016_v32 = vld [vmem:[%s5100_s6 + $0x80] sm:$0xff]   ;;  %v769_v10 = vrot.slane %v5799_v36, 1 }
  0xc7   : > { %v716_v39 = vpop.permute.xlu1 %715  ;;  %2001 = vmatpush1.bf16.msra.mxu0 %v5470_v42 }
  0xc8   : > { %v6006_v55 = vsel %vm1131_vm5, %v4994_v62, %v716_v39  ;;  %v734_v6 = vpop.permute.xlu0 %733  ;;  %2002 = vmatprep.subr.bf16.mxu0 %v8111_v23  ;;  %v6025_v62 = vsel %vm749_vm4, %v765_v54, %v767_v14  ;;  %v903_v2 = vor.u32 %v902_v0, %v901_v38  ;;  %v771_v38 = vrot.slane %v5850_v22, 1 }
  0xc9   : > { %v6020_v42 = vsel %vm1131_vm5, %v6016_v32, %v734_v6  ;;  %v900_v6 = vor.u32 %v899_v53, %v898_v57 }
  0xca   : > { %1838 = vmatmul.mubr.bf16.gmra.mrb[28].mxu0 %v6006_v55  ;;  %2110 = vmatprep.mubr.bf16.mxu1 %v6020_v42  ;;  %v6072_v22 = vsel %vm749_vm4, %v769_v10, %v771_v38 }
  0xcb   : > { %v1081_v7 = vpop.permute.xlu1 %1080  ;;  %2003 = vmatpush1.bf16.msra.mxu0 %v5499_v58  ;;  %v6036_v58 = vsel %vm897_vm3, %v900_v6, %v903_v2 }
  0xcc   : > { %v1354_v8 = vsel %vm1131_vm5, %v5600_v9, %v1081_v7  ;;  %v866_v39 = vpop.permute.xlu0 %865  ;;  %2004 = vmatprep.subr.bf16.mxu0 %v8111_v23  ;;  %v8118_v23 = vshll.u32 %v5150_v28, 16 }
  0xcd   : > { %2111 = vmatmul.mubr.bf16.gmra.mrb[28].mxu1 %v1354_v8  ;;  %v1238_v63 = vsel %vm1131_vm5, %v6025_v62, %v866_v39  ;;  %v8119_v8 = vshrl.u32 %v5150_v28, 16 }
  0xce   : > { %1845 = vmatprep.mubr.bf16.mxu0 %v1238_v63  ;;  %v906_v7 = vrot.slane %v8118_v23, 5 }
  0xcf   : > { %v718_v54 = vpop.permute.xlu1 %717  ;;  %2005 = vmatpush1.bf16.msra.mxu0 %v5523_v41  ;;  %v905_v53 = vrot.slane %v8119_v8, 4  ;;  %v6052_v41 = vsel %vm749_vm4, %v767_v14, %v769_v10 }
  0xd0   : > { %v6039_v9 = vsel %vm1131_vm5, %v4996_v17, %v718_v54  ;;  %v736_v35 = vpop.permute.xlu0 %735 }
  0xd1   : > { %v6047_v57 = vsel %vm1131_vm5, %v5404_v40, %v736_v35  ;;  %v907_v40 = vor.u32 %v906_v7, %v905_v53  ;;  %v8121_v35 = vshrl.u32 %v5177_v44, 16  ;;  %v773_v7 = vrot.slane %v5897_v15, 1 }
  0xd2   : > { %1846 = vmatmul.mubr.bf16.gmra.mrb[32].mxu0 %v6039_v9  ;;  %2118 = vmatprep.mubr.bf16.mxu1 %v6047_v57 }
  0xd3   : > { %v1083_v36 = vpop.permute.xlu1 %1082  ;;  %v6060_v63 = vsel %vm897_vm3, %v903_v2, %v907_v40  ;;  %v909_v23 = vrot.slane %v8121_v35, 4 }
  0xd4   : > { %v1358_v17 = vsel %vm1131_vm5, %v5609_v34, %v1083_v36  ;;  %v868_v0 = vpop.permute.xlu0 %867  ;;  %v8120_v34 = vshll.u32 %v5177_v44, 16 }
  0xd5   : > { %2119 = vmatmul.mubr.bf16.gmra.mrb[32].mxu1 %v1358_v17  ;;  %v1242_v28 = vsel %vm1131_vm5, %v6052_v41, %v868_v0  ;;  %v775_v0 = vrot.slane %v5934_v43, 1 }
  0xd6   : > { %1853 = vmatprep.mubr.bf16.mxu0 %v1242_v28  ;;  %v910_v54 = vrot.slane %v8120_v34, 5  ;;  %v8122_v28 = vshll.u32 %v5204_v59, 16 }
  0xd7   : > { %v738_v39 = vpop.permute.xlu1 %737  ;;  %v6106_v43 = vsel %vm749_vm4, %v773_v7, %v775_v0 }
  0xd8   : > { %v1085_v6 = vpop.permute.xlu0 %1084  ;;  %v6064_v14 = vsel %vm1131_vm5, %v5448_v3, %v738_v39  ;;  %v911_v10 = vor.u32 %v910_v54, %v909_v23  ;;  %v8123_v39 = vshrl.u32 %v5204_v59, 16 }
  0xd9   : > { %2126 = vmatprep.mubr.bf16.mxu1 %v6064_v14  ;;  %v1362_v2 = vsel %vm1131_vm5, %v5620_v56, %v1085_v6 }
  0xda   : > { %1854 = vmatmul.mubr.bf16.gmra.mrb[36].mxu0 %v5748_v29  ;;  %v6086_v29 = vsel %vm749_vm4, %v771_v38, %v773_v7  ;;  %v6089_v15 = vsel %vm897_vm3, %v907_v40, %v911_v10  ;;  %v913_v6 = vrot.slane %v8123_v39, 4  ;;  %v8124_v38 = vld [vmem:[#allocation3_spill] sm:$0xff] }
  0xdb   : > { %v870_v3 = vpop.permute.xlu1 %869 }
  0xdc   : > { %v1246_v8 = vsel %vm1131_vm5, %v6072_v22, %v870_v3  ;;  %v740_v53 = vpop.permute.xlu0 %739 }
  0xdd   : > { %2127 = vmatmul.mubr.bf16.gmra.mrb[36].mxu1 %v1362_v2  ;;  %1861 = vmatprep.mubr.bf16.mxu0 %v1246_v8  ;;  %v6082_v44 = vsel %vm1131_vm5, %v5503_v33, %v740_v53  ;;  %v914_v33 = vrot.slane %v8122_v28, 5  ;;  %v777_v8 = vrot.slane %v5959_v25, 1  ;;  %v8125_v53 = vld [vmem:[#allocation2_spill] sm:$0xff] }
  0xde   : > { %2134 = vmatprep.mubr.bf16.mxu1 %v6082_v44 }
  0xdf   : > { %v1087_v56 = vpop.permute.xlu1 %1086  ;;  %v915_v59 = vor.u32 %v914_v33, %v913_v6  ;;  %v6127_v25 = vsel %vm749_vm4, %v775_v0, %v777_v8 }
  0xe0   : > { %v872_v36 = vpop.permute.xlu0 %871  ;;  %v1366_v34 = vsel %vm1131_vm5, %v8124_v38, %v1087_v56 }
  0xe1   : > { %v1250_v17 = vsel %vm1131_vm5, %v6086_v29, %v872_v36  ;;  %v6112_v3 = vsel %vm897_vm3, %v911_v10, %v915_v59  ;;  %v8127_v36 = vshrl.u32 %v8125_v53, 16 }
  0xe2   : > { %1862 = vmatmul.mubr.bf16.gmra.mrb[40].mxu0 %v5803_v11 }
  0xe3   : > { %1869 = vmatprep.mubr.bf16.mxu0 %v1250_v17  ;;  %v742_v40 = vpop.permute.xlu1 %741  ;;  %v917_v7 = vrot.slane %v8127_v36, 4  ;;  %v8128_v17 = vld [vmem:[#allocation4_spill] sm:$0xff] }
  0xe4   : > { %v1089_v54 = vpop.permute.xlu0 %1088  ;;  %v6103_v35 = vsel %vm1131_vm5, %v5541_v50, %v742_v40  ;;  %v8126_v50 = vshll.u32 %v8125_v53, 16  ;;  %v779_v40 = vrot.slane %v5984_v45, 1 }
  0xe5   : > { %2135 = vmatmul.mubr.bf16.gmra.mrb[40].mxu1 %v1366_v34  ;;  %v1370_v28 = vsel %vm1131_vm5, %v8128_v17, %v1089_v54  ;;  %v8129_v54 = vld [vmem:[#allocation5_spill] sm:$0xff] }
  0xe6   : > { %2142 = vmatprep.mubr.bf16.mxu1 %v6103_v35  ;;  %v918_v56 = vrot.slane %v8126_v50, 5  ;;  %v6147_v53 = vsel %vm749_vm4, %v777_v8, %v779_v40  ;;  %v8130_v50 = vld [vmem:[#allocation6_spill] sm:$0xff] }
  0xe7   : > { %v874_v23 = vpop.permute.xlu1 %873 }
  0xe8   : > { %v1254_v11 = vsel %vm1131_vm5, %v6106_v43, %v874_v23  ;;  %v744_v2 = vpop.permute.xlu0 %743  ;;  %v6130_v6 = vor.u32 %v918_v56, %v917_v7 }
  0xe9   : > { %v6124_v39 = vsel %vm1131_vm5, %v5570_v47, %v744_v2 }
  0xea   : > { %1870 = vmatmul.mubr.bf16.gmra.mrb[44].mxu0 %v5854_v30  ;;  %v6136_v34 = vsel %vm897_vm3, %v915_v59, %v6130_v6  ;;  %v781_v59 = vrot.slane %v6016_v32, 1 }
  0xeb   : > { %1877 = vmatprep.mubr.bf16.mxu0 %v1254_v11  ;;  %v1091_v33 = vpop.permute.xlu1 %1090 }
  0xec   : > { %v876_v10 = vpop.permute.xlu0 %875  ;;  %v1374_v0 = vsel %vm1131_vm5, %v8129_v54, %v1091_v33  ;;  %v6161_v17 = vsel %vm749_vm4, %v779_v40, %v781_v59 }
  0xed   : > { %2143 = vmatmul.mubr.bf16.gmra.mrb[44].mxu1 %v1370_v28  ;;  %v1258_v30 = vsel %vm1131_vm5, %v6127_v25, %v876_v10  ;;  %v4999_v28 = vld [vmem:[%s5100_s6 + $0x88] sm:$0xff]  }
  0xee   : > { %2150 = vmatprep.mubr.bf16.mxu1 %v6124_v39  ;;  %v783_v33 = vrot.slane %v4999_v28, 1  ;;  %v8131_v10 = vld [vmem:[#allocation7_spill] sm:$0xff] }
  0xef   : > { %v746_v38 = vpop.permute.xlu1 %745 }
  0xf0   : > { %v1093_v23 = vpop.permute.xlu0 %1092  ;;  %v6144_v11 = vsel %vm1131_vm5, %v5604_v4, %v746_v38 }
  0xf1   : > { %v1378_v56 = vsel %vm1131_vm5, %v8130_v50, %v1093_v23 }
  0xf2   : > { %1878 = vmatmul.mubr.bf16.gmra.mrb[48].mxu0 %v5901_v18 }
  0xf3   : > { %1885 = vmatprep.mubr.bf16.mxu0 %v1258_v30  ;;  %v878_v2 = vpop.permute.xlu1 %877 }
  0xf4   : > { %v748_v45 = vpop.permute.xlu0 %747  ;;  %v1262_v18 = vsel %vm1131_vm5, %v6147_v53, %v878_v2 }
  0xf5   : > { %2151 = vmatmul.mubr.bf16.gmra.mrb[48].mxu1 %v1374_v0  ;;  %v6158_v8 = vsel %vm1131_vm5, %v5630_v5, %v748_v45  ;;  %v6173_v0 = vsel %vm749_vm4, %v781_v59, %v783_v33 }
  0xf6   : > { %2158 = vmatprep.mubr.bf16.mxu1 %v6144_v11 }
  0xf7   : > { %v1095_v36 = vpop.permute.xlu1 %1094 }
  0xf8   : > { %v880_v7 = vpop.permute.xlu0 %879  ;;  %v1382_v38 = vsel %vm1131_vm5, %v8131_v10, %v1095_v36 }
  0xfa   : > { %1886 = vmatmul.mubr.bf16.gmra.mrb[52].mxu0 %v5938_v46  ;;  %v1266_v46 = vsel %vm1131_vm5, %v6161_v17, %v880_v7 }
  0xfb   : > { %1893 = vmatprep.mubr.bf16.mxu0 %v1262_v18  ;;  %v1120_v32 = vpop.permute.xlu1 %1119 }
  0xfc   : > { %v1097_v30 = vpop.permute.xlu0 %1096  ;;  %v1397_v40 = vsel %vm1131_vm5, %v5645_v60, %v1120_v32 }
  0xfd   : > { %2159 = vmatmul.mubr.bf16.gmra.mrb[52].mxu1 %v1378_v56  ;;  %v1386_v18 = vsel %vm1131_vm5, %v5729_v21, %v1097_v30 }
  0xfe   : > { %2166 = vmatprep.mubr.bf16.mxu1 %v6158_v8 }
  0xff   : > { %v882_v54 = vpop.permute.xlu1 %881 }
 0x100   : > { %v1122_v23 = vpop.permute.xlu0 %1121  ;;  %v1270_v2 = vsel %vm1131_vm5, %v6173_v0, %v882_v54 }
 0x101   : > { %v1400_v56 = vsel %vm1131_vm5, %v5662_v37, %v1122_v23 }
 0x102   : > { %1894 = vmatmul.mubr.bf16.gmra.mrb[56].mxu0 %v5963_v26  ;;  %v5000_v26 = vld [vmem:[%s5100_s6 + $0x90] sm:$0xff]  }
 0x103   : > { %1901 = vmatprep.mubr.bf16.mxu0 %v1266_v46  ;;  %v785_v45 = vrot.slane %v5000_v26, 1  ;;  %v1099_v50 = vpop.permute.xlu1 %1098  ;;  %v791_v26 = vrot.slane %v5570_v47, 1 }
 0x104   : > { %v884_v59 = vpop.permute.xlu0 %883  ;;  %v1390_v21 = vsel %vm1131_vm5, %v5774_v27, %v1099_v50 }
 0x105   : > { %2167 = vmatmul.mubr.bf16.gmra.mrb[56].mxu1 %v1382_v38  ;;  %v6184_v36 = vsel %vm749_vm4, %v783_v33, %v785_v45 }
 0x106   : > { %2174 = vmatprep.mubr.bf16.mxu1 %v1397_v40  ;;  %v1274_v32 = vsel %vm1131_vm5, %v6184_v36, %v884_v59  ;;  %v5002_v40 = vld [vmem:[%s5100_s6 + $0xa0] sm:$0xff]  }
 0x107   : > { %v1124_v7 = vpop.permute.xlu1 %1123  ;;  %v789_v54 = vrot.slane %v5002_v40, 1 }
 0x108   : > { %v1403_v28 = vsel %vm1131_vm5, %v5679_v51, %v1124_v7 }
 0x109   : > { %v1101_v38 = vpop.permute.xlu0 %1100 }
 0x10a   : > { %1902 = vmatmul.mubr.bf16.gmra.mrb[60].mxu0 %v5988_v49  ;;  %v5001_v49 = vld [vmem:[%s5100_s6 + $0x98] sm:$0xff]   ;;  %v1394_v27 = vsel %vm1131_vm5, %v5826_v20, %v1101_v38  ;;  %v792_v20 = vsel %vm749_vm4, %v789_v54, %v791_v26 }
 0x10b   : > { %1909 = vmatprep.mubr.bf16.mxu0 %v1270_v2  ;;  %v787_v46 = vrot.slane %v5001_v49, 1  ;;  %v886_v33 = vpop.permute.xlu1 %885 }
 0x10d   : > { %2175 = vmatmul.mubr.bf16.gmra.mrb[60].mxu1 %v1386_v18  ;;  %v6195_v10 = vsel %vm749_vm4, %v785_v45, %v787_v46  ;;  %v790_v23 = vsel %vm749_vm4, %v787_v46, %v789_v54  ;;  %v1477_v54 = vld [vmem:[%s8060_s3] sm:$0x7] }
 0x10e   : > { %2182 = vmatprep.mubr.bf16.mxu1 %v1400_v56  ;;  %v1278_v30 = vsel %vm1131_vm5, %v6195_v10, %v886_v33 }
 0x112   : > { %1910 = vmatmul.mubr.bf16.gmra.mrb[64].mxu0 %v6020_v42  ;;  %v888_v42 = vpop.permute.xlu0 %887 }
 0x113   : > { %1917 = vmatprep.mubr.bf16.mxu0 %v1274_v32  ;;  %v1282_v2 = vsel %vm1131_vm5, %v790_v23, %v888_v42 }
 0x115   : > { %2183 = vmatmul.mubr.bf16.gmra.mrb[64].mxu1 %v1390_v21  ;;  %v1478_v21 = vlaneseq }
 0x116   : > { %2190 = vmatprep.mubr.bf16.mxu1 %v1403_v28  ;;  %v892_v47 = vpop.permute.xlu0 %891 }
 0x117   : > { %v6293_v38 = vshrl.u32 %v1478_v21, 7 }
 0x119   : > { %v1480_v40 = vsub.s32 0, %v6293_v38 }
 0x11a   : > { %1918 = vmatmul.mubr.bf16.gmra.mrb[68].mxu0 %v6047_v57  ;;  %v890_v57 = vpop.permute.xlu1 %889 }
 0x11b   : > { %1925 = vmatprep.mubr.bf16.mxu0 %v1278_v30  ;;  %v1286_v45 = vsel %vm1131_vm5, %v792_v20, %v890_v57 }
 0x11d   : > { %2191 = vmatmul.mubr.bf16.gmra.mrb[68].mxu1 %v1394_v27 }
 0x11e   : > { %4404 = vmatprep.mubr.msk.bf16.mxu1 %vm1131_vm5, %v5861_v48  ;;  %v793_v48 = vrot.slane %v5604_v4, 1  ;;  %v894_v4 = vpop.permute.xlu1 %893 }
 0x122   : > { %1926 = vmatmul.mubr.bf16.gmra.mrb[72].mxu0 %v6064_v14  ;;  %v794_v14 = vsel %vm749_vm4, %v791_v26, %v793_v48 }
 0x123   : > { %1933 = vmatprep.mubr.bf16.mxu0 %v1282_v2  ;;  %v6303_v2 = vrot.slane %v1477_v54, %v1480_v40 }
 0x125   : > { %4405 = vmatmul.mubr.msk.bf16.vlgmr.msra.gmra.mrb[72].mxu1 %vm1131_vm5, %v5907_v1  ;;  %v1290_v1 = vsel %vm1131_vm5, %v794_v14, %v892_v47 }
 0x126   : > { %4408 = vmatprep.mubr.msk.bf16.mxu1 %vm1131_vm5, %v5943_v52  ;;  %v795_v52 = vrot.slane %v5630_v5, 1  ;;  %v896_v5 = vpop.permute.xlu0 %895 }
 0x12a   : > { %1934 = vmatmul.mubr.bf16.gmra.mrb[76].mxu0 %v6082_v44  ;;  %v796_v44 = vsel %vm749_vm4, %v793_v48, %v795_v52 }
 0x12b   : > { %1941 = vmatprep.mubr.bf16.mxu0 %v1286_v45 }
 0x12d   : > { %4409 = vmatmul.mubr.msk.bf16.gmra.mrb[76].mxu1 %vm1131_vm5, %v5968_v61  ;;  %v1294_v61 = vsel %vm1131_vm5, %v796_v44, %v894_v4 }
 0x12e   : > { %4412 = vmatprep.mubr.msk.bf16.mxu1 %vm1131_vm5, %v5993_v16  ;;  %v797_v16 = vrot.slane %v5645_v60, 1  ;;  %v1055_v60 = vpop.permute.xlu1 %1054 }
 0x132   : > { %1942 = vmatmul.mubr.bf16.gmra.mrb[80].mxu0 %v6103_v35  ;;  %v798_v35 = vsel %vm749_vm4, %v795_v52, %v797_v16 }
 0x133   : > { %1949 = vmatprep.mubr.bf16.mxu0 %v1290_v1 }
 0x135   : > { %4413 = vmatmul.mubr.msk.bf16.gmra.mrb[80].mxu1 %vm1131_vm5, %v6025_v62  ;;  %v1298_v62 = vsel %vm1131_vm5, %v798_v35, %v896_v5 }
 0x136   : > { %4416 = vmatprep.mubr.msk.bf16.mxu1 %vm1131_vm5, %v6052_v41  ;;  %v1302_v41 = vsel %vm1131_vm5, %v6036_v58, %v1055_v60 }
 0x13a   : > { %1950 = vmatmul.mubr.bf16.gmra.mrb[84].mxu0 %v6124_v39 }
 0x13b   : > { %1957 = vmatprep.mubr.bf16.mxu0 %v1294_v61 }
 0x13d   : > { %4417 = vmatmul.mubr.msk.bf16.gmra.mrb[84].mxu1 %vm1131_vm5, %v6072_v22  ;;  %v1057_v22 = vpop.permute.xlu0 %1056 }
 0x13e   : > { %4420 = vmatprep.mubr.msk.bf16.mxu1 %vm1131_vm5, %v6086_v29  ;;  %v1059_v29 = vpop.permute.xlu1 %1058 }
 0x141   : > { %v1061_v58 = vpop.permute.xlu0 %1060 }
 0x142   : > { %1958 = vmatmul.mubr.bf16.gmra.mrb[88].mxu0 %v6144_v11  ;;  %v1063_v11 = vpop.permute.xlu1 %1062 }
 0x143   : > { %1965 = vmatprep.mubr.bf16.mxu0 %v1298_v62 }
 0x145   : > { %4421 = vmatmul.mubr.msk.bf16.gmra.mrb[88].mxu1 %vm1131_vm5, %v6106_v43  ;;  %v1065_v50 = vpop.permute.xlu0 %1064 }
 0x146   : > { %4424 = vmatprep.mubr.msk.bf16.mxu1 %vm1131_vm5, %v6127_v25 }
 0x14a   : > { %1966 = vmatmul.mubr.bf16.gmra.mrb[92].mxu0 %v6158_v8 }
 0x14b   : > { %2006 = vmatprep.mubr.bf16.mxu0 %v5892_v12  ;;  %v1306_v12 = vsel %vm1131_vm5, %v6060_v63, %v1057_v22 }
 0x14d   : > { %4425 = vmatmul.mubr.msk.bf16.gmra.mrb[92].mxu1 %vm1131_vm5, %v6147_v53  ;;  %v1127_v53 = vrot.slane %v5679_v51, 1  ;;  %v8132_v51 = vld [vmem:[#allocation8_spill] sm:$0xff] }
 0x14e   : > { %4428 = vmatprep.mubr.msk.bf16.mxu1 %vm1131_vm5, %v6161_v17 }
 0x152   : > { %2007 = vmatmul.mubr.bf16.vlgmr.msra.gmra.mrb[0].mxu0 %v1302_v41 }
 0x153   : > { %2014 = vmatprep.mubr.bf16.mxu0 %v5930_v19  ;;  %v1310_v19 = vsel %vm1131_vm5, %v6089_v15, %v1059_v29  ;;  %v1318_v15 = vsel %vm1131_vm5, %v6136_v34, %v1063_v11  ;;  %v1129_v34 = vrot.slane %v8132_v51, 1 }
 0x155   : > { %4429 = vmatmul.mubr.msk.bf16.gmra.mrb[96].mxu1 %vm1131_vm5, %v6173_v0  ;;  %v1130_v7 = vsel %vm749_vm4, %v1127_v53, %v1129_v34 }
 0x156   : > { %4432 = vmatprep.mubr.msk.bf16.mxu1 %vm1131_vm5, %v6184_v36 }
 0x15a   : > { %2015 = vmatmul.mubr.bf16.gmra.mrb[4].mxu0 %v1306_v12 }
 0x15b   : > { %2022 = vmatprep.mubr.bf16.mxu0 %v5955_v31  ;;  %v1314_v31 = vsel %vm1131_vm5, %v6112_v3, %v1061_v58 }
 0x15d   : > { %4433 = vmatmul.mubr.msk.bf16.gmra.mrb[100].mxu1 %vm1131_vm5, %v6195_v10 }
 0x15e   : > { %4436 = vmatprep.mubr.msk.bf16.mxu1 %vm1131_vm5, %v790_v23 }
 0x162   : > { %2023 = vmatmul.mubr.bf16.gmra.mrb[8].mxu0 %v1310_v19 }
 0x163   : > { %2030 = vmatprep.mubr.bf16.mxu0 %v5980_v13  ;;  %v1125_v13 = vrot.slane %v5662_v37, 1  ;;  %v924_v37 = vsel %vm897_vm3, %v6130_v6, %v5733_v24 }
 0x164   : > { %v1322_v56 = vsel %vm1131_vm5, %v924_v37, %v1065_v50 }
 0x165   : > { %4437 = vmatmul.mubr.msk.bf16.gmra.mrb[104].mxu1 %vm1131_vm5, %v792_v20  ;;  %v1126_v0 = vsel %vm749_vm4, %v797_v16, %v1125_v13  ;;  %v1128_v18 = vsel %vm749_vm4, %v1125_v13, %v1127_v53 }
 0x166   : > { %4440 = vmatprep.mubr.msk.bf16.mxu1 %vm1131_vm5, %v794_v14 }
 0x168   : > { %v2056_v63 = vpop.f32.mrb[0].mxu1 }
 0x169   : > { %v2058_v43 = vpop.f32.mrb[1].mxu1 }
 0x16a   : > { %2031 = vmatmul.mubr.bf16.gmra.mrb[12].mxu0 %v1314_v31  ;;  %v2059_v39 = vpop.f32.mrb[2].mxu1 }
 0x16b   : > { %2038 = vmatprep.mubr.bf16.mxu0 %v6006_v55  ;;  %v2061_v25 = vpop.f32.mrb[3].mxu1 }
 0x16d   : > { %4441 = vmatmul.mubr.msk.bf16.gmra.mrb[108].mxu1 %vm1131_vm5, %v796_v44 }
 0x16e   : > { %4444 = vmatprep.mubr.msk.bf16.mxu1 %vm1131_vm5, %v798_v35 }
 0x170   : > { %v2064_v3 = vpop.f32.mrb[4].mxu1 }
 0x171   : > { %v2066_v8 = vpop.f32.mrb[5].mxu1 }
 0x172   : > { %2039 = vmatmul.mubr.bf16.gmra.mrb[16].mxu0 %v1318_v15  ;;  %v2067_v17 = vpop.f32.mrb[6].mxu1 }
 0x173   : > { %2046 = vmatprep.mubr.bf16.mxu0 %v6039_v9  ;;  %v2069_v55 = vpop.f32.mrb[7].mxu1 }
 0x175   : > { %4445 = vmatmul.mubr.msk.bf16.gmra.mrb[112].mxu1 %vm1131_vm5, %v1126_v0 }
 0x176   : > { %4448 = vmatprep.mubr.msk.bf16.mxu1 %vm1131_vm5, %v1128_v18 }
 0x178   : > { %v2072_v59 = vpop.f32.mrb[8].mxu1 }
 0x179   : > { %v2074_v36 = vpop.f32.mrb[9].mxu1 }
 0x17a   : > { %2047 = vmatmul.mubr.bf16.gmra.mrb[20].mxu0 %v1322_v56  ;;  %v2075_v9 = vpop.f32.mrb[10].mxu1 }
 0x17b   : > { %v2077_v32 = vpop.f32.mrb[11].mxu1 }
 0x17d   : > { %4449 = vmatmul.mubr.msk.bf16.gmra.mrb[116].mxu1 %vm1131_vm5, %v1130_v7 }
 0x180   : > { %v2080_v49 = vpop.f32.mrb[12].mxu1 }
 0x181   : > { %v2082_v46 = vpop.f32.mrb[13].mxu1 }
 0x182   : > { %v2083_v24 = vpop.f32.mrb[14].mxu1 }
 0x183   : > { %v2085_v6 = vpop.f32.mrb[15].mxu1 }
 0x188   : > { %v6289_v28 = vpop.f32.mrb[16].mxu1 }
 0x189   : > { %v2090_v33 = vpop.f32.mrb[17].mxu1 }
 0x18a   : > { %v6291_v10 = vpop.f32.mrb[18].mxu1 }
 0x18b   : > { %v2093_v30 = vpop.f32.mrb[19].mxu1 }
 0x190   : > { %v6299_v27 = vpop.f32.mrb[20].mxu1 }
 0x191   : > { %v2098_v42 = vpop.f32.mrb[21].mxu1 }
 0x192   : > { %v6301_v23 = vpop.f32.mrb[22].mxu1 }
 0x193   : > { %v2101_v26 = vpop.f32.mrb[23].mxu1 }
 0x195   : > { %v1831_v57 = vpop.f32.mrb[24].mxu0 }
 0x196   : > { %v1832_v20 = vadd.f32 %v1831_v57, %v6303_v2  ;;  %v1833_v45 = vpop.f32.mrb[25].mxu0 }
 0x197   : > { %v1834_v48 = vpop.f32.mrb[26].mxu0 }
 0x198   : > { %v1835_v47 = vadd.f32 %v1834_v48, %v6303_v2  ;;  %v1836_v14 = vpop.f32.mrb[27].mxu0  ;;  %v6307_v1 = vpop.f32.mrb[24].mxu1  ;;  %v6309_v52 = vadd.f32 %v2056_v63, %v1832_v20 }
 0x199   : > { %v2106_v4 = vpop.f32.mrb[25].mxu1 }
 0x19a   : > { %v6311_v44 = vpop.f32.mrb[26].mxu1  ;;  %v6313_v61 = vadd.f32 %v2059_v39, %v1835_v47 }
 0x19b   : > { %v2109_v16 = vpop.f32.mrb[27].mxu1 }
 0x19d   : > { %v1839_v5 = vpop.f32.mrb[28].mxu0 }
 0x19e   : > { %v1840_v35 = vadd.f32 %v1839_v5, %v6303_v2  ;;  %v1841_v62 = vpop.f32.mrb[29].mxu0 }
 0x19f   : > { %v1842_v60 = vpop.f32.mrb[30].mxu0 }
 0x1a0   : > { %v1843_v41 = vadd.f32 %v1842_v60, %v6303_v2  ;;  %v1844_v22 = vpop.f32.mrb[31].mxu0  ;;  %v6317_v12 = vpop.f32.mrb[28].mxu1  ;;  %v6319_v29 = vadd.f32 %v2064_v3, %v1840_v35 }
 0x1a1   : > { %v2114_v19 = vpop.f32.mrb[29].mxu1 }
 0x1a2   : > { %v6321_v58 = vpop.f32.mrb[30].mxu1  ;;  %v6323_v31 = vadd.f32 %v2067_v17, %v1843_v41 }
 0x1a3   : > { %v2117_v63 = vpop.f32.mrb[31].mxu1 }
 0x1a5   : > { %v1847_v43 = vpop.f32.mrb[32].mxu0 }
 0x1a6   : > { %v1848_v39 = vadd.f32 %v1847_v43, %v6303_v2  ;;  %v1849_v25 = vpop.f32.mrb[33].mxu0 }
 0x1a7   : > { %v1850_v11 = vpop.f32.mrb[34].mxu0 }
 0x1a8   : > { %v1851_v13 = vadd.f32 %v1850_v11, %v6303_v2  ;;  %v1852_v15 = vpop.f32.mrb[35].mxu0  ;;  %v6327_v53 = vpop.f32.mrb[32].mxu1  ;;  %v6329_v8 = vadd.f32 %v2072_v59, %v1848_v39 }
 0x1a9   : > { %v2122_v3 = vpop.f32.mrb[33].mxu1 }
 0x1aa   : > { %v6331_v0 = vpop.f32.mrb[34].mxu1  ;;  %v6333_v55 = vadd.f32 %v2075_v9, %v1851_v13 }
 0x1ab   : > { %v2125_v17 = vpop.f32.mrb[35].mxu1 }
 0x1ad   : > { %v1855_v18 = vpop.f32.mrb[36].mxu0 }
 0x1ae   : > { %v1856_v50 = vadd.f32 %v1855_v18, %v6303_v2  ;;  %v1857_v37 = vpop.f32.mrb[37].mxu0 }
 0x1af   : > { %v1858_v51 = vpop.f32.mrb[38].mxu0 }
 0x1b0   : > { %v1859_v34 = vadd.f32 %v1858_v51, %v6303_v2  ;;  %v1860_v56 = vpop.f32.mrb[39].mxu0  ;;  %v6337_v36 = vpop.f32.mrb[36].mxu1  ;;  %v6339_v7 = vadd.f32 %v2080_v49, %v1856_v50 }
 0x1b1   : > { %v2130_v59 = vpop.f32.mrb[37].mxu1 }
 0x1b2   : > { %v6341_v32 = vpop.f32.mrb[38].mxu1  ;;  %v6343_v46 = vadd.f32 %v2083_v24, %v1859_v34 }
 0x1b3   : > { %v2133_v9 = vpop.f32.mrb[39].mxu1 }
 0x1b5   : > { %v1863_v6 = vpop.f32.mrb[40].mxu0 }
 0x1b6   : > { %v1864_v21 = vadd.f32 %v1863_v6, %v6303_v2  ;;  %v1865_v33 = vpop.f32.mrb[41].mxu0 }
 0x1b7   : > { %v1866_v30 = vpop.f32.mrb[42].mxu0 }
 0x1b8   : > { %v1867_v40 = vadd.f32 %v1866_v30, %v6303_v2  ;;  %v1868_v54 = vpop.f32.mrb[43].mxu0  ;;  %v6347_v42 = vpop.f32.mrb[40].mxu1  ;;  %v6350_v26 = vadd.f32 %v6289_v28, %v1864_v21 }
 0x1b9   : > { %v2138_v49 = vpop.f32.mrb[41].mxu1 }
 0x1ba   : > { %v6352_v57 = vpop.f32.mrb[42].mxu1  ;;  %v6355_v24 = vadd.f32 %v6291_v10, %v1867_v40 }
 0x1bb   : > { %v2141_v20 = vpop.f32.mrb[43].mxu1 }
 0x1bd   : > { %v1871_v45 = vpop.f32.mrb[44].mxu0 }
 0x1be   : > { %v1872_v48 = vadd.f32 %v1871_v45, %v6303_v2  ;;  %v1873_v47 = vpop.f32.mrb[45].mxu0 }
 0x1bf   : > { %v1874_v14 = vpop.f32.mrb[46].mxu0 }
 0x1c0   : > { %v1875_v4 = vadd.f32 %v1874_v14, %v6303_v2  ;;  %v1876_v16 = vpop.f32.mrb[47].mxu0  ;;  %v6359_v5 = vpop.f32.mrb[44].mxu1  ;;  %v6362_v28 = vadd.f32 %v6299_v27, %v1872_v48 }
 0x1c1   : > { %v2146_v35 = vpop.f32.mrb[45].mxu1 }
 0x1c2   : > { %v6364_v62 = vpop.f32.mrb[46].mxu1  ;;  %v6367_v10 = vadd.f32 %v6301_v23, %v1875_v4 }
 0x1c3   : > { %v2149_v60 = vpop.f32.mrb[47].mxu1 }
 0x1c5   : > { %v1879_v41 = vpop.f32.mrb[48].mxu0 }
 0x1c6   : > { %v1880_v22 = vadd.f32 %v1879_v41, %v6303_v2  ;;  %v1881_v19 = vpop.f32.mrb[49].mxu0 }
 0x1c7   : > { %v1882_v63 = vpop.f32.mrb[50].mxu0 }
 0x1c8   : > { %v1883_v43 = vadd.f32 %v1882_v63, %v6303_v2  ;;  %v1884_v39 = vpop.f32.mrb[51].mxu0  ;;  %v6371_v25 = vpop.f32.mrb[48].mxu1  ;;  %v6374_v27 = vadd.f32 %v6307_v1, %v1880_v22 }
 0x1c9   : > { %v2154_v11 = vpop.f32.mrb[49].mxu1 }
 0x1ca   : > { %v6376_v13 = vpop.f32.mrb[50].mxu1  ;;  %v6379_v23 = vadd.f32 %v6311_v44, %v1883_v43 }
 0x1cb   : > { %v2157_v15 = vpop.f32.mrb[51].mxu1 }
 0x1cd   : > { %v1887_v3 = vpop.f32.mrb[52].mxu0 }
 0x1ce   : > { %v1888_v17 = vadd.f32 %v1887_v3, %v6303_v2  ;;  %v1889_v18 = vpop.f32.mrb[53].mxu0 }
 0x1cf   : > { %v1890_v50 = vpop.f32.mrb[54].mxu0 }
 0x1d0   : > { %v1891_v37 = vadd.f32 %v1890_v50, %v6303_v2  ;;  %v1892_v51 = vpop.f32.mrb[55].mxu0  ;;  %v6383_v34 = vpop.f32.mrb[52].mxu1  ;;  %v6386_v1 = vadd.f32 %v6317_v12, %v1888_v17 }
 0x1d1   : > { %v2162_v56 = vpop.f32.mrb[53].mxu1 }
 0x1d2   : > { %v6388_v59 = vpop.f32.mrb[54].mxu1  ;;  %v6391_v44 = vadd.f32 %v6321_v58, %v1891_v37 }
 0x1d3   : > { %v2165_v9 = vpop.f32.mrb[55].mxu1 }
 0x1d5   : > { %v1895_v6 = vpop.f32.mrb[56].mxu0 }
 0x1d6   : > { %v1896_v21 = vadd.f32 %v1895_v6, %v6303_v2  ;;  %v1897_v33 = vpop.f32.mrb[57].mxu0 }
 0x1d7   : > { %v1898_v30 = vpop.f32.mrb[58].mxu0 }
 0x1d8   : > { %v1899_v40 = vadd.f32 %v1898_v30, %v6303_v2  ;;  %v1900_v54 = vpop.f32.mrb[59].mxu0  ;;  %v6395_v49 = vpop.f32.mrb[56].mxu1  ;;  %v6398_v12 = vadd.f32 %v6327_v53, %v1896_v21 }
 0x1d9   : > { %v2170_v20 = vpop.f32.mrb[57].mxu1 }
 0x1da   : > { %v6400_v45 = vpop.f32.mrb[58].mxu1  ;;  %v6403_v58 = vadd.f32 %v6331_v0, %v1899_v40 }
 0x1db   : > { %v2173_v48 = vpop.f32.mrb[59].mxu1 }
 0x1dd   : > { %v1903_v47 = vpop.f32.mrb[60].mxu0 }
 0x1de   : > { %v1904_v14 = vadd.f32 %v1903_v47, %v6303_v2  ;;  %v1905_v4 = vpop.f32.mrb[61].mxu0 }
 0x1df   : > { %v1906_v16 = vpop.f32.mrb[62].mxu0 }
 0x1e0   : > { %v1907_v35 = vadd.f32 %v1906_v16, %v6303_v2  ;;  %v1908_v60 = vpop.f32.mrb[63].mxu0  ;;  %v6407_v41 = vpop.f32.mrb[60].mxu1  ;;  %v6410_v53 = vadd.f32 %v6337_v36, %v1904_v14 }
 0x1e1   : > { %v2178_v22 = vpop.f32.mrb[61].mxu1 }
 0x1e2   : > { %v6412_v19 = vpop.f32.mrb[62].mxu1  ;;  %v6415_v0 = vadd.f32 %v6341_v32, %v1907_v35 }
 0x1e3   : > { %v2181_v63 = vpop.f32.mrb[63].mxu1 }
 0x1e5   : > { %v1911_v43 = vpop.f32.mrb[64].mxu0 }
 0x1e6   : > { %v1912_v39 = vadd.f32 %v1911_v43, %v6303_v2  ;;  %v1913_v11 = vpop.f32.mrb[65].mxu0 }
 0x1e7   : > { %v1914_v15 = vpop.f32.mrb[66].mxu0 }
 0x1e8   : > { %v1915_v3 = vadd.f32 %v1914_v15, %v6303_v2  ;;  %v1916_v17 = vpop.f32.mrb[67].mxu0  ;;  %v6419_v18 = vpop.f32.mrb[64].mxu1  ;;  %v6422_v36 = vadd.f32 %v6347_v42, %v1912_v39 }
 0x1e9   : > { %v2186_v50 = vpop.f32.mrb[65].mxu1 }
 0x1ea   : > { %v6424_v37 = vpop.f32.mrb[66].mxu1  ;;  %v6427_v32 = vadd.f32 %v6352_v57, %v1915_v3 }
 0x1eb   : > { %v2189_v51 = vpop.f32.mrb[67].mxu1 }
 0x1ed   : > { %v1919_v56 = vpop.f32.mrb[68].mxu0 }
 0x1ee   : > { %v1920_v9 = vadd.f32 %v1919_v56, %v6303_v2  ;;  %v1921_v6 = vpop.f32.mrb[69].mxu0 }
 0x1ef   : > { %v1922_v21 = vpop.f32.mrb[70].mxu0 }
 0x1f0   : > { %v1923_v33 = vadd.f32 %v1922_v21, %v6303_v2  ;;  %v1924_v30 = vpop.f32.mrb[71].mxu0  ;;  %v6431_v40 = vpop.f32.mrb[68].mxu1  ;;  %v6434_v42 = vadd.f32 %v6359_v5, %v1920_v9 }
 0x1f1   : > { %v2194_v54 = vpop.f32.mrb[69].mxu1 }
 0x1f2   : > { %v6436_v20 = vpop.f32.mrb[70].mxu1  ;;  %v6439_v57 = vadd.f32 %v6364_v62, %v1923_v33 }
 0x1f3   : > { %v2197_v48 = vpop.f32.mrb[71].mxu1 }
 0x1f5   : > { %v1927_v47 = vpop.f32.mrb[72].mxu0 }
 0x1f6   : > { %v1928_v14 = vadd.f32 %v1927_v47, %v6303_v2  ;;  %v1929_v4 = vpop.f32.mrb[73].mxu0 }
 0x1f7   : > { %v1930_v16 = vpop.f32.mrb[74].mxu0 }
 0x1f8   : > { %v1931_v35 = vadd.f32 %v1930_v16, %v6303_v2  ;;  %v1932_v60 = vpop.f32.mrb[75].mxu0  ;;  %v6443_v22 = vpop.f32.mrb[72].mxu1  ;;  %v6446_v5 = vadd.f32 %v6371_v25, %v1928_v14 }
 0x1f9   : > { %v6448_v63 = vpop.f32.mrb[73].mxu1 }
 0x1fa   : > { %v6450_v43 = vpop.f32.mrb[74].mxu1  ;;  %v6453_v62 = vadd.f32 %v6376_v13, %v1931_v35 }
 0x1fb   : > { %v6455_v39 = vpop.f32.mrb[75].mxu1 }
 0x1fd   : > { %v1935_v11 = vpop.f32.mrb[76].mxu0 }
 0x1fe   : > { %v1936_v15 = vadd.f32 %v1935_v11, %v6303_v2  ;;  %v1937_v3 = vpop.f32.mrb[77].mxu0 }
 0x1ff   : > { %v1938_v17 = vpop.f32.mrb[78].mxu0 }
 0x200   : > { %v1939_v50 = vadd.f32 %v1938_v17, %v6303_v2  ;;  %v1940_v51 = vpop.f32.mrb[79].mxu0  ;;  %v6459_v56 = vpop.f32.mrb[76].mxu1  ;;  %v6462_v25 = vadd.f32 %v6383_v34, %v1936_v15 }
 0x201   : > { %v6464_v9 = vpop.f32.mrb[77].mxu1 }
 0x202   : > { %v6466_v6 = vpop.f32.mrb[78].mxu1  ;;  %v6469_v13 = vadd.f32 %v6388_v59, %v1939_v50 }
 0x203   : > { %v6471_v21 = vpop.f32.mrb[79].mxu1 }
 0x205   : > { %v1943_v33 = vpop.f32.mrb[80].mxu0 }
 0x206   : > { %v1944_v30 = vadd.f32 %v1943_v33, %v6303_v2  ;;  %v1945_v54 = vpop.f32.mrb[81].mxu0 }
 0x207   : > { %v1946_v48 = vpop.f32.mrb[82].mxu0 }
 0x208   : > { %v1947_v47 = vadd.f32 %v1946_v48, %v6303_v2  ;;  %v1948_v14 = vpop.f32.mrb[83].mxu0  ;;  %v6475_v4 = vpop.f32.mrb[80].mxu1  ;;  %v6478_v34 = vadd.f32 %v6395_v49, %v1944_v30 }
 0x209   : > { %v6480_v16 = vpop.f32.mrb[81].mxu1 }
 0x20a   : > { %v6482_v35 = vpop.f32.mrb[82].mxu1  ;;  %v6485_v59 = vadd.f32 %v6400_v45, %v1947_v47 }
 0x20b   : > { %v6487_v60 = vpop.f32.mrb[83].mxu1 }
 0x20d   : > { %v1951_v11 = vpop.f32.mrb[84].mxu0 }
 0x20e   : > { %v1952_v15 = vadd.f32 %v1951_v11, %v6303_v2  ;;  %v1953_v3 = vpop.f32.mrb[85].mxu0 }
 0x20f   : > { %v1954_v17 = vpop.f32.mrb[86].mxu0 }
 0x210   : > { %v1955_v50 = vadd.f32 %v1954_v17, %v6303_v2  ;;  %v1956_v51 = vpop.f32.mrb[87].mxu0  ;;  %v4418_v33 = vpop.f32.mrb[84].mxu1  ;;  %v6492_v49 = vadd.f32 %v6407_v41, %v1952_v15 }
 0x211   : > { %v6495_v30 = vadd.f32 %v4418_v33, %v6319_v29  ;;  %v2281_v45 = vpop.f32.mrb[85].mxu1 }
 0x212   : > { %v6498_v54 = vadd.f32 %v2281_v45, %v6309_v52  ;;  %v4419_v48 = vpop.f32.mrb[86].mxu1  ;;  %v6501_v47 = vadd.f32 %v6412_v19, %v1955_v50 }
 0x213   : > { %v6504_v14 = vadd.f32 %v4419_v48, %v6323_v31  ;;  %v2284_v11 = vpop.f32.mrb[87].mxu1  ;;  %v2467_v3 = vsel %vm2424_vm6, %v6495_v30, 0.0 }
 0x214   : > { %v6509_v41 = vadd.f32 %v2284_v11, %v6313_v61  ;;  %2468 = vadd.xlane.f32.xlu0 %v2467_v3  ;;  %v2461_v31 = vsel %vm2424_vm6, %v6498_v54, 0.0 }
 0x215   : > { %v1959_v29 = vpop.f32.mrb[88].mxu0  ;;  %v2470_v52 = vsel %vm2424_vm6, %v6504_v14, 0.0 }
 0x216   : > { %v1960_v15 = vadd.f32 %v1959_v29, %v6303_v2  ;;  %v1961_v17 = vpop.f32.mrb[89].mxu0  ;;  %2471 = vadd.xlane.f32.xlu1 %v2470_v52  ;;  %v2464_v11 = vsel %vm2424_vm6, %v6509_v41, 0.0 }
 0x217   : > { %v1962_v19 = vpop.f32.mrb[90].mxu0 }
 0x218   : > { %v1963_v50 = vadd.f32 %v1962_v19, %v6303_v2  ;;  %v1964_v51 = vpop.f32.mrb[91].mxu0  ;;  %v4422_v33 = vpop.f32.mrb[88].mxu1  ;;  %2462 = vadd.xlane.f32.xlu0 %v2461_v31  ;;  %v6518_v61 = vadd.f32 %v6419_v18, %v1960_v15 }
 0x219   : > { %v6521_v45 = vadd.f32 %v4422_v33, %v6339_v7  ;;  %v2297_v48 = vpop.f32.mrb[89].mxu1 }
 0x21a   : > { %v6526_v3 = vadd.f32 %v2297_v48, %v6329_v8  ;;  %v4423_v29 = vpop.f32.mrb[90].mxu1  ;;  %2465 = vadd.xlane.f32.xlu1 %v2464_v11  ;;  %v6529_v52 = vadd.f32 %v6424_v37, %v1963_v50 }
 0x21b   : > { %v6532_v17 = vadd.f32 %v4423_v29, %v6343_v46  ;;  %v2300_v18 = vpop.f32.mrb[91].mxu1  ;;  %v2479_v7 = vsel %vm2424_vm6, %v6521_v45, 0.0 }
 0x21c   : > { %v6537_v15 = vadd.f32 %v2300_v18, %v6333_v55  ;;  %2480 = vadd.xlane.f32.xlu0 %v2479_v7  ;;  %v2473_v46 = vsel %vm2424_vm6, %v6526_v3, 0.0 }
 0x21d   : > { %v1967_v19 = vpop.f32.mrb[92].mxu0  ;;  %v2482_v8 = vsel %vm2424_vm6, %v6532_v17, 0.0 }
 0x21e   : > { %v1968_v31 = vadd.f32 %v1967_v19, %v6303_v2  ;;  %v1969_v51 = vpop.f32.mrb[93].mxu0  ;;  %2483 = vadd.xlane.f32.xlu1 %v2482_v8  ;;  %v2476_v18 = vsel %vm2424_vm6, %v6537_v15, 0.0 }
 0x21f   : > { %v1970_v37 = vpop.f32.mrb[94].mxu0 }
 0x220   : > { %v1971_v50 = vadd.f32 %v1970_v37, %v6303_v2  ;;  %v1972_v33 = vpop.f32.mrb[95].mxu0  ;;  %v4426_v48 = vpop.f32.mrb[92].mxu1  ;;  %2474 = vadd.xlane.f32.xlu0 %v2473_v46  ;;  %v6546_v55 = vadd.f32 %v6431_v40, %v1968_v31 }
 0x221   : > { %v6549_v11 = vadd.f32 %v4426_v48, %v6362_v28  ;;  %v2313_v29 = vpop.f32.mrb[93].mxu1 }
 0x222   : > { %v6554_v7 = vadd.f32 %v2313_v29, %v6350_v26  ;;  %v4427_v19 = vpop.f32.mrb[94].mxu1  ;;  %2477 = vadd.xlane.f32.xlu1 %v2476_v18  ;;  %v6557_v8 = vadd.f32 %v6436_v20, %v1971_v50 }
 0x223   : > { %v6560_v51 = vadd.f32 %v4427_v19, %v6367_v10  ;;  %v2316_v40 = vpop.f32.mrb[95].mxu1  ;;  %v2491_v28 = vsel %vm2424_vm6, %v6549_v11, 0.0 }
 0x224   : > { %v6565_v31 = vadd.f32 %v2316_v40, %v6355_v24  ;;  %2492 = vadd.xlane.f32.xlu0 %v2491_v28  ;;  %v2485_v10 = vsel %vm2424_vm6, %v6554_v7, 0.0 }
 0x225   : > { %v2008_v37 = vpop.f32.mrb[0].mxu0  ;;  %v2494_v26 = vsel %vm2424_vm6, %v6560_v51, 0.0 }
 0x226   : > { %v4484_v46 = vadd.f32 %v2008_v37, %v6303_v2  ;;  %v2010_v33 = vpop.f32.mrb[1].mxu0  ;;  %2495 = vadd.xlane.f32.xlu1 %v2494_v26  ;;  %v2488_v40 = vsel %vm2424_vm6, %v6565_v31, 0.0 }
 0x227   : > { %v2011_v20 = vpop.f32.mrb[2].mxu0 }
 0x228   : > { %v4485_v50 = vadd.f32 %v2011_v20, %v6303_v2  ;;  %v2013_v48 = vpop.f32.mrb[3].mxu0  ;;  %v4430_v29 = vpop.f32.mrb[96].mxu1  ;;  %2486 = vadd.xlane.f32.xlu0 %v2485_v10  ;;  %v6574_v24 = vadd.f32 %v4484_v46, %v6448_v63 }
 0x229   : > { %v6577_v18 = vadd.f32 %v4430_v29, %v6386_v1  ;;  %v2329_v19 = vpop.f32.mrb[97].mxu1 }
 0x22a   : > { %v6582_v28 = vadd.f32 %v2329_v19, %v6374_v27  ;;  %v4431_v37 = vpop.f32.mrb[98].mxu1  ;;  %2489 = vadd.xlane.f32.xlu1 %v2488_v40  ;;  %v6585_v26 = vadd.f32 %v4485_v50, %v6455_v39  ;;  %v2425_v27 = vsel %vm2424_vm6, %v6574_v24, 0.0 }
 0x22b   : > { %v6588_v33 = vadd.f32 %v4431_v37, %v6391_v44  ;;  %v2332_v63 = vpop.f32.mrb[99].mxu1  ;;  %v2503_v1 = vsel %vm2424_vm6, %v6577_v18, 0.0 }
 0x22c   : > { %v6593_v46 = vadd.f32 %v2332_v63, %v6379_v23  ;;  %2504 = vadd.xlane.f32.xlu0 %v2503_v1  ;;  %v2497_v44 = vsel %vm2424_vm6, %v6582_v28, 0.0 }
 0x22d   : > { %v2016_v20 = vpop.f32.mrb[4].mxu0  ;;  %v2506_v63 = vsel %vm2424_vm6, %v6588_v33, 0.0 }
 0x22e   : > { %v4486_v10 = vadd.f32 %v2016_v20, %v6303_v2  ;;  %v2018_v48 = vpop.f32.mrb[5].mxu0  ;;  %2426 = vadd.xlane.f32.xlu1 %v2425_v27 }
 0x22f   : > { %v2019_v39 = vpop.f32.mrb[6].mxu0 }
 0x230   : > { %v4487_v50 = vadd.f32 %v2019_v39, %v6303_v2  ;;  %v2021_v29 = vpop.f32.mrb[7].mxu0  ;;  %v4434_v19 = vpop.f32.mrb[100].mxu1  ;;  %2498 = vadd.xlane.f32.xlu0 %v2497_v44  ;;  %v6602_v23 = vadd.f32 %v4486_v10, %v6443_v22 }
 0x231   : > { %v6605_v40 = vadd.f32 %v4434_v19, %v6410_v53  ;;  %v2345_v37 = vpop.f32.mrb[101].mxu1  ;;  %v2428_v53 = vsel %vm2424_vm6, %v6585_v26, 0.0 }
 0x232   : > { %v6610_v1 = vadd.f32 %v2345_v37, %v6398_v12  ;;  %v4435_v20 = vpop.f32.mrb[102].mxu1  ;;  %2507 = vadd.xlane.f32.xlu1 %v2506_v63  ;;  %v6613_v27 = vadd.f32 %v4487_v50, %v6450_v43  ;;  %v2500_v12 = vsel %vm2424_vm6, %v6593_v46, 0.0 }
 0x233   : > { %v6616_v48 = vadd.f32 %v4435_v20, %v6415_v0  ;;  %v2348_v22 = vpop.f32.mrb[103].mxu1  ;;  %v2515_v0 = vsel %vm2424_vm6, %v6605_v40, 0.0 }
 0x234   : > { %v6621_v10 = vadd.f32 %v2348_v22, %v6403_v58  ;;  %2429 = vadd.xlane.f32.xlu0 %v2428_v53 }
 0x235   : > { %v2024_v39 = vpop.f32.mrb[8].mxu0  ;;  %v2518_v22 = vsel %vm2424_vm6, %v6616_v48, 0.0 }
 0x236   : > { %v4488_v44 = vadd.f32 %v2024_v39, %v6303_v2  ;;  %v2026_v29 = vpop.f32.mrb[9].mxu0  ;;  %2501 = vadd.xlane.f32.xlu1 %v2500_v12 }
 0x237   : > { %v2027_v43 = vpop.f32.mrb[10].mxu0 }
 0x238   : > { %v6629_v50 = vadd.f32 %v4488_v44, %v6464_v9  ;;  %v4489_v19 = vadd.f32 %v2027_v43, %v6303_v2  ;;  %v2029_v58 = vpop.f32.mrb[11].mxu0  ;;  %v4438_v37 = vpop.f32.mrb[104].mxu1  ;;  %2516 = vadd.xlane.f32.xlu0 %v2515_v0 }
 0x239   : > { %v6633_v63 = vadd.f32 %v4438_v37, %v6434_v42  ;;  %v2361_v20 = vpop.f32.mrb[105].mxu1  ;;  %v2431_v42 = vsel %vm2424_vm6, %v6602_v23, 0.0 }
 0x23a   : > { %v6638_v53 = vadd.f32 %v4489_v19, %v6471_v21  ;;  %v6641_v39 = vadd.f32 %v2361_v20, %v6422_v36  ;;  %v4439_v9 = vpop.f32.mrb[106].mxu1  ;;  %2519 = vadd.xlane.f32.xlu1 %v2518_v22  ;;  %v2434_v21 = vsel %vm2424_vm6, %v6613_v27, 0.0 }
 0x23b   : > { %v6644_v12 = vadd.f32 %v4439_v9, %v6439_v57  ;;  %v2364_v44 = vpop.f32.mrb[107].mxu1  ;;  %v2509_v57 = vsel %vm2424_vm6, %v6610_v1, 0.0 }
 0x23c   : > { %v6649_v29 = vadd.f32 %v2364_v44, %v6427_v32  ;;  %2432 = vadd.xlane.f32.xlu0 %v2431_v42  ;;  %v2512_v44 = vsel %vm2424_vm6, %v6621_v10, 0.0 }
 0x23d   : > { %v2032_v43 = vpop.f32.mrb[12].mxu0 }
 0x23e   : > { %v4490_v36 = vadd.f32 %v2032_v43, %v6303_v2  ;;  %v2034_v0 = vpop.f32.mrb[13].mxu0  ;;  %2435 = vadd.xlane.f32.xlu1 %v2434_v21 }
 0x23f   : > { %v2035_v19 = vpop.f32.mrb[14].mxu0 }
 0x240   : > { %v6657_v58 = vadd.f32 %v4490_v36, %v6459_v56  ;;  %v4491_v37 = vadd.f32 %v2035_v19, %v6303_v2  ;;  %v2037_v32 = vpop.f32.mrb[15].mxu0  ;;  %v4442_v20 = vpop.f32.mrb[108].mxu1  ;;  %2510 = vadd.xlane.f32.xlu0 %v2509_v57 }
 0x241   : > { %v6661_v22 = vadd.f32 %v4442_v20, %v6462_v25  ;;  %v2377_v9 = vpop.f32.mrb[109].mxu1  ;;  %v2527_v25 = vsel %vm2424_vm6, %v6633_v63, 0.0 }
 0x242   : > { %v6666_v42 = vadd.f32 %v4491_v37, %v6466_v6  ;;  %v6669_v43 = vadd.f32 %v2377_v9, %v6446_v5  ;;  %v4443_v56 = vpop.f32.mrb[110].mxu1  ;;  %2513 = vadd.xlane.f32.xlu1 %v2512_v44  ;;  %v2530_v6 = vsel %vm2424_vm6, %v6644_v12, 0.0 }
 0x243   : > { %v6672_v21 = vadd.f32 %v4443_v56, %v6469_v13  ;;  %v2380_v36 = vpop.f32.mrb[111].mxu1  ;;  %v2437_v13 = vsel %vm2424_vm6, %v6629_v50, 0.0 }
 0x244   : > { %v6677_v0 = vadd.f32 %v2380_v36, %v6453_v62  ;;  %2528 = vadd.xlane.f32.xlu0 %v2527_v25  ;;  %v2440_v36 = vsel %vm2424_vm6, %v6638_v53, 0.0 }
 0x245   : > { %v2040_v19 = vpop.f32.mrb[16].mxu0 }
 0x246   : > { %v4492_v5 = vadd.f32 %v2040_v19, %v6303_v2  ;;  %v2042_v57 = vpop.f32.mrb[17].mxu0  ;;  %2531 = vadd.xlane.f32.xlu1 %v2530_v6 }
 0x247   : > { %v2043_v37 = vpop.f32.mrb[18].mxu0 }
 0x248   : > { %v6685_v32 = vadd.f32 %v4492_v5, %v6480_v16  ;;  %v4493_v20 = vadd.f32 %v2043_v37, %v6303_v2  ;;  %v2045_v62 = vpop.f32.mrb[19].mxu0  ;;  %v4446_v9 = vpop.f32.mrb[112].mxu1  ;;  %2438 = vadd.xlane.f32.xlu0 %v2437_v13 }
 0x249   : > { %v6689_v44 = vadd.f32 %v4446_v9, %v6492_v49  ;;  %v2393_v56 = vpop.f32.mrb[113].mxu1  ;;  %v2521_v49 = vsel %vm2424_vm6, %v6641_v39, 0.0 }
 0x24a   : > { %v6694_v25 = vadd.f32 %v4493_v20, %v6487_v60  ;;  %v6697_v19 = vadd.f32 %v2393_v56, %v6478_v34  ;;  %v4447_v16 = vpop.f32.mrb[114].mxu1  ;;  %2441 = vadd.xlane.f32.xlu1 %v2440_v36  ;;  %v2524_v60 = vsel %vm2424_vm6, %v6649_v29, 0.0 }
 0x24b   : > { %v6700_v6 = vadd.f32 %v4447_v16, %v6501_v47  ;;  %v2396_v5 = vpop.f32.mrb[115].mxu1  ;;  %v2539_v47 = vsel %vm2424_vm6, %v6661_v22, 0.0 }
 0x24c   : > { %v6705_v57 = vadd.f32 %v2396_v5, %v6485_v59  ;;  %2522 = vadd.xlane.f32.xlu0 %v2521_v49  ;;  %v2542_v5 = vsel %vm2424_vm6, %v6672_v21, 0.0 }
 0x24d   : > { %v2048_v37 = vpop.f32.mrb[20].mxu0 }
 0x24e   : > { %v4494_v34 = vadd.f32 %v2048_v37, %v6303_v2  ;;  %v2050_v13 = vpop.f32.mrb[21].mxu0  ;;  %2525 = vadd.xlane.f32.xlu1 %v2524_v60 }
 0x24f   : > { %v2051_v20 = vpop.f32.mrb[22].mxu0  ;;  %v2551_v13 = vsel %vm2424_vm6, %v6689_v44, 0.0 }
 0x250   : > { %v6713_v62 = vadd.f32 %v4494_v34, %v6475_v4  ;;  %v4495_v9 = vadd.f32 %v2051_v20, %v6303_v2  ;;  %v2053_v59 = vpop.f32.mrb[23].mxu0  ;;  %v4450_v56 = vpop.f32.mrb[116].mxu1  ;;  %2540 = vadd.xlane.f32.xlu0 %v2539_v47  ;;  %v2449_v20 = vsel %vm2424_vm6, %v6685_v32, 0.0  ;;  %v2452_v47 = vsel %vm2424_vm6, %v6694_v25, 0.0 }
 0x251   : > { %v6717_v36 = vadd.f32 %v4450_v56, %v6546_v55  ;;  %v2409_v16 = vpop.f32.mrb[117].mxu1  ;;  %v2443_v55 = vsel %vm2424_vm6, %v6657_v58, 0.0  ;;  %v2548_v59 = vsel %vm2424_vm6, %v6705_v57, 0.0 }
 0x252   : > { %v6722_v49 = vadd.f32 %v4495_v9, %v6482_v35  ;;  %v6725_v37 = vadd.f32 %v2409_v16, %v6518_v61  ;;  %v4451_v4 = vpop.f32.mrb[118].mxu1  ;;  %2543 = vadd.xlane.f32.xlu1 %v2542_v5  ;;  %v2446_v35 = vsel %vm2424_vm6, %v6666_v42, 0.0  ;;  %v2533_v61 = vsel %vm2424_vm6, %v6669_v43, 0.0 }
 0x253   : > { %v6728_v2 = vadd.f32 %v4451_v4, %v6557_v8  ;;  %v2412_v60 = vpop.f32.mrb[119].mxu1  ;;  %v2536_v8 = vsel %vm2424_vm6, %v6677_v0, 0.0  ;;  %v2545_v9 = vsel %vm2424_vm6, %v6697_v19, 0.0  ;;  %v2563_v56 = vsel %vm2424_vm6, %v6717_v36, 0.0 }
 0x254   : > { %v6733_v34 = vadd.f32 %v2412_v60, %v6529_v52  ;;  %2444 = vadd.xlane.f32.xlu0 %v2443_v55  ;;  %v2554_v52 = vsel %vm2424_vm6, %v6700_v6, 0.0  ;;  %v2455_v5 = vsel %vm2424_vm6, %v6713_v62, 0.0  ;;  %v2458_v4 = vsel %vm2424_vm6, %v6722_v49, 0.0 }
 0x255   : > { %v2566_v16 = vsel %vm2424_vm6, %v6728_v2, 0.0  ;;  %v2557_v60 = vsel %vm2424_vm6, %v6725_v37, 0.0 }
 0x256   : > { %2447 = vadd.xlane.f32.xlu1 %v2446_v35  ;;  %v2560_v55 = vsel %vm2424_vm6, %v6733_v34, 0.0 }
 0x258   : > { %2534 = vadd.xlane.f32.xlu0 %v2533_v61 }
 0x25a   : > { %2537 = vadd.xlane.f32.xlu1 %v2536_v8 }
 0x25c   : > { %2552 = vadd.xlane.f32.xlu0 %v2551_v13 }
 0x25e   : > { %2555 = vadd.xlane.f32.xlu1 %v2554_v52 }
 0x260   : > { %2450 = vadd.xlane.f32.xlu0 %v2449_v20 }
 0x262   : > { %2453 = vadd.xlane.f32.xlu1 %v2452_v47 }
 0x264   : > { %2546 = vadd.xlane.f32.xlu0 %v2545_v9 }
 0x266   : > { %2549 = vadd.xlane.f32.xlu1 %v2548_v59 }
 0x268   : > { %2564 = vadd.xlane.f32.xlu0 %v2563_v56 }
 0x26a   : > { %2567 = vadd.xlane.f32.xlu1 %v2566_v16 }
 0x26c   : > { %2456 = vadd.xlane.f32.xlu0 %v2455_v5 }
 0x26e   : > { %2459 = vadd.xlane.f32.xlu1 %v2458_v4 }
 0x270   : > { %2558 = vadd.xlane.f32.xlu0 %v2557_v60 }
 0x272   : > { %2561 = vadd.xlane.f32.xlu1 %v2560_v55 }
 0x2a1   : > { %v2469_v35 = vpop.xlane.xlu0 %2468 }
 0x2a2   : > { %v2584_v61 = vmul.f32 0.03125, %v2469_v35 }
 0x2a3   : > { %v2472_v8 = vpop.xlane.xlu1 %2471 }
 0x2a4   : > { %v6766_v13 = vsub.f32 %v6495_v30, %v2584_v61  ;;  %v2585_v52 = vmul.f32 0.03125, %v2472_v8 }
 0x2a5   : > { %v2463_v20 = vpop.xlane.xlu0 %2462 }
 0x2a6   : > { %v6769_v47 = vsub.f32 %v6504_v14, %v2585_v52  ;;  %v2582_v9 = vmul.f32 0.03125, %v2463_v20  ;;  %v2680_v59 = vmul.f32 %v6766_v13, %v6766_v13 }
 0x2a7   : > { %v2466_v56 = vpop.xlane.xlu1 %2465 }
 0x2a8   : > { %v6774_v16 = vsub.f32 %v6498_v54, %v2582_v9  ;;  %v2583_v5 = vmul.f32 0.03125, %v2466_v56  ;;  %v2756_v4 = vsel %vm2424_vm6, %v2680_v59, 0.0  ;;  %v2681_v30 = vmul.f32 %v6769_v47, %v6769_v47 }
 0x2a9   : > { %2757 = vadd.xlane.f32.xlu0 %v2756_v4  ;;  %v2481_v60 = vpop.xlane.xlu0 %2480 }
 0x2aa   : > { %v6780_v55 = vsub.f32 %v6509_v41, %v2583_v5  ;;  %v2588_v14 = vmul.f32 0.03125, %v2481_v60  ;;  %v2759_v35 = vsel %vm2424_vm6, %v2681_v30, 0.0  ;;  %v2678_v61 = vmul.f32 %v6774_v16, %v6774_v16 }
 0x2ab   : > { %v2484_v8 = vpop.xlane.xlu1 %2483  ;;  %2760 = vadd.xlane.f32.xlu1 %v2759_v35 }
 0x2ac   : > { %v6786_v54 = vsub.f32 %v6521_v45, %v2588_v14  ;;  %v2589_v52 = vmul.f32 0.03125, %v2484_v8  ;;  %v2750_v20 = vsel %vm2424_vm6, %v2678_v61, 0.0  ;;  %v2679_v9 = vmul.f32 %v6780_v55, %v6780_v55 }
 0x2ad   : > { %2751 = vadd.xlane.f32.xlu0 %v2750_v20  ;;  %v2475_v41 = vpop.xlane.xlu0 %2474 }
 0x2ae   : > { %v6792_v59 = vsub.f32 %v6532_v17, %v2589_v52  ;;  %v2586_v56 = vmul.f32 0.03125, %v2475_v41  ;;  %v2753_v5 = vsel %vm2424_vm6, %v2679_v9, 0.0  ;;  %v2684_v4 = vmul.f32 %v6786_v54, %v6786_v54 }
 0x2af   : > { %v2478_v30 = vpop.xlane.xlu1 %2477  ;;  %2754 = vadd.xlane.f32.xlu1 %v2753_v5 }
 0x2b0   : > { %v6798_v45 = vsub.f32 %v6526_v3, %v2586_v56  ;;  %v2587_v60 = vmul.f32 0.03125, %v2478_v30  ;;  %v2768_v14 = vsel %vm2424_vm6, %v2684_v4, 0.0  ;;  %v2685_v35 = vmul.f32 %v6792_v59, %v6792_v59 }
 0x2b1   : > { %2769 = vadd.xlane.f32.xlu0 %v2768_v14  ;;  %v2493_v17 = vpop.xlane.xlu0 %2492 }
 0x2b2   : > { %v6804_v61 = vsub.f32 %v6537_v15, %v2587_v60  ;;  %v2592_v8 = vmul.f32 0.03125, %v2493_v17  ;;  %v2771_v52 = vsel %vm2424_vm6, %v2685_v35, 0.0  ;;  %v2682_v20 = vmul.f32 %v6798_v45, %v6798_v45 }
 0x2b3   : > { %v2496_v9 = vpop.xlane.xlu1 %2495  ;;  %2772 = vadd.xlane.f32.xlu1 %v2771_v52 }
 0x2b4   : > { %v6810_v3 = vsub.f32 %v6549_v11, %v2592_v8  ;;  %v2593_v41 = vmul.f32 0.03125, %v2496_v9  ;;  %v2762_v56 = vsel %vm2424_vm6, %v2682_v20, 0.0  ;;  %v2683_v5 = vmul.f32 %v6804_v61, %v6804_v61 }
 0x2b5   : > { %2763 = vadd.xlane.f32.xlu0 %v2762_v56  ;;  %v2487_v15 = vpop.xlane.xlu0 %2486 }
 0x2b6   : > { %v6816_v4 = vsub.f32 %v6560_v51, %v2593_v41  ;;  %v2590_v30 = vmul.f32 0.03125, %v2487_v15  ;;  %v2765_v60 = vsel %vm2424_vm6, %v2683_v5, 0.0  ;;  %v2688_v14 = vmul.f32 %v6810_v3, %v6810_v3 }
 0x2b7   : > { %v2490_v35 = vpop.xlane.xlu1 %2489  ;;  %2766 = vadd.xlane.f32.xlu1 %v2765_v60 }
 0x2b8   : > { %v6822_v11 = vsub.f32 %v6554_v7, %v2590_v30  ;;  %v2591_v17 = vmul.f32 0.03125, %v2490_v35  ;;  %v2780_v8 = vsel %vm2424_vm6, %v2688_v14, 0.0  ;;  %v2689_v52 = vmul.f32 %v6816_v4, %v6816_v4 }
 0x2b9   : > { %2781 = vadd.xlane.f32.xlu0 %v2780_v8  ;;  %v2505_v51 = vpop.xlane.xlu0 %2504 }
 0x2ba   : > { %v6828_v20 = vsub.f32 %v6565_v31, %v2591_v17  ;;  %v2596_v9 = vmul.f32 0.03125, %v2505_v51  ;;  %v2783_v41 = vsel %vm2424_vm6, %v2689_v52, 0.0  ;;  %v2686_v56 = vmul.f32 %v6822_v11, %v6822_v11 }
 0x2bb   : > { %v2427_v5 = vpop.xlane.xlu1 %2426  ;;  %2784 = vadd.xlane.f32.xlu1 %v2783_v41 }
 0x2bc   : > { %v6834_v7 = vsub.f32 %v6577_v18, %v2596_v9  ;;  %v2570_v15 = vmul.f32 0.03125, %v2427_v5  ;;  %v2774_v30 = vsel %vm2424_vm6, %v2686_v56, 0.0  ;;  %v2687_v60 = vmul.f32 %v6828_v20, %v6828_v20 }
 0x2bd   : > { %2775 = vadd.xlane.f32.xlu0 %v2774_v30  ;;  %v2499_v31 = vpop.xlane.xlu0 %2498 }
 0x2be   : > { %v6840_v14 = vsub.f32 %v6574_v24, %v2570_v15  ;;  %v2594_v35 = vmul.f32 0.03125, %v2499_v31  ;;  %v2777_v17 = vsel %vm2424_vm6, %v2687_v60, 0.0  ;;  %v2692_v8 = vmul.f32 %v6834_v7, %v6834_v7 }
 0x2bf   : > { %v2508_v52 = vpop.xlane.xlu1 %2507  ;;  %2778 = vadd.xlane.f32.xlu1 %v2777_v17 }
 0x2c0   : > { %v6846_v18 = vsub.f32 %v6582_v28, %v2594_v35  ;;  %v2597_v51 = vmul.f32 0.03125, %v2508_v52  ;;  %v2792_v9 = vsel %vm2424_vm6, %v2692_v8, 0.0  ;;  %v2666_v41 = vmul.f32 %v6840_v14, %v6840_v14 }
 0x2c1   : > { %2793 = vadd.xlane.f32.xlu0 %v2792_v9  ;;  %v2430_v24 = vpop.xlane.xlu0 %2429 }
 0x2c2   : > { %v6852_v56 = vsub.f32 %v6588_v33, %v2597_v51  ;;  %v2571_v5 = vmul.f32 0.03125, %v2430_v24  ;;  %v2714_v30 = vsel %vm2424_vm6, %v2666_v41, 0.0  ;;  %v2690_v35 = vmul.f32 %v6846_v18, %v6846_v18 }
 0x2c3   : > { %v2502_v15 = vpop.xlane.xlu1 %2501 }
 0x2c4   : > { %v6856_v60 = vsub.f32 %v6585_v26, %v2571_v5  ;;  %v2595_v28 = vmul.f32 0.03125, %v2502_v15  ;;  %v2693_v31 = vmul.f32 %v6852_v56, %v6852_v56  ;;  %v2786_v24 = vsel %vm2424_vm6, %v2690_v35, 0.0 }
 0x2c5   : > { %2715 = vadd.xlane.f32.xlu0 %v2714_v30  ;;  %v2517_v17 = vpop.xlane.xlu0 %2516 }
 0x2c6   : > { %v6863_v8 = vsub.f32 %v6593_v46, %v2595_v28  ;;  %v2600_v33 = vmul.f32 0.03125, %v2517_v17  ;;  %v2795_v52 = vsel %vm2424_vm6, %v2693_v31, 0.0  ;;  %v2667_v51 = vmul.f32 %v6856_v60, %v6856_v60 }
 0x2c7   : > { %v2520_v26 = vpop.xlane.xlu1 %2519  ;;  %2796 = vadd.xlane.f32.xlu1 %v2795_v52 }
 0x2c8   : > { %v6869_v9 = vsub.f32 %v6605_v40, %v2600_v33  ;;  %v2601_v41 = vmul.f32 0.03125, %v2520_v26  ;;  %v2717_v15 = vsel %vm2424_vm6, %v2667_v51, 0.0  ;;  %v2691_v31 = vmul.f32 %v6863_v8, %v6863_v8 }
 0x2c9   : > { %2787 = vadd.xlane.f32.xlu0 %v2786_v24  ;;  %v2433_v5 = vpop.xlane.xlu0 %2432 }
 0x2ca   : > { %v6874_v46 = vsub.f32 %v6616_v48, %v2601_v41  ;;  %v2572_v30 = vmul.f32 0.03125, %v2433_v5  ;;  %v2696_v28 = vmul.f32 %v6869_v9, %v6869_v9  ;;  %v2789_v41 = vsel %vm2424_vm6, %v2691_v31, 0.0 }
 0x2cb   : > { %v2436_v17 = vpop.xlane.xlu1 %2435  ;;  %2718 = vadd.xlane.f32.xlu1 %v2717_v15 }
 0x2cc   : > { %v6881_v40 = vsub.f32 %v6602_v23, %v2572_v30  ;;  %v2573_v35 = vmul.f32 0.03125, %v2436_v17  ;;  %v2804_v33 = vsel %vm2424_vm6, %v2696_v28, 0.0  ;;  %v2697_v48 = vmul.f32 %v6874_v46, %v6874_v46 }
 0x2cd   : > { %2805 = vadd.xlane.f32.xlu0 %v2804_v33  ;;  %v2511_v52 = vpop.xlane.xlu0 %2510 }
 0x2ce   : > { %v6887_v51 = vsub.f32 %v6613_v27, %v2573_v35  ;;  %v2598_v26 = vmul.f32 0.03125, %v2511_v52  ;;  %v2668_v24 = vmul.f32 %v6881_v40, %v6881_v40  ;;  %v2807_v17 = vsel %vm2424_vm6, %v2697_v48, 0.0 }
 0x2cf   : > { %v2514_v5 = vpop.xlane.xlu1 %2513  ;;  %2790 = vadd.xlane.f32.xlu1 %v2789_v41 }
 0x2d0   : > { %v6893_v23 = vsub.f32 %v6610_v1, %v2598_v26  ;;  %v2599_v15 = vmul.f32 0.03125, %v2514_v5  ;;  %v2720_v30 = vsel %vm2424_vm6, %v2668_v24, 0.0  ;;  %v2669_v33 = vmul.f32 %v6887_v51, %v6887_v51 }
 0x2d1   : > { %2721 = vadd.xlane.f32.xlu0 %v2720_v30  ;;  %v2529_v28 = vpop.xlane.xlu0 %2528 }
 0x2d2   : > { %v6898_v27 = vsub.f32 %v6621_v10, %v2599_v15  ;;  %v2604_v35 = vmul.f32 0.03125, %v2529_v28  ;;  %v2694_v31 = vmul.f32 %v6893_v23, %v6893_v23  ;;  %v2723_v15 = vsel %vm2424_vm6, %v2669_v33, 0.0 }
 0x2d3   : > { %v2532_v52 = vpop.xlane.xlu1 %2531  ;;  %2808 = vadd.xlane.f32.xlu1 %v2807_v17 }
 0x2d4   : > { %v6905_v1 = vsub.f32 %v6633_v63, %v2604_v35  ;;  %v2605_v26 = vmul.f32 0.03125, %v2532_v52  ;;  %v2798_v41 = vsel %vm2424_vm6, %v2694_v31, 0.0  ;;  %v2695_v10 = vmul.f32 %v6898_v27, %v6898_v27 }
 0x2d5   : > { %2799 = vadd.xlane.f32.xlu0 %v2798_v41  ;;  %v2439_v48 = vpop.xlane.xlu0 %2438 }
 0x2d6   : > { %v6911_v24 = vsub.f32 %v6644_v12, %v2605_v26  ;;  %v2574_v5 = vmul.f32 0.03125, %v2439_v48  ;;  %v2700_v30 = vmul.f32 %v6905_v1, %v6905_v1  ;;  %v2801_v52 = vsel %vm2424_vm6, %v2695_v10, 0.0 }
 0x2d7   : > { %v2442_v28 = vpop.xlane.xlu1 %2441  ;;  %2724 = vadd.xlane.f32.xlu1 %v2723_v15 }
 0x2d8   : > { %v6917_v63 = vsub.f32 %v6629_v50, %v2574_v5  ;;  %v2575_v17 = vmul.f32 0.03125, %v2442_v28  ;;  %v2816_v35 = vsel %vm2424_vm6, %v2700_v30, 0.0  ;;  %v2701_v41 = vmul.f32 %v6911_v24, %v6911_v24 }
 0x2d9   : > { %2817 = vadd.xlane.f32.xlu0 %v2816_v35  ;;  %v2523_v31 = vpop.xlane.xlu0 %2522 }
 0x2da   : > { %v6922_v12 = vsub.f32 %v6638_v53, %v2575_v17  ;;  %v2602_v26 = vmul.f32 0.03125, %v2523_v31  ;;  %v2670_v33 = vmul.f32 %v6917_v63, %v6917_v63  ;;  %v2819_v17 = vsel %vm2424_vm6, %v2701_v41, 0.0 }
 0x2db   : > { %v2526_v48 = vpop.xlane.xlu1 %2525  ;;  %2802 = vadd.xlane.f32.xlu1 %v2801_v52 }
 0x2dc   : > { %v6929_v50 = vsub.f32 %v6641_v39, %v2602_v26  ;;  %v2603_v5 = vmul.f32 0.03125, %v2526_v48  ;;  %v2726_v15 = vsel %vm2424_vm6, %v2670_v33, 0.0  ;;  %v2671_v53 = vmul.f32 %v6922_v12, %v6922_v12 }
 0x2dd   : > { %2727 = vadd.xlane.f32.xlu0 %v2726_v15  ;;  %v2541_v10 = vpop.xlane.xlu0 %2540 }
 0x2de   : > { %v6935_v30 = vsub.f32 %v6649_v29, %v2603_v5  ;;  %v2608_v28 = vmul.f32 0.03125, %v2541_v10  ;;  %v2698_v35 = vmul.f32 %v6929_v50, %v6929_v50  ;;  %v2729_v48 = vsel %vm2424_vm6, %v2671_v53, 0.0 }
 0x2df   : > { %v2544_v31 = vpop.xlane.xlu1 %2543  ;;  %2820 = vadd.xlane.f32.xlu1 %v2819_v17 }
 0x2e0   : > { %v6941_v39 = vsub.f32 %v6661_v22, %v2608_v28  ;;  %v2609_v52 = vmul.f32 0.03125, %v2544_v31  ;;  %v2810_v26 = vsel %vm2424_vm6, %v2698_v35, 0.0  ;;  %v2699_v15 = vmul.f32 %v6935_v30, %v6935_v30 }
 0x2e1   : > { %2811 = vadd.xlane.f32.xlu0 %v2810_v26  ;;  %v2445_v33 = vpop.xlane.xlu0 %2444 }
 0x2e2   : > { %v6946_v29 = vsub.f32 %v6672_v21, %v2609_v52  ;;  %v2576_v5 = vmul.f32 0.03125, %v2445_v33  ;;  %v2704_v41 = vmul.f32 %v6941_v39, %v6941_v39  ;;  %v2813_v52 = vsel %vm2424_vm6, %v2699_v15, 0.0 }
 0x2e3   : > { %v2448_v10 = vpop.xlane.xlu1 %2447  ;;  %2730 = vadd.xlane.f32.xlu1 %v2729_v48 }
 0x2e4   : > { %v6953_v22 = vsub.f32 %v6657_v58, %v2576_v5  ;;  %v2577_v28 = vmul.f32 0.03125, %v2448_v10  ;;  %v2828_v17 = vsel %vm2424_vm6, %v2704_v41, 0.0  ;;  %v2705_v21 = vmul.f32 %v6946_v29, %v6946_v29 }
 0x2e5   : > { %2829 = vadd.xlane.f32.xlu0 %v2828_v17  ;;  %v2535_v53 = vpop.xlane.xlu0 %2534 }
 0x2e6   : > { %v6959_v35 = vsub.f32 %v6666_v42, %v2577_v28  ;;  %v2606_v31 = vmul.f32 0.03125, %v2535_v53  ;;  %v2672_v26 = vmul.f32 %v6953_v22, %v6953_v22  ;;  %v2831_v10 = vsel %vm2424_vm6, %v2705_v21, 0.0 }
 0x2e7   : > { %v2538_v33 = vpop.xlane.xlu1 %2537  ;;  %2814 = vadd.xlane.f32.xlu1 %v2813_v52 }
 0x2e8   : > { %v6965_v58 = vsub.f32 %v6669_v43, %v2606_v31  ;;  %v2607_v48 = vmul.f32 0.03125, %v2538_v33  ;;  %v2732_v5 = vsel %vm2424_vm6, %v2672_v26, 0.0  ;;  %v2673_v17 = vmul.f32 %v6959_v35, %v6959_v35 }
 0x2e9   : > { %2733 = vadd.xlane.f32.xlu0 %v2732_v5  ;;  %v2553_v41 = vpop.xlane.xlu0 %2552 }
 0x2ea   : > { %v6970_v42 = vsub.f32 %v6677_v0, %v2607_v48  ;;  %v2612_v28 = vmul.f32 0.03125, %v2553_v41  ;;  %v2702_v15 = vmul.f32 %v6965_v58, %v6965_v58  ;;  %v2735_v48 = vsel %vm2424_vm6, %v2673_v17, 0.0 }
 0x2eb   : > { %v2556_v53 = vpop.xlane.xlu1 %2555  ;;  %2832 = vadd.xlane.f32.xlu1 %v2831_v10 }
 0x2ec   : > { %v6977_v43 = vsub.f32 %v6689_v44, %v2612_v28  ;;  %v2613_v31 = vmul.f32 0.03125, %v2556_v53  ;;  %v2822_v52 = vsel %vm2424_vm6, %v2702_v15, 0.0  ;;  %v2703_v0 = vmul.f32 %v6970_v42, %v6970_v42 }
 0x2ed   : > { %2823 = vadd.xlane.f32.xlu0 %v2822_v52  ;;  %v2451_v21 = vpop.xlane.xlu0 %2450 }
 0x2ee   : > { %v6983_v26 = vsub.f32 %v6700_v6, %v2613_v31  ;;  %v2578_v33 = vmul.f32 0.03125, %v2451_v21  ;;  %v2708_v5 = vmul.f32 %v6977_v43, %v6977_v43  ;;  %v2825_v53 = vsel %vm2424_vm6, %v2703_v0, 0.0 }
 0x2ef   : > { %v2454_v41 = vpop.xlane.xlu1 %2453  ;;  %2736 = vadd.xlane.f32.xlu1 %v2735_v48 }
 0x2f0   : > { %8133 = vst [vmem:[#allocation3_spill] sm:$0xff] %v6983_v26  ;;  %v6989_v44 = vsub.f32 %v6685_v32, %v2578_v33  ;;  %v2579_v10 = vmul.f32 0.03125, %v2454_v41  ;;  %v2840_v28 = vsel %vm2424_vm6, %v2708_v5, 0.0  ;;  %v2709_v52 = vmul.f32 %v6983_v26, %v6983_v26 }
 0x2f1   : > { %2841 = vadd.xlane.f32.xlu0 %v2840_v28  ;;  %v2547_v15 = vpop.xlane.xlu0 %2546 }
 0x2f2   : > { %8134 = vst [vmem:[#allocation2_spill] sm:$0xff] %v6989_v44  ;;  %v6994_v6 = vsub.f32 %v6694_v25, %v2579_v10  ;;  %v2610_v31 = vmul.f32 0.03125, %v2547_v15  ;;  %v2674_v17 = vmul.f32 %v6989_v44, %v6989_v44  ;;  %v2843_v5 = vsel %vm2424_vm6, %v2709_v52, 0.0 }
 0x2f3   : > { %v2550_v21 = vpop.xlane.xlu1 %2549  ;;  %2826 = vadd.xlane.f32.xlu1 %v2825_v53 }
 0x2f4   : > { %8135 = vst [vmem:[#allocation4_spill] sm:$0xff] %v6994_v6  ;;  %v7001_v32 = vsub.f32 %v6697_v19, %v2610_v31  ;;  %v2611_v33 = vmul.f32 0.03125, %v2550_v21  ;;  %v2738_v48 = vsel %vm2424_vm6, %v2674_v17, 0.0  ;;  %v2675_v10 = vmul.f32 %v6994_v6, %v6994_v6 }
 0x2f5   : > { %2739 = vadd.xlane.f32.xlu0 %v2738_v48  ;;  %v2565_v0 = vpop.xlane.xlu0 %2564 }
 0x2f6   : > { %8136 = vst [vmem:[#allocation5_spill] sm:$0xff] %v7001_v32  ;;  %v7005_v25 = vsub.f32 %v6705_v57, %v2611_v33  ;;  %v2706_v41 = vmul.f32 %v7001_v32, %v7001_v32  ;;  %v2741_v31 = vsel %vm2424_vm6, %v2675_v10, 0.0  ;;  %v2616_v17 = vmul.f32 0.03125, %v2565_v0 }
 0x2f7   : > { %v2568_v28 = vpop.xlane.xlu1 %2567  ;;  %2844 = vadd.xlane.f32.xlu1 %v2843_v5 }
 0x2f8   : > { %8137 = vst [vmem:[#allocation6_spill] sm:$0xff] %v7005_v25  ;;  %v2834_v19 = vsel %vm2424_vm6, %v2706_v41, 0.0  ;;  %v2707_v57 = vmul.f32 %v7005_v25, %v7005_v25  ;;  %v2617_v48 = vmul.f32 0.03125, %v2568_v28 }
 0x2f9   : > { %2835 = vadd.xlane.f32.xlu0 %v2834_v19  ;;  %v2457_v15 = vpop.xlane.xlu0 %2456 }
 0x2fa   : > { %v2580_v53 = vmul.f32 0.03125, %v2457_v15  ;;  %v2837_v19 = vsel %vm2424_vm6, %v2707_v57, 0.0  ;;  %v7026_v15 = vsub.f32 %v6717_v36, %v2616_v17 }
 0x2fb   : > { %v2460_v52 = vpop.xlane.xlu1 %2459  ;;  %2742 = vadd.xlane.f32.xlu1 %v2741_v31 }
 0x2fc   : > { %v7017_v21 = vsub.f32 %v6713_v62, %v2580_v53  ;;  %v2581_v33 = vmul.f32 0.03125, %v2460_v52  ;;  %8140 = vst [vmem:[#allocation9_spill] sm:$0xff] %v7026_v15  ;;  %v2712_v52 = vmul.f32 %v7026_v15, %v7026_v15 }
 0x2fd   : > { %v2559_v6 = vpop.xlane.xlu0 %2558 }
 0x2fe   : > { %8138 = vst [vmem:[#allocation7_spill] sm:$0xff] %v7017_v21  ;;  %v7020_v5 = vsub.f32 %v6722_v49, %v2581_v33  ;;  %v2614_v41 = vmul.f32 0.03125, %v2559_v6  ;;  %v2676_v10 = vmul.f32 %v7017_v21, %v7017_v21  ;;  %v7035_v6 = vsub.f32 %v6728_v2, %v2617_v48 }
 0x2ff   : > { %v2562_v0 = vpop.xlane.xlu1 %2561  ;;  %2838 = vadd.xlane.f32.xlu1 %v2837_v19  ;;  %v2852_v33 = vsel %vm2424_vm6, %v2712_v52, 0.0 }
 0x300   : > { %8139 = vst [vmem:[#allocation8_spill] sm:$0xff] %v7020_v5  ;;  %v7029_v62 = vsub.f32 %v6725_v37, %v2614_v41  ;;  %v2615_v53 = vmul.f32 0.03125, %v2562_v0  ;;  %v2744_v28 = vsel %vm2424_vm6, %v2676_v10, 0.0  ;;  %v2677_v49 = vmul.f32 %v7020_v5, %v7020_v5  ;;  %8142 = vst [vmem:[#allocation11_spill] sm:$0xff] %v7035_v6 }
 0x301   : > { %2745 = vadd.xlane.f32.xlu0 %v2744_v28 }
 0x302   : > { %8141 = vst [vmem:[#allocation10_spill] sm:$0xff] %v7029_v62  ;;  %v7038_v31 = vsub.f32 %v6733_v34, %v2615_v53  ;;  %v2747_v36 = vsel %vm2424_vm6, %v2677_v49, 0.0  ;;  %v2710_v57 = vmul.f32 %v7029_v62, %v7029_v62  ;;  %v2713_v34 = vmul.f32 %v7035_v6, %v7035_v6 }
 0x303   : > { %2748 = vadd.xlane.f32.xlu1 %v2747_v36  ;;  %v3388_v36 = vsub.s32 1, %v6293_v38 }
 0x304   : > { %8143 = vst [vmem:[#allocation12_spill] sm:$0xff] %v7038_v31  ;;  %v2846_v37 = vsel %vm2424_vm6, %v2710_v57, 0.0  ;;  %v2711_v17 = vmul.f32 %v7038_v31, %v7038_v31  ;;  %v2855_v48 = vsel %vm2424_vm6, %v2713_v34, 0.0  ;;  %v5003_v34 = vld [vmem:[%s8060_s3] sm:$0x7] }
 0x305   : > { %2847 = vadd.xlane.f32.xlu0 %v2846_v37 }
 0x306   : > { %v2849_v2 = vsel %vm2424_vm6, %v2711_v17, 0.0  ;;  %v3440_v17 = vsub.s32 2, %v6293_v38 }
 0x307   : > { %2850 = vadd.xlane.f32.xlu1 %v2849_v2 }
 0x309   : > { %2853 = vadd.xlane.f32.xlu0 %v2852_v33  ;;  %v7064_v33 = vrot.slane %v5003_v34, %v3388_v36 }
 0x30b   : > { %2856 = vadd.xlane.f32.xlu1 %v2855_v48 }
 0x336   : > { %v2758_v41 = vpop.xlane.xlu0 %2757 }
 0x337   : > { %v2872_v19 = vmul.f32 0.032258064, %v2758_v41 }
 0x338   : > { %v2761_v10 = vpop.xlane.xlu1 %2760 }
 0x339   : > { %4686 = vrsqrt.f32 %v2872_v19  ;;  %v2873_v0 = vmul.f32 0.032258064, %v2761_v10  ;;  %vm3006_vm7 = vcmp.eq.f32.partialorder %v2872_v19, inf  ;;  %vm3008_vm8 = vcmp.eq.f32.partialorder %v2872_v19, 0.0 }
 0x33a   : > { %v2752_v53 = vpop.xlane.xlu0 %2751 }
 0x33b   : > { %v2870_v28 = vmul.f32 0.032258064, %v2752_v53  ;;  %4688 = vrsqrt.f32 %v2873_v0  ;;  %v7068_v53 = vrot.slane %v5003_v34, %v3440_v17  ;;  %vm3013_vm9 = vcmp.eq.f32.partialorder %v2873_v0, inf }
 0x33c   : > { %v2755_v49 = vpop.xlane.xlu1 %2754  ;;  %vm3015_vm10 = vcmp.eq.f32.partialorder %v2873_v0, 0.0  ;;  %v3016_v15 = vand.u32 2147483648, %v2873_v0 }
 0x33d   : > { %4690 = vrsqrt.f32 %v2870_v28  ;;  %v7054_v57 = vmul.f32 0.032258064, %v2755_v49  ;;  %vm2992_vm11 = vcmp.eq.f32.partialorder %v2870_v28, inf  ;;  %vm2994_vm12 = vcmp.eq.f32.partialorder %v2870_v28, 0.0 }
 0x33e   : > { %v2770_v37 = vpop.xlane.xlu0 %2769  ;;  %v2995_v17 = vand.u32 2147483648, %v2870_v28 }
 0x33f   : > { %v7057_v52 = vmul.f32 0.032258064, %v2770_v37  ;;  %4692 = vrsqrt.f32 %v7054_v57  ;;  %v3009_v37 = vand.u32 2147483648, %v2872_v19  ;;  %vm2999_vm13 = vcmp.eq.f32.partialorder %v7054_v57, inf }
 0x340   : > { %v2773_v2 = vpop.xlane.xlu1 %2772  ;;  %vm3001_vm14 = vcmp.eq.f32.partialorder %v7054_v57, 0.0 }
 0x341   : > { %4694 = vrsqrt.f32 %v7057_v52  ;;  %v7066_v48 = vmul.f32 0.032258064, %v2773_v2  ;;  %vm3034_vm15 = vcmp.eq.f32.partialorder %v7057_v52, inf  ;;  %vm3036_vm0 = vcmp.eq.f32.partialorder %v7057_v52, 0.0 }
 0x342   : > { %v2764_v41 = vpop.xlane.xlu0 %2763  ;;  %v3037_v32 = vand.u32 2147483648, %v7057_v52 }
 0x343   : > { %v4687_v10 = vpop.eup %4686  ;;  %v7070_v38 = vmul.f32 0.032258064, %v2764_v41  ;;  %4696 = vrsqrt.f32 %v7066_v48  ;;  %vm3041_vm1 = vcmp.eq.f32.partialorder %v7066_v48, inf  ;;  %vm3043_vm2 = vcmp.eq.f32.partialorder %v7066_v48, 0.0 }
 0x344   : > { %v3005_v49 = vmul.f32 %v4687_v10, %v2872_v19  ;;  %v2767_v6 = vpop.xlane.xlu1 %2766 }
 0x345   : > { %4698 = vrsqrt.f32 %v7070_v38  ;;  %v4689_v36 = vpop.eup %4688  ;;  %v7074_v34 = vmul.f32 0.032258064, %v2767_v6  ;;  %v3002_v6 = vand.u32 2147483648, %v7054_v57  ;;  %vm3020_vm3 = vcmp.eq.f32.partialorder %v7070_v38, inf }
 0x346   : > { %v3007_v2 = vsel %vm3006_vm7, %v2872_v19, %v3005_v49  ;;  %v2782_v31 = vpop.xlane.xlu0 %2781  ;;  %v3012_v62 = vmul.f32 %v4689_v36, %v2873_v0  ;;  %vm3022_vm4 = vcmp.eq.f32.partialorder %v7070_v38, 0.0 }
 0x347   : > { %v4691_v41 = vpop.eup %4690  ;;  %v3010_v10 = vsel %vm3008_vm8, %v3009_v37, %v3007_v2  ;;  %v7078_v5 = vmul.f32 0.032258064, %v2782_v31  ;;  %4700 = vrsqrt.f32 %v7074_v34  ;;  %vm3027_vm5 = vcmp.eq.f32.partialorder %v7074_v34, inf }
 0x348   : > { %v3256_v21 = vadd.f32 1e-06, %v3010_v10  ;;  %v2991_v25 = vmul.f32 %v4691_v41, %v2870_v28  ;;  %v3014_v49 = vsel %vm3013_vm9, %v2873_v0, %v3012_v62  ;;  %v2785_v19 = vpop.xlane.xlu1 %2784  ;;  %vm3029_vm6 = vcmp.eq.f32.partialorder %v7074_v34, 0.0 }
 0x349   : > { %4702 = vrsqrt.f32 %v7078_v5  ;;  %v4693_v37 = vpop.eup %4692  ;;  %v3017_v31 = vsel %vm3015_vm10, %v3016_v15, %v3014_v49  ;;  %v3044_v15 = vand.u32 2147483648, %v7066_v48  ;;  %vm3062_vm7 = vcmp.eq.f32.partialorder %v7078_v5, inf }
 0x34a   : > { %4704 = vrcp.f32 %v3256_v21  ;;  %v2993_v36 = vsel %vm2992_vm11, %v2870_v28, %v2991_v25  ;;  %v3257_v41 = vadd.f32 1e-06, %v3017_v31  ;;  %v2998_v62 = vmul.f32 %v4693_v37, %v7054_v57  ;;  %v2776_v0 = vpop.xlane.xlu0 %2775 }
 0x34b   : > { %v4695_v2 = vpop.eup %4694  ;;  %v2996_v10 = vsel %vm2994_vm12, %v2995_v17, %v2993_v36  ;;  %v7094_v21 = vmul.f32 0.032258064, %v2785_v19  ;;  %vm3064_vm8 = vcmp.eq.f32.partialorder %v7078_v5, 0.0 }
 0x34c   : > { %v3254_v26 = vadd.f32 1e-06, %v2996_v10  ;;  %v3033_v44 = vmul.f32 %v4695_v2, %v7057_v52  ;;  %4706 = vrcp.f32 %v3257_v41  ;;  %v3000_v25 = vsel %vm2999_vm13, %v7054_v57, %v2998_v62 }
 0x34d   : > { %v4697_v28 = vpop.eup %4696  ;;  %v3003_v17 = vsel %vm3001_vm14, %v3002_v6, %v3000_v25  ;;  %v7113_v57 = vmul.f32 0.032258064, %v2776_v0  ;;  %v3023_v6 = vand.u32 2147483648, %v7070_v38  ;;  %vm3069_vm9 = vcmp.eq.f32.partialorder %v7094_v21, inf }
 0x34e   : > { %4708 = vrcp.f32 %v3254_v26  ;;  %v3035_v49 = vsel %vm3034_vm15, %v7057_v52, %v3033_v44  ;;  %v3255_v37 = vadd.f32 1e-06, %v3003_v17  ;;  %v3040_v36 = vmul.f32 %v4697_v28, %v7066_v48 }
 0x34f   : > { %v4699_v19 = vpop.eup %4698  ;;  %v3038_v31 = vsel %vm3036_vm0, %v3037_v32, %v3035_v49  ;;  %4710 = vrsqrt.f32 %v7094_v21  ;;  %v3030_v28 = vand.u32 2147483648, %v7074_v34  ;;  %vm3071_vm10 = vcmp.eq.f32.partialorder %v7094_v21, 0.0 }
 0x350   : > { %v3260_v2 = vadd.f32 1e-06, %v3038_v31  ;;  %v3019_v26 = vmul.f32 %v4699_v19, %v7070_v38  ;;  %4712 = vrcp.f32 %v3255_v37  ;;  %v3042_v44 = vsel %vm3041_vm1, %v7066_v48, %v3040_v36  ;;  %v2779_v48 = vpop.xlane.xlu1 %2778  ;;  %v2794_v31 = vpop.xlane.xlu0 %2793 }
 0x351   : > { %v4701_v32 = vpop.eup %4700  ;;  %v3045_v52 = vsel %vm3043_vm2, %v3044_v15, %v3042_v44  ;;  %v3065_v37 = vand.u32 2147483648, %v7078_v5  ;;  %vm3048_vm11 = vcmp.eq.f32.partialorder %v7113_v57, inf  ;;  %vm3050_vm12 = vcmp.eq.f32.partialorder %v7113_v57, 0.0 }
 0x352   : > { %4714 = vrcp.f32 %v3260_v2  ;;  %v3021_v41 = vsel %vm3020_vm3, %v7070_v38, %v3019_v26  ;;  %v3261_v62 = vadd.f32 1e-06, %v3045_v52  ;;  %v3026_v0 = vmul.f32 %v4701_v32, %v7074_v34 }
 0x353   : > { %v4703_v10 = vpop.eup %4702  ;;  %v3024_v25 = vsel %vm3022_vm4, %v3023_v6, %v3021_v41  ;;  %4716 = vrsqrt.f32 %v7113_v57  ;;  %v7141_v32 = vmul.f32 0.032258064, %v2779_v48  ;;  %vm3970_vm14 = vcmask 257024  }
 0x354   : > { %v4705_v17 = vpop.eup %4704  ;;  %v3258_v49 = vadd.f32 1e-06, %v3024_v25  ;;  %v3061_v19 = vmul.f32 %v4703_v10, %v7078_v5  ;;  %4718 = vrcp.f32 %v3261_v62  ;;  %v3028_v15 = vsel %vm3027_vm5, %v7074_v34, %v3026_v0 }
 0x355   : > { %v3352_v38 = vmul.f32 %v4705_v17, %v6766_v13  ;;  %v3031_v36 = vsel %vm3029_vm6, %v3030_v28, %v3028_v15  ;;  %v7145_v62 = vmul.f32 0.032258064, %v2794_v31  ;;  %vm3055_vm13 = vcmp.eq.f32.partialorder %v7141_v32, inf }
 0x356   : > { %4720 = vrcp.f32 %v3258_v49  ;;  %v3063_v2 = vsel %vm3062_vm7, %v7078_v5, %v3061_v19  ;;  %v4707_v26 = vpop.eup %4706  ;;  %v3259_v13 = vadd.f32 1e-06, %v3031_v36  ;;  %vm3057_vm15 = vcmp.eq.f32.partialorder %v7141_v32, 0.0 }
 0x357   : > { %v3404_v44 = vmul.f32 %v7064_v33, %v3352_v38  ;;  %v3066_v6 = vsel %vm3064_vm8, %v3065_v37, %v3063_v2  ;;  %v3353_v41 = vmul.f32 %v4707_v26, %v6769_v47  ;;  %v3072_v47 = vand.u32 2147483648, %v7094_v21 }
 0x358   : > { %v4709_v52 = vpop.eup %4708  ;;  %v3264_v10 = vadd.f32 1e-06, %v3066_v6  ;;  %4722 = vrcp.f32 %v3259_v13  ;;  %v3051_v6 = vand.u32 2147483648, %v7113_v57  ;;  %vm3090_vm0 = vcmp.eq.f32.partialorder %v7145_v62, inf }
 0x359   : > { %v4711_v34 = vpop.eup %4710  ;;  %v7148_v25 = vadd.f32 %v7068_v53, %v3404_v44  ;;  %v3350_v5 = vmul.f32 %v4709_v52, %v6774_v16  ;;  %v3405_v0 = vmul.f32 %v7064_v33, %v3353_v41  ;;  %vm3092_vm2 = vcmp.eq.f32.partialorder %v7145_v62, 0.0 }
 0x35a   : > { %4724 = vrcp.f32 %v3264_v10  ;;  %v3068_v28 = vmul.f32 %v4711_v34, %v7094_v21  ;;  %v4713_v17 = vpop.eup %4712  ;;  %v3058_v34 = vand.u32 2147483648, %v7141_v32 }
 0x35b   : > { %v3552_v49 = vmin.f32 %v7148_v25, 0.0  ;;  %v3402_v19 = vmul.f32 %v7064_v33, %v3350_v5  ;;  %4726 = vrsqrt.f32 %v7141_v32  ;;  %v7160_v48 = vadd.f32 %v7068_v53, %v3405_v0 }
 0x35c   : > { %v4715_v16 = vpop.eup %4714  ;;  %v3351_v38 = vmul.f32 %v4713_v17, %v6780_v55  ;;  %v3070_v15 = vsel %vm3069_vm9, %v7094_v21, %v3068_v28  ;;  %4728 = vrsqrt.f32 %v7145_v62  ;;  %vm3504_vm1 = vcmp.gt.f32.partialorder %v7148_v25, 0.0 }
 0x35d   : > { %v3614_v37 = vmul.f32 1.442695, %v3552_v49  ;;  %v7169_v31 = vadd.f32 %v7068_v53, %v3402_v19  ;;  %v3356_v36 = vmul.f32 %v4715_v16, %v6786_v54  ;;  %v3073_v2 = vsel %vm3071_vm10, %v3072_v47, %v3070_v15  ;;  %v4717_v26 = vpop.eup %4716  ;;  %v2716_v54 = vpop.xlane.xlu0 %2715 }
 0x35e   : > { %v3553_v55 = vmin.f32 %v7160_v48, 0.0  ;;  %v3403_v44 = vmul.f32 %v7064_v33, %v3351_v38  ;;  %v3265_v13 = vadd.f32 1e-06, %v3073_v2  ;;  %v4719_v52 = vpop.eup %4718  ;;  %v2797_v47 = vpop.xlane.xlu1 %2796  ;;  %v3047_v16 = vmul.f32 %v4717_v26, %v7113_v57 }
 0x35f   : > { %4730 = vpow2.f32 %v3614_v37  ;;  %v3550_v41 = vmin.f32 %v7169_v31, 0.0  ;;  %v3408_v10 = vmul.f32 %v7064_v33, %v3356_v36  ;;  %v3357_v28 = vmul.f32 %v4719_v52, %v6792_v59 }
 0x360   : > { %v4721_v5 = vpop.eup %4720  ;;  %v3616_v21 = vmul.f32 1.442695, %v3553_v55  ;;  %v7181_v0 = vadd.f32 %v7068_v53, %v3403_v44  ;;  %4732 = vrcp.f32 %v3265_v13  ;;  %v7191_v37 = vmul.f32 0.032258064, %v2716_v54 }
 0x361   : > { %v3610_v17 = vmul.f32 1.442695, %v3550_v41  ;;  %v7185_v49 = vadd.f32 %v7068_v53, %v3408_v10  ;;  %v3354_v19 = vmul.f32 %v4721_v5, %v6798_v45  ;;  %v3409_v15 = vmul.f32 %v7064_v33, %v3357_v28 }
 0x362   : > { %4734 = vpow2.f32 %v3616_v21  ;;  %v3551_v38 = vmin.f32 %v7181_v0, 0.0  ;;  %v4723_v36 = vpop.eup %4722  ;;  %v7196_v55 = vmul.f32 0.032258064, %v2797_v47  ;;  %v3049_v52 = vsel %vm3048_vm11, %v7113_v57, %v3047_v16 }
 0x363   : > { %4736 = vpow2.f32 %v3610_v17  ;;  %v3556_v59 = vmin.f32 %v7185_v49, 0.0  ;;  %v3406_v2 = vmul.f32 %v7064_v33, %v3354_v19  ;;  %v7199_v44 = vadd.f32 %v7068_v53, %v3409_v15 }
 0x364   : > { %v4725_v45 = vpop.eup %4724  ;;  %v3612_v26 = vmul.f32 1.442695, %v3551_v38  ;;  %v3355_v13 = vmul.f32 %v4723_v36, %v6804_v61  ;;  %v3052_v21 = vsel %vm3050_vm12, %v3051_v6, %v3049_v52  ;;  %v3093_v57 = vand.u32 2147483648, %v7145_v62 }
 0x365   : > { %v4727_v41 = vpop.eup %4726  ;;  %v3622_v10 = vmul.f32 1.442695, %v3556_v59  ;;  %v7206_v54 = vadd.f32 %v7068_v53, %v3406_v2  ;;  %v3360_v5 = vmul.f32 %v4725_v45, %v6810_v3  ;;  %v3557_v28 = vmin.f32 %v7199_v44, 0.0 }
 0x366   : > { %v4729_v61 = vpop.eup %4728  ;;  %4738 = vpow2.f32 %v3612_v26  ;;  %v3407_v47 = vmul.f32 %v7064_v33, %v3355_v13  ;;  %v3262_v16 = vadd.f32 1e-06, %v3052_v21  ;;  %v3054_v38 = vmul.f32 %v4727_v41, %v7141_v32 }
 0x367   : > { %4740 = vpow2.f32 %v3622_v10  ;;  %v3554_v17 = vmin.f32 %v7206_v54, 0.0  ;;  %v3412_v3 = vmul.f32 %v7064_v33, %v3360_v5  ;;  %v3624_v6 = vmul.f32 1.442695, %v3557_v28 }
 0x368   : > { %v7222_v19 = vadd.f32 %v7068_v53, %v3407_v47  ;;  %vm3505_vm3 = vcmp.gt.f32.partialorder %v7160_v48, 0.0  ;;  %4742 = vrsqrt.f32 %v7191_v37  ;;  %v3089_v13 = vmul.f32 %v4729_v61, %v7145_v62 }
 0x369   : > { %v4731_v15 = vpop.eup %4730  ;;  %v3618_v36 = vmul.f32 1.442695, %v3554_v17  ;;  %v7227_v59 = vadd.f32 %v7068_v53, %v3412_v3  ;;  %4744 = vpow2.f32 %v3624_v6  ;;  %vm3502_vm4 = vcmp.gt.f32.partialorder %v7169_v31, 0.0 }
 0x36a   : > { %v4733_v2 = vpop.eup %4732  ;;  %v4234_v45 = vadd.f32 -1.0, %v4731_v15  ;;  %v3555_v26 = vmin.f32 %v7222_v19, 0.0  ;;  %v3056_v61 = vsel %vm3055_vm13, %v7141_v32, %v3054_v38  ;;  %vm3503_vm5 = vcmp.gt.f32.partialorder %v7181_v0, 0.0 }
 0x36b   : > { %4746 = vpow2.f32 %v3618_v36  ;;  %v3560_v52 = vmin.f32 %v7227_v59, 0.0  ;;  %v3361_v41 = vmul.f32 %v4733_v2, %v6816_v4  ;;  %v3059_v15 = vsel %vm3057_vm15, %v3058_v34, %v3056_v61 }
 0x36c   : > { %v4735_v10 = vpop.eup %4734  ;;  %v3744_v5 = vsel %vm3504_vm1, %v7148_v25, %v4234_v45  ;;  %v3620_v21 = vmul.f32 1.442695, %v3555_v26  ;;  %4748 = vrcp.f32 %v3262_v16  ;;  %v3091_v25 = vsel %vm3090_vm0, %v7145_v62, %v3089_v13 }
 0x36d   : > { %v4737_v28 = vpop.eup %4736  ;;  %v4334_v47 = vpack.c.bf16 %v3744_v5, %v3744_v5  ;;  %v4235_v4 = vadd.f32 -1.0, %v4735_v10  ;;  %v3630_v17 = vmul.f32 1.442695, %v3560_v52  ;;  %v3413_v3 = vmul.f32 %v7064_v33, %v3361_v41 }
 0x36e   : > { %v4232_v6 = vadd.f32 -1.0, %v4737_v28  ;;  %4750 = vpow2.f32 %v3620_v21  ;;  %v3263_v36 = vadd.f32 1e-06, %v3059_v15  ;;  %v3094_v45 = vsel %vm3092_vm2, %v3093_v57, %v3091_v25 }
 0x36f   : > { %3985 = vst.msk [vmem:[%s7238_s20 + $0x38] sm:$0xf] %vm3970_vm14, %v4334_v47  ;;  %v3745_v16 = vsel %vm3505_vm3, %v7160_v48, %v4235_v4  ;;  %4752 = vpow2.f32 %v3630_v17  ;;  %v7260_v38 = vadd.f32 %v7068_v53, %v3413_v3  ;;  %vm3508_vm6 = vcmp.gt.f32.partialorder %v7185_v49, 0.0  ;;  %v2788_v47 = vpop.xlane.xlu0 %2787 }
 0x370   : > { %v4739_v2 = vpop.eup %4738  ;;  %v4335_v32 = vpack.c.bf16 %v3745_v16, %v3745_v16  ;;  %v3742_v34 = vsel %vm3502_vm4, %v7169_v31, %v4232_v6  ;;  %vm3509_vm7 = vcmp.gt.f32.partialorder %v7199_v44, 0.0  ;;  %4754 = vrcp.f32 %v3263_v36  ;;  %v2719_v6 = vpop.xlane.xlu1 %2718 }
 0x371   : > { %v4741_v26 = vpop.eup %4740  ;;  %v4332_v13 = vpack.c.bf16 %v3742_v34, %v3742_v34  ;;  %v4233_v48 = vadd.f32 -1.0, %v4739_v2  ;;  %v3561_v52 = vmin.f32 %v7260_v38, 0.0  ;;  %v3268_v10 = vadd.f32 1e-06, %v3094_v45 }
 0x372   : > { %3986 = vst.msk [vmem:[%s7238_s20 + $0x3c] sm:$0xf] %vm3970_vm14, %v4335_v32  ;;  %v4238_v41 = vadd.f32 -1.0, %v4741_v26  ;;  %v4743_v31 = vpop.eup %4742  ;;  %vm2908_vm8 = vcmp.eq.f32.partialorder %v7191_v37, inf  ;;  %4756 = vrsqrt.f32 %v7196_v55  ;;  %vm3506_vm9 = vcmp.gt.f32.partialorder %v7206_v54, 0.0 }
 0x373   : > { %3983 = vst.msk [vmem:[%s7238_s20 + $0x30] sm:$0xf] %vm3970_vm14, %v4332_v13  ;;  %v3743_v62 = vsel %vm3503_vm5, %v7181_v0, %v4233_v48  ;;  %v3632_v57 = vmul.f32 1.442695, %v3561_v52  ;;  %v4745_v5 = vpop.eup %4744  ;;  %4758 = vrcp.f32 %v3268_v10  ;;  %v2907_v28 = vmul.f32 %v4743_v31, %v7191_v37  ;;  %v2806_v31 = vpop.xlane.xlu0 %2805 }
 0x374   : > { %v4333_v21 = vpack.c.bf16 %v3743_v62, %v3743_v62  ;;  %v3748_v61 = vsel %vm3508_vm6, %v7185_v49, %v4238_v41  ;;  %v4239_v3 = vadd.f32 -1.0, %v4745_v5  ;;  %v2911_v0 = vand.u32 2147483648, %v7191_v37 }
 0x375   : > { %v4747_v4 = vpop.eup %4746  ;;  %v4338_v17 = vpack.c.bf16 %v3748_v61, %v3748_v61  ;;  %4760 = vpow2.f32 %v3632_v57  ;;  %v2909_v49 = vsel %vm2908_vm8, %v7191_v37, %v2907_v28  ;;  %vm2910_vm10 = vcmp.eq.f32.partialorder %v7191_v37, 0.0 }
 0x376   : > { %v4749_v15 = vpop.eup %4748  ;;  %3984 = vst.msk [vmem:[%s7238_s20 + $0x34] sm:$0xf] %vm3970_vm14, %v4333_v21  ;;  %v4236_v25 = vadd.f32 -1.0, %v4747_v4  ;;  %v3749_v16 = vsel %vm3509_vm7, %v7199_v44, %v4239_v3  ;;  %v2912_v2 = vsel %vm2910_vm10, %v2911_v0, %v2909_v49  ;;  %v7294_v32 = vmul.f32 0.032258064, %v2788_v47 }
 0x377   : > { %3989 = vst.msk [vmem:[%s7238_s20 + $0x48] sm:$0xf] %vm3970_vm14, %v4338_v17  ;;  %v3358_v36 = vmul.f32 %v4749_v15, %v6822_v11  ;;  %v4339_v45 = vpack.c.bf16 %v3749_v16, %v3749_v16  ;;  %v3242_v13 = vadd.f32 1e-06, %v2912_v2  ;;  %v7297_v48 = vmul.f32 0.032258064, %v2719_v6  ;;  %v2791_v15 = vpop.xlane.xlu1 %2790 }
 0x378   : > { %v4751_v34 = vpop.eup %4750  ;;  %v3746_v26 = vsel %vm3506_vm9, %v7206_v54, %v4236_v25  ;;  %4762 = vrsqrt.f32 %v7294_v32  ;;  %vm3507_vm11 = vcmp.gt.f32.partialorder %v7222_v19, 0.0  ;;  %vm3512_vm12 = vcmp.gt.f32.partialorder %v7227_v59, 0.0 }
 0x379   : > { %v4753_v37 = vpop.eup %4752  ;;  %v4336_v52 = vpack.c.bf16 %v3746_v26, %v3746_v26  ;;  %v4237_v41 = vadd.f32 -1.0, %v4751_v34  ;;  %v3410_v10 = vmul.f32 %v7064_v33, %v3358_v36  ;;  %3990 = vst.msk [vmem:[%s7238_s20 + $0x4c] sm:$0xf] %vm3970_vm14, %v4339_v45  ;;  %4764 = vrcp.f32 %v3242_v13 }
 0x37a   : > { %v4242_v11 = vadd.f32 -1.0, %v4753_v37  ;;  %4766 = vrsqrt.f32 %v7297_v48  ;;  %v4755_v62 = vpop.eup %4754  ;;  %vm3513_vm13 = vcmp.gt.f32.partialorder %v7260_v38, 0.0  ;;  %vm3097_vm15 = vcmp.eq.f32.partialorder %v7196_v55, inf }
 0x37b   : > { %3987 = vst.msk [vmem:[%s7238_s20 + $0x40] sm:$0xf] %vm3970_vm14, %v4336_v52  ;;  %v3747_v44 = vsel %vm3507_vm11, %v7222_v19, %v4237_v41  ;;  %v7309_v54 = vadd.f32 %v7068_v53, %v3410_v10  ;;  %v3359_v19 = vmul.f32 %v4755_v62, %v6828_v20  ;;  %vm3099_vm0 = vcmp.eq.f32.partialorder %v7196_v55, 0.0 }
 0x37c   : > { %v4337_v57 = vpack.c.bf16 %v3747_v44, %v3747_v44  ;;  %v3752_v5 = vsel %vm3512_vm12, %v7227_v59, %v4242_v11  ;;  %v4757_v21 = vpop.eup %4756  ;;  %v3100_v17 = vand.u32 2147483648, %v7196_v55  ;;  %v7322_v59 = vmul.f32 0.032258064, %v2806_v31 }
 0x37d   : > { %v4342_v61 = vpack.c.bf16 %v3752_v5, %v3752_v5  ;;  %v3558_v28 = vmin.f32 %v7309_v54, 0.0  ;;  %v4759_v47 = vpop.eup %4758  ;;  %v3096_v4 = vmul.f32 %v4757_v21, %v7196_v55  ;;  %v3411_v6 = vmul.f32 %v7064_v33, %v3359_v19 }
 0x37e   : > { %3988 = vst.msk [vmem:[%s7238_s20 + $0x44] sm:$0xf] %vm3970_vm14, %v4337_v57  ;;  %v3364_v20 = vmul.f32 %v4759_v47, %v6834_v7  ;;  %vm3076_vm1 = vcmp.eq.f32.partialorder %v7294_v32, inf  ;;  %vm3078_vm2 = vcmp.eq.f32.partialorder %v7294_v32, 0.0  ;;  %4768 = vrsqrt.f32 %v7322_v59  ;;  %v2722_v7 = vpop.xlane.xlu0 %2721 }
 0x37f   : > { %v4761_v3 = vpop.eup %4760  ;;  %3993 = vst.msk [vmem:[%s7238_s20 + $0x58] sm:$0xf] %vm3970_vm14, %v4342_v61  ;;  %v3626_v0 = vmul.f32 1.442695, %v3558_v28  ;;  %v3098_v49 = vsel %vm3097_vm15, %v7196_v55, %v3096_v4  ;;  %v7333_v16 = vadd.f32 %v7068_v53, %v3411_v6  ;;  %v3079_v26 = vand.u32 2147483648, %v7294_v32  ;;  %v2809_v4 = vpop.xlane.xlu1 %2808 }
 0x380   : > { %v4243_v25 = vadd.f32 -1.0, %v4761_v3  ;;  %v3416_v36 = vmul.f32 %v7064_v33, %v3364_v20  ;;  %v3101_v2 = vsel %vm3099_vm0, %v3100_v17, %v3098_v49  ;;  %v7342_v13 = vmul.f32 0.032258064, %v2791_v15 }
 0x381   : > { %4770 = vpow2.f32 %v3626_v0  ;;  %v3269_v45 = vadd.f32 1e-06, %v3101_v2  ;;  %v3559_v41 = vmin.f32 %v7333_v16, 0.0  ;;  %vm2915_vm3 = vcmp.eq.f32.partialorder %v7297_v48, inf }
 0x382   : > { %v3753_v34 = vsel %vm3513_vm13, %v7260_v38, %v4243_v25  ;;  %v4763_v37 = vpop.eup %4762  ;;  %v7346_v10 = vadd.f32 %v7068_v53, %v3416_v36  ;;  %vm2917_vm4 = vcmp.eq.f32.partialorder %v7297_v48, 0.0  ;;  %v7351_v38 = vmul.f32 0.032258064, %v2722_v7  ;;  %v2800_v17 = vpop.xlane.xlu0 %2799 }
 0x383   : > { %v4343_v52 = vpack.c.bf16 %v3753_v34, %v3753_v34  ;;  %v4765_v55 = vpop.eup %4764  ;;  %4772 = vrcp.f32 %v3269_v45  ;;  %v3075_v11 = vmul.f32 %v4763_v37, %v7294_v32  ;;  %vm3510_vm5 = vcmp.gt.f32.partialorder %v7309_v54, 0.0 }
 0x384   : > { %v4767_v44 = vpop.eup %4766  ;;  %v3628_v31 = vmul.f32 1.442695, %v3559_v41  ;;  %v3564_v62 = vmin.f32 %v7346_v10, 0.0  ;;  %v3338_v57 = vmul.f32 %v4765_v55, %v6840_v14  ;;  %v2918_v61 = vand.u32 2147483648, %v7297_v48 }
 0x385   : > { %3994 = vst.msk [vmem:[%s7238_s20 + $0x5c] sm:$0xf] %vm3970_vm14, %v4343_v52  ;;  %v3077_v5 = vsel %vm3076_vm1, %v7294_v32, %v3075_v11  ;;  %v2914_v21 = vmul.f32 %v4767_v44, %v7297_v48  ;;  %4774 = vrsqrt.f32 %v7342_v13  ;;  %vm3118_vm6 = vcmp.eq.f32.partialorder %v7322_v59, inf }
 0x386   : > { %4776 = vpow2.f32 %v3628_v31  ;;  %v3638_v28 = vmul.f32 1.442695, %v3564_v62  ;;  %v3390_v19 = vmul.f32 %v7064_v33, %v3338_v57  ;;  %v3080_v47 = vsel %vm3078_vm2, %v3079_v26, %v3077_v5  ;;  %v2725_v26 = vpop.xlane.xlu1 %2724  ;;  %v2818_v37 = vpop.xlane.xlu0 %2817 }
 0x387   : > { %v3266_v14 = vadd.f32 1e-06, %v3080_v47  ;;  %v2916_v3 = vsel %vm2915_vm3, %v7297_v48, %v2914_v21  ;;  %4778 = vrsqrt.f32 %v7351_v38  ;;  %vm3120_vm7 = vcmp.eq.f32.partialorder %v7322_v59, 0.0 }
 0x388   : > { %4780 = vpow2.f32 %v3638_v28  ;;  %v7373_v0 = vadd.f32 %v7068_v53, %v3390_v19  ;;  %v2919_v6 = vsel %vm2917_vm4, %v2918_v61, %v2916_v3  ;;  %v4769_v32 = vpop.eup %4768  ;;  %v3121_v15 = vand.u32 2147483648, %v7322_v59 }
 0x389   : > { %4782 = vrcp.f32 %v3266_v14  ;;  %v3243_v20 = vadd.f32 1e-06, %v2919_v6  ;;  %v7379_v25 = vmul.f32 0.032258064, %v2809_v4  ;;  %vm3511_vm8 = vcmp.gt.f32.partialorder %v7333_v16, 0.0 }
 0x38a   : > { %v3538_v36 = vmin.f32 %v7373_v0, 0.0  ;;  %v3117_v2 = vmul.f32 %v4769_v32, %v7322_v59  ;;  %v7384_v7 = vmul.f32 0.032258064, %v2800_v17  ;;  %vm3083_vm9 = vcmp.eq.f32.partialorder %v7342_v13, inf }
 0x38b   : > { %v4771_v49 = vpop.eup %4770  ;;  %4784 = vrcp.f32 %v3243_v20  ;;  %vm3085_vm10 = vcmp.eq.f32.partialorder %v7342_v13, 0.0  ;;  %vm3516_vm11 = vcmp.gt.f32.partialorder %v7346_v10, 0.0  ;;  %v3086_v11 = vand.u32 2147483648, %v7342_v13 }
 0x38c   : > { %v4240_v48 = vadd.f32 -1.0, %v4771_v49  ;;  %v3586_v34 = vmul.f32 1.442695, %v3538_v36  ;;  %v3119_v45 = vsel %vm3118_vm6, %v7322_v59, %v3117_v2  ;;  %4786 = vrsqrt.f32 %v7379_v25 }
 0x38d   : > { %v4773_v52 = vpop.eup %4772  ;;  %v3122_v55 = vsel %vm3120_vm7, %v3121_v15, %v3119_v45  ;;  %4788 = vrsqrt.f32 %v7384_v7  ;;  %vm2922_vm12 = vcmp.eq.f32.partialorder %v7351_v38, inf  ;;  %vm2924_vm13 = vcmp.eq.f32.partialorder %v7351_v38, 0.0 }
 0x38e   : > { %v3750_v41 = vsel %vm3510_vm5, %v7309_v54, %v4240_v48  ;;  %4790 = vpow2.f32 %v3586_v34  ;;  %v3365_v31 = vmul.f32 %v4773_v52, %v6852_v56  ;;  %v3272_v62 = vadd.f32 1e-06, %v3122_v55  ;;  %v2803_v48 = vpop.xlane.xlu1 %2802 }
 0x38f   : > { %v4340_v44 = vpack.c.bf16 %v3750_v41, %v3750_v41  ;;  %v4775_v57 = vpop.eup %4774  ;;  %v7403_v5 = vmul.f32 0.032258064, %v2725_v26  ;;  %v7405_v54 = vmul.f32 0.032258064, %v2818_v37  ;;  %v2925_v56 = vand.u32 2147483648, %v7351_v38 }
 0x390   : > { %v4777_v59 = vpop.eup %4776  ;;  %v3417_v21 = vmul.f32 %v7064_v33, %v3365_v31  ;;  %4792 = vrcp.f32 %v3272_v62  ;;  %v3082_v61 = vmul.f32 %v4775_v57, %v7342_v13  ;;  %vm3125_vm15 = vcmp.eq.f32.partialorder %v7379_v25, inf }
 0x391   : > { %3991 = vst.msk [vmem:[%s7238_s20 + $0x50] sm:$0xf] %vm3970_vm14, %v4340_v44  ;;  %v4779_v28 = vpop.eup %4778  ;;  %v4241_v19 = vadd.f32 -1.0, %v4777_v59  ;;  %v3128_v47 = vand.u32 2147483648, %v7379_v25  ;;  %4794 = vrsqrt.f32 %v7403_v5  ;;  %vm3490_vm0 = vcmp.gt.f32.partialorder %v7373_v0, 0.0 }
 0x392   : > { %v4781_v4 = vpop.eup %4780  ;;  %v7417_v17 = vadd.f32 %v7068_v53, %v3417_v21  ;;  %v3084_v14 = vsel %vm3083_vm9, %v7342_v13, %v3082_v61  ;;  %v2921_v3 = vmul.f32 %v4779_v28, %v7351_v38  ;;  %vm3127_vm1 = vcmp.eq.f32.partialorder %v7379_v25, 0.0 }
 0x393   : > { %vm3104_vm2 = vcmp.eq.f32.partialorder %v7384_v7, inf  ;;  %v4783_v6 = vpop.eup %4782  ;;  %v3751_v32 = vsel %vm3511_vm8, %v7333_v16, %v4241_v19  ;;  %v4246_v20 = vadd.f32 -1.0, %v4781_v4  ;;  %v3087_v15 = vsel %vm3085_vm10, %v3086_v11, %v3084_v14 }
 0x394   : > { %4796 = vrsqrt.f32 %v7405_v54  ;;  %v4341_v49 = vpack.c.bf16 %v3751_v32, %v3751_v32  ;;  %v3565_v36 = vmin.f32 %v7417_v17, 0.0  ;;  %v3362_v2 = vmul.f32 %v4783_v6, %v6846_v18 }
 0x395   : > { %vm3106_vm3 = vcmp.eq.f32.partialorder %v7384_v7, 0.0  ;;  %v4785_v34 = vpop.eup %4784  ;;  %v3756_v45 = vsel %vm3516_vm11, %v7346_v10, %v4246_v20  ;;  %v3267_v16 = vadd.f32 1e-06, %v3087_v15  ;;  %v2923_v13 = vsel %vm2922_vm12, %v7351_v38, %v2921_v3 }
 0x396   : > { %v3107_v26 = vand.u32 2147483648, %v7384_v7  ;;  %v4787_v37 = vpop.eup %4786  ;;  %3992 = vst.msk [vmem:[%s7238_s20 + $0x54] sm:$0xf] %vm3970_vm14, %v4341_v49  ;;  %v4346_v18 = vpack.c.bf16 %v3756_v45, %v3756_v45  ;;  %v3640_v52 = vmul.f32 1.442695, %v3565_v36  ;;  %v3414_v41 = vmul.f32 %v7064_v33, %v3362_v2 }
 0x397   : > { %v3339_v55 = vmul.f32 %v4785_v34, %v6856_v60  ;;  %v4789_v11 = vpop.eup %4788  ;;  %4798 = vrcp.f32 %v3267_v16  ;;  %v2926_v10 = vsel %vm2924_vm13, %v2925_v56, %v2923_v13  ;;  %v3124_v44 = vmul.f32 %v4787_v37, %v7379_v25 }
 0x398   : > { %v7448_v31 = vmul.f32 0.032258064, %v2803_v48  ;;  %v4791_v62 = vpop.eup %4790  ;;  %3997 = vst.msk [vmem:[%s7238_s20 + $0x68] sm:$0xf] %vm3970_vm14, %v4346_v18  ;;  %4800 = vpow2.f32 %v3640_v52  ;;  %v7453_v57 = vadd.f32 %v7068_v53, %v3414_v41  ;;  %v3244_v21 = vadd.f32 1e-06, %v2926_v10 }
 0x399   : > { %v3391_v59 = vmul.f32 %v7064_v33, %v3339_v55  ;;  %v4220_v60 = vadd.f32 -1.0, %v4791_v62  ;;  %v3126_v38 = vsel %vm3125_vm15, %v7379_v25, %v3124_v44  ;;  %v3103_v61 = vmul.f32 %v4789_v11, %v7384_v7  ;;  %v2728_v25 = vpop.xlane.xlu0 %2727  ;;  %v2821_v11 = vpop.xlane.xlu1 %2820 }
 0x39a   : > { %vm2929_vm4 = vcmp.eq.f32.partialorder %v7403_v5, inf  ;;  %v4793_v56 = vpop.eup %4792  ;;  %v3562_v28 = vmin.f32 %v7453_v57, 0.0  ;;  %4802 = vrcp.f32 %v3244_v21  ;;  %vm2931_vm5 = vcmp.eq.f32.partialorder %v7403_v5, 0.0 }
 0x39b   : > { %v7463_v19 = vadd.f32 %v7068_v53, %v3391_v59  ;;  %v4795_v4 = vpop.eup %4794  ;;  %v3730_v14 = vsel %vm3490_vm0, %v7373_v0, %v4220_v60  ;;  %v3368_v3 = vmul.f32 %v4793_v56, %v6869_v9  ;;  %v3129_v6 = vsel %vm3127_vm1, %v3128_v47, %v3126_v38 }
 0x39c   : > { %v3105_v32 = vsel %vm3104_vm2, %v7384_v7, %v3103_v61  ;;  %v4320_v20 = vpack.c.bf16 %v3730_v14, %v3730_v14  ;;  %v3634_v15 = vmul.f32 1.442695, %v3562_v28  ;;  %v2932_v36 = vand.u32 2147483648, %v7403_v5 }
 0x39d   : > { %v3539_v49 = vmin.f32 %v7463_v19, 0.0  ;;  %v3420_v48 = vmul.f32 %v7064_v33, %v3368_v3  ;;  %v3273_v34 = vadd.f32 1e-06, %v3129_v6  ;;  %v3108_v9 = vsel %vm3106_vm3, %v3107_v26, %v3105_v32  ;;  %v2812_v60 = vpop.xlane.xlu0 %2811 }
 0x39e   : > { %v4797_v2 = vpop.eup %4796  ;;  %v2928_v0 = vmul.f32 %v4795_v4, %v7403_v5  ;;  %3971 = vst.msk [vmem:[%s7238_s20] sm:$0xf] %vm3970_vm14, %v4320_v20  ;;  %4804 = vpow2.f32 %v3634_v15  ;;  %v3270_v45 = vadd.f32 1e-06, %v3108_v9  ;;  %vm3146_vm6 = vcmp.eq.f32.partialorder %v7405_v54, inf }
 0x39f   : > { %v3588_v47 = vmul.f32 1.442695, %v3539_v49  ;;  %v3145_v16 = vmul.f32 %v4797_v2, %v7405_v54  ;;  %v7485_v13 = vadd.f32 %v7068_v53, %v3420_v48  ;;  %4806 = vrcp.f32 %v3273_v34 }
 0x3a0   : > { %v2930_v37 = vsel %vm2929_vm4, %v7403_v5, %v2928_v0  ;;  %v3149_v18 = vand.u32 2147483648, %v7405_v54  ;;  %vm3148_vm7 = vcmp.eq.f32.partialorder %v7405_v54, 0.0  ;;  %vm3517_vm8 = vcmp.gt.f32.partialorder %v7417_v17, 0.0 }
 0x3a1   : > { %4808 = vpow2.f32 %v3588_v47  ;;  %v2933_v7 = vsel %vm2931_vm5, %v2932_v36, %v2930_v37  ;;  %v3147_v26 = vsel %vm3146_vm6, %v7405_v54, %v3145_v16  ;;  %v4799_v52 = vpop.eup %4798  ;;  %v3568_v41 = vmin.f32 %v7485_v13, 0.0 }
 0x3a2   : > { %4810 = vrcp.f32 %v3270_v45  ;;  %v3245_v55 = vadd.f32 1e-06, %v2933_v7  ;;  %v4801_v10 = vpop.eup %4800  ;;  %v3363_v44 = vmul.f32 %v4799_v52, %v6863_v8  ;;  %v3150_v62 = vsel %vm3148_vm7, %v3149_v18, %v3147_v26 }
 0x3a3   : > { %4812 = vrsqrt.f32 %v7448_v31  ;;  %v4247_v5 = vadd.f32 -1.0, %v4801_v10  ;;  %v3646_v59 = vmul.f32 1.442695, %v3568_v41  ;;  %v3276_v21 = vadd.f32 1e-06, %v3150_v62 }
 0x3a4   : > { %4814 = vrcp.f32 %v3245_v55  ;;  %v4803_v38 = vpop.eup %4802  ;;  %v3415_v61 = vmul.f32 %v7064_v33, %v3363_v44  ;;  %v7501_v56 = vmul.f32 0.032258064, %v2728_v25  ;;  %v7503_v54 = vmul.f32 0.032258064, %v2821_v11 }
 0x3a5   : > { %v3757_v8 = vsel %vm3517_vm8, %v7417_v17, %v4247_v5  ;;  %4816 = vpow2.f32 %v3646_v59  ;;  %v3340_v28 = vmul.f32 %v4803_v38, %v6881_v40  ;;  %v7510_v3 = vmul.f32 0.032258064, %v2812_v60  ;;  %v2731_v17 = vpop.xlane.xlu1 %2730 }
 0x3a6   : > { %v4347_v4 = vpack.c.bf16 %v3757_v8, %v3757_v8  ;;  %v7508_v14 = vadd.f32 %v7068_v53, %v3415_v61  ;;  %4818 = vrcp.f32 %v3276_v21  ;;  %vm3514_vm9 = vcmp.gt.f32.partialorder %v7453_v57, 0.0 }
 0x3a7   : > { %v3392_v6 = vmul.f32 %v7064_v33, %v3340_v28  ;;  %4820 = vrsqrt.f32 %v7501_v56  ;;  %vm3491_vm10 = vcmp.gt.f32.partialorder %v7463_v19, 0.0  ;;  %vm3111_vm11 = vcmp.eq.f32.partialorder %v7448_v31, inf }
 0x3a8   : > { %v4805_v32 = vpop.eup %4804  ;;  %3998 = vst.msk [vmem:[%s7238_s20 + $0x6c] sm:$0xf] %vm3970_vm14, %v4347_v4  ;;  %v3563_v40 = vmin.f32 %v7508_v14, 0.0  ;;  %4822 = vrsqrt.f32 %v7503_v54  ;;  %vm3520_vm12 = vcmp.gt.f32.partialorder %v7485_v13, 0.0  ;;  %vm3113_vm13 = vcmp.eq.f32.partialorder %v7448_v31, 0.0 }
 0x3a9   : > { %v4807_v20 = vpop.eup %4806  ;;  %v4244_v15 = vadd.f32 -1.0, %v4805_v32  ;;  %v7523_v49 = vadd.f32 %v7068_v53, %v3392_v6  ;;  %v3114_v34 = vand.u32 2147483648, %v7448_v31  ;;  %4824 = vrsqrt.f32 %v7510_v3 }
 0x3aa   : > { %v3636_v2 = vmul.f32 1.442695, %v3563_v40  ;;  %v3369_v48 = vmul.f32 %v4807_v20, %v6874_v46  ;;  %v7533_v45 = vmul.f32 0.032258064, %v2731_v17  ;;  %vm2936_vm15 = vcmp.eq.f32.partialorder %v7501_v56, inf }
 0x3ab   : > { %v4809_v36 = vpop.eup %4808  ;;  %v3754_v0 = vsel %vm3514_vm9, %v7453_v57, %v4244_v15  ;;  %v3540_v47 = vmin.f32 %v7523_v49, 0.0  ;;  %vm2938_vm0 = vcmp.eq.f32.partialorder %v7501_v56, 0.0  ;;  %v2939_v44 = vand.u32 2147483648, %v7501_v56 }
 0x3ac   : > { %v4811_v9 = vpop.eup %4810  ;;  %v4221_v25 = vadd.f32 -1.0, %v4809_v36  ;;  %v4344_v37 = vpack.c.bf16 %v3754_v0, %v3754_v0  ;;  %4826 = vpow2.f32 %v3636_v2  ;;  %v3421_v46 = vmul.f32 %v7064_v33, %v3369_v48 }
 0x3ad   : > { %v4813_v16 = vpop.eup %4812  ;;  %v3366_v7 = vmul.f32 %v4811_v9, %v6893_v23  ;;  %v3590_v52 = vmul.f32 1.442695, %v3540_v47  ;;  %vm3153_vm1 = vcmp.eq.f32.partialorder %v7503_v54, inf  ;;  %vm3515_vm2 = vcmp.gt.f32.partialorder %v7508_v14, 0.0 }
 0x3ae   : > { %v4815_v26 = vpop.eup %4814  ;;  %v3731_v18 = vsel %vm3491_vm10, %v7463_v19, %v4221_v25  ;;  %v3110_v57 = vmul.f32 %v4813_v16, %v7448_v31  ;;  %3995 = vst.msk [vmem:[%s7238_s20 + $0x60] sm:$0xf] %vm3970_vm14, %v4344_v37  ;;  %v7545_v55 = vadd.f32 %v7068_v53, %v3421_v46  ;;  %vm3155_vm3 = vcmp.eq.f32.partialorder %v7503_v54, 0.0 }
 0x3af   : > { %v4321_v41 = vpack.c.bf16 %v3731_v18, %v3731_v18  ;;  %v3418_v11 = vmul.f32 %v7064_v33, %v3366_v7  ;;  %v3341_v23 = vmul.f32 %v4815_v26, %v6887_v51  ;;  %v4817_v10 = vpop.eup %4816  ;;  %4828 = vpow2.f32 %v3590_v52 }
 0x3b0   : > { %v3112_v19 = vsel %vm3111_vm11, %v7448_v31, %v3110_v57  ;;  %v4819_v62 = vpop.eup %4818  ;;  %v4250_v5 = vadd.f32 -1.0, %v4817_v10  ;;  %v3569_v51 = vmin.f32 %v7545_v55, 0.0  ;;  %4830 = vrsqrt.f32 %v7533_v45  ;;  %v2815_v57 = vpop.xlane.xlu1 %2814 }
 0x3b1   : > { %3972 = vst.msk [vmem:[%s7238_s20 + $0x4] sm:$0xf] %vm3970_vm14, %v4321_v41  ;;  %v7560_v59 = vadd.f32 %v7068_v53, %v3418_v11  ;;  %v4821_v21 = vpop.eup %4820  ;;  %v3393_v60 = vmul.f32 %v7064_v33, %v3341_v23  ;;  %v3372_v38 = vmul.f32 %v4819_v62, %v6905_v1  ;;  %v3115_v61 = vsel %vm3113_vm13, %v3114_v34, %v3112_v19 }
 0x3b2   : > { %v4823_v8 = vpop.eup %4822  ;;  %v3760_v28 = vsel %vm3520_vm12, %v7485_v13, %v4250_v5  ;;  %v3648_v4 = vmul.f32 1.442695, %v3569_v51  ;;  %v3156_v32 = vand.u32 2147483648, %v7503_v54  ;;  %v3271_v31 = vadd.f32 1e-06, %v3115_v61  ;;  %v2830_v13 = vpop.xlane.xlu0 %2829 }
 0x3b3   : > { %v3566_v6 = vmin.f32 %v7560_v59, 0.0  ;;  %v4350_v40 = vpack.c.bf16 %v3760_v28, %v3760_v28  ;;  %v7574_v17 = vadd.f32 %v7068_v53, %v3393_v60  ;;  %v3424_v1 = vmul.f32 %v7064_v33, %v3372_v38  ;;  %v4825_v20 = vpop.eup %4824 }
 0x3b4   : > { %4832 = vpow2.f32 %v3648_v4  ;;  %v2935_v36 = vmul.f32 %v4821_v21, %v7501_v56  ;;  %v3152_v2 = vmul.f32 %v4823_v8, %v7503_v54  ;;  %vm3132_vm4 = vcmp.eq.f32.partialorder %v7510_v3, inf  ;;  %v2833_v4 = vpop.xlane.xlu1 %2832 }
 0x3b5   : > { %v3642_v15 = vmul.f32 1.442695, %v3566_v6  ;;  %4001 = vst.msk [vmem:[%s7238_s20 + $0x78] sm:$0xf] %vm3970_vm14, %v4350_v40  ;;  %v3541_v48 = vmin.f32 %v7574_v17, 0.0  ;;  %v7583_v34 = vadd.f32 %v7068_v53, %v3424_v1  ;;  %4834 = vrcp.f32 %v3271_v31 }
 0x3b6   : > { %v4827_v9 = vpop.eup %4826  ;;  %v2937_v0 = vsel %vm2936_vm15, %v7501_v56, %v2935_v36  ;;  %v3154_v25 = vsel %vm3153_vm1, %v7503_v54, %v3152_v2  ;;  %v3131_v47 = vmul.f32 %v4825_v20, %v7510_v3  ;;  %vm3134_vm5 = vcmp.eq.f32.partialorder %v7510_v3, 0.0  ;;  %v2734_v54 = vpop.xlane.xlu0 %2733 }
 0x3b7   : > { %4836 = vpow2.f32 %v3642_v15  ;;  %v4245_v16 = vadd.f32 -1.0, %v4827_v9  ;;  %v3592_v37 = vmul.f32 1.442695, %v3541_v48  ;;  %v3572_v46 = vmin.f32 %v7583_v34, 0.0 }
 0x3b8   : > { %v2940_v7 = vsel %vm2938_vm0, %v2939_v44, %v2937_v0  ;;  %v3157_v26 = vsel %vm3155_vm3, %v3156_v32, %v3154_v25  ;;  %v3133_v18 = vsel %vm3132_vm4, %v7510_v3, %v3131_v47  ;;  %v3135_v52 = vand.u32 2147483648, %v7510_v3 }
 0x3b9   : > { %v4829_v41 = vpop.eup %4828  ;;  %v3755_v11 = vsel %vm3515_vm2, %v7508_v14, %v4245_v16  ;;  %4838 = vpow2.f32 %v3592_v37  ;;  %v3654_v23 = vmul.f32 1.442695, %v3572_v46  ;;  %v3246_v10 = vadd.f32 1e-06, %v2940_v7 }
 0x3ba   : > { %v4345_v19 = vpack.c.bf16 %v3755_v11, %v3755_v11  ;;  %v4222_v56 = vadd.f32 -1.0, %v4829_v41  ;;  %v3277_v44 = vadd.f32 1e-06, %v3157_v26  ;;  %v3136_v62 = vsel %vm3134_vm5, %v3135_v52, %v3133_v18  ;;  %v4831_v5 = vpop.eup %4830  ;;  %v2824_v20 = vpop.xlane.xlu0 %2823 }
 0x3bb   : > { %vm3492_vm6 = vcmp.gt.f32.partialorder %v7523_v49, 0.0  ;;  %4840 = vpow2.f32 %v3654_v23  ;;  %v3274_v3 = vadd.f32 1e-06, %v3136_v62  ;;  %v7605_v51 = vmul.f32 0.032258064, %v2830_v13  ;;  %v2737_v41 = vpop.xlane.xlu1 %2736 }
 0x3bc   : > { %3996 = vst.msk [vmem:[%s7238_s20 + $0x64] sm:$0xf] %vm3970_vm14, %v4345_v19  ;;  %v3732_v14 = vsel %vm3492_vm6, %v7523_v49, %v4222_v56  ;;  %4842 = vrcp.f32 %v3246_v10  ;;  %v2942_v21 = vmul.f32 %v4831_v5, %v7533_v45  ;;  %v7611_v60 = vmul.f32 0.032258064, %v2815_v57 }
 0x3bd   : > { %v4322_v38 = vpack.c.bf16 %v3732_v14, %v3732_v14  ;;  %4844 = vrcp.f32 %v3277_v44  ;;  %vm2943_vm7 = vcmp.eq.f32.partialorder %v7533_v45, inf  ;;  %v2946_v61 = vand.u32 2147483648, %v7533_v45 }
 0x3be   : > { %v4833_v8 = vpop.eup %4832  ;;  %4846 = vrcp.f32 %v3274_v3  ;;  %v2944_v28 = vsel %vm2943_vm7, %v7533_v45, %v2942_v21  ;;  %vm2945_vm8 = vcmp.eq.f32.partialorder %v7533_v45, 0.0  ;;  %vm3521_vm9 = vcmp.gt.f32.partialorder %v7545_v55, 0.0 }
 0x3bf   : > { %v4835_v6 = vpop.eup %4834  ;;  %3973 = vst.msk [vmem:[%s7238_s20 + $0x8] sm:$0xf] %vm3970_vm14, %v4322_v38  ;;  %v4251_v49 = vadd.f32 -1.0, %v4833_v8  ;;  %v2947_v32 = vsel %vm2945_vm8, %v2946_v61, %v2944_v28  ;;  %4848 = vrsqrt.f32 %v7605_v51  ;;  %v7624_v36 = vmul.f32 0.032258064, %v2734_v54 }
 0x3c0   : > { %v3367_v1 = vmul.f32 %v4835_v6, %v6898_v27  ;;  %v3247_v31 = vadd.f32 1e-06, %v2947_v32  ;;  %4850 = vrsqrt.f32 %v7611_v60  ;;  %v7626_v2 = vmul.f32 0.032258064, %v2833_v4 }
 0x3c1   : > { %v4837_v40 = vpop.eup %4836  ;;  %v3761_v45 = vsel %vm3521_vm9, %v7545_v55, %v4251_v49  ;;  %vm3518_vm10 = vcmp.gt.f32.partialorder %v7560_v59, 0.0  ;;  %vm3493_vm11 = vcmp.gt.f32.partialorder %v7574_v17, 0.0  ;;  %v7633_v55 = vmul.f32 0.032258064, %v2824_v20 }
 0x3c2   : > { %v4248_v15 = vadd.f32 -1.0, %v4837_v40  ;;  %v4351_v13 = vpack.c.bf16 %v3761_v45, %v3761_v45  ;;  %v3419_v48 = vmul.f32 %v7064_v33, %v3367_v1  ;;  %4852 = vrcp.f32 %v3247_v31 }
 0x3c3   : > { %v4839_v9 = vpop.eup %4838  ;;  %4854 = vrsqrt.f32 %v7624_v36  ;;  %vm3524_vm12 = vcmp.gt.f32.partialorder %v7583_v34, 0.0  ;;  %vm3174_vm13 = vcmp.eq.f32.partialorder %v7605_v51, inf  ;;  %vm3176_vm15 = vcmp.eq.f32.partialorder %v7605_v51, 0.0 }
 0x3c4   : > { %v3758_v27 = vsel %vm3518_vm10, %v7560_v59, %v4248_v15  ;;  %4002 = vst.msk [vmem:[%s7238_s20 + $0x7c] sm:$0xf] %vm3970_vm14, %v4351_v13  ;;  %v4223_v25 = vadd.f32 -1.0, %v4839_v9  ;;  %v7639_v47 = vadd.f32 %v7068_v53, %v3419_v48  ;;  %v3177_v59 = vand.u32 2147483648, %v7605_v51  ;;  %v2842_v13 = vpop.xlane.xlu0 %2841 }
 0x3c5   : > { %v4348_v0 = vpack.c.bf16 %v3758_v27, %v3758_v27  ;;  %v4841_v16 = vpop.eup %4840  ;;  %4856 = vrsqrt.f32 %v7626_v2  ;;  %vm3139_vm0 = vcmp.eq.f32.partialorder %v7611_v60, inf  ;;  %vm3141_vm1 = vcmp.eq.f32.partialorder %v7611_v60, 0.0 }
 0x3c6   : > { %v4843_v37 = vpop.eup %4842  ;;  %v3733_v46 = vsel %vm3493_vm11, %v7574_v17, %v4223_v25  ;;  %v4254_v7 = vadd.f32 -1.0, %v4841_v16  ;;  %v3567_v26 = vmin.f32 %v7639_v47, 0.0  ;;  %4858 = vrsqrt.f32 %v7633_v55 }
 0x3c7   : > { %3999 = vst.msk [vmem:[%s7238_s20 + $0x70] sm:$0xf] %vm3970_vm14, %v4348_v0  ;;  %v4845_v18 = vpop.eup %4844  ;;  %v4323_v52 = vpack.c.bf16 %v3733_v46, %v3733_v46  ;;  %v3342_v57 = vmul.f32 %v4843_v37, %v6917_v63  ;;  %v3142_v19 = vand.u32 2147483648, %v7611_v60  ;;  %vm2950_vm2 = vcmp.eq.f32.partialorder %v7624_v36, inf }
 0x3c8   : > { %v4847_v11 = vpop.eup %4846  ;;  %v3764_v17 = vsel %vm3524_vm12, %v7583_v34, %v4254_v7  ;;  %v3644_v23 = vmul.f32 1.442695, %v3567_v26  ;;  %v3373_v10 = vmul.f32 %v4845_v18, %v6911_v24  ;;  %v2953_v54 = vand.u32 2147483648, %v7624_v36 }
 0x3c9   : > { %v4849_v56 = vpop.eup %4848  ;;  %3974 = vst.msk [vmem:[%s7238_s20 + $0xc] sm:$0xf] %vm3970_vm14, %v4323_v52  ;;  %v4354_v63 = vpack.c.bf16 %v3764_v17, %v3764_v17  ;;  %v3394_v44 = vmul.f32 %v7064_v33, %v3342_v57  ;;  %v3370_v62 = vmul.f32 %v4847_v11, %v6929_v50  ;;  %vm2952_vm3 = vcmp.eq.f32.partialorder %v7624_v36, 0.0  ;;  %v2827_v52 = vpop.xlane.xlu1 %2826 }
 0x3ca   : > { %v4851_v5 = vpop.eup %4850  ;;  %4860 = vpow2.f32 %v3644_v23  ;;  %v3425_v34 = vmul.f32 %v7064_v33, %v3373_v10  ;;  %v3173_v24 = vmul.f32 %v4849_v56, %v7605_v51  ;;  %v7667_v3 = vmul.f32 0.032258064, %v2737_v41 }
 0x3cb   : > { %4005 = vst.msk [vmem:[%s7238_s20 + $0x88] sm:$0xf] %vm3970_vm14, %v4354_v63  ;;  %v7672_v14 = vadd.f32 %v7068_v53, %v3394_v44  ;;  %v3422_v50 = vmul.f32 %v7064_v33, %v3370_v62  ;;  %v3138_v21 = vmul.f32 %v4851_v5, %v7611_v60  ;;  %vm3181_vm4 = vcmp.eq.f32.partialorder %v7626_v2, inf }
 0x3cc   : > { %v4853_v38 = vpop.eup %4852  ;;  %v7678_v61 = vadd.f32 %v7068_v53, %v3425_v34  ;;  %v3175_v8 = vsel %vm3174_vm13, %v7605_v51, %v3173_v24  ;;  %vm3183_vm5 = vcmp.eq.f32.partialorder %v7626_v2, 0.0  ;;  %4862 = vrsqrt.f32 %v7667_v3 }
 0x3cd   : > { %v4855_v28 = vpop.eup %4854  ;;  %v3542_v4 = vmin.f32 %v7672_v14, 0.0  ;;  %v7687_v6 = vadd.f32 %v7068_v53, %v3422_v50  ;;  %v3343_v49 = vmul.f32 %v4853_v38, %v6922_v12  ;;  %v3184_v32 = vand.u32 2147483648, %v7626_v2  ;;  %v2845_v50 = vpop.xlane.xlu1 %2844 }
 0x3ce   : > { %vm3519_vm6 = vcmp.gt.f32.partialorder %v7639_v47, 0.0  ;;  %v3573_v40 = vmin.f32 %v7678_v61, 0.0  ;;  %v3178_v1 = vsel %vm3176_vm15, %v3177_v59, %v3175_v8  ;;  %v3140_v31 = vsel %vm3139_vm0, %v7611_v60, %v3138_v21 }
 0x3cf   : > { %vm3160_vm7 = vcmp.eq.f32.partialorder %v7633_v55, inf  ;;  %v4857_v20 = vpop.eup %4856  ;;  %v3594_v45 = vmul.f32 1.442695, %v3542_v4  ;;  %v3570_v15 = vmin.f32 %v7687_v6, 0.0  ;;  %v3395_v12 = vmul.f32 %v7064_v33, %v3343_v49 }
 0x3d0   : > { %vm3162_vm8 = vcmp.eq.f32.partialorder %v7633_v55, 0.0  ;;  %v3656_v48 = vmul.f32 1.442695, %v3573_v40  ;;  %v3280_v9 = vadd.f32 1e-06, %v3178_v1  ;;  %v3143_v51 = vsel %vm3141_vm1, %v3142_v19, %v3140_v31  ;;  %v4859_v0 = vpop.eup %4858  ;;  %v2740_v19 = vpop.xlane.xlu0 %2739 }
 0x3d1   : > { %v2949_v27 = vmul.f32 %v4855_v28, %v7624_v36  ;;  %4864 = vpow2.f32 %v3594_v45  ;;  %v3650_v25 = vmul.f32 1.442695, %v3570_v15  ;;  %v7706_v16 = vadd.f32 %v7068_v53, %v3395_v12 }
 0x3d2   : > { %v3275_v59 = vadd.f32 1e-06, %v3143_v51  ;;  %4866 = vpow2.f32 %v3656_v48  ;;  %v3180_v46 = vmul.f32 %v4857_v20, %v7626_v2  ;;  %v3159_v7 = vmul.f32 %v4859_v0, %v7633_v55 }
 0x3d3   : > { %v2951_v37 = vsel %vm2950_vm2, %v7624_v36, %v2949_v27  ;;  %4868 = vpow2.f32 %v3650_v25  ;;  %v3543_v60 = vmin.f32 %v7706_v16, 0.0  ;;  %v3163_v18 = vand.u32 2147483648, %v7633_v55 }
 0x3d4   : > { %v2954_v26 = vsel %vm2952_vm3, %v2953_v54, %v2951_v37  ;;  %v4861_v57 = vpop.eup %4860  ;;  %4870 = vrcp.f32 %v3280_v9  ;;  %v3182_v11 = vsel %vm3181_vm4, %v7626_v2, %v3180_v46  ;;  %v3161_v17 = vsel %vm3160_vm7, %v7633_v55, %v3159_v7  ;;  %v2836_v4 = vpop.xlane.xlu0 %2835 }
 0x3d5   : > { %v3248_v41 = vadd.f32 1e-06, %v2954_v26  ;;  %v4249_v23 = vadd.f32 -1.0, %v4861_v57  ;;  %v3596_v10 = vmul.f32 1.442695, %v3543_v60  ;;  %4872 = vrcp.f32 %v3275_v59 }
 0x3d6   : > { %v3185_v36 = vsel %vm3183_vm5, %v3184_v32, %v3182_v11  ;;  %v4863_v56 = vpop.eup %4862  ;;  %v3164_v44 = vsel %vm3162_vm8, %v3163_v18, %v3161_v17  ;;  %v7727_v62 = vmul.f32 0.032258064, %v2842_v13  ;;  %vm2957_vm9 = vcmp.eq.f32.partialorder %v7667_v3, inf }
 0x3d7   : > { %4874 = vrcp.f32 %v3248_v41  ;;  %v3281_v63 = vadd.f32 1e-06, %v3185_v36  ;;  %v3759_v54 = vsel %vm3519_vm6, %v7639_v47, %v4249_v23  ;;  %v3278_v5 = vadd.f32 1e-06, %v3164_v44 }
 0x3d8   : > { %4876 = vpow2.f32 %v3596_v10  ;;  %v2956_v34 = vmul.f32 %v4863_v56, %v7667_v3  ;;  %v4349_v2 = vpack.c.bf16 %v3759_v54, %v3759_v54  ;;  %v2960_v24 = vand.u32 2147483648, %v7667_v3 }
 0x3d9   : > { %4878 = vrcp.f32 %v3281_v63  ;;  %vm2959_vm10 = vcmp.eq.f32.partialorder %v7667_v3, 0.0  ;;  %v7740_v47 = vmul.f32 0.032258064, %v2827_v52  ;;  %v7742_v28 = vmul.f32 0.032258064, %v2740_v19 }
 0x3da   : > { %4880 = vrcp.f32 %v3278_v5  ;;  %v2958_v55 = vsel %vm2957_vm9, %v7667_v3, %v2956_v34  ;;  %4000 = vst.msk [vmem:[%s7238_s20 + $0x74] sm:$0xf] %vm3970_vm14, %v4349_v2  ;;  %vm3494_vm11 = vcmp.gt.f32.partialorder %v7672_v14, 0.0  ;;  %v7746_v3 = vmul.f32 0.032258064, %v2845_v50  ;;  %v2743_v5 = vpop.xlane.xlu1 %2742 }
 0x3db   : > { %v2961_v21 = vsel %vm2959_vm10, %v2960_v24, %v2958_v55  ;;  %4882 = vrsqrt.f32 %v7727_v62  ;;  %v4865_v38 = vpop.eup %4864  ;;  %vm3525_vm12 = vcmp.gt.f32.partialorder %v7678_v61, 0.0  ;;  %vm3522_vm13 = vcmp.gt.f32.partialorder %v7687_v6, 0.0 }
 0x3dc   : > { %v3249_v8 = vadd.f32 1e-06, %v2961_v21  ;;  %v4867_v49 = vpop.eup %4866  ;;  %v4224_v32 = vadd.f32 -1.0, %v4865_v38  ;;  %4884 = vrsqrt.f32 %v7740_v47  ;;  %vm3495_vm15 = vcmp.gt.f32.partialorder %v7706_v16, 0.0 }
 0x3dd   : > { %v4869_v40 = vpop.eup %4868  ;;  %v4255_v1 = vadd.f32 -1.0, %v4867_v49  ;;  %v7752_v15 = vmul.f32 0.032258064, %v2836_v4  ;;  %vm3202_vm0 = vcmp.eq.f32.partialorder %v7727_v62, inf  ;;  %vm3204_vm1 = vcmp.eq.f32.partialorder %v7727_v62, 0.0 }
 0x3de   : > { %4886 = vrcp.f32 %v3249_v8  ;;  %v4871_v31 = vpop.eup %4870  ;;  %v3734_v20 = vsel %vm3494_vm11, %v7672_v14, %v4224_v32  ;;  %v4252_v45 = vadd.f32 -1.0, %v4869_v40  ;;  %vm3167_vm2 = vcmp.eq.f32.partialorder %v7740_v47, inf }
 0x3df   : > { %v4873_v12 = vpop.eup %4872  ;;  %v4324_v13 = vpack.c.bf16 %v3734_v20, %v3734_v20  ;;  %v3765_v48 = vsel %vm3525_vm12, %v7678_v61, %v4255_v1  ;;  %v3376_v9 = vmul.f32 %v4871_v31, %v6941_v39  ;;  %4888 = vrsqrt.f32 %v7742_v28 }
 0x3e0   : > { %v4355_v27 = vpack.c.bf16 %v3765_v48, %v3765_v48  ;;  %v3762_v0 = vsel %vm3522_vm13, %v7687_v6, %v4252_v45  ;;  %v3371_v14 = vmul.f32 %v4873_v12, %v6935_v30  ;;  %4890 = vrsqrt.f32 %v7746_v3 }
 0x3e1   : > { %v4875_v51 = vpop.eup %4874  ;;  %3975 = vst.msk [vmem:[%s7238_s20 + $0x10] sm:$0xf] %vm3970_vm14, %v4324_v13  ;;  %v4352_v59 = vpack.c.bf16 %v3762_v0, %v3762_v0  ;;  %v3428_v37 = vmul.f32 %v7064_v33, %v3376_v9  ;;  %v3205_v30 = vand.u32 2147483648, %v7727_v62  ;;  %4892 = vrsqrt.f32 %v7752_v15 }
 0x3e2   : > { %v4877_v25 = vpop.eup %4876  ;;  %v3344_v61 = vmul.f32 %v4875_v51, %v6953_v22  ;;  %4006 = vst.msk [vmem:[%s7238_s20 + $0x8c] sm:$0xf] %vm3970_vm14, %v4355_v27  ;;  %v3423_v6 = vmul.f32 %v7064_v33, %v3371_v14  ;;  %vm3169_vm3 = vcmp.eq.f32.partialorder %v7740_v47, 0.0  ;;  %v3170_v11 = vand.u32 2147483648, %v7740_v47 }
 0x3e3   : > { %v4879_v39 = vpop.eup %4878  ;;  %v4225_v46 = vadd.f32 -1.0, %v4877_v25  ;;  %4003 = vst.msk [vmem:[%s7238_s20 + $0x80] sm:$0xf] %vm3970_vm14, %v4352_v59  ;;  %v7773_v60 = vadd.f32 %v7068_v53, %v3428_v37  ;;  %vm2964_vm4 = vcmp.eq.f32.partialorder %v7742_v28, inf  ;;  %vm2966_vm5 = vcmp.eq.f32.partialorder %v7742_v28, 0.0 }
 0x3e4   : > { %v4881_v7 = vpop.eup %4880  ;;  %v3396_v22 = vmul.f32 %v7064_v33, %v3344_v61  ;;  %v3377_v26 = vmul.f32 %v4879_v39, %v6946_v29  ;;  %v7783_v57 = vadd.f32 %v7068_v53, %v3423_v6  ;;  %v2967_v54 = vand.u32 2147483648, %v7742_v28 }
 0x3e5   : > { %v4883_v18 = vpop.eup %4882  ;;  %v3735_v52 = vsel %vm3495_vm15, %v7706_v16, %v4225_v46  ;;  %v3374_v41 = vmul.f32 %v4881_v7, %v6965_v58  ;;  %v3576_v17 = vmin.f32 %v7773_v60, 0.0  ;;  %vm3209_vm6 = vcmp.eq.f32.partialorder %v7746_v3, inf }
 0x3e6   : > { %v4325_v29 = vpack.c.bf16 %v3735_v52, %v3735_v52  ;;  %v7790_v23 = vadd.f32 %v7068_v53, %v3396_v22  ;;  %v4885_v10 = vpop.eup %4884  ;;  %v3571_v16 = vmin.f32 %v7783_v57, 0.0  ;;  %v3429_v36 = vmul.f32 %v7064_v33, %v3377_v26  ;;  %v2746_v22 = vpop.xlane.xlu0 %2745 }
 0x3e7   : > { %v3426_v19 = vmul.f32 %v7064_v33, %v3374_v41  ;;  %v3662_v56 = vmul.f32 1.442695, %v3576_v17  ;;  %v3201_v44 = vmul.f32 %v4883_v18, %v7727_v62  ;;  %v3166_v8 = vmul.f32 %v4885_v10, %v7740_v47 }
 0x3e8   : > { %v4887_v58 = vpop.eup %4886  ;;  %3976 = vst.msk [vmem:[%s7238_s20 + $0x14] sm:$0xf] %vm3970_vm14, %v4325_v29  ;;  %v3544_v63 = vmin.f32 %v7790_v23, 0.0  ;;  %v3652_v34 = vmul.f32 1.442695, %v3571_v16  ;;  %v7803_v2 = vadd.f32 %v7068_v53, %v3429_v36  ;;  %vm3211_vm7 = vcmp.eq.f32.partialorder %v7746_v3, 0.0 }
 0x3e9   : > { %v7806_v24 = vadd.f32 %v7068_v53, %v3426_v19  ;;  %v3345_v55 = vmul.f32 %v4887_v58, %v6959_v35  ;;  %v4889_v50 = vpop.eup %4888  ;;  %4894 = vpow2.f32 %v3662_v56  ;;  %v3203_v38 = vsel %vm3202_vm0, %v7727_v62, %v3201_v44  ;;  %v2839_v62 = vpop.xlane.xlu1 %2838 }
 0x3ea   : > { %v3598_v21 = vmul.f32 1.442695, %v3544_v63  ;;  %v4891_v4 = vpop.eup %4890  ;;  %4896 = vpow2.f32 %v3652_v34  ;;  %v3577_v49 = vmin.f32 %v7803_v2, 0.0  ;;  %v3206_v40 = vsel %vm3204_vm1, %v3205_v30, %v3203_v38 }
 0x3eb   : > { %v3574_v35 = vmin.f32 %v7806_v24, 0.0  ;;  %v3397_v32 = vmul.f32 %v7064_v33, %v3345_v55  ;;  %v3284_v31 = vadd.f32 1e-06, %v3206_v40  ;;  %v3168_v20 = vsel %vm3167_vm2, %v7740_v47, %v3166_v8  ;;  %v4893_v12 = vpop.eup %4892 }
 0x3ec   : > { %4898 = vpow2.f32 %v3598_v21  ;;  %v3664_v1 = vmul.f32 1.442695, %v3577_v49  ;;  %v2963_v45 = vmul.f32 %v4889_v50, %v7742_v28  ;;  %v3171_v9 = vsel %vm3169_vm3, %v3170_v11, %v3168_v20 }
 0x3ed   : > { %v3658_v13 = vmul.f32 1.442695, %v3574_v35  ;;  %v7825_v48 = vadd.f32 %v7068_v53, %v3397_v32  ;;  %v3208_v51 = vmul.f32 %v4891_v4, %v7746_v3  ;;  %v3279_v27 = vadd.f32 1e-06, %v3171_v9  ;;  %v2749_v18 = vpop.xlane.xlu1 %2748 }
 0x3ee   : > { %4900 = vpow2.f32 %v3664_v1  ;;  %v2965_v0 = vsel %vm2964_vm4, %v7742_v28, %v2963_v45  ;;  %v3187_v14 = vmul.f32 %v4893_v12, %v7752_v15  ;;  %v3212_v47 = vand.u32 2147483648, %v7746_v3 }
 0x3ef   : > { %4902 = vpow2.f32 %v3658_v13  ;;  %v3545_v25 = vmin.f32 %v7825_v48, 0.0  ;;  %v2968_v59 = vsel %vm2966_vm5, %v2967_v54, %v2965_v0  ;;  %v3210_v61 = vsel %vm3209_vm6, %v7746_v3, %v3208_v51  ;;  %v8145_v51 = vld [vmem:[#allocation3_spill] sm:$0xff] }
 0x3f0   : > { %4904 = vrcp.f32 %v3284_v31  ;;  %v3250_v37 = vadd.f32 1e-06, %v2968_v59  ;;  %vm3188_vm8 = vcmp.eq.f32.partialorder %v7752_v15, inf  ;;  %v3213_v46 = vsel %vm3211_vm7, %v3212_v47, %v3210_v61 }
 0x3f1   : > { %v3600_v39 = vmul.f32 1.442695, %v3545_v25  ;;  %4906 = vrcp.f32 %v3279_v27  ;;  %v3189_v6 = vsel %vm3188_vm8, %v7752_v15, %v3187_v14  ;;  %v3285_v28 = vadd.f32 1e-06, %v3213_v46 }
 0x3f2   : > { %4908 = vrcp.f32 %v3250_v37  ;;  %v3191_v30 = vand.u32 2147483648, %v7752_v15  ;;  %v7846_v7 = vmul.f32 0.032258064, %v2743_v5  ;;  %vm3528_vm9 = vcmp.gt.f32.partialorder %v7773_v60, 0.0 }
 0x3f3   : > { %v4895_v26 = vpop.eup %4894  ;;  %4910 = vpow2.f32 %v3600_v39  ;;  %vm3190_vm10 = vcmp.eq.f32.partialorder %v7752_v15, 0.0  ;;  %v7850_v11 = vmul.f32 0.032258064, %v2839_v62  ;;  %v7853_v16 = vmul.f32 0.032258064, %v2746_v22 }
 0x3f4   : > { %v4897_v52 = vpop.eup %4896  ;;  %v4258_v41 = vadd.f32 -1.0, %v4895_v26  ;;  %4912 = vrcp.f32 %v3285_v28  ;;  %v3192_v3 = vsel %vm3190_vm10, %v3191_v30, %v3189_v6  ;;  %vm3523_vm11 = vcmp.gt.f32.partialorder %v7783_v57, 0.0  ;;  %v8146_v6 = vld [vmem:[#allocation5_spill] sm:$0xff] }
 0x3f5   : > { %v4253_v17 = vadd.f32 -1.0, %v4897_v52  ;;  %v3282_v10 = vadd.f32 1e-06, %v3192_v3  ;;  %4914 = vrsqrt.f32 %v7846_v7  ;;  %v7857_v19 = vmul.f32 0.032258064, %v2749_v18 }
 0x3f6   : > { %v4899_v29 = vpop.eup %4898  ;;  %v3768_v36 = vsel %vm3528_vm9, %v7773_v60, %v4258_v41  ;;  %vm3496_vm12 = vcmp.gt.f32.partialorder %v7790_v23, 0.0  ;;  %vm3529_vm13 = vcmp.gt.f32.partialorder %v7803_v2, 0.0  ;;  %vm3526_vm15 = vcmp.gt.f32.partialorder %v7806_v24, 0.0 }
 0x3f7   : > { %v4226_v15 = vadd.f32 -1.0, %v4899_v29  ;;  %v4358_v58 = vpack.c.bf16 %v3768_v36, %v3768_v36  ;;  %v3763_v56 = vsel %vm3523_vm11, %v7783_v57, %v4253_v17  ;;  %4916 = vrcp.f32 %v3282_v10 }
 0x3f8   : > { %v4901_v63 = vpop.eup %4900  ;;  %v4353_v44 = vpack.c.bf16 %v3763_v56, %v3763_v56  ;;  %4918 = vrsqrt.f32 %v7850_v11  ;;  %vm3497_vm0 = vcmp.gt.f32.partialorder %v7825_v48, 0.0  ;;  %vm2971_vm1 = vcmp.eq.f32.partialorder %v7846_v7, inf }
 0x3f9   : > { %v3736_v54 = vsel %vm3496_vm12, %v7790_v23, %v4226_v15  ;;  %v4903_v60 = vpop.eup %4902  ;;  %4009 = vst.msk [vmem:[%s7238_s20 + $0x98] sm:$0xf] %vm3970_vm14, %v4358_v58  ;;  %v4259_v34 = vadd.f32 -1.0, %v4901_v63  ;;  %4920 = vrsqrt.f32 %v7853_v16  ;;  %v2848_v23 = vpop.xlane.xlu0 %2847  ;;  %vm2973_vm2 = vcmp.eq.f32.partialorder %v7846_v7, 0.0 }
 0x3fa   : > { %v4326_v5 = vpack.c.bf16 %v3736_v54, %v3736_v54  ;;  %v4905_v55 = vpop.eup %4904  ;;  %4004 = vst.msk [vmem:[%s7238_s20 + $0x84] sm:$0xf] %vm3970_vm14, %v4353_v44  ;;  %v4256_v57 = vadd.f32 -1.0, %v4903_v60  ;;  %4922 = vrsqrt.f32 %v7857_v19  ;;  %v7882_v20 = vmul.f32 0.032258064, %v2848_v23  ;;  %v2851_v60 = vpop.xlane.xlu1 %2850 }
 0x3fb   : > { %v4907_v50 = vpop.eup %4906  ;;  %v3769_v21 = vsel %vm3529_vm13, %v7803_v2, %v4259_v34  ;;  %v3380_v38 = vmul.f32 %v4905_v55, %v6977_v43  ;;  %v8144_v2 = vld [vmem:[#allocation2_spill] sm:$0xff]  ;;  %vm3195_vm3 = vcmp.eq.f32.partialorder %v7850_v11, inf  ;;  %vm3197_vm4 = vcmp.eq.f32.partialorder %v7850_v11, 0.0 }
 0x3fc   : > { %3977 = vst.msk [vmem:[%s7238_s20 + $0x18] sm:$0xf] %vm3970_vm14, %v4326_v5  ;;  %v4909_v8 = vpop.eup %4908  ;;  %v4359_v4 = vpack.c.bf16 %v3769_v21, %v3769_v21  ;;  %v3766_v49 = vsel %vm3526_vm15, %v7806_v24, %v4256_v57  ;;  %v3375_v35 = vmul.f32 %v4907_v50, %v6970_v42  ;;  %v2974_v24 = vand.u32 2147483648, %v7846_v7 }
 0x3fd   : > { %v4911_v32 = vpop.eup %4910  ;;  %v4356_v40 = vpack.c.bf16 %v3766_v49, %v3766_v49  ;;  %v3432_v1 = vmul.f32 %v7064_v33, %v3380_v38  ;;  %v3346_v31 = vmul.f32 %v4909_v8, %v8144_v2  ;;  %4924 = vrsqrt.f32 %v7882_v20 }
 0x3fe   : > { %v4913_v43 = vpop.eup %4912  ;;  %4010 = vst.msk [vmem:[%s7238_s20 + $0x9c] sm:$0xf] %vm3970_vm14, %v4359_v4  ;;  %v4227_v45 = vadd.f32 -1.0, %v4911_v32  ;;  %v3427_v12 = vmul.f32 %v7064_v33, %v3375_v35  ;;  %v3198_v25 = vand.u32 2147483648, %v7850_v11  ;;  %vm2978_vm5 = vcmp.eq.f32.partialorder %v7853_v16, inf }
 0x3ff   : > { %v4915_v42 = vpop.eup %4914  ;;  %4007 = vst.msk [vmem:[%s7238_s20 + $0x90] sm:$0xf] %vm3970_vm14, %v4356_v40  ;;  %v7892_v13 = vadd.f32 %v7068_v53, %v3432_v1  ;;  %v3398_v9 = vmul.f32 %v7064_v33, %v3346_v31  ;;  %v3381_v62 = vmul.f32 %v4913_v43, %v8145_v51  ;;  %vm2980_vm6 = vcmp.eq.f32.partialorder %v7853_v16, 0.0  ;;  %v2854_v40 = vpop.xlane.xlu0 %2853 }
 0x400   : > { %v3737_v27 = vsel %vm3497_vm0, %v7825_v48, %v4227_v45  ;;  %v7901_v0 = vadd.f32 %v7068_v53, %v3427_v12  ;;  %v2970_v14 = vmul.f32 %v4915_v42, %v7846_v7  ;;  %v2981_v52 = vand.u32 2147483648, %v7853_v16 }
 0x401   : > { %v4917_v59 = vpop.eup %4916  ;;  %v4327_v47 = vpack.c.bf16 %v3737_v27, %v3737_v27  ;;  %v3580_v37 = vmin.f32 %v7892_v13, 0.0  ;;  %v7908_v61 = vadd.f32 %v7068_v53, %v3398_v9  ;;  %v3433_v46 = vmul.f32 %v7064_v33, %v3381_v62 }
 0x402   : > { %v4919_v48 = vpop.eup %4918  ;;  %v3575_v39 = vmin.f32 %v7901_v0, 0.0  ;;  %v3378_v28 = vmul.f32 %v4917_v59, %v8146_v6  ;;  %v2972_v18 = vsel %vm2971_vm1, %v7846_v7, %v2970_v14  ;;  %vm2985_vm7 = vcmp.eq.f32.partialorder %v7857_v19, inf }
 0x403   : > { %v4921_v30 = vpop.eup %4920  ;;  %3978 = vst.msk [vmem:[%s7238_s20 + $0x1c] sm:$0xf] %vm3970_vm14, %v4327_v47  ;;  %v3670_v22 = vmul.f32 1.442695, %v3580_v37  ;;  %v3546_v26 = vmin.f32 %v7908_v61, 0.0  ;;  %v7923_v29 = vadd.f32 %v7068_v53, %v3433_v46  ;;  %v2975_v10 = vsel %vm2973_vm2, %v2974_v24, %v2972_v18  ;;  %v8147_v47 = vld [vmem:[#allocation4_spill] sm:$0xff] }
 0x404   : > { %v4923_v41 = vpop.eup %4922  ;;  %v3660_v3 = vmul.f32 1.442695, %v3575_v39  ;;  %v3430_v17 = vmul.f32 %v7064_v33, %v3378_v28  ;;  %v3251_v15 = vadd.f32 1e-06, %v2975_v10  ;;  %v3194_v58 = vmul.f32 %v4919_v48, %v7850_v11 }
 0x405   : > { %4926 = vpow2.f32 %v3670_v22  ;;  %v3602_v36 = vmul.f32 1.442695, %v3546_v26  ;;  %v3581_v56 = vmin.f32 %v7923_v29, 0.0  ;;  %v2977_v7 = vmul.f32 %v4921_v30, %v7853_v16 }
 0x406   : > { %4928 = vpow2.f32 %v3660_v3  ;;  %v7931_v63 = vadd.f32 %v7068_v53, %v3430_v17  ;;  %v3196_v44 = vsel %vm3195_vm3, %v7850_v11, %v3194_v58  ;;  %v2984_v54 = vmul.f32 %v4923_v41, %v7857_v19  ;;  %v8148_v41 = vld [vmem:[#allocation6_spill] sm:$0xff] }
 0x407   : > { %4930 = vpow2.f32 %v3602_v36  ;;  %v3672_v5 = vmul.f32 1.442695, %v3581_v56  ;;  %vm2987_vm8 = vcmp.eq.f32.partialorder %v7857_v19, 0.0  ;;  %v4925_v55 = vpop.eup %4924  ;;  %v3199_v57 = vsel %vm3197_vm4, %v3198_v25, %v3196_v44 }
 0x408   : > { %v3578_v34 = vmin.f32 %v7931_v63, 0.0  ;;  %4932 = vrcp.f32 %v3251_v15  ;;  %v2979_v23 = vsel %vm2978_vm5, %v7853_v16, %v2977_v7  ;;  %v2986_v50 = vsel %vm2985_vm7, %v7857_v19, %v2984_v54  ;;  %v2857_v16 = vpop.xlane.xlu1 %2856  ;;  %v8149_v15 = vld [vmem:[#allocation7_spill] sm:$0xff]  ;;  %v8150_v7 = vld [vmem:[#allocation8_spill] sm:$0xff] }
 0x409   : > { %v2988_v21 = vand.u32 2147483648, %v7857_v19  ;;  %4934 = vpow2.f32 %v3672_v5  ;;  %v3283_v8 = vadd.f32 1e-06, %v3199_v57  ;;  %v2982_v4 = vsel %vm2980_vm6, %v2981_v52, %v2979_v23 }
 0x40a   : > { %v3666_v38 = vmul.f32 1.442695, %v3578_v34  ;;  %v3252_v49 = vadd.f32 1e-06, %v2982_v4  ;;  %v3215_v32 = vmul.f32 %v4925_v55, %v7882_v20  ;;  %v7951_v11 = vmul.f32 0.032258064, %v2851_v60 }
 0x40b   : > { %v2989_v35 = vsel %vm2987_vm8, %v2988_v21, %v2986_v50  ;;  %vm3216_vm9 = vcmp.eq.f32.partialorder %v7882_v20, inf  ;;  %v3219_v2 = vand.u32 2147483648, %v7882_v20  ;;  %vm3218_vm10 = vcmp.eq.f32.partialorder %v7882_v20, 0.0  ;;  %v8151_v21 = vld [vmem:[#allocation10_spill] sm:$0xff] }
 0x40c   : > { %4936 = vpow2.f32 %v3666_v38  ;;  %v3253_v1 = vadd.f32 1e-06, %v2989_v35  ;;  %v3217_v19 = vsel %vm3216_vm9, %v7882_v20, %v3215_v32  ;;  %v7957_v43 = vmul.f32 0.032258064, %v2854_v40 }
 0x40d   : > { %4938 = vrcp.f32 %v3283_v8  ;;  %v3220_v31 = vsel %vm3218_vm10, %v3219_v2, %v3217_v19  ;;  %v7960_v9 = vmul.f32 0.032258064, %v2857_v16  ;;  %vm3532_vm11 = vcmp.gt.f32.partialorder %v7892_v13, 0.0 }
 0x40e   : > { %4940 = vrcp.f32 %v3252_v49  ;;  %v3286_v12 = vadd.f32 1e-06, %v3220_v31  ;;  %vm3527_vm12 = vcmp.gt.f32.partialorder %v7901_v0, 0.0  ;;  %vm3498_vm13 = vcmp.gt.f32.partialorder %v7908_v61, 0.0 }
 0x40f   : > { %v4927_v45 = vpop.eup %4926  ;;  %4942 = vrcp.f32 %v3253_v1  ;;  %vm3533_vm15 = vcmp.gt.f32.partialorder %v7923_v29, 0.0  ;;  %vm3530_vm0 = vcmp.gt.f32.partialorder %v7931_v63, 0.0  ;;  %vm3223_vm1 = vcmp.eq.f32.partialorder %v7951_v11, inf }
 0x410   : > { %v4929_v24 = vpop.eup %4928  ;;  %v4262_v42 = vadd.f32 -1.0, %v4927_v45  ;;  %4944 = vrsqrt.f32 %v7951_v11  ;;  %vm3225_vm2 = vcmp.eq.f32.partialorder %v7951_v11, 0.0  ;;  %v3226_v55 = vand.u32 2147483648, %v7951_v11 }
 0x411   : > { %v4931_v51 = vpop.eup %4930  ;;  %v4257_v62 = vadd.f32 -1.0, %v4929_v24  ;;  %4946 = vrcp.f32 %v3286_v12  ;;  %vm3230_vm3 = vcmp.eq.f32.partialorder %v7957_v43, inf  ;;  %vm3232_vm4 = vcmp.eq.f32.partialorder %v7957_v43, 0.0 }
 0x412   : > { %v4933_v20 = vpop.eup %4932  ;;  %v3772_v27 = vsel %vm3532_vm11, %v7892_v13, %v4262_v42  ;;  %v4228_v14 = vadd.f32 -1.0, %v4931_v51  ;;  %4948 = vrsqrt.f32 %v7957_v43  ;;  %v3233_v31 = vand.u32 2147483648, %v7957_v43 }
 0x413   : > { %v4362_v25 = vpack.c.bf16 %v3772_v27, %v3772_v27  ;;  %v3767_v59 = vsel %vm3527_vm12, %v7901_v0, %v4257_v62  ;;  %v3347_v37 = vmul.f32 %v4933_v20, %v8147_v47  ;;  %v4935_v48 = vpop.eup %4934  ;;  %4950 = vrsqrt.f32 %v7960_v9 }
 0x414   : > { %v4357_v39 = vpack.c.bf16 %v3767_v59, %v3767_v59  ;;  %v3738_v46 = vsel %vm3498_vm13, %v7908_v61, %v4228_v14  ;;  %v4263_v6 = vadd.f32 -1.0, %v4935_v48  ;;  %vm3237_vm5 = vcmp.eq.f32.partialorder %v7960_v9, inf }
 0x415   : > { %4013 = vst.msk [vmem:[%s7238_s20 + $0xa8] sm:$0xf] %vm3970_vm14, %v4362_v25  ;;  %v4328_v13 = vpack.c.bf16 %v3738_v46, %v3738_v46  ;;  %v3399_v28 = vmul.f32 %v7064_v33, %v3347_v37  ;;  %vm3239_vm6 = vcmp.eq.f32.partialorder %v7960_v9, 0.0 }
 0x416   : > { %v4937_v30 = vpop.eup %4936  ;;  %4008 = vst.msk [vmem:[%s7238_s20 + $0x94] sm:$0xf] %vm3970_vm14, %v4357_v39  ;;  %v3773_v22 = vsel %vm3533_vm15, %v7923_v29, %v4263_v6 }
 0x417   : > { %v4939_v0 = vpop.eup %4938  ;;  %3979 = vst.msk [vmem:[%s7238_s20 + $0x20] sm:$0xf] %vm3970_vm14, %v4328_v13  ;;  %v4260_v61 = vadd.f32 -1.0, %v4937_v30  ;;  %v7981_v26 = vadd.f32 %v7068_v53, %v3399_v28  ;;  %v4363_v52 = vpack.c.bf16 %v3773_v22, %v3773_v22 }
 0x418   : > { %v4941_v18 = vpop.eup %4940  ;;  %v3379_v3 = vmul.f32 %v4939_v0, %v8148_v41 }
 0x419   : > { %v4943_v17 = vpop.eup %4942  ;;  %v3770_v10 = vsel %vm3530_vm0, %v7931_v63, %v4260_v61  ;;  %v3547_v36 = vmin.f32 %v7981_v26, 0.0  ;;  %v3348_v58 = vmul.f32 %v4941_v18, %v8149_v15  ;;  %4014 = vst.msk [vmem:[%s7238_s20 + $0xac] sm:$0xf] %vm3970_vm14, %v4363_v52  ;;  %vm3499_vm7 = vcmp.gt.f32.partialorder %v7981_v26, 0.0 }
 0x41a   : > { %v4945_v29 = vpop.eup %4944  ;;  %v4360_v56 = vpack.c.bf16 %v3770_v10, %v3770_v10  ;;  %v3431_v44 = vmul.f32 %v7064_v33, %v3379_v3  ;;  %v3349_v54 = vmul.f32 %v4943_v17, %v8150_v7  ;;  %v8153_v7 = vld [vmem:[#allocation9_spill] sm:$0xff] }
 0x41b   : > { %v4947_v60 = vpop.eup %4946  ;;  %v3604_v5 = vmul.f32 1.442695, %v3547_v36  ;;  %v3400_v63 = vmul.f32 %v7064_v33, %v3348_v58  ;;  %v3222_v34 = vmul.f32 %v4945_v29, %v7951_v11 }
 0x41c   : > { %v4949_v57 = vpop.eup %4948  ;;  %4011 = vst.msk [vmem:[%s7238_s20 + $0xa0] sm:$0xf] %vm3970_vm14, %v4360_v56  ;;  %v3483_v23 = vadd.f32 %v7068_v53, %v3431_v44  ;;  %v3401_v50 = vmul.f32 %v7064_v33, %v3349_v54  ;;  %v3382_v38 = vmul.f32 %v4947_v60, %v8151_v21 }
 0x41d   : > { %4952 = vpow2.f32 %v3604_v5  ;;  %v3452_v8 = vadd.f32 %v7068_v53, %v3400_v63  ;;  %v3224_v4 = vsel %vm3223_vm1, %v7951_v11, %v3222_v34  ;;  %v3229_v49 = vmul.f32 %v4949_v57, %v7957_v43  ;;  %v4951_v35 = vpop.eup %4950  ;;  %v8154_v5 = vld [vmem:[#allocation11_spill] sm:$0xff] }
 0x41e   : > { %v3579_v32 = vmin.f32 %v3483_v23, 0.0  ;;  %v3453_v40 = vadd.f32 %v7068_v53, %v3401_v50  ;;  %v3434_v1 = vmul.f32 %v7064_v33, %v3382_v38  ;;  %v3227_v19 = vsel %vm3225_vm2, %v3226_v55, %v3224_v4 }
 0x41f   : > { %v3548_v2 = vmin.f32 %v3452_v8, 0.0  ;;  %v3231_v16 = vsel %vm3230_vm3, %v7957_v43, %v3229_v49  ;;  %v3287_v51 = vadd.f32 1e-06, %v3227_v19  ;;  %v3236_v20 = vmul.f32 %v4951_v35, %v7960_v9 }
 0x420   : > { %v3668_v45 = vmul.f32 1.442695, %v3579_v32  ;;  %v3549_v12 = vmin.f32 %v3453_v40, 0.0  ;;  %v3486_v24 = vadd.f32 %v7068_v53, %v3434_v1  ;;  %v3234_v62 = vsel %vm3232_vm4, %v3233_v31, %v3231_v16 }
 0x421   : > { %v3606_v42 = vmul.f32 1.442695, %v3548_v2  ;;  %v3240_v11 = vand.u32 2147483648, %v7960_v9  ;;  %v3288_v25 = vadd.f32 1e-06, %v3234_v62  ;;  %v3238_v43 = vsel %vm3237_vm5, %v7960_v9, %v3236_v20 }
 0x422   : > { %4954 = vpow2.f32 %v3668_v45  ;;  %v3608_v27 = vmul.f32 1.442695, %v3549_v12  ;;  %v3582_v14 = vmin.f32 %v3486_v24, 0.0  ;;  %vm3531_vm8 = vcmp.gt.f32.partialorder %v3483_v23, 0.0 }
 0x423   : > { %4956 = vpow2.f32 %v3606_v42  ;;  %v3241_v47 = vsel %vm3239_vm6, %v3240_v11, %v3238_v43  ;;  %vm3500_vm9 = vcmp.gt.f32.partialorder %v3452_v8, 0.0  ;;  %vm3501_vm10 = vcmp.gt.f32.partialorder %v3453_v40, 0.0 }
 0x424   : > { %4958 = vpow2.f32 %v3608_v27  ;;  %v3674_v59 = vmul.f32 1.442695, %v3582_v14  ;;  %v3289_v37 = vadd.f32 1e-06, %v3241_v47  ;;  %vm3534_vm11 = vcmp.gt.f32.partialorder %v3486_v24, 0.0 }
 0x425   : > { %4960 = vrcp.f32 %v3287_v51 }
 0x426   : > { %4962 = vpow2.f32 %v3674_v59 }
 0x427   : > { %v4953_v48 = vpop.eup %4952  ;;  %4964 = vrcp.f32 %v3288_v25 }
 0x428   : > { %v4229_v39 = vadd.f32 -1.0, %v4953_v48  ;;  %4966 = vrcp.f32 %v3289_v37 }
 0x42a   : > { %v3739_v46 = vsel %vm3499_vm7, %v7981_v26, %v4229_v39  ;;  %v8152_v26 = vld [vmem:[#allocation12_spill] sm:$0xff] }
 0x42b   : > { %v4329_v13 = vpack.c.bf16 %v3739_v46, %v3739_v46 }
 0x42c   : > { %v4955_v6 = vpop.eup %4954 }
 0x42d   : > { %v4957_v28 = vpop.eup %4956  ;;  %3980 = vst.msk [vmem:[%s7238_s20 + $0x24] sm:$0xf] %vm3970_vm14, %v4329_v13  ;;  %v4261_v9 = vadd.f32 -1.0, %v4955_v6 }
 0x42e   : > { %v4959_v30 = vpop.eup %4958  ;;  %v4230_v0 = vadd.f32 -1.0, %v4957_v28 }
 0x42f   : > { %v4961_v22 = vpop.eup %4960  ;;  %v3771_v61 = vsel %vm3531_vm8, %v3483_v23, %v4261_v9  ;;  %v4231_v18 = vadd.f32 -1.0, %v4959_v30 }
 0x430   : > { %v4963_v52 = vpop.eup %4962  ;;  %v4361_v41 = vpack.c.bf16 %v3771_v61, %v3771_v61  ;;  %v3740_v3 = vsel %vm3500_vm9, %v3452_v8, %v4230_v0  ;;  %v3383_v17 = vmul.f32 %v4961_v22, %v8152_v26 }
 0x431   : > { %v4965_v10 = vpop.eup %4964  ;;  %v4330_v36 = vpack.c.bf16 %v3740_v3, %v3740_v3  ;;  %v3741_v15 = vsel %vm3501_vm10, %v3453_v40, %v4231_v18  ;;  %v4264_v58 = vadd.f32 -1.0, %v4963_v52 }
 0x432   : > { %v4967_v29 = vpop.eup %4966  ;;  %4012 = vst.msk [vmem:[%s7238_s20 + $0xa4] sm:$0xf] %vm3970_vm14, %v4361_v41  ;;  %v4331_v56 = vpack.c.bf16 %v3741_v15, %v3741_v15  ;;  %v3435_v44 = vmul.f32 %v7064_v33, %v3383_v17  ;;  %v3384_v54 = vmul.f32 %v4965_v10, %v8153_v7 }
 0x433   : > { %3981 = vst.msk [vmem:[%s7238_s20 + $0x28] sm:$0xf] %vm3970_vm14, %v4330_v36  ;;  %v3774_v60 = vsel %vm3534_vm11, %v3486_v24, %v4264_v58  ;;  %v3385_v63 = vmul.f32 %v4967_v29, %v8154_v5 }
 0x434   : > { %3982 = vst.msk [vmem:[%s7238_s20 + $0x2c] sm:$0xf] %vm3970_vm14, %v4331_v56  ;;  %v4364_v34 = vpack.c.bf16 %v3774_v60, %v3774_v60  ;;  %v3487_v55 = vadd.f32 %v7068_v53, %v3435_v44  ;;  %v3436_v57 = vmul.f32 %v7064_v33, %v3384_v54 }
 0x435   : > { %v3437_v23 = vmul.f32 %v7064_v33, %v3385_v63 }
 0x436   : > { %4015 = vst.msk [vmem:[%s7238_s20 + $0xb0] sm:$0xf] %vm3970_vm14, %v4364_v34  ;;  %v3583_v50 = vmin.f32 %v3487_v55, 0.0  ;;  %v3488_v21 = vadd.f32 %v7068_v53, %v3436_v57  ;;  %vm3535_vm12 = vcmp.gt.f32.partialorder %v3487_v55, 0.0 }
 0x437   : > { %v3489_v38 = vadd.f32 %v7068_v53, %v3437_v23 }
 0x438   : > { %v3676_v8 = vmul.f32 1.442695, %v3583_v50  ;;  %v3584_v4 = vmin.f32 %v3488_v21, 0.0  ;;  %vm3536_vm13 = vcmp.gt.f32.partialorder %v3488_v21, 0.0 }
 0x439   : > { %v3585_v49 = vmin.f32 %v3489_v38, 0.0  ;;  %vm3537_vm15 = vcmp.gt.f32.partialorder %v3489_v38, 0.0 }
 0x43a   : > { %4968 = vpow2.f32 %v3676_v8  ;;  %v3678_v35 = vmul.f32 1.442695, %v3584_v4 }
 0x43b   : > { %v3680_v32 = vmul.f32 1.442695, %v3585_v49 }
 0x43c   : > { %4970 = vpow2.f32 %v3678_v35 }
 0x43d   : > { %4972 = vpow2.f32 %v3680_v32 }
 0x444   : > { %v4969_v40 = vpop.eup %4968 }
 0x445   : > { %v4265_v1 = vadd.f32 -1.0, %v4969_v40 }
 0x446   : > { %v4971_v33 = vpop.eup %4970 }
 0x447   : > { %v4973_v2 = vpop.eup %4972  ;;  %v3775_v19 = vsel %vm3535_vm12, %v3487_v55, %v4265_v1  ;;  %v4266_v16 = vadd.f32 -1.0, %v4971_v33 }
 0x448   : > { %v4365_v31 = vpack.c.bf16 %v3775_v19, %v3775_v19  ;;  %v4267_v53 = vadd.f32 -1.0, %v4973_v2 }
 0x449   : > { %v3776_v45 = vsel %vm3536_vm13, %v3488_v21, %v4266_v16 }
 0x44a   : > { %4016 = vst.msk [vmem:[%s7238_s20 + $0xb4] sm:$0xf] %vm3970_vm14, %v4365_v31  ;;  %v4366_v12 = vpack.c.bf16 %v3776_v45, %v3776_v45  ;;  %v3777_v24 = vsel %vm3537_vm15, %v3489_v38, %v4267_v53 }
 0x44b   : > { %v4367_v42 = vpack.c.bf16 %v3777_v24, %v3777_v24 }
 0x44c   : > { %4017 = vst.msk [vmem:[%s7238_s20 + $0xb8] sm:$0xf] %vm3970_vm14, %v4366_v12 }
 0x44d   : > { %4018 = vst.msk [vmem:[%s7238_s20 + $0xbc] sm:$0xf] %vm3970_vm14, %v4367_v42 }
 0x44e PF: > { %s14_s17 = sadd.s32 1, %s5026_s17   ;;  %s8155_s15 = smov %s5022_s16 }
 0x44f   : > { %p11_p5 = scmp.ge.s32.totalorder %s14_s17, 4   ;;  %s8156_s16 = smov %s8158_s18 }
 0x451   :  { %13 = sbr.rel (!%p11_p5) target bundleno = 2 (0x2), region = 69 }

</bundles_post_ra>
